<compile_context>
chip_gen: v6e
topology: v6e:2x2x1
jax: 0.10.0
libtpu: 0.0.40
codegen_flags: <defaults>
</compile_context>

<pallas_src>
import functools

import numpy as np
import jax
import jax.numpy as jnp
from jax.experimental import pallas as pl
from jax.experimental.pallas import tpu as pltpu

ALPHA = 0.84
VGG_WEIGHT = 0.1
EPSILON = 1e-6
SSIM_WIN = 11
SSIM_SIGMA = 1.5
SSIM_C1 = 0.01 ** 2   # (K1 * data_range)^2, data_range = 1.0
SSIM_C2 = 0.03 ** 2   # (K2 * data_range)^2

_VMEM_LIMIT = 48 * 1024 * 1024   # headroom below v7x's 64 MiB physical VMEM


# --------------------------------------------------------------------------
# Pallas kernels
# --------------------------------------------------------------------------

def _sqdiff_sum_kernel(a_ref, b_ref, o_ref, *, clamp):
    # Tiled sum of squared differences, accumulated across the grid.
    i = pl.program_id(0)

    @pl.when(i == 0)
    def _():
        o_ref[...] = jnp.zeros_like(o_ref)

    a = a_ref[...].astype(jnp.float32)
    b = b_ref[...].astype(jnp.float32)
    if clamp:
        a = jnp.clip(a, EPSILON, 1.0 - EPSILON)
        b = jnp.clip(b, EPSILON, 1.0 - EPSILON)
    d = a - b
    o_ref[...] += jnp.sum(d * d, keepdims=True)


def _conv3x3_relu_kernel(x_ref, w_ref, b_ref, o_ref, *, H, W):
    # x_ref: (1, H+2, W+2, Cin) bf16 (halo-padded NHWC image)
    # w_ref: (9, Cin, Cout) bf16, b_ref: (1, Cout) f32, o_ref: (1, H*W, Cout)
    # conv = 9 accumulated shifted-slice GEMMs (no im2col blowup in HBM).
    x = x_ref[0]
    cin = x.shape[-1]
    cout = o_ref.shape[-1]
    acc = jnp.zeros((H * W, cout), jnp.float32)
    for ky in range(3):
        for kx in range(3):
            patch = jax.lax.slice(x, (ky, kx, 0), (ky + H, kx + W, cin))
            patch = patch.reshape(H * W, cin)
            acc = acc + jnp.dot(patch, w_ref[ky * 3 + kx],
                                preferred_element_type=jnp.float32)
    o_ref[0] = jnp.maximum(acc + b_ref[...], 0.0).astype(o_ref.dtype)


def _gram_kernel(f_ref, o_ref, *, scale):
    # f_ref: (1, TILE_HW, C) bf16, reduction over HW tiles on grid axis 1.
    k = pl.program_id(1)

    @pl.when(k == 0)
    def _():
        o_ref[...] = jnp.zeros_like(o_ref)

    x = f_ref[0]
    o_ref[0] += jax.lax.dot_general(x, x, (((0,), (0,)), ((), ())),
                                    preferred_element_type=jnp.float32)

    @pl.when(k == pl.num_programs(1) - 1)
    def _():
        o_ref[...] = o_ref[...] * scale


def _ssim_sum_kernel(x_ref, y_ref, fhb_ref, fwt_ref, o_ref):
    # TILE_N channels per grid step.  x_ref/y_ref: (TILE_N*H, W) stacked
    # channel planes; fwt_ref: (W, Wo) col filter; fhb_ref: (TILE_N*Ho,
    # TILE_N*H) block-diagonal row filter so all channels share one GEMM.
    i = pl.program_id(0)

    @pl.when(i == 0)
    def _():
        o_ref[...] = jnp.zeros_like(o_ref)

    x = jnp.clip(x_ref[...], EPSILON, 1.0 - EPSILON)   # clamp fused here
    y = jnp.clip(y_ref[...], EPSILON, 1.0 - EPSILON)
    fhb = fhb_ref[...]
    fwt = fwt_ref[...]

    def blur(img):
        t = jnp.dot(img, fwt, preferred_element_type=jnp.float32)    # (TN*H, Wo)
        return jnp.dot(fhb, t, preferred_element_type=jnp.float32)   # (TN*Ho, Wo)

    mu_x = blur(x)
    mu_y = blur(y)
    sxx = blur(x * x) - mu_x * mu_x
    syy = blur(y * y) - mu_y * mu_y
    sxy = blur(x * y) - mu_x * mu_y

    lum_num = 2.0 * mu_x * mu_y + SSIM_C1
    lum_den = mu_x * mu_x + mu_y * mu_y + SSIM_C1
    cs_num = 2.0 * sxy + SSIM_C2
    cs_den = sxx + syy + SSIM_C2
    # Single EUP reciprocal of the combined denominator instead of two vdivs.
    ssim_map = (lum_num * cs_num) * pl.reciprocal(lum_den * cs_den, approx=True)
    o_ref[...] += jnp.sum(ssim_map, keepdims=True)


# --------------------------------------------------------------------------
# Wrappers around pallas_call
# --------------------------------------------------------------------------

def mse_mean(a, b, *, clamp=False):
    # Flatten to lane-dense (rows, 128), zero-pad (padding contributes 0 to the
    # squared diff), and accumulate tile partial sums across a pipelined grid.
    n = int(np.prod(a.shape))
    lanes = 128
    rows_needed = -(-n // lanes)
    tile_rows = min(512, ((rows_needed + 7) // 8) * 8)
    rows = -(-rows_needed // tile_rows) * tile_rows
    padded = rows * lanes

    a1 = a.reshape(-1)
    b1 = b.reshape(-1)
    if padded != n:
        a1 = jnp.pad(a1, (0, padded - n))
        b1 = jnp.pad(b1, (0, padded - n))
    a2 = a1.reshape(rows, lanes)
    b2 = b1.reshape(rows, lanes)

    s = pl.pallas_call(
        functools.partial(_sqdiff_sum_kernel, clamp=clamp),
        out_shape=jax.ShapeDtypeStruct((1, 1), jnp.float32),
        grid=(rows // tile_rows,),
        in_specs=[pl.BlockSpec((tile_rows, lanes), lambda i: (i, 0)),
                  pl.BlockSpec((tile_rows, lanes), lambda i: (i, 0))],
        out_specs=pl.BlockSpec((1, 1), lambda i: (0, 0)),
        compiler_params=pltpu.CompilerParams(
            dimension_semantics=("arbitrary",)),
    )(a2, b2)
    return s[0, 0] / n


def conv3x3_relu(x, w, b, *, out_dtype=jnp.bfloat16):
    # x: (B, H, W, Cin) NHWC; w: (3, 3, Cin, Cout); b: (1, Cout) f32.
    B, H, W, Cin = x.shape
    Cout = w.shape[-1]
    xp = jnp.pad(x.astype(jnp.bfloat16), ((0, 0), (1, 1), (1, 1), (0, 0)))
    wmat = w.reshape(9, Cin, Cout).astype(jnp.bfloat16)
    # TODO(synk): for very large H*W, add a halo-tiled row-band grid axis so a
    # single image plane never has to be resident in VMEM.
    out = pl.pallas_call(
        functools.partial(_conv3x3_relu_kernel, H=H, W=W),
        out_shape=jax.ShapeDtypeStruct((B, H * W, Cout), out_dtype),
        grid=(B,),
        in_specs=[
            pl.BlockSpec((1, H + 2, W + 2, Cin), lambda i: (i, 0, 0, 0)),
            pl.BlockSpec((9, Cin, Cout), lambda i: (0, 0, 0)),
            pl.BlockSpec((1, Cout), lambda i: (0, 0)),
        ],
        out_specs=pl.BlockSpec((1, H * W, Cout), lambda i: (i, 0, 0)),
        compiler_params=pltpu.CompilerParams(
            dimension_semantics=("parallel",),
            vmem_limit_bytes=_VMEM_LIMIT),
    )(xp, wmat, b)
    return out.reshape(B, H, W, Cout)


def maxpool2x2(x):
    # TODO(synk): small 2x2 max-pool kept in JAX glue (could be fused into the
    # following conv kernel's input stage to save one HBM round-trip).
    B, H, W, C = x.shape
    return x.reshape(B, H // 2, 2, W // 2, 2, C).max(axis=(2, 4))


def _largest_divisor(n, cap, multiple=8):
    for d in range(min(n, cap), 0, -1):
        if n % d == 0 and (d % multiple == 0 or d == n):
            return d
    return n


def gram_matrix(feat):
    # feat: (B, H, W, C) NHWC -> gram[b] = F^T F / (C*H*W), F = (HW, C).
    B, H, W, C = feat.shape
    HW = H * W
    f2 = feat.reshape(B, HW, C).astype(jnp.bfloat16)
    tile = _largest_divisor(HW, 512)
    nk = HW // tile
    kernel = functools.partial(_gram_kernel, scale=1.0 / float(C * H * W))
    return pl.pallas_call(
        kernel,
        out_shape=jax.ShapeDtypeStruct((B, C, C), jnp.float32),
        grid=(B, nk),
        in_specs=[pl.BlockSpec((1, tile, C), lambda b, k: (b, k, 0))],
        out_specs=pl.BlockSpec((1, C, C), lambda b, k: (b, 0, 0)),
        compiler_params=pltpu.CompilerParams(
            dimension_semantics=("parallel", "arbitrary"),
            vmem_limit_bytes=_VMEM_LIMIT),
    )(f2)


def _make_ssim_filters(H, W, tile_n):
    g = np.exp(-((np.arange(SSIM_WIN) - (SSIM_WIN - 1) / 2.0) ** 2)
               / (2.0 * SSIM_SIGMA ** 2))
    g = (g / g.sum()).astype(np.float32)
    Ho, Wo = H - SSIM_WIN + 1, W - SSIM_WIN + 1
    fh = np.zeros((Ho, H), np.float32)
    for r in range(Ho):
        fh[r, r:r + SSIM_WIN] = g
    fwt = np.zeros((W, Wo), np.float32)
    for c in range(Wo):
        fwt[c:c + SSIM_WIN, c] = g
    # Block-diagonal row filter: folds tile_n channel planes into one GEMM.
    fhb = np.zeros((tile_n * Ho, tile_n * H), np.float32)
    for n in range(tile_n):
        fhb[n * Ho:(n + 1) * Ho, n * H:(n + 1) * H] = fh
    return jnp.asarray(fhb), jnp.asarray(fwt), Ho, Wo


def ssim_mean(pred_nchw, target_nchw):
    # Standard SSIM: gaussian window 11, sigma 1.5, valid padding, per-channel.
    B, C, H, W = pred_nchw.shape
    N = B * C

    # Channels per grid step: amortize per-step overhead, keep blocks legal
    # (sublane dim multiple of 8 or full extent).
    tile_n = 1
    for t in range(min(N, max(1, 256 // H)), 0, -1):
        if N % t == 0 and (t == N or (t * H) % 8 == 0):
            tile_n = t
            break
    if tile_n != N and (tile_n * H) % 8 != 0:
        tile_n = N

    fhb, fwt, Ho, Wo = _make_ssim_filters(H, W, tile_n)
    x = pred_nchw.reshape(N * H, W).astype(jnp.float32)
    y = target_nchw.reshape(N * H, W).astype(jnp.float32)

    s = pl.pallas_call(
        _ssim_sum_kernel,
        out_shape=jax.ShapeDtypeStruct((1, 1), jnp.float32),
        grid=(N // tile_n,),
        in_specs=[
            pl.BlockSpec((tile_n * H, W), lambda i: (i, 0)),
            pl.BlockSpec((tile_n * H, W), lambda i: (i, 0)),
            pl.BlockSpec((tile_n * Ho, tile_n * H), lambda i: (0, 0)),
            pl.BlockSpec((W, Wo), lambda i: (0, 0)),
        ],
        out_specs=pl.BlockSpec((1, 1), lambda i: (0, 0)),
        compiler_params=pltpu.CompilerParams(
            dimension_semantics=("arbitrary",)),
    )(x, y, fhb, fwt)
    return s[0, 0] / float(N * Ho * Wo)


# --------------------------------------------------------------------------
# Parameters (deterministic synthetic VGG19[:9] weights) and forward pass
# --------------------------------------------------------------------------

def init_vgg_params(key):
    # TODO(synk): pretrained IMAGENET1K_V1 VGG19 weights replaced by
    # deterministic random init (no checkpoint loading in-script).
    shapes = [(3, 3, 3, 64), (3, 3, 64, 64), (3, 3, 64, 128), (3, 3, 128, 128)]
    params = []
    for s in shapes:
        key, k = jax.random.split(key)
        fan_in = s[0] * s[1] * s[2]
        w = jax.random.normal(k, s, jnp.float32) / np.sqrt(fan_in)
        b = jnp.zeros((1, s[-1]), jnp.float32)
        params.append((w, b))
    return params


def combined_loss(pred, target, vgg_params):
    # pred, target: (B, C, H, W) NCHW.  Clamp is fused into each consumer.
    B = pred.shape[0]

    mse_loss = mse_mean(pred, target, clamp=True)
    ssim_loss = 1.0 - ssim_mean(pred, target)

    # ---- VGG branch (NHWC internally, pred & target concatenated on batch) ----
    def to_rgb_nhwc(x):
        x = jnp.clip(x, EPSILON, 1.0 - EPSILON)   # folded into the transpose by XLA
        if x.shape[1] == 1:
            x = jnp.repeat(x, 3, axis=1)
        return jnp.transpose(x, (0, 2, 3, 1))

    x_all = jnp.concatenate([to_rgb_nhwc(pred), to_rgb_nhwc(target)], axis=0)

    (w1, b1), (w2, b2), (w3, b3), (w4, b4) = vgg_params
    f1 = conv3x3_relu(conv3x3_relu(x_all, w1, b1), w2, b2)   # (2B, H, W, 64)
    p1 = maxpool2x2(f1)
    f2 = conv3x3_relu(conv3x3_relu(p1, w3, b3), w4, b4)      # (2B, H/2, W/2, 128)

    fi1, ft1 = f1[:B], f1[B:]
    g1 = gram_matrix(f1)
    g2 = gram_matrix(f2)
    gi1, gt1 = g1[:B], g1[B:]
    gi2, gt2 = g2[:B], g2[B:]

    content_loss = mse_mean(fi1, ft1)
    style_loss = mse_mean(gi1, gt1) + mse_mean(gi2, gt2)
    vgg_loss = content_loss + style_loss

    total = (ALPHA * mse_loss
             + (1.0 - ALPHA) * ssim_loss
             + VGG_WEIGHT * vgg_loss)
    # NaN/Inf guard (torch version prints and returns 0.0)
    total = jnp.where(jnp.isnan(total) | jnp.isinf(total),
                      jnp.float32(0.0), total)
    return total


if __name__ == "__main__":
    key = jax.random.PRNGKey(0)
    k1, k2, k3 = jax.random.split(key, 3)
    B, C, H, W = 2, 1, 16, 16           # single-channel (BraTS-style) images
    pred = jax.random.uniform(k1, (B, C, H, W), jnp.float32)
    target = jax.random.uniform(k2, (B, C, H, W), jnp.float32)
    vgg_params = init_vgg_params(k3)

    loss = jax.jit(combined_loss)(pred, target, vgg_params)
    jax.block_until_ready(loss)
    print("KERNEL_OK")
</pallas_src>

<mosaic_0001>
module attributes {stable_mosaic.version = 11 : i64} {
  func.func @_conv3x3_relu_kernel(%arg0: i32, %arg1: memref<1x18x18x3xbf16, #tpu.memory_space<vmem>>, %arg2: memref<9x3x64xbf16, #tpu.memory_space<vmem>>, %arg3: memref<1x64xf32, #tpu.memory_space<vmem>>, %arg4: memref<1x256x64xbf16, #tpu.memory_space<vmem>>) attributes {dimension_semantics = [#tpu.dimension_semantics<parallel>], iteration_bounds = array<i64: 4>, scalar_prefetch = 0 : i64, scratch_operands = 0 : i64, tpu.core_type = #tpu.core_type<tc>, window_params = [{transform_indices = @transform_0, window_bounds = array<i64: 1, 18, 18, 3>}, {pipeline_mode = #tpu.pipeline_mode<synchronous>, transform_indices = @transform_1, window_bounds = array<i64: 9, 3, 64>}, {pipeline_mode = #tpu.pipeline_mode<synchronous>, transform_indices = @transform_2, window_bounds = array<i64: 1, 64>}, {transform_indices = @transform_3, window_bounds = array<i64: 1, 256, 64>}]} {
    %c0 = arith.constant 0 : index
    %c0_0 = arith.constant 0 : index
    %c0_1 = arith.constant 0 : index
    %c0_2 = arith.constant 0 : index
    %0 = vector.load %arg1[%c0, %c0_0, %c0_1, %c0_2] : memref<1x18x18x3xbf16, #tpu.memory_space<vmem>>, vector<1x18x18x3xbf16>
    %1 = vector.shape_cast %0 : vector<1x18x18x3xbf16> to vector<18x18x3xbf16>
    %cst = arith.constant 0.000000e+00 : f32
    %2 = vector.broadcast %cst : f32 to vector<256x64xf32>
    %3 = vector.extract_strided_slice %1 {offsets = [0, 0, 0], sizes = [16, 16, 3], strides = [1, 1, 1]} : vector<18x18x3xbf16> to vector<16x16x3xbf16>
    %4 = vector.shape_cast %3 : vector<16x16x3xbf16> to vector<256x3xbf16>
    %c0_3 = arith.constant 0 : index
    %c0_4 = arith.constant 0 : index
    %c0_5 = arith.constant 0 : index
    %5 = vector.load %arg2[%c0_3, %c0_4, %c0_5] : memref<9x3x64xbf16, #tpu.memory_space<vmem>>, vector<1x3x64xbf16>
    %6 = vector.shape_cast %5 : vector<1x3x64xbf16> to vector<3x64xbf16>
    %cst_6 = arith.constant dense<0.000000e+00> : vector<256x64xf32>
    %7 = tpu.matmul %4, %6, %cst_6 {dimension_numbers = #tpu.dot_dimension_numbers<[1], [0], [0], [1], [0, 0, 1, 1], [], []>} : vector<256x3xbf16>, vector<3x64xbf16>, vector<256x64xf32> -> vector<256x64xf32>
    %8 = arith.addf %2, %7 : vector<256x64xf32>
    %9 = vector.extract_strided_slice %1 {offsets = [0, 1, 0], sizes = [16, 16, 3], strides = [1, 1, 1]} : vector<18x18x3xbf16> to vector<16x16x3xbf16>
    %10 = vector.shape_cast %9 : vector<16x16x3xbf16> to vector<256x3xbf16>
    %c1 = arith.constant 1 : index
    %c0_7 = arith.constant 0 : index
    %c0_8 = arith.constant 0 : index
    %11 = vector.load %arg2[%c1, %c0_7, %c0_8] : memref<9x3x64xbf16, #tpu.memory_space<vmem>>, vector<1x3x64xbf16>
    %12 = vector.shape_cast %11 : vector<1x3x64xbf16> to vector<3x64xbf16>
    %cst_9 = arith.constant dense<0.000000e+00> : vector<256x64xf32>
    %13 = tpu.matmul %10, %12, %cst_9 {dimension_numbers = #tpu.dot_dimension_numbers<[1], [0], [0], [1], [0, 0, 1, 1], [], []>} : vector<256x3xbf16>, vector<3x64xbf16>, vector<256x64xf32> -> vector<256x64xf32>
    %14 = arith.addf %8, %13 : vector<256x64xf32>
    %15 = vector.extract_strided_slice %1 {offsets = [0, 2, 0], sizes = [16, 16, 3], strides = [1, 1, 1]} : vector<18x18x3xbf16> to vector<16x16x3xbf16>
    %16 = vector.shape_cast %15 : vector<16x16x3xbf16> to vector<256x3xbf16>
    %c2 = arith.constant 2 : index
    %c0_10 = arith.constant 0 : index
    %c0_11 = arith.constant 0 : index
    %17 = vector.load %arg2[%c2, %c0_10, %c0_11] : memref<9x3x64xbf16, #tpu.memory_space<vmem>>, vector<1x3x64xbf16>
    %18 = vector.shape_cast %17 : vector<1x3x64xbf16> to vector<3x64xbf16>
    %cst_12 = arith.constant dense<0.000000e+00> : vector<256x64xf32>
    %19 = tpu.matmul %16, %18, %cst_12 {dimension_numbers = #tpu.dot_dimension_numbers<[1], [0], [0], [1], [0, 0, 1, 1], [], []>} : vector<256x3xbf16>, vector<3x64xbf16>, vector<256x64xf32> -> vector<256x64xf32>
    %20 = arith.addf %14, %19 : vector<256x64xf32>
    %21 = vector.extract_strided_slice %1 {offsets = [1, 0, 0], sizes = [16, 16, 3], strides = [1, 1, 1]} : vector<18x18x3xbf16> to vector<16x16x3xbf16>
    %22 = vector.shape_cast %21 : vector<16x16x3xbf16> to vector<256x3xbf16>
    %c3 = arith.constant 3 : index
    %c0_13 = arith.constant 0 : index
    %c0_14 = arith.constant 0 : index
    %23 = vector.load %arg2[%c3, %c0_13, %c0_14] : memref<9x3x64xbf16, #tpu.memory_space<vmem>>, vector<1x3x64xbf16>
    %24 = vector.shape_cast %23 : vector<1x3x64xbf16> to vector<3x64xbf16>
    %cst_15 = arith.constant dense<0.000000e+00> : vector<256x64xf32>
    %25 = tpu.matmul %22, %24, %cst_15 {dimension_numbers = #tpu.dot_dimension_numbers<[1], [0], [0], [1], [0, 0, 1, 1], [], []>} : vector<256x3xbf16>, vector<3x64xbf16>, vector<256x64xf32> -> vector<256x64xf32>
    %26 = arith.addf %20, %25 : vector<256x64xf32>
    %27 = vector.extract_strided_slice %1 {offsets = [1, 1, 0], sizes = [16, 16, 3], strides = [1, 1, 1]} : vector<18x18x3xbf16> to vector<16x16x3xbf16>
    %28 = vector.shape_cast %27 : vector<16x16x3xbf16> to vector<256x3xbf16>
    %c4 = arith.constant 4 : index
    %c0_16 = arith.constant 0 : index
    %c0_17 = arith.constant 0 : index
    %29 = vector.load %arg2[%c4, %c0_16, %c0_17] : memref<9x3x64xbf16, #tpu.memory_space<vmem>>, vector<1x3x64xbf16>
    %30 = vector.shape_cast %29 : vector<1x3x64xbf16> to vector<3x64xbf16>
    %cst_18 = arith.constant dense<0.000000e+00> : vector<256x64xf32>
    %31 = tpu.matmul %28, %30, %cst_18 {dimension_numbers = #tpu.dot_dimension_numbers<[1], [0], [0], [1], [0, 0, 1, 1], [], []>} : vector<256x3xbf16>, vector<3x64xbf16>, vector<256x64xf32> -> vector<256x64xf32>
    %32 = arith.addf %26, %31 : vector<256x64xf32>
    %33 = vector.extract_strided_slice %1 {offsets = [1, 2, 0], sizes = [16, 16, 3], strides = [1, 1, 1]} : vector<18x18x3xbf16> to vector<16x16x3xbf16>
    %34 = vector.shape_cast %33 : vector<16x16x3xbf16> to vector<256x3xbf16>
    %c5 = arith.constant 5 : index
    %c0_19 = arith.constant 0 : index
    %c0_20 = arith.constant 0 : index
    %35 = vector.load %arg2[%c5, %c0_19, %c0_20] : memref<9x3x64xbf16, #tpu.memory_space<vmem>>, vector<1x3x64xbf16>
    %36 = vector.shape_cast %35 : vector<1x3x64xbf16> to vector<3x64xbf16>
    %cst_21 = arith.constant dense<0.000000e+00> : vector<256x64xf32>
    %37 = tpu.matmul %34, %36, %cst_21 {dimension_numbers = #tpu.dot_dimension_numbers<[1], [0], [0], [1], [0, 0, 1, 1], [], []>} : vector<256x3xbf16>, vector<3x64xbf16>, vector<256x64xf32> -> vector<256x64xf32>
    %38 = arith.addf %32, %37 : vector<256x64xf32>
    %39 = vector.extract_strided_slice %1 {offsets = [2, 0, 0], sizes = [16, 16, 3], strides = [1, 1, 1]} : vector<18x18x3xbf16> to vector<16x16x3xbf16>
    %40 = vector.shape_cast %39 : vector<16x16x3xbf16> to vector<256x3xbf16>
    %c6 = arith.constant 6 : index
    %c0_22 = arith.constant 0 : index
    %c0_23 = arith.constant 0 : index
    %41 = vector.load %arg2[%c6, %c0_22, %c0_23] : memref<9x3x64xbf16, #tpu.memory_space<vmem>>, vector<1x3x64xbf16>
    %42 = vector.shape_cast %41 : vector<1x3x64xbf16> to vector<3x64xbf16>
    %cst_24 = arith.constant dense<0.000000e+00> : vector<256x64xf32>
    %43 = tpu.matmul %40, %42, %cst_24 {dimension_numbers = #tpu.dot_dimension_numbers<[1], [0], [0], [1], [0, 0, 1, 1], [], []>} : vector<256x3xbf16>, vector<3x64xbf16>, vector<256x64xf32> -> vector<256x64xf32>
    %44 = arith.addf %38, %43 : vector<256x64xf32>
    %45 = vector.extract_strided_slice %1 {offsets = [2, 1, 0], sizes = [16, 16, 3], strides = [1, 1, 1]} : vector<18x18x3xbf16> to vector<16x16x3xbf16>
    %46 = vector.shape_cast %45 : vector<16x16x3xbf16> to vector<256x3xbf16>
    %c7 = arith.constant 7 : index
    %c0_25 = arith.constant 0 : index
    %c0_26 = arith.constant 0 : index
    %47 = vector.load %arg2[%c7, %c0_25, %c0_26] : memref<9x3x64xbf16, #tpu.memory_space<vmem>>, vector<1x3x64xbf16>
    %48 = vector.shape_cast %47 : vector<1x3x64xbf16> to vector<3x64xbf16>
    %cst_27 = arith.constant dense<0.000000e+00> : vector<256x64xf32>
    %49 = tpu.matmul %46, %48, %cst_27 {dimension_numbers = #tpu.dot_dimension_numbers<[1], [0], [0], [1], [0, 0, 1, 1], [], []>} : vector<256x3xbf16>, vector<3x64xbf16>, vector<256x64xf32> -> vector<256x64xf32>
    %50 = arith.addf %44, %49 : vector<256x64xf32>
    %51 = vector.extract_strided_slice %1 {offsets = [2, 2, 0], sizes = [16, 16, 3], strides = [1, 1, 1]} : vector<18x18x3xbf16> to vector<16x16x3xbf16>
    %52 = vector.shape_cast %51 : vector<16x16x3xbf16> to vector<256x3xbf16>
    %c8 = arith.constant 8 : index
    %c0_28 = arith.constant 0 : index
    %c0_29 = arith.constant 0 : index
    %53 = vector.load %arg2[%c8, %c0_28, %c0_29] : memref<9x3x64xbf16, #tpu.memory_space<vmem>>, vector<1x3x64xbf16>
    %54 = vector.shape_cast %53 : vector<1x3x64xbf16> to vector<3x64xbf16>
    %cst_30 = arith.constant dense<0.000000e+00> : vector<256x64xf32>
    %55 = tpu.matmul %52, %54, %cst_30 {dimension_numbers = #tpu.dot_dimension_numbers<[1], [0], [0], [1], [0, 0, 1, 1], [], []>} : vector<256x3xbf16>, vector<3x64xbf16>, vector<256x64xf32> -> vector<256x64xf32>
    %56 = arith.addf %50, %55 : vector<256x64xf32>
    %c0_31 = arith.constant 0 : index
    %c0_32 = arith.constant 0 : index
    %57 = vector.load %arg3[%c0_31, %c0_32] : memref<1x64xf32, #tpu.memory_space<vmem>>, vector<1x64xf32>
    %58 = vector.broadcast %57 : vector<1x64xf32> to vector<256x64xf32>
    %59 = arith.addf %56, %58 : vector<256x64xf32>
    %cst_33 = arith.constant 0.000000e+00 : f32
    %60 = vector.broadcast %cst_33 : f32 to vector<256x64xf32>
    %61 = arith.maximumf %59, %60 : vector<256x64xf32>
    %62 = arith.truncf %61 : vector<256x64xf32> to vector<256x64xbf16>
    %c0_34 = arith.constant 0 : index
    %c0_35 = arith.constant 0 : index
    %c0_36 = arith.constant 0 : index
    %63 = vector.load %arg4[%c0_34, %c0_35, %c0_36] : memref<1x256x64xbf16, #tpu.memory_space<vmem>>, vector<1x256x64xbf16>
    %64 = vector.shape_cast %63 : vector<1x256x64xbf16> to vector<256x64xbf16>
    %65 = vector.shape_cast %62 : vector<256x64xbf16> to vector<1x256x64xbf16>
    tpu.vector_store %arg4[%c0_34, %c0_35, %c0_36], %65 {strides = array<i32>} : memref<1x256x64xbf16, #tpu.memory_space<vmem>>, vector<1x256x64xbf16>,
    return
  }
  func.func @transform_0(%arg0: i32) -> (i32, i32, i32, i32) {
    %c0_i32 = arith.constant 0 : i32
    %c0_i32_0 = arith.constant 0 : i32
    %c0_i32_1 = arith.constant 0 : i32
    %c0_i32_2 = arith.constant 0 : i32
    return %arg0, %c0_i32, %c0_i32_0, %c0_i32_1 : i32, i32, i32, i32
  }
  func.func @transform_1(%arg0: i32) -> (i32, i32, i32) {
    %c0_i32 = arith.constant 0 : i32
    %c0_i32_0 = arith.constant 0 : i32
    %c0_i32_1 = arith.constant 0 : i32
    %c0_i32_2 = arith.constant 0 : i32
    return %c0_i32, %c0_i32_0, %c0_i32_1 : i32, i32, i32
  }
  func.func @transform_2(%arg0: i32) -> (i32, i32) {
    %c0_i32 = arith.constant 0 : i32
    %c0_i32_0 = arith.constant 0 : i32
    %c0_i32_1 = arith.constant 0 : i32
    return %c0_i32, %c0_i32_0 : i32, i32
  }
  func.func @transform_3(%arg0: i32) -> (i32, i32, i32) {
    %c0_i32 = arith.constant 0 : i32
    %c0_i32_0 = arith.constant 0 : i32
    %c0_i32_1 = arith.constant 0 : i32
    return %arg0, %c0_i32, %c0_i32_0 : i32, i32, i32
  }
}

module attributes {stable_mosaic.version = 11 : i64} {
  func.func @_conv3x3_relu_kernel(%arg0: i32, %arg1: memref<1x18x18x64xbf16, #tpu.memory_space<vmem>>, %arg2: memref<9x64x64xbf16, #tpu.memory_space<vmem>>, %arg3: memref<1x64xf32, #tpu.memory_space<vmem>>, %arg4: memref<1x256x64xbf16, #tpu.memory_space<vmem>>) attributes {dimension_semantics = [#tpu.dimension_semantics<parallel>], iteration_bounds = array<i64: 4>, scalar_prefetch = 0 : i64, scratch_operands = 0 : i64, tpu.core_type = #tpu.core_type<tc>, window_params = [{transform_indices = @transform_0, window_bounds = array<i64: 1, 18, 18, 64>}, {pipeline_mode = #tpu.pipeline_mode<synchronous>, transform_indices = @transform_1, window_bounds = array<i64: 9, 64, 64>}, {pipeline_mode = #tpu.pipeline_mode<synchronous>, transform_indices = @transform_2, window_bounds = array<i64: 1, 64>}, {transform_indices = @transform_3, window_bounds = array<i64: 1, 256, 64>}]} {
    %c0 = arith.constant 0 : index
    %c0_0 = arith.constant 0 : index
    %c0_1 = arith.constant 0 : index
    %c0_2 = arith.constant 0 : index
    %0 = vector.load %arg1[%c0, %c0_0, %c0_1, %c0_2] : memref<1x18x18x64xbf16, #tpu.memory_space<vmem>>, vector<1x18x18x64xbf16>
    %1 = vector.shape_cast %0 : vector<1x18x18x64xbf16> to vector<18x18x64xbf16>
    %cst = arith.constant 0.000000e+00 : f32
    %2 = vector.broadcast %cst : f32 to vector<256x64xf32>
    %3 = vector.extract_strided_slice %1 {offsets = [0, 0, 0], sizes = [16, 16, 64], strides = [1, 1, 1]} : vector<18x18x64xbf16> to vector<16x16x64xbf16>
    %4 = vector.shape_cast %3 : vector<16x16x64xbf16> to vector<256x64xbf16>
    %c0_3 = arith.constant 0 : index
    %c0_4 = arith.constant 0 : index
    %c0_5 = arith.constant 0 : index
    %5 = vector.load %arg2[%c0_3, %c0_4, %c0_5] : memref<9x64x64xbf16, #tpu.memory_space<vmem>>, vector<1x64x64xbf16>
    %6 = vector.shape_cast %5 : vector<1x64x64xbf16> to vector<64x64xbf16>
    %cst_6 = arith.constant dense<0.000000e+00> : vector<256x64xf32>
    %7 = tpu.matmul %4, %6, %cst_6 {dimension_numbers = #tpu.dot_dimension_numbers<[1], [0], [0], [1], [0, 0, 1, 1], [], []>} : vector<256x64xbf16>, vector<64x64xbf16>, vector<256x64xf32> -> vector<256x64xf32>
    %8 = arith.addf %2, %7 : vector<256x64xf32>
    %9 = vector.extract_strided_slice %1 {offsets = [0, 1, 0], sizes = [16, 16, 64], strides = [1, 1, 1]} : vector<18x18x64xbf16> to vector<16x16x64xbf16>
    %10 = vector.shape_cast %9 : vector<16x16x64xbf16> to vector<256x64xbf16>
    %c1 = arith.constant 1 : index
    %c0_7 = arith.constant 0 : index
    %c0_8 = arith.constant 0 : index
    %11 = vector.load %arg2[%c1, %c0_7, %c0_8] : memref<9x64x64xbf16, #tpu.memory_space<vmem>>, vector<1x64x64xbf16>
    %12 = vector.shape_cast %11 : vector<1x64x64xbf16> to vector<64x64xbf16>
    %cst_9 = arith.constant dense<0.000000e+00> : vector<256x64xf32>
    %13 = tpu.matmul %10, %12, %cst_9 {dimension_numbers = #tpu.dot_dimension_numbers<[1], [0], [0], [1], [0, 0, 1, 1], [], []>} : vector<256x64xbf16>, vector<64x64xbf16>, vector<256x64xf32> -> vector<256x64xf32>
    %14 = arith.addf %8, %13 : vector<256x64xf32>
    %15 = vector.extract_strided_slice %1 {offsets = [0, 2, 0], sizes = [16, 16, 64], strides = [1, 1, 1]} : vector<18x18x64xbf16> to vector<16x16x64xbf16>
    %16 = vector.shape_cast %15 : vector<16x16x64xbf16> to vector<256x64xbf16>
    %c2 = arith.constant 2 : index
    %c0_10 = arith.constant 0 : index
    %c0_11 = arith.constant 0 : index
    %17 = vector.load %arg2[%c2, %c0_10, %c0_11] : memref<9x64x64xbf16, #tpu.memory_space<vmem>>, vector<1x64x64xbf16>
    %18 = vector.shape_cast %17 : vector<1x64x64xbf16> to vector<64x64xbf16>
    %cst_12 = arith.constant dense<0.000000e+00> : vector<256x64xf32>
    %19 = tpu.matmul %16, %18, %cst_12 {dimension_numbers = #tpu.dot_dimension_numbers<[1], [0], [0], [1], [0, 0, 1, 1], [], []>} : vector<256x64xbf16>, vector<64x64xbf16>, vector<256x64xf32> -> vector<256x64xf32>
    %20 = arith.addf %14, %19 : vector<256x64xf32>
    %21 = vector.extract_strided_slice %1 {offsets = [1, 0, 0], sizes = [16, 16, 64], strides = [1, 1, 1]} : vector<18x18x64xbf16> to vector<16x16x64xbf16>
    %22 = vector.shape_cast %21 : vector<16x16x64xbf16> to vector<256x64xbf16>
    %c3 = arith.constant 3 : index
    %c0_13 = arith.constant 0 : index
    %c0_14 = arith.constant 0 : index
    %23 = vector.load %arg2[%c3, %c0_13, %c0_14] : memref<9x64x64xbf16, #tpu.memory_space<vmem>>, vector<1x64x64xbf16>
    %24 = vector.shape_cast %23 : vector<1x64x64xbf16> to vector<64x64xbf16>
    %cst_15 = arith.constant dense<0.000000e+00> : vector<256x64xf32>
    %25 = tpu.matmul %22, %24, %cst_15 {dimension_numbers = #tpu.dot_dimension_numbers<[1], [0], [0], [1], [0, 0, 1, 1], [], []>} : vector<256x64xbf16>, vector<64x64xbf16>, vector<256x64xf32> -> vector<256x64xf32>
    %26 = arith.addf %20, %25 : vector<256x64xf32>
    %27 = vector.extract_strided_slice %1 {offsets = [1, 1, 0], sizes = [16, 16, 64], strides = [1, 1, 1]} : vector<18x18x64xbf16> to vector<16x16x64xbf16>
    %28 = vector.shape_cast %27 : vector<16x16x64xbf16> to vector<256x64xbf16>
    %c4 = arith.constant 4 : index
    %c0_16 = arith.constant 0 : index
    %c0_17 = arith.constant 0 : index
    %29 = vector.load %arg2[%c4, %c0_16, %c0_17] : memref<9x64x64xbf16, #tpu.memory_space<vmem>>, vector<1x64x64xbf16>
    %30 = vector.shape_cast %29 : vector<1x64x64xbf16> to vector<64x64xbf16>
    %cst_18 = arith.constant dense<0.000000e+00> : vector<256x64xf32>
    %31 = tpu.matmul %28, %30, %cst_18 {dimension_numbers = #tpu.dot_dimension_numbers<[1], [0], [0], [1], [0, 0, 1, 1], [], []>} : vector<256x64xbf16>, vector<64x64xbf16>, vector<256x64xf32> -> vector<256x64xf32>
    %32 = arith.addf %26, %31 : vector<256x64xf32>
    %33 = vector.extract_strided_slice %1 {offsets = [1, 2, 0], sizes = [16, 16, 64], strides = [1, 1, 1]} : vector<18x18x64xbf16> to vector<16x16x64xbf16>
    %34 = vector.shape_cast %33 : vector<16x16x64xbf16> to vector<256x64xbf16>
    %c5 = arith.constant 5 : index
    %c0_19 = arith.constant 0 : index
    %c0_20 = arith.constant 0 : index
    %35 = vector.load %arg2[%c5, %c0_19, %c0_20] : memref<9x64x64xbf16, #tpu.memory_space<vmem>>, vector<1x64x64xbf16>
    %36 = vector.shape_cast %35 : vector<1x64x64xbf16> to vector<64x64xbf16>
    %cst_21 = arith.constant dense<0.000000e+00> : vector<256x64xf32>
    %37 = tpu.matmul %34, %36, %cst_21 {dimension_numbers = #tpu.dot_dimension_numbers<[1], [0], [0], [1], [0, 0, 1, 1], [], []>} : vector<256x64xbf16>, vector<64x64xbf16>, vector<256x64xf32> -> vector<256x64xf32>
    %38 = arith.addf %32, %37 : vector<256x64xf32>
    %39 = vector.extract_strided_slice %1 {offsets = [2, 0, 0], sizes = [16, 16, 64], strides = [1, 1, 1]} : vector<18x18x64xbf16> to vector<16x16x64xbf16>
    %40 = vector.shape_cast %39 : vector<16x16x64xbf16> to vector<256x64xbf16>
    %c6 = arith.constant 6 : index
    %c0_22 = arith.constant 0 : index
    %c0_23 = arith.constant 0 : index
    %41 = vector.load %arg2[%c6, %c0_22, %c0_23] : memref<9x64x64xbf16, #tpu.memory_space<vmem>>, vector<1x64x64xbf16>
    %42 = vector.shape_cast %41 : vector<1x64x64xbf16> to vector<64x64xbf16>
    %cst_24 = arith.constant dense<0.000000e+00> : vector<256x64xf32>
    %43 = tpu.matmul %40, %42, %cst_24 {dimension_numbers = #tpu.dot_dimension_numbers<[1], [0], [0], [1], [0, 0, 1, 1], [], []>} : vector<256x64xbf16>, vector<64x64xbf16>, vector<256x64xf32> -> vector<256x64xf32>
    %44 = arith.addf %38, %43 : vector<256x64xf32>
    %45 = vector.extract_strided_slice %1 {offsets = [2, 1, 0], sizes = [16, 16, 64], strides = [1, 1, 1]} : vector<18x18x64xbf16> to vector<16x16x64xbf16>
    %46 = vector.shape_cast %45 : vector<16x16x64xbf16> to vector<256x64xbf16>
    %c7 = arith.constant 7 : index
    %c0_25 = arith.constant 0 : index
    %c0_26 = arith.constant 0 : index
    %47 = vector.load %arg2[%c7, %c0_25, %c0_26] : memref<9x64x64xbf16, #tpu.memory_space<vmem>>, vector<1x64x64xbf16>
    %48 = vector.shape_cast %47 : vector<1x64x64xbf16> to vector<64x64xbf16>
    %cst_27 = arith.constant dense<0.000000e+00> : vector<256x64xf32>
    %49 = tpu.matmul %46, %48, %cst_27 {dimension_numbers = #tpu.dot_dimension_numbers<[1], [0], [0], [1], [0, 0, 1, 1], [], []>} : vector<256x64xbf16>, vector<64x64xbf16>, vector<256x64xf32> -> vector<256x64xf32>
    %50 = arith.addf %44, %49 : vector<256x64xf32>
    %51 = vector.extract_strided_slice %1 {offsets = [2, 2, 0], sizes = [16, 16, 64], strides = [1, 1, 1]} : vector<18x18x64xbf16> to vector<16x16x64xbf16>
    %52 = vector.shape_cast %51 : vector<16x16x64xbf16> to vector<256x64xbf16>
    %c8 = arith.constant 8 : index
    %c0_28 = arith.constant 0 : index
    %c0_29 = arith.constant 0 : index
    %53 = vector.load %arg2[%c8, %c0_28, %c0_29] : memref<9x64x64xbf16, #tpu.memory_space<vmem>>, vector<1x64x64xbf16>
    %54 = vector.shape_cast %53 : vector<1x64x64xbf16> to vector<64x64xbf16>
    %cst_30 = arith.constant dense<0.000000e+00> : vector<256x64xf32>
    %55 = tpu.matmul %52, %54, %cst_30 {dimension_numbers = #tpu.dot_dimension_numbers<[1], [0], [0], [1], [0, 0, 1, 1], [], []>} : vector<256x64xbf16>, vector<64x64xbf16>, vector<256x64xf32> -> vector<256x64xf32>
    %56 = arith.addf %50, %55 : vector<256x64xf32>
    %c0_31 = arith.constant 0 : index
    %c0_32 = arith.constant 0 : index
    %57 = vector.load %arg3[%c0_31, %c0_32] : memref<1x64xf32, #tpu.memory_space<vmem>>, vector<1x64xf32>
    %58 = vector.broadcast %57 : vector<1x64xf32> to vector<256x64xf32>
    %59 = arith.addf %56, %58 : vector<256x64xf32>
    %cst_33 = arith.constant 0.000000e+00 : f32
    %60 = vector.broadcast %cst_33 : f32 to vector<256x64xf32>
    %61 = arith.maximumf %59, %60 : vector<256x64xf32>
    %62 = arith.truncf %61 : vector<256x64xf32> to vector<256x64xbf16>
    %c0_34 = arith.constant 0 : index
    %c0_35 = arith.constant 0 : index
    %c0_36 = arith.constant 0 : index
    %63 = vector.load %arg4[%c0_34, %c0_35, %c0_36] : memref<1x256x64xbf16, #tpu.memory_space<vmem>>, vector<1x256x64xbf16>
    %64 = vector.shape_cast %63 : vector<1x256x64xbf16> to vector<256x64xbf16>
    %65 = vector.shape_cast %62 : vector<256x64xbf16> to vector<1x256x64xbf16>
    tpu.vector_store %arg4[%c0_34, %c0_35, %c0_36], %65 {strides = array<i32>} : memref<1x256x64xbf16, #tpu.memory_space<vmem>>, vector<1x256x64xbf16>,
    return
  }
  func.func @transform_0(%arg0: i32) -> (i32, i32, i32, i32) {
    %c0_i32 = arith.constant 0 : i32
    %c0_i32_0 = arith.constant 0 : i32
    %c0_i32_1 = arith.constant 0 : i32
    %c0_i32_2 = arith.constant 0 : i32
    return %arg0, %c0_i32, %c0_i32_0, %c0_i32_1 : i32, i32, i32, i32
  }
  func.func @transform_1(%arg0: i32) -> (i32, i32, i32) {
    %c0_i32 = arith.constant 0 : i32
    %c0_i32_0 = arith.constant 0 : i32
    %c0_i32_1 = arith.constant 0 : i32
    %c0_i32_2 = arith.constant 0 : i32
    return %c0_i32, %c0_i32_0, %c0_i32_1 : i32, i32, i32
  }
  func.func @transform_2(%arg0: i32) -> (i32, i32) {
    %c0_i32 = arith.constant 0 : i32
    %c0_i32_0 = arith.constant 0 : i32
    %c0_i32_1 = arith.constant 0 : i32
    return %c0_i32, %c0_i32_0 : i32, i32
  }
  func.func @transform_3(%arg0: i32) -> (i32, i32, i32) {
    %c0_i32 = arith.constant 0 : i32
    %c0_i32_0 = arith.constant 0 : i32
    %c0_i32_1 = arith.constant 0 : i32
    return %arg0, %c0_i32, %c0_i32_0 : i32, i32, i32
  }
}

module attributes {stable_mosaic.version = 11 : i64} {
  func.func @_conv3x3_relu_kernel(%arg0: i32, %arg1: memref<1x10x10x64xbf16, #tpu.memory_space<vmem>>, %arg2: memref<9x64x128xbf16, #tpu.memory_space<vmem>>, %arg3: memref<1x128xf32, #tpu.memory_space<vmem>>, %arg4: memref<1x64x128xbf16, #tpu.memory_space<vmem>>) attributes {dimension_semantics = [#tpu.dimension_semantics<parallel>], iteration_bounds = array<i64: 4>, scalar_prefetch = 0 : i64, scratch_operands = 0 : i64, tpu.core_type = #tpu.core_type<tc>, window_params = [{transform_indices = @transform_0, window_bounds = array<i64: 1, 10, 10, 64>}, {pipeline_mode = #tpu.pipeline_mode<synchronous>, transform_indices = @transform_1, window_bounds = array<i64: 9, 64, 128>}, {pipeline_mode = #tpu.pipeline_mode<synchronous>, transform_indices = @transform_2, window_bounds = array<i64: 1, 128>}, {transform_indices = @transform_3, window_bounds = array<i64: 1, 64, 128>}]} {
    %c0 = arith.constant 0 : index
    %c0_0 = arith.constant 0 : index
    %c0_1 = arith.constant 0 : index
    %c0_2 = arith.constant 0 : index
    %0 = vector.load %arg1[%c0, %c0_0, %c0_1, %c0_2] : memref<1x10x10x64xbf16, #tpu.memory_space<vmem>>, vector<1x10x10x64xbf16>
    %1 = vector.shape_cast %0 : vector<1x10x10x64xbf16> to vector<10x10x64xbf16>
    %cst = arith.constant 0.000000e+00 : f32
    %2 = vector.broadcast %cst : f32 to vector<64x128xf32>
    %3 = vector.extract_strided_slice %1 {offsets = [0, 0, 0], sizes = [8, 8, 64], strides = [1, 1, 1]} : vector<10x10x64xbf16> to vector<8x8x64xbf16>
    %4 = vector.shape_cast %3 : vector<8x8x64xbf16> to vector<64x64xbf16>
    %c0_3 = arith.constant 0 : index
    %c0_4 = arith.constant 0 : index
    %c0_5 = arith.constant 0 : index
    %5 = vector.load %arg2[%c0_3, %c0_4, %c0_5] : memref<9x64x128xbf16, #tpu.memory_space<vmem>>, vector<1x64x128xbf16>
    %6 = vector.shape_cast %5 : vector<1x64x128xbf16> to vector<64x128xbf16>
    %cst_6 = arith.constant dense<0.000000e+00> : vector<64x128xf32>
    %7 = tpu.matmul %4, %6, %cst_6 {dimension_numbers = #tpu.dot_dimension_numbers<[1], [0], [0], [1], [0, 0, 1, 1], [], []>} : vector<64x64xbf16>, vector<64x128xbf16>, vector<64x128xf32> -> vector<64x128xf32>
    %8 = arith.addf %2, %7 : vector<64x128xf32>
    %9 = vector.extract_strided_slice %1 {offsets = [0, 1, 0], sizes = [8, 8, 64], strides = [1, 1, 1]} : vector<10x10x64xbf16> to vector<8x8x64xbf16>
    %10 = vector.shape_cast %9 : vector<8x8x64xbf16> to vector<64x64xbf16>
    %c1 = arith.constant 1 : index
    %c0_7 = arith.constant 0 : index
    %c0_8 = arith.constant 0 : index
    %11 = vector.load %arg2[%c1, %c0_7, %c0_8] : memref<9x64x128xbf16, #tpu.memory_space<vmem>>, vector<1x64x128xbf16>
    %12 = vector.shape_cast %11 : vector<1x64x128xbf16> to vector<64x128xbf16>
    %cst_9 = arith.constant dense<0.000000e+00> : vector<64x128xf32>
    %13 = tpu.matmul %10, %12, %cst_9 {dimension_numbers = #tpu.dot_dimension_numbers<[1], [0], [0], [1], [0, 0, 1, 1], [], []>} : vector<64x64xbf16>, vector<64x128xbf16>, vector<64x128xf32> -> vector<64x128xf32>
    %14 = arith.addf %8, %13 : vector<64x128xf32>
    %15 = vector.extract_strided_slice %1 {offsets = [0, 2, 0], sizes = [8, 8, 64], strides = [1, 1, 1]} : vector<10x10x64xbf16> to vector<8x8x64xbf16>
    %16 = vector.shape_cast %15 : vector<8x8x64xbf16> to vector<64x64xbf16>
    %c2 = arith.constant 2 : index
    %c0_10 = arith.constant 0 : index
    %c0_11 = arith.constant 0 : index
    %17 = vector.load %arg2[%c2, %c0_10, %c0_11] : memref<9x64x128xbf16, #tpu.memory_space<vmem>>, vector<1x64x128xbf16>
    %18 = vector.shape_cast %17 : vector<1x64x128xbf16> to vector<64x128xbf16>
    %cst_12 = arith.constant dense<0.000000e+00> : vector<64x128xf32>
    %19 = tpu.matmul %16, %18, %cst_12 {dimension_numbers = #tpu.dot_dimension_numbers<[1], [0], [0], [1], [0, 0, 1, 1], [], []>} : vector<64x64xbf16>, vector<64x128xbf16>, vector<64x128xf32> -> vector<64x128xf32>
    %20 = arith.addf %14, %19 : vector<64x128xf32>
    %21 = vector.extract_strided_slice %1 {offsets = [1, 0, 0], sizes = [8, 8, 64], strides = [1, 1, 1]} : vector<10x10x64xbf16> to vector<8x8x64xbf16>
    %22 = vector.shape_cast %21 : vector<8x8x64xbf16> to vector<64x64xbf16>
    %c3 = arith.constant 3 : index
    %c0_13 = arith.constant 0 : index
    %c0_14 = arith.constant 0 : index
    %23 = vector.load %arg2[%c3, %c0_13, %c0_14] : memref<9x64x128xbf16, #tpu.memory_space<vmem>>, vector<1x64x128xbf16>
    %24 = vector.shape_cast %23 : vector<1x64x128xbf16> to vector<64x128xbf16>
    %cst_15 = arith.constant dense<0.000000e+00> : vector<64x128xf32>
    %25 = tpu.matmul %22, %24, %cst_15 {dimension_numbers = #tpu.dot_dimension_numbers<[1], [0], [0], [1], [0, 0, 1, 1], [], []>} : vector<64x64xbf16>, vector<64x128xbf16>, vector<64x128xf32> -> vector<64x128xf32>
    %26 = arith.addf %20, %25 : vector<64x128xf32>
    %27 = vector.extract_strided_slice %1 {offsets = [1, 1, 0], sizes = [8, 8, 64], strides = [1, 1, 1]} : vector<10x10x64xbf16> to vector<8x8x64xbf16>
    %28 = vector.shape_cast %27 : vector<8x8x64xbf16> to vector<64x64xbf16>
    %c4 = arith.constant 4 : index
    %c0_16 = arith.constant 0 : index
    %c0_17 = arith.constant 0 : index
    %29 = vector.load %arg2[%c4, %c0_16, %c0_17] : memref<9x64x128xbf16, #tpu.memory_space<vmem>>, vector<1x64x128xbf16>
    %30 = vector.shape_cast %29 : vector<1x64x128xbf16> to vector<64x128xbf16>
    %cst_18 = arith.constant dense<0.000000e+00> : vector<64x128xf32>
    %31 = tpu.matmul %28, %30, %cst_18 {dimension_numbers = #tpu.dot_dimension_numbers<[1], [0], [0], [1], [0, 0, 1, 1], [], []>} : vector<64x64xbf16>, vector<64x128xbf16>, vector<64x128xf32> -> vector<64x128xf32>
    %32 = arith.addf %26, %31 : vector<64x128xf32>
    %33 = vector.extract_strided_slice %1 {offsets = [1, 2, 0], sizes = [8, 8, 64], strides = [1, 1, 1]} : vector<10x10x64xbf16> to vector<8x8x64xbf16>
    %34 = vector.shape_cast %33 : vector<8x8x64xbf16> to vector<64x64xbf16>
    %c5 = arith.constant 5 : index
    %c0_19 = arith.constant 0 : index
    %c0_20 = arith.constant 0 : index
    %35 = vector.load %arg2[%c5, %c0_19, %c0_20] : memref<9x64x128xbf16, #tpu.memory_space<vmem>>, vector<1x64x128xbf16>
    %36 = vector.shape_cast %35 : vector<1x64x128xbf16> to vector<64x128xbf16>
    %cst_21 = arith.constant dense<0.000000e+00> : vector<64x128xf32>
    %37 = tpu.matmul %34, %36, %cst_21 {dimension_numbers = #tpu.dot_dimension_numbers<[1], [0], [0], [1], [0, 0, 1, 1], [], []>} : vector<64x64xbf16>, vector<64x128xbf16>, vector<64x128xf32> -> vector<64x128xf32>
    %38 = arith.addf %32, %37 : vector<64x128xf32>
    %39 = vector.extract_strided_slice %1 {offsets = [2, 0, 0], sizes = [8, 8, 64], strides = [1, 1, 1]} : vector<10x10x64xbf16> to vector<8x8x64xbf16>
    %40 = vector.shape_cast %39 : vector<8x8x64xbf16> to vector<64x64xbf16>
    %c6 = arith.constant 6 : index
    %c0_22 = arith.constant 0 : index
    %c0_23 = arith.constant 0 : index
    %41 = vector.load %arg2[%c6, %c0_22, %c0_23] : memref<9x64x128xbf16, #tpu.memory_space<vmem>>, vector<1x64x128xbf16>
    %42 = vector.shape_cast %41 : vector<1x64x128xbf16> to vector<64x128xbf16>
    %cst_24 = arith.constant dense<0.000000e+00> : vector<64x128xf32>
    %43 = tpu.matmul %40, %42, %cst_24 {dimension_numbers = #tpu.dot_dimension_numbers<[1], [0], [0], [1], [0, 0, 1, 1], [], []>} : vector<64x64xbf16>, vector<64x128xbf16>, vector<64x128xf32> -> vector<64x128xf32>
    %44 = arith.addf %38, %43 : vector<64x128xf32>
    %45 = vector.extract_strided_slice %1 {offsets = [2, 1, 0], sizes = [8, 8, 64], strides = [1, 1, 1]} : vector<10x10x64xbf16> to vector<8x8x64xbf16>
    %46 = vector.shape_cast %45 : vector<8x8x64xbf16> to vector<64x64xbf16>
    %c7 = arith.constant 7 : index
    %c0_25 = arith.constant 0 : index
    %c0_26 = arith.constant 0 : index
    %47 = vector.load %arg2[%c7, %c0_25, %c0_26] : memref<9x64x128xbf16, #tpu.memory_space<vmem>>, vector<1x64x128xbf16>
    %48 = vector.shape_cast %47 : vector<1x64x128xbf16> to vector<64x128xbf16>
    %cst_27 = arith.constant dense<0.000000e+00> : vector<64x128xf32>
    %49 = tpu.matmul %46, %48, %cst_27 {dimension_numbers = #tpu.dot_dimension_numbers<[1], [0], [0], [1], [0, 0, 1, 1], [], []>} : vector<64x64xbf16>, vector<64x128xbf16>, vector<64x128xf32> -> vector<64x128xf32>
    %50 = arith.addf %44, %49 : vector<64x128xf32>
    %51 = vector.extract_strided_slice %1 {offsets = [2, 2, 0], sizes = [8, 8, 64], strides = [1, 1, 1]} : vector<10x10x64xbf16> to vector<8x8x64xbf16>
    %52 = vector.shape_cast %51 : vector<8x8x64xbf16> to vector<64x64xbf16>
    %c8 = arith.constant 8 : index
    %c0_28 = arith.constant 0 : index
    %c0_29 = arith.constant 0 : index
    %53 = vector.load %arg2[%c8, %c0_28, %c0_29] : memref<9x64x128xbf16, #tpu.memory_space<vmem>>, vector<1x64x128xbf16>
    %54 = vector.shape_cast %53 : vector<1x64x128xbf16> to vector<64x128xbf16>
    %cst_30 = arith.constant dense<0.000000e+00> : vector<64x128xf32>
    %55 = tpu.matmul %52, %54, %cst_30 {dimension_numbers = #tpu.dot_dimension_numbers<[1], [0], [0], [1], [0, 0, 1, 1], [], []>} : vector<64x64xbf16>, vector<64x128xbf16>, vector<64x128xf32> -> vector<64x128xf32>
    %56 = arith.addf %50, %55 : vector<64x128xf32>
    %c0_31 = arith.constant 0 : index
    %c0_32 = arith.constant 0 : index
    %57 = vector.load %arg3[%c0_31, %c0_32] : memref<1x128xf32, #tpu.memory_space<vmem>>, vector<1x128xf32>
    %58 = vector.broadcast %57 : vector<1x128xf32> to vector<64x128xf32>
    %59 = arith.addf %56, %58 : vector<64x128xf32>
    %cst_33 = arith.constant 0.000000e+00 : f32
    %60 = vector.broadcast %cst_33 : f32 to vector<64x128xf32>
    %61 = arith.maximumf %59, %60 : vector<64x128xf32>
    %62 = arith.truncf %61 : vector<64x128xf32> to vector<64x128xbf16>
    %c0_34 = arith.constant 0 : index
    %c0_35 = arith.constant 0 : index
    %c0_36 = arith.constant 0 : index
    %63 = vector.load %arg4[%c0_34, %c0_35, %c0_36] : memref<1x64x128xbf16, #tpu.memory_space<vmem>>, vector<1x64x128xbf16>
    %64 = vector.shape_cast %63 : vector<1x64x128xbf16> to vector<64x128xbf16>
    %65 = vector.shape_cast %62 : vector<64x128xbf16> to vector<1x64x128xbf16>
    tpu.vector_store %arg4[%c0_34, %c0_35, %c0_36], %65 {strides = array<i32>} : memref<1x64x128xbf16, #tpu.memory_space<vmem>>, vector<1x64x128xbf16>,
    return
  }
  func.func @transform_0(%arg0: i32) -> (i32, i32, i32, i32) {
    %c0_i32 = arith.constant 0 : i32
    %c0_i32_0 = arith.constant 0 : i32
    %c0_i32_1 = arith.constant 0 : i32
    %c0_i32_2 = arith.constant 0 : i32
    return %arg0, %c0_i32, %c0_i32_0, %c0_i32_1 : i32, i32, i32, i32
  }
  func.func @transform_1(%arg0: i32) -> (i32, i32, i32) {
    %c0_i32 = arith.constant 0 : i32
    %c0_i32_0 = arith.constant 0 : i32
    %c0_i32_1 = arith.constant 0 : i32
    %c0_i32_2 = arith.constant 0 : i32
    return %c0_i32, %c0_i32_0, %c0_i32_1 : i32, i32, i32
  }
  func.func @transform_2(%arg0: i32) -> (i32, i32) {
    %c0_i32 = arith.constant 0 : i32
    %c0_i32_0 = arith.constant 0 : i32
    %c0_i32_1 = arith.constant 0 : i32
    return %c0_i32, %c0_i32_0 : i32, i32
  }
  func.func @transform_3(%arg0: i32) -> (i32, i32, i32) {
    %c0_i32 = arith.constant 0 : i32
    %c0_i32_0 = arith.constant 0 : i32
    %c0_i32_1 = arith.constant 0 : i32
    return %arg0, %c0_i32, %c0_i32_0 : i32, i32, i32
  }
}

module attributes {stable_mosaic.version = 11 : i64} {
  func.func @_conv3x3_relu_kernel(%arg0: i32, %arg1: memref<1x10x10x128xbf16, #tpu.memory_space<vmem>>, %arg2: memref<9x128x128xbf16, #tpu.memory_space<vmem>>, %arg3: memref<1x128xf32, #tpu.memory_space<vmem>>, %arg4: memref<1x64x128xbf16, #tpu.memory_space<vmem>>) attributes {dimension_semantics = [#tpu.dimension_semantics<parallel>], iteration_bounds = array<i64: 4>, scalar_prefetch = 0 : i64, scratch_operands = 0 : i64, tpu.core_type = #tpu.core_type<tc>, window_params = [{transform_indices = @transform_0, window_bounds = array<i64: 1, 10, 10, 128>}, {pipeline_mode = #tpu.pipeline_mode<synchronous>, transform_indices = @transform_1, window_bounds = array<i64: 9, 128, 128>}, {pipeline_mode = #tpu.pipeline_mode<synchronous>, transform_indices = @transform_2, window_bounds = array<i64: 1, 128>}, {transform_indices = @transform_3, window_bounds = array<i64: 1, 64, 128>}]} {
    %c0 = arith.constant 0 : index
    %c0_0 = arith.constant 0 : index
    %c0_1 = arith.constant 0 : index
    %c0_2 = arith.constant 0 : index
    %0 = vector.load %arg1[%c0, %c0_0, %c0_1, %c0_2] : memref<1x10x10x128xbf16, #tpu.memory_space<vmem>>, vector<1x10x10x128xbf16>
    %1 = vector.shape_cast %0 : vector<1x10x10x128xbf16> to vector<10x10x128xbf16>
    %cst = arith.constant 0.000000e+00 : f32
    %2 = vector.broadcast %cst : f32 to vector<64x128xf32>
    %3 = vector.extract_strided_slice %1 {offsets = [0, 0, 0], sizes = [8, 8, 128], strides = [1, 1, 1]} : vector<10x10x128xbf16> to vector<8x8x128xbf16>
    %4 = vector.shape_cast %3 : vector<8x8x128xbf16> to vector<64x128xbf16>
    %c0_3 = arith.constant 0 : index
    %c0_4 = arith.constant 0 : index
    %c0_5 = arith.constant 0 : index
    %5 = vector.load %arg2[%c0_3, %c0_4, %c0_5] : memref<9x128x128xbf16, #tpu.memory_space<vmem>>, vector<1x128x128xbf16>
    %6 = vector.shape_cast %5 : vector<1x128x128xbf16> to vector<128x128xbf16>
    %cst_6 = arith.constant dense<0.000000e+00> : vector<64x128xf32>
    %7 = tpu.matmul %4, %6, %cst_6 {dimension_numbers = #tpu.dot_dimension_numbers<[1], [0], [0], [1], [0, 0, 1, 1], [], []>} : vector<64x128xbf16>, vector<128x128xbf16>, vector<64x128xf32> -> vector<64x128xf32>
    %8 = arith.addf %2, %7 : vector<64x128xf32>
    %9 = vector.extract_strided_slice %1 {offsets = [0, 1, 0], sizes = [8, 8, 128], strides = [1, 1, 1]} : vector<10x10x128xbf16> to vector<8x8x128xbf16>
    %10 = vector.shape_cast %9 : vector<8x8x128xbf16> to vector<64x128xbf16>
    %c1 = arith.constant 1 : index
    %c0_7 = arith.constant 0 : index
    %c0_8 = arith.constant 0 : index
    %11 = vector.load %arg2[%c1, %c0_7, %c0_8] : memref<9x128x128xbf16, #tpu.memory_space<vmem>>, vector<1x128x128xbf16>
    %12 = vector.shape_cast %11 : vector<1x128x128xbf16> to vector<128x128xbf16>
    %cst_9 = arith.constant dense<0.000000e+00> : vector<64x128xf32>
    %13 = tpu.matmul %10, %12, %cst_9 {dimension_numbers = #tpu.dot_dimension_numbers<[1], [0], [0], [1], [0, 0, 1, 1], [], []>} : vector<64x128xbf16>, vector<128x128xbf16>, vector<64x128xf32> -> vector<64x128xf32>
    %14 = arith.addf %8, %13 : vector<64x128xf32>
    %15 = vector.extract_strided_slice %1 {offsets = [0, 2, 0], sizes = [8, 8, 128], strides = [1, 1, 1]} : vector<10x10x128xbf16> to vector<8x8x128xbf16>
    %16 = vector.shape_cast %15 : vector<8x8x128xbf16> to vector<64x128xbf16>
    %c2 = arith.constant 2 : index
    %c0_10 = arith.constant 0 : index
    %c0_11 = arith.constant 0 : index
    %17 = vector.load %arg2[%c2, %c0_10, %c0_11] : memref<9x128x128xbf16, #tpu.memory_space<vmem>>, vector<1x128x128xbf16>
    %18 = vector.shape_cast %17 : vector<1x128x128xbf16> to vector<128x128xbf16>
    %cst_12 = arith.constant dense<0.000000e+00> : vector<64x128xf32>
    %19 = tpu.matmul %16, %18, %cst_12 {dimension_numbers = #tpu.dot_dimension_numbers<[1], [0], [0], [1], [0, 0, 1, 1], [], []>} : vector<64x128xbf16>, vector<128x128xbf16>, vector<64x128xf32> -> vector<64x128xf32>
    %20 = arith.addf %14, %19 : vector<64x128xf32>
    %21 = vector.extract_strided_slice %1 {offsets = [1, 0, 0], sizes = [8, 8, 128], strides = [1, 1, 1]} : vector<10x10x128xbf16> to vector<8x8x128xbf16>
    %22 = vector.shape_cast %21 : vector<8x8x128xbf16> to vector<64x128xbf16>
    %c3 = arith.constant 3 : index
    %c0_13 = arith.constant 0 : index
    %c0_14 = arith.constant 0 : index
    %23 = vector.load %arg2[%c3, %c0_13, %c0_14] : memref<9x128x128xbf16, #tpu.memory_space<vmem>>, vector<1x128x128xbf16>
    %24 = vector.shape_cast %23 : vector<1x128x128xbf16> to vector<128x128xbf16>
    %cst_15 = arith.constant dense<0.000000e+00> : vector<64x128xf32>
    %25 = tpu.matmul %22, %24, %cst_15 {dimension_numbers = #tpu.dot_dimension_numbers<[1], [0], [0], [1], [0, 0, 1, 1], [], []>} : vector<64x128xbf16>, vector<128x128xbf16>, vector<64x128xf32> -> vector<64x128xf32>
    %26 = arith.addf %20, %25 : vector<64x128xf32>
    %27 = vector.extract_strided_slice %1 {offsets = [1, 1, 0], sizes = [8, 8, 128], strides = [1, 1, 1]} : vector<10x10x128xbf16> to vector<8x8x128xbf16>
    %28 = vector.shape_cast %27 : vector<8x8x128xbf16> to vector<64x128xbf16>
    %c4 = arith.constant 4 : index
    %c0_16 = arith.constant 0 : index
    %c0_17 = arith.constant 0 : index
    %29 = vector.load %arg2[%c4, %c0_16, %c0_17] : memref<9x128x128xbf16, #tpu.memory_space<vmem>>, vector<1x128x128xbf16>
    %30 = vector.shape_cast %29 : vector<1x128x128xbf16> to vector<128x128xbf16>
    %cst_18 = arith.constant dense<0.000000e+00> : vector<64x128xf32>
    %31 = tpu.matmul %28, %30, %cst_18 {dimension_numbers = #tpu.dot_dimension_numbers<[1], [0], [0], [1], [0, 0, 1, 1], [], []>} : vector<64x128xbf16>, vector<128x128xbf16>, vector<64x128xf32> -> vector<64x128xf32>
    %32 = arith.addf %26, %31 : vector<64x128xf32>
    %33 = vector.extract_strided_slice %1 {offsets = [1, 2, 0], sizes = [8, 8, 128], strides = [1, 1, 1]} : vector<10x10x128xbf16> to vector<8x8x128xbf16>
    %34 = vector.shape_cast %33 : vector<8x8x128xbf16> to vector<64x128xbf16>
    %c5 = arith.constant 5 : index
    %c0_19 = arith.constant 0 : index
    %c0_20 = arith.constant 0 : index
    %35 = vector.load %arg2[%c5, %c0_19, %c0_20] : memref<9x128x128xbf16, #tpu.memory_space<vmem>>, vector<1x128x128xbf16>
    %36 = vector.shape_cast %35 : vector<1x128x128xbf16> to vector<128x128xbf16>
    %cst_21 = arith.constant dense<0.000000e+00> : vector<64x128xf32>
    %37 = tpu.matmul %34, %36, %cst_21 {dimension_numbers = #tpu.dot_dimension_numbers<[1], [0], [0], [1], [0, 0, 1, 1], [], []>} : vector<64x128xbf16>, vector<128x128xbf16>, vector<64x128xf32> -> vector<64x128xf32>
    %38 = arith.addf %32, %37 : vector<64x128xf32>
    %39 = vector.extract_strided_slice %1 {offsets = [2, 0, 0], sizes = [8, 8, 128], strides = [1, 1, 1]} : vector<10x10x128xbf16> to vector<8x8x128xbf16>
    %40 = vector.shape_cast %39 : vector<8x8x128xbf16> to vector<64x128xbf16>
    %c6 = arith.constant 6 : index
    %c0_22 = arith.constant 0 : index
    %c0_23 = arith.constant 0 : index
    %41 = vector.load %arg2[%c6, %c0_22, %c0_23] : memref<9x128x128xbf16, #tpu.memory_space<vmem>>, vector<1x128x128xbf16>
    %42 = vector.shape_cast %41 : vector<1x128x128xbf16> to vector<128x128xbf16>
    %cst_24 = arith.constant dense<0.000000e+00> : vector<64x128xf32>
    %43 = tpu.matmul %40, %42, %cst_24 {dimension_numbers = #tpu.dot_dimension_numbers<[1], [0], [0], [1], [0, 0, 1, 1], [], []>} : vector<64x128xbf16>, vector<128x128xbf16>, vector<64x128xf32> -> vector<64x128xf32>
    %44 = arith.addf %38, %43 : vector<64x128xf32>
    %45 = vector.extract_strided_slice %1 {offsets = [2, 1, 0], sizes = [8, 8, 128], strides = [1, 1, 1]} : vector<10x10x128xbf16> to vector<8x8x128xbf16>
    %46 = vector.shape_cast %45 : vector<8x8x128xbf16> to vector<64x128xbf16>
    %c7 = arith.constant 7 : index
    %c0_25 = arith.constant 0 : index
    %c0_26 = arith.constant 0 : index
    %47 = vector.load %arg2[%c7, %c0_25, %c0_26] : memref<9x128x128xbf16, #tpu.memory_space<vmem>>, vector<1x128x128xbf16>
    %48 = vector.shape_cast %47 : vector<1x128x128xbf16> to vector<128x128xbf16>
    %cst_27 = arith.constant dense<0.000000e+00> : vector<64x128xf32>
    %49 = tpu.matmul %46, %48, %cst_27 {dimension_numbers = #tpu.dot_dimension_numbers<[1], [0], [0], [1], [0, 0, 1, 1], [], []>} : vector<64x128xbf16>, vector<128x128xbf16>, vector<64x128xf32> -> vector<64x128xf32>
    %50 = arith.addf %44, %49 : vector<64x128xf32>
    %51 = vector.extract_strided_slice %1 {offsets = [2, 2, 0], sizes = [8, 8, 128], strides = [1, 1, 1]} : vector<10x10x128xbf16> to vector<8x8x128xbf16>
    %52 = vector.shape_cast %51 : vector<8x8x128xbf16> to vector<64x128xbf16>
    %c8 = arith.constant 8 : index
    %c0_28 = arith.constant 0 : index
    %c0_29 = arith.constant 0 : index
    %53 = vector.load %arg2[%c8, %c0_28, %c0_29] : memref<9x128x128xbf16, #tpu.memory_space<vmem>>, vector<1x128x128xbf16>
    %54 = vector.shape_cast %53 : vector<1x128x128xbf16> to vector<128x128xbf16>
    %cst_30 = arith.constant dense<0.000000e+00> : vector<64x128xf32>
    %55 = tpu.matmul %52, %54, %cst_30 {dimension_numbers = #tpu.dot_dimension_numbers<[1], [0], [0], [1], [0, 0, 1, 1], [], []>} : vector<64x128xbf16>, vector<128x128xbf16>, vector<64x128xf32> -> vector<64x128xf32>
    %56 = arith.addf %50, %55 : vector<64x128xf32>
    %c0_31 = arith.constant 0 : index
    %c0_32 = arith.constant 0 : index
    %57 = vector.load %arg3[%c0_31, %c0_32] : memref<1x128xf32, #tpu.memory_space<vmem>>, vector<1x128xf32>
    %58 = vector.broadcast %57 : vector<1x128xf32> to vector<64x128xf32>
    %59 = arith.addf %56, %58 : vector<64x128xf32>
    %cst_33 = arith.constant 0.000000e+00 : f32
    %60 = vector.broadcast %cst_33 : f32 to vector<64x128xf32>
    %61 = arith.maximumf %59, %60 : vector<64x128xf32>
    %62 = arith.truncf %61 : vector<64x128xf32> to vector<64x128xbf16>
    %c0_34 = arith.constant 0 : index
    %c0_35 = arith.constant 0 : index
    %c0_36 = arith.constant 0 : index
    %63 = vector.load %arg4[%c0_34, %c0_35, %c0_36] : memref<1x64x128xbf16, #tpu.memory_space<vmem>>, vector<1x64x128xbf16>
    %64 = vector.shape_cast %63 : vector<1x64x128xbf16> to vector<64x128xbf16>
    %65 = vector.shape_cast %62 : vector<64x128xbf16> to vector<1x64x128xbf16>
    tpu.vector_store %arg4[%c0_34, %c0_35, %c0_36], %65 {strides = array<i32>} : memref<1x64x128xbf16, #tpu.memory_space<vmem>>, vector<1x64x128xbf16>,
    return
  }
  func.func @transform_0(%arg0: i32) -> (i32, i32, i32, i32) {
    %c0_i32 = arith.constant 0 : i32
    %c0_i32_0 = arith.constant 0 : i32
    %c0_i32_1 = arith.constant 0 : i32
    %c0_i32_2 = arith.constant 0 : i32
    return %arg0, %c0_i32, %c0_i32_0, %c0_i32_1 : i32, i32, i32, i32
  }
  func.func @transform_1(%arg0: i32) -> (i32, i32, i32) {
    %c0_i32 = arith.constant 0 : i32
    %c0_i32_0 = arith.constant 0 : i32
    %c0_i32_1 = arith.constant 0 : i32
    %c0_i32_2 = arith.constant 0 : i32
    return %c0_i32, %c0_i32_0, %c0_i32_1 : i32, i32, i32
  }
  func.func @transform_2(%arg0: i32) -> (i32, i32) {
    %c0_i32 = arith.constant 0 : i32
    %c0_i32_0 = arith.constant 0 : i32
    %c0_i32_1 = arith.constant 0 : i32
    return %c0_i32, %c0_i32_0 : i32, i32
  }
  func.func @transform_3(%arg0: i32) -> (i32, i32, i32) {
    %c0_i32 = arith.constant 0 : i32
    %c0_i32_0 = arith.constant 0 : i32
    %c0_i32_1 = arith.constant 0 : i32
    return %arg0, %c0_i32, %c0_i32_0 : i32, i32, i32
  }
}

module attributes {stable_mosaic.version = 11 : i64} {
  func.func @_sqdiff_sum_kernel(%arg0: i32, %arg1: memref<256x128xf32, #tpu.memory_space<vmem>>, %arg2: memref<256x128xf32, #tpu.memory_space<vmem>>, %arg3: memref<1x1xf32, #tpu.memory_space<vmem>>) attributes {dimension_semantics = [#tpu.dimension_semantics<arbitrary>], iteration_bounds = array<i64: 1>, scalar_prefetch = 0 : i64, scratch_operands = 0 : i64, tpu.core_type = #tpu.core_type<tc>, window_params = [{transform_indices = @transform_0, window_bounds = array<i64: 256, 128>}, {transform_indices = @transform_1, window_bounds = array<i64: 256, 128>}, {pipeline_mode = #tpu.pipeline_mode<synchronous>, transform_indices = @transform_2, window_bounds = array<i64: 1, 1>}]} {
    %c0_i32 = arith.constant 0 : i32
    %0 = arith.cmpi eq, %arg0, %c0_i32 : i32
    %1 = arith.extui %0 : i1 to i32
    %c0_i32_0 = arith.constant 0 : i32
    %2 = arith.cmpi ne, %1, %c0_i32_0 : i32
    scf.if %2 {
      %cst_8 = arith.constant 0.000000e+00 : f32
      %15 = vector.broadcast %cst_8 : f32 to vector<1x1xf32>
      %c0_9 = arith.constant 0 : index
      %c0_10 = arith.constant 0 : index
      %16 = vector.load %arg3[%c0_9, %c0_10] : memref<1x1xf32, #tpu.memory_space<vmem>>, vector<1x1xf32>
      tpu.vector_store %arg3[%c0_9, %c0_10], %15 {strides = array<i32>} : memref<1x1xf32, #tpu.memory_space<vmem>>, vector<1x1xf32>,
    } else {
    }
    %c0 = arith.constant 0 : index
    %c0_1 = arith.constant 0 : index
    %3 = vector.load %arg1[%c0, %c0_1] : memref<256x128xf32, #tpu.memory_space<vmem>>, vector<256x128xf32>
    %c0_2 = arith.constant 0 : index
    %c0_3 = arith.constant 0 : index
    %4 = vector.load %arg2[%c0_2, %c0_3] : memref<256x128xf32, #tpu.memory_space<vmem>>, vector<256x128xf32>
    %5 = arith.subf %3, %4 : vector<256x128xf32>
    %c0_4 = arith.constant 0 : index
    %c0_5 = arith.constant 0 : index
    %6 = vector.load %arg3[%c0_4, %c0_5] : memref<1x1xf32, #tpu.memory_space<vmem>>, vector<1x1xf32>
    %7 = arith.mulf %5, %5 : vector<256x128xf32>
    %8 = vector.shape_cast %7 : vector<256x128xf32> to vector<1x256x128xf32>
    %cst = arith.constant dense<0.000000e+00> : vector<1xf32>
    %9 = vector.multi_reduction <add>, %8, %cst [1, 2] : vector<1x256x128xf32> to vector<1xf32>
    %10 = vector.shape_cast %9 : vector<1xf32> to vector<1x1x1xf32>
    %11 = vector.extract %10[0, 0, 0] : f32 from vector<1x1x1xf32>
    %12 = vector.broadcast %11 : f32 to vector<1x1xf32>
    %13 = arith.addf %6, %12 : vector<1x1xf32>
    %c0_6 = arith.constant 0 : index
    %c0_7 = arith.constant 0 : index
    %14 = vector.load %arg3[%c0_6, %c0_7] : memref<1x1xf32, #tpu.memory_space<vmem>>, vector<1x1xf32>
    tpu.vector_store %arg3[%c0_6, %c0_7], %13 {strides = array<i32>} : memref<1x1xf32, #tpu.memory_space<vmem>>, vector<1x1xf32>,
    return
  }
  func.func @transform_0(%arg0: i32) -> (i32, i32) {
    %c0_i32 = arith.constant 0 : i32
    %c0_i32_0 = arith.constant 0 : i32
    return %arg0, %c0_i32 : i32, i32
  }
  func.func @transform_1(%arg0: i32) -> (i32, i32) {
    %c0_i32 = arith.constant 0 : i32
    %c0_i32_0 = arith.constant 0 : i32
    return %arg0, %c0_i32 : i32, i32
  }
  func.func @transform_2(%arg0: i32) -> (i32, i32) {
    %c0_i32 = arith.constant 0 : i32
    %c0_i32_0 = arith.constant 0 : i32
    %c0_i32_1 = arith.constant 0 : i32
    return %c0_i32, %c0_i32_0 : i32, i32
  }
}

module attributes {stable_mosaic.version = 11 : i64} {
  func.func @_gram_kernel(%arg0: i32, %arg1: i32, %arg2: memref<1x64x128xbf16, #tpu.memory_space<vmem>>, %arg3: memref<1x128x128xf32, #tpu.memory_space<vmem>>) attributes {dimension_semantics = [#tpu.dimension_semantics<parallel>, #tpu.dimension_semantics<arbitrary>], iteration_bounds = array<i64: 4, 1>, scalar_prefetch = 0 : i64, scratch_operands = 0 : i64, tpu.core_type = #tpu.core_type<tc>, window_params = [{transform_indices = @transform_0, window_bounds = array<i64: 1, 64, 128>}, {transform_indices = @transform_1, window_bounds = array<i64: 1, 128, 128>}]} {
    %c0_i32 = arith.constant 0 : i32
    %0 = arith.cmpi eq, %arg1, %c0_i32 : i32
    %1 = arith.extui %0 : i1 to i32
    %c0_i32_0 = arith.constant 0 : i32
    %2 = arith.cmpi ne, %1, %c0_i32_0 : i32
    scf.if %2 {
      %cst_11 = arith.constant 0.000000e+00 : f32
      %15 = vector.broadcast %cst_11 : f32 to vector<1x128x128xf32>
      %c0_12 = arith.constant 0 : index
      %c0_13 = arith.constant 0 : index
      %c0_14 = arith.constant 0 : index
      %16 = vector.load %arg3[%c0_12, %c0_13, %c0_14] : memref<1x128x128xf32, #tpu.memory_space<vmem>>, vector<1x128x128xf32>
      tpu.vector_store %arg3[%c0_12, %c0_13, %c0_14], %15 {strides = array<i32>} : memref<1x128x128xf32, #tpu.memory_space<vmem>>, vector<1x128x128xf32>,
    } else {
    }
    %c0 = arith.constant 0 : index
    %c0_1 = arith.constant 0 : index
    %c0_2 = arith.constant 0 : index
    %3 = vector.load %arg2[%c0, %c0_1, %c0_2] : memref<1x64x128xbf16, #tpu.memory_space<vmem>>, vector<1x64x128xbf16>
    %4 = vector.shape_cast %3 : vector<1x64x128xbf16> to vector<64x128xbf16>
    %c0_3 = arith.constant 0 : index
    %c0_4 = arith.constant 0 : index
    %c0_5 = arith.constant 0 : index
    %5 = vector.load %arg3[%c0_3, %c0_4, %c0_5] : memref<1x128x128xf32, #tpu.memory_space<vmem>>, vector<1x128x128xf32>
    %6 = vector.shape_cast %5 : vector<1x128x128xf32> to vector<128x128xf32>
    %cst = arith.constant dense<0.000000e+00> : vector<128x128xf32>
    %7 = tpu.matmul %4, %4, %cst {dimension_numbers = #tpu.dot_dimension_numbers<[0], [0], [1], [1], [0, 1, 1, 1], [], []>} : vector<64x128xbf16>, vector<64x128xbf16>, vector<128x128xf32> -> vector<128x128xf32>
    %8 = arith.addf %6, %7 : vector<128x128xf32>
    %c0_6 = arith.constant 0 : index
    %c0_7 = arith.constant 0 : index
    %c0_8 = arith.constant 0 : index
    %9 = vector.load %arg3[%c0_6, %c0_7, %c0_8] : memref<1x128x128xf32, #tpu.memory_space<vmem>>, vector<1x128x128xf32>
    %10 = vector.shape_cast %9 : vector<1x128x128xf32> to vector<128x128xf32>
    %11 = vector.shape_cast %8 : vector<128x128xf32> to vector<1x128x128xf32>
    tpu.vector_store %arg3[%c0_6, %c0_7, %c0_8], %11 {strides = array<i32>} : memref<1x128x128xf32, #tpu.memory_space<vmem>>, vector<1x128x128xf32>,
    %c0_i32_9 = arith.constant 0 : i32
    %12 = arith.cmpi eq, %arg1, %c0_i32_9 : i32
    %13 = arith.extui %12 : i1 to i32
    %c0_i32_10 = arith.constant 0 : i32
    %14 = arith.cmpi ne, %13, %c0_i32_10 : i32
    scf.if %14 {
      %c0_11 = arith.constant 0 : index
      %c0_12 = arith.constant 0 : index
      %c0_13 = arith.constant 0 : index
      %15 = vector.load %arg3[%c0_11, %c0_12, %c0_13] : memref<1x128x128xf32, #tpu.memory_space<vmem>>, vector<1x128x128xf32>
      %cst_14 = arith.constant 1.22070313E-4 : f32
      %16 = vector.broadcast %cst_14 : f32 to vector<1x128x128xf32>
      %17 = arith.mulf %15, %16 : vector<1x128x128xf32>
      %c0_15 = arith.constant 0 : index
      %c0_16 = arith.constant 0 : index
      %c0_17 = arith.constant 0 : index
      %18 = vector.load %arg3[%c0_15, %c0_16, %c0_17] : memref<1x128x128xf32, #tpu.memory_space<vmem>>, vector<1x128x128xf32>
      tpu.vector_store %arg3[%c0_15, %c0_16, %c0_17], %17 {strides = array<i32>} : memref<1x128x128xf32, #tpu.memory_space<vmem>>, vector<1x128x128xf32>,
    } else {
    }
    return
  }
  func.func @transform_0(%arg0: i32, %arg1: i32) -> (i32, i32, i32) {
    %c0_i32 = arith.constant 0 : i32
    %c0_i32_0 = arith.constant 0 : i32
    return %arg0, %arg1, %c0_i32 : i32, i32, i32
  }
  func.func @transform_1(%arg0: i32, %arg1: i32) -> (i32, i32, i32) {
    %c0_i32 = arith.constant 0 : i32
    %c0_i32_0 = arith.constant 0 : i32
    %c0_i32_1 = arith.constant 0 : i32
    return %arg0, %c0_i32, %c0_i32_0 : i32, i32, i32
  }
}

module attributes {stable_mosaic.version = 11 : i64} {
  func.func @_gram_kernel(%arg0: i32, %arg1: i32, %arg2: memref<1x256x64xbf16, #tpu.memory_space<vmem>>, %arg3: memref<1x64x64xf32, #tpu.memory_space<vmem>>) attributes {dimension_semantics = [#tpu.dimension_semantics<parallel>, #tpu.dimension_semantics<arbitrary>], iteration_bounds = array<i64: 4, 1>, scalar_prefetch = 0 : i64, scratch_operands = 0 : i64, tpu.core_type = #tpu.core_type<tc>, window_params = [{transform_indices = @transform_0, window_bounds = array<i64: 1, 256, 64>}, {transform_indices = @transform_1, window_bounds = array<i64: 1, 64, 64>}]} {
    %c0_i32 = arith.constant 0 : i32
    %0 = arith.cmpi eq, %arg1, %c0_i32 : i32
    %1 = arith.extui %0 : i1 to i32
    %c0_i32_0 = arith.constant 0 : i32
    %2 = arith.cmpi ne, %1, %c0_i32_0 : i32
    scf.if %2 {
      %cst_11 = arith.constant 0.000000e+00 : f32
      %15 = vector.broadcast %cst_11 : f32 to vector<1x64x64xf32>
      %c0_12 = arith.constant 0 : index
      %c0_13 = arith.constant 0 : index
      %c0_14 = arith.constant 0 : index
      %16 = vector.load %arg3[%c0_12, %c0_13, %c0_14] : memref<1x64x64xf32, #tpu.memory_space<vmem>>, vector<1x64x64xf32>
      tpu.vector_store %arg3[%c0_12, %c0_13, %c0_14], %15 {strides = array<i32>} : memref<1x64x64xf32, #tpu.memory_space<vmem>>, vector<1x64x64xf32>,
    } else {
    }
    %c0 = arith.constant 0 : index
    %c0_1 = arith.constant 0 : index
    %c0_2 = arith.constant 0 : index
    %3 = vector.load %arg2[%c0, %c0_1, %c0_2] : memref<1x256x64xbf16, #tpu.memory_space<vmem>>, vector<1x256x64xbf16>
    %4 = vector.shape_cast %3 : vector<1x256x64xbf16> to vector<256x64xbf16>
    %c0_3 = arith.constant 0 : index
    %c0_4 = arith.constant 0 : index
    %c0_5 = arith.constant 0 : index
    %5 = vector.load %arg3[%c0_3, %c0_4, %c0_5] : memref<1x64x64xf32, #tpu.memory_space<vmem>>, vector<1x64x64xf32>
    %6 = vector.shape_cast %5 : vector<1x64x64xf32> to vector<64x64xf32>
    %cst = arith.constant dense<0.000000e+00> : vector<64x64xf32>
    %7 = tpu.matmul %4, %4, %cst {dimension_numbers = #tpu.dot_dimension_numbers<[0], [0], [1], [1], [0, 1, 1, 1], [], []>} : vector<256x64xbf16>, vector<256x64xbf16>, vector<64x64xf32> -> vector<64x64xf32>
    %8 = arith.addf %6, %7 : vector<64x64xf32>
    %c0_6 = arith.constant 0 : index
    %c0_7 = arith.constant 0 : index
    %c0_8 = arith.constant 0 : index
    %9 = vector.load %arg3[%c0_6, %c0_7, %c0_8] : memref<1x64x64xf32, #tpu.memory_space<vmem>>, vector<1x64x64xf32>
    %10 = vector.shape_cast %9 : vector<1x64x64xf32> to vector<64x64xf32>
    %11 = vector.shape_cast %8 : vector<64x64xf32> to vector<1x64x64xf32>
    tpu.vector_store %arg3[%c0_6, %c0_7, %c0_8], %11 {strides = array<i32>} : memref<1x64x64xf32, #tpu.memory_space<vmem>>, vector<1x64x64xf32>,
    %c0_i32_9 = arith.constant 0 : i32
    %12 = arith.cmpi eq, %arg1, %c0_i32_9 : i32
    %13 = arith.extui %12 : i1 to i32
    %c0_i32_10 = arith.constant 0 : i32
    %14 = arith.cmpi ne, %13, %c0_i32_10 : i32
    scf.if %14 {
      %c0_11 = arith.constant 0 : index
      %c0_12 = arith.constant 0 : index
      %c0_13 = arith.constant 0 : index
      %15 = vector.load %arg3[%c0_11, %c0_12, %c0_13] : memref<1x64x64xf32, #tpu.memory_space<vmem>>, vector<1x64x64xf32>
      %cst_14 = arith.constant 6.10351563E-5 : f32
      %16 = vector.broadcast %cst_14 : f32 to vector<1x64x64xf32>
      %17 = arith.mulf %15, %16 : vector<1x64x64xf32>
      %c0_15 = arith.constant 0 : index
      %c0_16 = arith.constant 0 : index
      %c0_17 = arith.constant 0 : index
      %18 = vector.load %arg3[%c0_15, %c0_16, %c0_17] : memref<1x64x64xf32, #tpu.memory_space<vmem>>, vector<1x64x64xf32>
      tpu.vector_store %arg3[%c0_15, %c0_16, %c0_17], %17 {strides = array<i32>} : memref<1x64x64xf32, #tpu.memory_space<vmem>>, vector<1x64x64xf32>,
    } else {
    }
    return
  }
  func.func @transform_0(%arg0: i32, %arg1: i32) -> (i32, i32, i32) {
    %c0_i32 = arith.constant 0 : i32
    %c0_i32_0 = arith.constant 0 : i32
    return %arg0, %arg1, %c0_i32 : i32, i32, i32
  }
  func.func @transform_1(%arg0: i32, %arg1: i32) -> (i32, i32, i32) {
    %c0_i32 = arith.constant 0 : i32
    %c0_i32_0 = arith.constant 0 : i32
    %c0_i32_1 = arith.constant 0 : i32
    return %arg0, %c0_i32, %c0_i32_0 : i32, i32, i32
  }
}

module attributes {stable_mosaic.version = 11 : i64} {
  func.func @_sqdiff_sum_kernel(%arg0: i32, %arg1: memref<64x128xf32, #tpu.memory_space<vmem>>, %arg2: memref<64x128xf32, #tpu.memory_space<vmem>>, %arg3: memref<1x1xf32, #tpu.memory_space<vmem>>) attributes {dimension_semantics = [#tpu.dimension_semantics<arbitrary>], iteration_bounds = array<i64: 1>, scalar_prefetch = 0 : i64, scratch_operands = 0 : i64, tpu.core_type = #tpu.core_type<tc>, window_params = [{transform_indices = @transform_0, window_bounds = array<i64: 64, 128>}, {transform_indices = @transform_1, window_bounds = array<i64: 64, 128>}, {pipeline_mode = #tpu.pipeline_mode<synchronous>, transform_indices = @transform_2, window_bounds = array<i64: 1, 1>}]} {
    %c0_i32 = arith.constant 0 : i32
    %0 = arith.cmpi eq, %arg0, %c0_i32 : i32
    %1 = arith.extui %0 : i1 to i32
    %c0_i32_0 = arith.constant 0 : i32
    %2 = arith.cmpi ne, %1, %c0_i32_0 : i32
    scf.if %2 {
      %cst_8 = arith.constant 0.000000e+00 : f32
      %15 = vector.broadcast %cst_8 : f32 to vector<1x1xf32>
      %c0_9 = arith.constant 0 : index
      %c0_10 = arith.constant 0 : index
      %16 = vector.load %arg3[%c0_9, %c0_10] : memref<1x1xf32, #tpu.memory_space<vmem>>, vector<1x1xf32>
      tpu.vector_store %arg3[%c0_9, %c0_10], %15 {strides = array<i32>} : memref<1x1xf32, #tpu.memory_space<vmem>>, vector<1x1xf32>,
    } else {
    }
    %c0 = arith.constant 0 : index
    %c0_1 = arith.constant 0 : index
    %3 = vector.load %arg1[%c0, %c0_1] : memref<64x128xf32, #tpu.memory_space<vmem>>, vector<64x128xf32>
    %c0_2 = arith.constant 0 : index
    %c0_3 = arith.constant 0 : index
    %4 = vector.load %arg2[%c0_2, %c0_3] : memref<64x128xf32, #tpu.memory_space<vmem>>, vector<64x128xf32>
    %5 = arith.subf %3, %4 : vector<64x128xf32>
    %c0_4 = arith.constant 0 : index
    %c0_5 = arith.constant 0 : index
    %6 = vector.load %arg3[%c0_4, %c0_5] : memref<1x1xf32, #tpu.memory_space<vmem>>, vector<1x1xf32>
    %7 = arith.mulf %5, %5 : vector<64x128xf32>
    %8 = vector.shape_cast %7 : vector<64x128xf32> to vector<1x64x128xf32>
    %cst = arith.constant dense<0.000000e+00> : vector<1xf32>
    %9 = vector.multi_reduction <add>, %8, %cst [1, 2] : vector<1x64x128xf32> to vector<1xf32>
    %10 = vector.shape_cast %9 : vector<1xf32> to vector<1x1x1xf32>
    %11 = vector.extract %10[0, 0, 0] : f32 from vector<1x1x1xf32>
    %12 = vector.broadcast %11 : f32 to vector<1x1xf32>
    %13 = arith.addf %6, %12 : vector<1x1xf32>
    %c0_6 = arith.constant 0 : index
    %c0_7 = arith.constant 0 : index
    %14 = vector.load %arg3[%c0_6, %c0_7] : memref<1x1xf32, #tpu.memory_space<vmem>>, vector<1x1xf32>
    tpu.vector_store %arg3[%c0_6, %c0_7], %13 {strides = array<i32>} : memref<1x1xf32, #tpu.memory_space<vmem>>, vector<1x1xf32>,
    return
  }
  func.func @transform_0(%arg0: i32) -> (i32, i32) {
    %c0_i32 = arith.constant 0 : i32
    %c0_i32_0 = arith.constant 0 : i32
    return %arg0, %c0_i32 : i32, i32
  }
  func.func @transform_1(%arg0: i32) -> (i32, i32) {
    %c0_i32 = arith.constant 0 : i32
    %c0_i32_0 = arith.constant 0 : i32
    return %arg0, %c0_i32 : i32, i32
  }
  func.func @transform_2(%arg0: i32) -> (i32, i32) {
    %c0_i32 = arith.constant 0 : i32
    %c0_i32_0 = arith.constant 0 : i32
    %c0_i32_1 = arith.constant 0 : i32
    return %c0_i32, %c0_i32_0 : i32, i32
  }
}

module attributes {stable_mosaic.version = 11 : i64} {
  func.func @_sqdiff_sum_kernel(%arg0: i32, %arg1: memref<256x128xbf16, #tpu.memory_space<vmem>>, %arg2: memref<256x128xbf16, #tpu.memory_space<vmem>>, %arg3: memref<1x1xf32, #tpu.memory_space<vmem>>) attributes {dimension_semantics = [#tpu.dimension_semantics<arbitrary>], iteration_bounds = array<i64: 1>, scalar_prefetch = 0 : i64, scratch_operands = 0 : i64, tpu.core_type = #tpu.core_type<tc>, window_params = [{transform_indices = @transform_0, window_bounds = array<i64: 256, 128>}, {transform_indices = @transform_1, window_bounds = array<i64: 256, 128>}, {pipeline_mode = #tpu.pipeline_mode<synchronous>, transform_indices = @transform_2, window_bounds = array<i64: 1, 1>}]} {
    %c0_i32 = arith.constant 0 : i32
    %0 = arith.cmpi eq, %arg0, %c0_i32 : i32
    %1 = arith.extui %0 : i1 to i32
    %c0_i32_0 = arith.constant 0 : i32
    %2 = arith.cmpi ne, %1, %c0_i32_0 : i32
    scf.if %2 {
      %cst_8 = arith.constant 0.000000e+00 : f32
      %17 = vector.broadcast %cst_8 : f32 to vector<1x1xf32>
      %c0_9 = arith.constant 0 : index
      %c0_10 = arith.constant 0 : index
      %18 = vector.load %arg3[%c0_9, %c0_10] : memref<1x1xf32, #tpu.memory_space<vmem>>, vector<1x1xf32>
      tpu.vector_store %arg3[%c0_9, %c0_10], %17 {strides = array<i32>} : memref<1x1xf32, #tpu.memory_space<vmem>>, vector<1x1xf32>,
    } else {
    }
    %c0 = arith.constant 0 : index
    %c0_1 = arith.constant 0 : index
    %3 = vector.load %arg1[%c0, %c0_1] : memref<256x128xbf16, #tpu.memory_space<vmem>>, vector<256x128xbf16>
    %4 = arith.extf %3 : vector<256x128xbf16> to vector<256x128xf32>
    %c0_2 = arith.constant 0 : index
    %c0_3 = arith.constant 0 : index
    %5 = vector.load %arg2[%c0_2, %c0_3] : memref<256x128xbf16, #tpu.memory_space<vmem>>, vector<256x128xbf16>
    %6 = arith.extf %5 : vector<256x128xbf16> to vector<256x128xf32>
    %7 = arith.subf %4, %6 : vector<256x128xf32>
    %c0_4 = arith.constant 0 : index
    %c0_5 = arith.constant 0 : index
    %8 = vector.load %arg3[%c0_4, %c0_5] : memref<1x1xf32, #tpu.memory_space<vmem>>, vector<1x1xf32>
    %9 = arith.mulf %7, %7 : vector<256x128xf32>
    %10 = vector.shape_cast %9 : vector<256x128xf32> to vector<1x256x128xf32>
    %cst = arith.constant dense<0.000000e+00> : vector<1xf32>
    %11 = vector.multi_reduction <add>, %10, %cst [1, 2] : vector<1x256x128xf32> to vector<1xf32>
    %12 = vector.shape_cast %11 : vector<1xf32> to vector<1x1x1xf32>
    %13 = vector.extract %12[0, 0, 0] : f32 from vector<1x1x1xf32>
    %14 = vector.broadcast %13 : f32 to vector<1x1xf32>
    %15 = arith.addf %8, %14 : vector<1x1xf32>
    %c0_6 = arith.constant 0 : index
    %c0_7 = arith.constant 0 : index
    %16 = vector.load %arg3[%c0_6, %c0_7] : memref<1x1xf32, #tpu.memory_space<vmem>>, vector<1x1xf32>
    tpu.vector_store %arg3[%c0_6, %c0_7], %15 {strides = array<i32>} : memref<1x1xf32, #tpu.memory_space<vmem>>, vector<1x1xf32>,
    return
  }
  func.func @transform_0(%arg0: i32) -> (i32, i32) {
    %c0_i32 = arith.constant 0 : i32
    %c0_i32_0 = arith.constant 0 : i32
    return %arg0, %c0_i32 : i32, i32
  }
  func.func @transform_1(%arg0: i32) -> (i32, i32) {
    %c0_i32 = arith.constant 0 : i32
    %c0_i32_0 = arith.constant 0 : i32
    return %arg0, %c0_i32 : i32, i32
  }
  func.func @transform_2(%arg0: i32) -> (i32, i32) {
    %c0_i32 = arith.constant 0 : i32
    %c0_i32_0 = arith.constant 0 : i32
    %c0_i32_1 = arith.constant 0 : i32
    return %c0_i32, %c0_i32_0 : i32, i32
  }
}

module attributes {stable_mosaic.version = 11 : i64} {
  func.func @_sqdiff_sum_kernel(%arg0: i32, %arg1: memref<8x128xf32, #tpu.memory_space<vmem>>, %arg2: memref<8x128xf32, #tpu.memory_space<vmem>>, %arg3: memref<1x1xf32, #tpu.memory_space<vmem>>) attributes {dimension_semantics = [#tpu.dimension_semantics<arbitrary>], iteration_bounds = array<i64: 1>, scalar_prefetch = 0 : i64, scratch_operands = 0 : i64, tpu.core_type = #tpu.core_type<tc>, window_params = [{transform_indices = @transform_0, window_bounds = array<i64: 8, 128>}, {transform_indices = @transform_1, window_bounds = array<i64: 8, 128>}, {pipeline_mode = #tpu.pipeline_mode<synchronous>, transform_indices = @transform_2, window_bounds = array<i64: 1, 1>}]} {
    %c0_i32 = arith.constant 0 : i32
    %0 = arith.cmpi eq, %arg0, %c0_i32 : i32
    %1 = arith.extui %0 : i1 to i32
    %c0_i32_0 = arith.constant 0 : i32
    %2 = arith.cmpi ne, %1, %c0_i32_0 : i32
    scf.if %2 {
      %cst_12 = arith.constant 0.000000e+00 : f32
      %23 = vector.broadcast %cst_12 : f32 to vector<1x1xf32>
      %c0_13 = arith.constant 0 : index
      %c0_14 = arith.constant 0 : index
      %24 = vector.load %arg3[%c0_13, %c0_14] : memref<1x1xf32, #tpu.memory_space<vmem>>, vector<1x1xf32>
      tpu.vector_store %arg3[%c0_13, %c0_14], %23 {strides = array<i32>} : memref<1x1xf32, #tpu.memory_space<vmem>>, vector<1x1xf32>,
    } else {
    }
    %c0 = arith.constant 0 : index
    %c0_1 = arith.constant 0 : index
    %3 = vector.load %arg1[%c0, %c0_1] : memref<8x128xf32, #tpu.memory_space<vmem>>, vector<8x128xf32>
    %c0_2 = arith.constant 0 : index
    %c0_3 = arith.constant 0 : index
    %4 = vector.load %arg2[%c0_2, %c0_3] : memref<8x128xf32, #tpu.memory_space<vmem>>, vector<8x128xf32>
    %cst = arith.constant 9.99999997E-7 : f32
    %cst_4 = arith.constant 0.999998986 : f32
    %5 = vector.broadcast %cst : f32 to vector<8x128xf32>
    %6 = arith.maximumf %5, %3 : vector<8x128xf32>
    %7 = vector.broadcast %cst_4 : f32 to vector<8x128xf32>
    %8 = arith.minimumf %7, %6 : vector<8x128xf32>
    %cst_5 = arith.constant 9.99999997E-7 : f32
    %cst_6 = arith.constant 0.999998986 : f32
    %9 = vector.broadcast %cst_5 : f32 to vector<8x128xf32>
    %10 = arith.maximumf %9, %4 : vector<8x128xf32>
    %11 = vector.broadcast %cst_6 : f32 to vector<8x128xf32>
    %12 = arith.minimumf %11, %10 : vector<8x128xf32>
    %13 = arith.subf %8, %12 : vector<8x128xf32>
    %c0_7 = arith.constant 0 : index
    %c0_8 = arith.constant 0 : index
    %14 = vector.load %arg3[%c0_7, %c0_8] : memref<1x1xf32, #tpu.memory_space<vmem>>, vector<1x1xf32>
    %15 = arith.mulf %13, %13 : vector<8x128xf32>
    %16 = vector.shape_cast %15 : vector<8x128xf32> to vector<1x8x128xf32>
    %cst_9 = arith.constant dense<0.000000e+00> : vector<1xf32>
    %17 = vector.multi_reduction <add>, %16, %cst_9 [1, 2] : vector<1x8x128xf32> to vector<1xf32>
    %18 = vector.shape_cast %17 : vector<1xf32> to vector<1x1x1xf32>
    %19 = vector.extract %18[0, 0, 0] : f32 from vector<1x1x1xf32>
    %20 = vector.broadcast %19 : f32 to vector<1x1xf32>
    %21 = arith.addf %14, %20 : vector<1x1xf32>
    %c0_10 = arith.constant 0 : index
    %c0_11 = arith.constant 0 : index
    %22 = vector.load %arg3[%c0_10, %c0_11] : memref<1x1xf32, #tpu.memory_space<vmem>>, vector<1x1xf32>
    tpu.vector_store %arg3[%c0_10, %c0_11], %21 {strides = array<i32>} : memref<1x1xf32, #tpu.memory_space<vmem>>, vector<1x1xf32>,
    return
  }
  func.func @transform_0(%arg0: i32) -> (i32, i32) {
    %c0_i32 = arith.constant 0 : i32
    %c0_i32_0 = arith.constant 0 : i32
    return %arg0, %c0_i32 : i32, i32
  }
  func.func @transform_1(%arg0: i32) -> (i32, i32) {
    %c0_i32 = arith.constant 0 : i32
    %c0_i32_0 = arith.constant 0 : i32
    return %arg0, %c0_i32 : i32, i32
  }
  func.func @transform_2(%arg0: i32) -> (i32, i32) {
    %c0_i32 = arith.constant 0 : i32
    %c0_i32_0 = arith.constant 0 : i32
    %c0_i32_1 = arith.constant 0 : i32
    return %c0_i32, %c0_i32_0 : i32, i32
  }
}

module attributes {stable_mosaic.version = 11 : i64} {
  func.func @_ssim_sum_kernel(%arg0: i32, %arg1: memref<32x16xf32, #tpu.memory_space<vmem>>, %arg2: memref<32x16xf32, #tpu.memory_space<vmem>>, %arg3: memref<12x32xf32, #tpu.memory_space<vmem>>, %arg4: memref<16x6xf32, #tpu.memory_space<vmem>>, %arg5: memref<1x1xf32, #tpu.memory_space<vmem>>) attributes {dimension_semantics = [#tpu.dimension_semantics<arbitrary>], iteration_bounds = array<i64: 1>, scalar_prefetch = 0 : i64, scratch_operands = 0 : i64, tpu.core_type = #tpu.core_type<tc>, window_params = [{transform_indices = @transform_0, window_bounds = array<i64: 32, 16>}, {transform_indices = @transform_1, window_bounds = array<i64: 32, 16>}, {pipeline_mode = #tpu.pipeline_mode<synchronous>, transform_indices = @transform_2, window_bounds = array<i64: 12, 32>}, {pipeline_mode = #tpu.pipeline_mode<synchronous>, transform_indices = @transform_3, window_bounds = array<i64: 16, 6>}, {pipeline_mode = #tpu.pipeline_mode<synchronous>, transform_indices = @transform_4, window_bounds = array<i64: 1, 1>}]} {
    %c0_i32 = arith.constant 0 : i32
    %0 = arith.cmpi eq, %arg0, %c0_i32 : i32
    %1 = arith.extui %0 : i1 to i32
    %c0_i32_0 = arith.constant 0 : i32
    %2 = arith.cmpi ne, %1, %c0_i32_0 : i32
    scf.if %2 {
      %cst_32 = arith.constant 0.000000e+00 : f32
      %63 = vector.broadcast %cst_32 : f32 to vector<1x1xf32>
      %c0_33 = arith.constant 0 : index
      %c0_34 = arith.constant 0 : index
      %64 = vector.load %arg5[%c0_33, %c0_34] : memref<1x1xf32, #tpu.memory_space<vmem>>, vector<1x1xf32>
      tpu.vector_store %arg5[%c0_33, %c0_34], %63 {strides = array<i32>} : memref<1x1xf32, #tpu.memory_space<vmem>>, vector<1x1xf32>,
    } else {
    }
    %c0 = arith.constant 0 : index
    %c0_1 = arith.constant 0 : index
    %3 = vector.load %arg1[%c0, %c0_1] : memref<32x16xf32, #tpu.memory_space<vmem>>, vector<32x16xf32>
    %cst = arith.constant 9.99999997E-7 : f32
    %cst_2 = arith.constant 0.999998986 : f32
    %4 = vector.broadcast %cst : f32 to vector<32x16xf32>
    %5 = arith.maximumf %4, %3 : vector<32x16xf32>
    %6 = vector.broadcast %cst_2 : f32 to vector<32x16xf32>
    %7 = arith.minimumf %6, %5 : vector<32x16xf32>
    %c0_3 = arith.constant 0 : index
    %c0_4 = arith.constant 0 : index
    %8 = vector.load %arg2[%c0_3, %c0_4] : memref<32x16xf32, #tpu.memory_space<vmem>>, vector<32x16xf32>
    %cst_5 = arith.constant 9.99999997E-7 : f32
    %cst_6 = arith.constant 0.999998986 : f32
    %9 = vector.broadcast %cst_5 : f32 to vector<32x16xf32>
    %10 = arith.maximumf %9, %8 : vector<32x16xf32>
    %11 = vector.broadcast %cst_6 : f32 to vector<32x16xf32>
    %12 = arith.minimumf %11, %10 : vector<32x16xf32>
    %c0_7 = arith.constant 0 : index
    %c0_8 = arith.constant 0 : index
    %13 = vector.load %arg3[%c0_7, %c0_8] : memref<12x32xf32, #tpu.memory_space<vmem>>, vector<12x32xf32>
    %c0_9 = arith.constant 0 : index
    %c0_10 = arith.constant 0 : index
    %14 = vector.load %arg4[%c0_9, %c0_10] : memref<16x6xf32, #tpu.memory_space<vmem>>, vector<16x6xf32>
    %cst_11 = arith.constant dense<0.000000e+00> : vector<32x6xf32>
    %15 = tpu.matmul %7, %14, %cst_11 {dimension_numbers = #tpu.dot_dimension_numbers<[1], [0], [0], [1], [0, 0, 1, 1], [], []>} : vector<32x16xf32>, vector<16x6xf32>, vector<32x6xf32> -> vector<32x6xf32>
    %cst_12 = arith.constant dense<0.000000e+00> : vector<12x6xf32>
    %16 = tpu.matmul %13, %15, %cst_12 {dimension_numbers = #tpu.dot_dimension_numbers<[1], [0], [0], [1], [0, 0, 1, 1], [], []>} : vector<12x32xf32>, vector<32x6xf32>, vector<12x6xf32> -> vector<12x6xf32>
    %cst_13 = arith.constant dense<0.000000e+00> : vector<32x6xf32>
    %17 = tpu.matmul %12, %14, %cst_13 {dimension_numbers = #tpu.dot_dimension_numbers<[1], [0], [0], [1], [0, 0, 1, 1], [], []>} : vector<32x16xf32>, vector<16x6xf32>, vector<32x6xf32> -> vector<32x6xf32>
    %cst_14 = arith.constant dense<0.000000e+00> : vector<12x6xf32>
    %18 = tpu.matmul %13, %17, %cst_14 {dimension_numbers = #tpu.dot_dimension_numbers<[1], [0], [0], [1], [0, 0, 1, 1], [], []>} : vector<12x32xf32>, vector<32x6xf32>, vector<12x6xf32> -> vector<12x6xf32>
    %19 = arith.mulf %7, %7 : vector<32x16xf32>
    %cst_15 = arith.constant dense<0.000000e+00> : vector<32x6xf32>
    %20 = tpu.matmul %19, %14, %cst_15 {dimension_numbers = #tpu.dot_dimension_numbers<[1], [0], [0], [1], [0, 0, 1, 1], [], []>} : vector<32x16xf32>, vector<16x6xf32>, vector<32x6xf32> -> vector<32x6xf32>
    %cst_16 = arith.constant dense<0.000000e+00> : vector<12x6xf32>
    %21 = tpu.matmul %13, %20, %cst_16 {dimension_numbers = #tpu.dot_dimension_numbers<[1], [0], [0], [1], [0, 0, 1, 1], [], []>} : vector<12x32xf32>, vector<32x6xf32>, vector<12x6xf32> -> vector<12x6xf32>
    %22 = arith.mulf %16, %16 : vector<12x6xf32>
    %23 = arith.subf %21, %22 : vector<12x6xf32>
    %24 = arith.mulf %12, %12 : vector<32x16xf32>
    %cst_17 = arith.constant dense<0.000000e+00> : vector<32x6xf32>
    %25 = tpu.matmul %24, %14, %cst_17 {dimension_numbers = #tpu.dot_dimension_numbers<[1], [0], [0], [1], [0, 0, 1, 1], [], []>} : vector<32x16xf32>, vector<16x6xf32>, vector<32x6xf32> -> vector<32x6xf32>
    %cst_18 = arith.constant dense<0.000000e+00> : vector<12x6xf32>
    %26 = tpu.matmul %13, %25, %cst_18 {dimension_numbers = #tpu.dot_dimension_numbers<[1], [0], [0], [1], [0, 0, 1, 1], [], []>} : vector<12x32xf32>, vector<32x6xf32>, vector<12x6xf32> -> vector<12x6xf32>
    %27 = arith.mulf %18, %18 : vector<12x6xf32>
    %28 = arith.subf %26, %27 : vector<12x6xf32>
    %29 = arith.mulf %7, %12 : vector<32x16xf32>
    %cst_19 = arith.constant dense<0.000000e+00> : vector<32x6xf32>
    %30 = tpu.matmul %29, %14, %cst_19 {dimension_numbers = #tpu.dot_dimension_numbers<[1], [0], [0], [1], [0, 0, 1, 1], [], []>} : vector<32x16xf32>, vector<16x6xf32>, vector<32x6xf32> -> vector<32x6xf32>
    %cst_20 = arith.constant dense<0.000000e+00> : vector<12x6xf32>
    %31 = tpu.matmul %13, %30, %cst_20 {dimension_numbers = #tpu.dot_dimension_numbers<[1], [0], [0], [1], [0, 0, 1, 1], [], []>} : vector<12x32xf32>, vector<32x6xf32>, vector<12x6xf32> -> vector<12x6xf32>
    %32 = arith.mulf %16, %18 : vector<12x6xf32>
    %33 = arith.subf %31, %32 : vector<12x6xf32>
    %cst_21 = arith.constant 2.000000e+00 : f32
    %34 = vector.broadcast %cst_21 : f32 to vector<12x6xf32>
    %35 = arith.mulf %34, %16 : vector<12x6xf32>
    %36 = arith.mulf %35, %18 : vector<12x6xf32>
    %cst_22 = arith.constant 9.99999974E-5 : f32
    %37 = vector.broadcast %cst_22 : f32 to vector<12x6xf32>
    %38 = arith.addf %36, %37 : vector<12x6xf32>
    %39 = arith.mulf %16, %16 : vector<12x6xf32>
    %40 = arith.mulf %18, %18 : vector<12x6xf32>
    %41 = arith.addf %39, %40 : vector<12x6xf32>
    %cst_23 = arith.constant 9.99999974E-5 : f32
    %42 = vector.broadcast %cst_23 : f32 to vector<12x6xf32>
    %43 = arith.addf %41, %42 : vector<12x6xf32>
    %cst_24 = arith.constant 2.000000e+00 : f32
    %44 = vector.broadcast %cst_24 : f32 to vector<12x6xf32>
    %45 = arith.mulf %44, %33 : vector<12x6xf32>
    %cst_25 = arith.constant 8.99999984E-4 : f32
    %46 = vector.broadcast %cst_25 : f32 to vector<12x6xf32>
    %47 = arith.addf %45, %46 : vector<12x6xf32>
    %48 = arith.addf %23, %28 : vector<12x6xf32>
    %cst_26 = arith.constant 8.99999984E-4 : f32
    %49 = vector.broadcast %cst_26 : f32 to vector<12x6xf32>
    %50 = arith.addf %48, %49 : vector<12x6xf32>
    %51 = arith.mulf %38, %47 : vector<12x6xf32>
    %52 = arith.mulf %43, %50 : vector<12x6xf32>
    %53 = tpu.reciprocal %52 {approx = true} : vector<12x6xf32> -> vector<12x6xf32>
    %54 = arith.mulf %51, %53 : vector<12x6xf32>
    %c0_27 = arith.constant 0 : index
    %c0_28 = arith.constant 0 : index
    %55 = vector.load %arg5[%c0_27, %c0_28] : memref<1x1xf32, #tpu.memory_space<vmem>>, vector<1x1xf32>
    %56 = vector.shape_cast %54 : vector<12x6xf32> to vector<1x12x6xf32>
    %cst_29 = arith.constant dense<0.000000e+00> : vector<1xf32>
    %57 = vector.multi_reduction <add>, %56, %cst_29 [1, 2] : vector<1x12x6xf32> to vector<1xf32>
    %58 = vector.shape_cast %57 : vector<1xf32> to vector<1x1x1xf32>
    %59 = vector.extract %58[0, 0, 0] : f32 from vector<1x1x1xf32>
    %60 = vector.broadcast %59 : f32 to vector<1x1xf32>
    %61 = arith.addf %55, %60 : vector<1x1xf32>
    %c0_30 = arith.constant 0 : index
    %c0_31 = arith.constant 0 : index
    %62 = vector.load %arg5[%c0_30, %c0_31] : memref<1x1xf32, #tpu.memory_space<vmem>>, vector<1x1xf32>
    tpu.vector_store %arg5[%c0_30, %c0_31], %61 {strides = array<i32>} : memref<1x1xf32, #tpu.memory_space<vmem>>, vector<1x1xf32>,
    return
  }
  func.func @transform_0(%arg0: i32) -> (i32, i32) {
    %c0_i32 = arith.constant 0 : i32
    %c0_i32_0 = arith.constant 0 : i32
    return %arg0, %c0_i32 : i32, i32
  }
  func.func @transform_1(%arg0: i32) -> (i32, i32) {
    %c0_i32 = arith.constant 0 : i32
    %c0_i32_0 = arith.constant 0 : i32
    return %arg0, %c0_i32 : i32, i32
  }
  func.func @transform_2(%arg0: i32) -> (i32, i32) {
    %c0_i32 = arith.constant 0 : i32
    %c0_i32_0 = arith.constant 0 : i32
    %c0_i32_1 = arith.constant 0 : i32
    return %c0_i32, %c0_i32_0 : i32, i32
  }
  func.func @transform_3(%arg0: i32) -> (i32, i32) {
    %c0_i32 = arith.constant 0 : i32
    %c0_i32_0 = arith.constant 0 : i32
    %c0_i32_1 = arith.constant 0 : i32
    return %c0_i32, %c0_i32_0 : i32, i32
  }
  func.func @transform_4(%arg0: i32) -> (i32, i32) {
    %c0_i32 = arith.constant 0 : i32
    %c0_i32_0 = arith.constant 0 : i32
    %c0_i32_1 = arith.constant 0 : i32
    return %c0_i32, %c0_i32_0 : i32, i32
  }
}

</mosaic_0001>

<bundles_post_ra>
// kernel: combined_loss.13
= control target key start
LH: loop header
LB: loop body
LE: loop exit
PB: predicated region body
PF: predicated region fallthrough
CT: control target
= control target key end

     0   :  { %s3995_s12 = smov 0   ;;  %s5533_s0 = inlined_call_operand.vmem [shape: bf16[4,18,18,3], index: 0, kind: input, shape index: {}]   ;;  %s5534_s1 = inlined_call_operand.vmem [shape: bf16[9,3,64], index: 1, kind: input, shape index: {}]   ;;  %s5535_s2 = inlined_call_operand.vmem [shape: f32[1,64], index: 2, kind: input, shape index: {}]   ;;  %s5536_s3 = inlined_call_operand.vmem [shape: bf16[4,256,64], index: 3, kind: output, shape index: {}]  }
   0x1 LB: > { %s3177_s13 = sadd.s32 4294967295, %s3972_s12   ;;  %p3181_p0 = scmp.ge.s32.totalorder %s3972_s12, 1  ;;  %s3972_s12 = sphi %s3995_s12, %s13_s12  }
   0x2   : > { %p137_p1 = scmp.lt.s32.totalorder %s3972_s12, 5 }
   0x4   : > { %p138_p2 = pnand %p3181_p0, %p137_p1 }
   0x6   : > { %141 = sbr.rel (%p138_p2) target bundleno = 558 (0x22e), region = 32 }
   0xb   : > { %v3185_v0 = vld [vmem:[%s5534_s1 + $0x2] sm:$0x3]  ;;  %vm713_vm0 = vcmask 1040384   ;;  %vm714_vm1 = vcmask 1041408   ;;  %p161_p3 = scmp.lt.s32.totalorder %s3177_s13, 3  ;;  %v3974_v1 = vmov 65535  }
   0xc   : > { %v715_v2 = vsel %vm713_vm0, 4294967295, %v3974_v1  ;;  %v226_v4 = vld [vmem:[%s5534_s1] sm:$0x3]  ;;  %v3266_v5 = vld [vmem:[%s5534_s1 + $0x4] sm:$0x3]  ;;  %vm664_vm4 = vcmask 23552  }
   0xd   : > { %v4006_v3 = vsel %vm714_vm1, %v715_v2, 0  ;;  %s5746_s13 = smov (!%p161_p3, %s3177_s13), 3  ;;  %vm227_vm2 = vsmask.f32 3328  ;;  %vm228_vm3 = vsmask.f32 7440 }
   0xe   : > { %5582 = vst [vmem:[#allocation2_spill] sm:$0xff] %v4006_v3  ;;  %v718_v6 = vand.u32 %v3185_v0, %v4006_v3  ;;  %v4018_v7 = vand.u32 %v4006_v3, %v226_v4  ;;  %v4021_v8 = vand.u32 %v3266_v5, %v4006_v3  ;;  %s3938_s20 = smul.u32 216, %s5746_s13  ;;  %v3299_v9 = vld [vmem:[%s5534_s1 + $0x6] sm:$0x3]  ;;  %v3317_v10 = vld [vmem:[%s5534_s1 + $0x8] sm:$0x3]  ;;  %vm4080_vm5 = vmor %vm227_vm2, %vm228_vm3 }
   0xf   : > { %v4062_v23 = vand.u32 %v3299_v9, %v4006_v3  ;;  %v4065_v24 = vand.u32 %v3317_v10, %v4006_v3  ;;  %v5583_v39 = vmov 0  ;;  %vm1189_vm6 = vcmask 1042432   ;;  %s3444_s11 = sshll.u32 %s5746_s13, 7 }
  0x10   : > { %3936 = vmatprep.subr.bf16.mxu1 %v718_v6  ;;  %3630 = vmatprep.subr.bf16.mxu0 %v718_v6  ;;  %s4027_s23 = scalar_lea.vmem %s5533_s0, %s3938_s20  ;;  %v5584_v39 = vsel %vm4080_vm5, 4294967295, %v5583_v39  ;;  %vm1190_vm7 = vcmask 1046532   ;;  %s5360_s15 = scalar_lea.vmem %s5536_s3, %s3444_s11  ;;  %vm3089_vm9 = vcmask 519168  }
  0x11   : > { %3937 = vmatpush3.bf16.msra.mxu1 %v718_v6  ;;  %3631 = vmatpush3.bf16.msra.mxu0 %v718_v6  ;;  %v4036_v11 = vld [vmem:[%s4027_s23] sm:$0xf]  ;;  %v4039_v12 = vld [vmem:[%s4027_s23 + $0x4] sm:$0xf]  ;;  %v4042_v13 = vld [vmem:[%s4027_s23 + $0x8] sm:$0x1] }
  0x12   : > { %3664 = vmatprep.subr.bf16.mxu1 %v4018_v7  ;;  %3698 = vmatprep.subr.bf16.mxu0 %v4021_v8  ;;  %v231_v14 = vshrl.u32 %v4036_v11, 16  ;;  %v234_v15 = vshll.u32 %v4036_v11, 16  ;;  %v240_v16 = vshll.u32 %v4039_v12, 16  ;;  %v244_v17 = vshrl.u32 %v4039_v12, 16  ;;  %v4051_v18 = vld [vmem:[%s4027_s23 + $0x60] sm:$0xf]  ;;  %vm4391_vm8 = vmor %vm1189_vm6, %vm1190_vm7 }
  0x13   : > { %v250_v19 = vshll.u32 %v4042_v13, 16  ;;  %v4056_v21 = vld [vmem:[%s4027_s23 + $0x64] sm:$0xf]  ;;  %v4059_v22 = vld [vmem:[%s4027_s23 + $0x68] sm:$0x1]  ;;  %v423_v30 = vshrl.u32 %v4051_v18, 16 }
  0x14   : > { %v233_v25 = vrot.slane %v231_v14, 4  ;;  %v236_v26 = vrot.slane %v234_v15, 5  ;;  %v242_v27 = vrot.slane %v240_v16, 5  ;;  %v246_v28 = vrot.slane %v244_v17, 4  ;;  %v4073_v37 = vld [vmem:[%s4027_s23 + $0xc] sm:$0xf] }
  0x15   : > { %v252_v29 = vrot.slane %v250_v19, 5  ;;  %v426_v31 = vshll.u32 %v4051_v18, 16  ;;  %v432_v32 = vshll.u32 %v4056_v21, 16  ;;  %v436_v35 = vshrl.u32 %v4056_v21, 16  ;;  %v4076_v38 = vld [vmem:[%s4027_s23 + $0x10] sm:$0xf] }
  0x16   : > { %v237_v33 = vor.u32 %v236_v26, %v233_v25  ;;  %v247_v34 = vor.u32 %v246_v28, %v242_v27  ;;  %v442_v36 = vshll.u32 %v4059_v22, 16  ;;  %5585 = vst [vmem:[#allocation3_spill] sm:$0xff] %v5584_v39  ;;  %v425_v40 = vrot.slane %v423_v30, 4  ;;  %v4087_v49 = vld [vmem:[%s4027_s23 + $0x14] sm:$0x1] }
  0x17   : > { %v428_v41 = vrot.slane %v426_v31, 5  ;;  %v434_v42 = vrot.slane %v432_v32, 5  ;;  %v438_v46 = vrot.slane %v436_v35, 4  ;;  %v255_v50 = vshrl.u32 %v4073_v37, 16  ;;  %v4098_v61 = vld [vmem:[%s4027_s23 + $0x6c] sm:$0xf] }
  0x18   : > { %v238_v44 = vrot.slane %v237_v33, 4  ;;  %v248_v45 = vrot.slane %v247_v34, 4  ;;  %v444_v47 = vrot.slane %v442_v36, 5  ;;  %v258_v51 = vshll.u32 %v4073_v37, 16  ;;  %5586 = vst [vmem:[#allocation4_spill] sm:$0xff] %v4098_v61 }
  0x19   : > { %v429_v48 = vor.u32 %v428_v41, %v425_v40  ;;  %v264_v52 = vshll.u32 %v4076_v38, 16  ;;  %v439_v55 = vor.u32 %v438_v46, %v434_v42  ;;  %v268_v56 = vshrl.u32 %v4076_v38, 16  ;;  %v4102_v2 = vld [vmem:[%s4027_s23 + $0x70] sm:$0xf]  ;;  %v4110_v10 = vld [vmem:[%s4027_s23 + $0x74] sm:$0x1] }
  0x1a   : > { %v243_v53 = vsel %vm4080_vm5, %v238_v44, %v242_v27  ;;  %v253_v54 = vsel %vm4080_vm5, %v248_v45, %v252_v29  ;;  %v257_v59 = vrot.slane %v255_v50, 4  ;;  %v260_v60 = vrot.slane %v258_v51, 5  ;;  %5587 = vst [vmem:[#allocation5_spill] sm:$0xff] %v4110_v10  ;;  %v4116_v19 = vld [vmem:[%s4027_s23 + $0x18] sm:$0xf] }
  0x1b   : > { %v3186_v57 = vcombine.low %v243_v53, %v253_v54  ;;  %v430_v58 = vrot.slane %v429_v48, 4  ;;  %v440_v62 = vrot.slane %v439_v55, 4  ;;  %v266_v63 = vrot.slane %v264_v52, 5  ;;  %v4125_v33 = vld [vmem:[%s4027_s23 + $0x1c] sm:$0xf] }
  0x1c   : > { %v270_v0 = vrot.slane %v268_v56, 4  ;;  %v274_v1 = vshll.u32 %v4087_v49, 16  ;;  %v261_v5 = vor.u32 %v260_v60, %v257_v59  ;;  %v447_v17 = vshrl.u32 %v4098_v61, 16  ;;  %v4132_v40 = vld [vmem:[%s4027_s23 + $0x20] sm:$0x1] }
  0x1d   : > { %3632 = vmatprep.mubr.msk.bf16.mxu0 %vm664_vm4, %v3186_v57  ;;  %v435_v4 = vsel %vm4080_vm5, %v430_v58, %v434_v42  ;;  %v445_v14 = vsel %vm4080_vm5, %v440_v62, %v444_v47  ;;  %v450_v27 = vshll.u32 %v4098_v61, 16  ;;  %v456_v28 = vshll.u32 %v4102_v2, 16  ;;  %v4139_v47 = vld [vmem:[%s4027_s23 + $0x78] sm:$0xf]  ;;  %v4147_v57 = vld [vmem:[%s4027_s23 + $0x7c] sm:$0xf] }
  0x1e   : > { %v271_v15 = vor.u32 %v270_v0, %v266_v63  ;;  %v276_v16 = vrot.slane %v274_v1, 5  ;;  %v4118_v25 = vcombine.low %v435_v4, %v445_v14  ;;  %v262_v26 = vrot.slane %v261_v5, 4  ;;  %5589 = vst [vmem:[#allocation7_spill] sm:$0xff] %v4139_v47  ;;  %5591 = vst [vmem:[#allocation9_spill] sm:$0xff] %v4147_v57  ;;  %v4155_v5 = vld [vmem:[%s4027_s23 + $0x80] sm:$0x1] }
  0x1f   : > { %v449_v30 = vrot.slane %v447_v17, 4  ;;  %v460_v31 = vshrl.u32 %v4102_v2, 16  ;;  %v466_v32 = vshll.u32 %v4110_v10, 16  ;;  %v452_v35 = vrot.slane %v450_v27, 5  ;;  %5592 = vst [vmem:[#allocation10_spill] sm:$0xff] %v4155_v5 }
  0x20   : > { %5588 = vst [vmem:[#allocation6_spill] sm:$0xff] %v4118_v25  ;;  %v272_v29 = vrot.slane %v271_v15, 4  ;;  %3648 = vmatprep.mubr.msk.bf16.mxu1 %vm664_vm4, %v4118_v25  ;;  %v267_v34 = vsel %vm4080_vm5, %v262_v26, %v266_v63  ;;  %v458_v36 = vrot.slane %v456_v28, 5  ;;  %v279_v41 = vshrl.u32 %v4116_v19, 16  ;;  %v4161_v26 = vld [vmem:[%s4027_s23 + $0x24] sm:$0xf] }
  0x21   : > { %v462_v44 = vrot.slane %v460_v31, 4  ;;  %v468_v45 = vrot.slane %v466_v32, 5  ;;  %v282_v46 = vshll.u32 %v4116_v19, 16  ;;  %v453_v50 = vor.u32 %v452_v35, %v449_v30  ;;  %v4168_v30 = vld [vmem:[%s4027_s23 + $0x28] sm:$0xf] }
  0x22   : > { %v277_v42 = vsel %vm4080_vm5, %v272_v29, %v276_v16  ;;  %v281_v51 = vrot.slane %v279_v41, 4  ;;  %v288_v52 = vshll.u32 %v4125_v33, 16  ;;  %v292_v55 = vshrl.u32 %v4125_v33, 16 }
  0x23   : > { %v4141_v48 = vcombine.low %v267_v34, %v277_v42  ;;  %v463_v53 = vor.u32 %v462_v44, %v458_v36  ;;  %v284_v54 = vrot.slane %v282_v46, 5  ;;  %v298_v56 = vshll.u32 %v4132_v40, 16  ;;  %v4176_v44 = vld [vmem:[%s4027_s23 + $0x2c] sm:$0x1] }
  0x24   : > { %v454_v58 = vrot.slane %v453_v50, 4  ;;  %v290_v59 = vrot.slane %v288_v52, 5  ;;  %v471_v60 = vshrl.u32 %v4139_v47, 16  ;;  %v474_v62 = vshll.u32 %v4139_v47, 16 }
  0x25   : > { %5590 = vst [vmem:[#allocation8_spill] sm:$0xff] %v4141_v48  ;;  %3633 = vmatmul.mubr.msk.bf16.vlgmr.msra.gmra.mxu0 %vm664_vm4, %v4141_v48  ;;  %v464_v63 = vrot.slane %v463_v53, 4  ;;  %v285_v0 = vor.u32 %v284_v54, %v281_v51  ;;  %v294_v1 = vrot.slane %v292_v55, 4  ;;  %v300_v4 = vrot.slane %v298_v56, 5  ;;  %v4184_v53 = vld [vmem:[%s4027_s23 + $0x84] sm:$0xf] }
  0x26   : > { %3699 = vmatpush3.bf16.msra.mxu0 %v4021_v8  ;;  %v459_v14 = vsel %vm4080_vm5, %v454_v58, %v458_v36  ;;  %v473_v15 = vrot.slane %v471_v60, 4  ;;  %v476_v16 = vrot.slane %v474_v62, 5  ;;  %v480_v17 = vshll.u32 %v4147_v57, 16 }
  0x27   : > { %3766 = vmatprep.subr.bf16.mxu0 %v4065_v24  ;;  %v469_v8 = vsel %vm4080_vm5, %v464_v63, %v468_v45  ;;  %v286_v27 = vrot.slane %v285_v0, 4  ;;  %v295_v28 = vor.u32 %v294_v1, %v290_v59  ;;  %v484_v29 = vshrl.u32 %v4147_v57, 16 }
  0x28   : > { %v4170_v31 = vcombine.low %v459_v14, %v469_v8  ;;  %v477_v32 = vor.u32 %v476_v16, %v473_v15  ;;  %v482_v34 = vrot.slane %v480_v17, 5  ;;  %v490_v35 = vshll.u32 %v4155_v5, 16  ;;  %v4200_v14 = vld [vmem:[%s4027_s23 + $0x8c] sm:$0x1]  ;;  %v4330_v5 = vld [vmem:[%s4027_s23 + $0xb0] sm:$0x1] }
  0x29   : > { %v291_v36 = vsel %vm4080_vm5, %v286_v27, %v290_v59  ;;  %v296_v41 = vrot.slane %v295_v28, 4  ;;  %v486_v42 = vrot.slane %v484_v29, 4  ;;  %v303_v45 = vshrl.u32 %v4161_v26, 16  ;;  %v4191_v59 = vld [vmem:[%s4027_s23 + $0x88] sm:$0xf]  ;;  %5604 = vst [vmem:[#allocation22_spill] sm:$0xff] %v4330_v5 }
  0x2a   : > { %5593 = vst [vmem:[#allocation11_spill] sm:$0xff] %v4170_v31  ;;  %3649 = vmatmul.mubr.msk.bf16.vlgmr.msra.gmra.mxu1 %vm664_vm4, %v4170_v31  ;;  %v478_v46 = vrot.slane %v477_v32, 4  ;;  %v492_v50 = vrot.slane %v490_v35, 5  ;;  %v306_v51 = vshll.u32 %v4161_v26, 16  ;;  %v312_v52 = vshll.u32 %v4168_v30, 16 }
  0x2b   : > { %3665 = vmatpush3.bf16.msra.mxu1 %v4018_v7  ;;  %v301_v54 = vsel %vm4080_vm5, %v296_v41, %v300_v4  ;;  %v487_v55 = vor.u32 %v486_v42, %v482_v34  ;;  %v305_v56 = vrot.slane %v303_v45, 4  ;;  %v316_v58 = vshrl.u32 %v4168_v30, 16  ;;  %v4209_v28 = vld [vmem:[%s4027_s23 + $0x30] sm:$0xf]  ;;  %v4281_v31 = vld [vmem:[%s4027_s23 + $0xa0] sm:$0xf] }
  0x2c   : > { %v4193_v60 = vcombine.low %v291_v36, %v301_v54  ;;  %v483_v62 = vsel %vm4080_vm5, %v478_v46, %v482_v34  ;;  %v308_v63 = vrot.slane %v306_v51, 5  ;;  %v314_v0 = vrot.slane %v312_v52, 5  ;;  %3732 = vmatprep.subr.bf16.mxu1 %v4062_v23  ;;  %v4214_v36 = vld [vmem:[%s4027_s23 + $0x34] sm:$0xf] }
  0x2d   : > { %v488_v7 = vrot.slane %v487_v55, 4  ;;  %v318_v1 = vrot.slane %v316_v58, 4  ;;  %v322_v4 = vshll.u32 %v4176_v44, 16  ;;  %v495_v15 = vshrl.u32 %v4184_v53, 16  ;;  %v4225_v58 = vld [vmem:[%s4027_s23 + $0x38] sm:$0x1] }
  0x2e   : > { %5594 = vst [vmem:[#allocation12_spill] sm:$0xff] %v4193_v60  ;;  %3636 = vmatprep.mubr.msk.bf16.mxu0 %vm664_vm4, %v4193_v60  ;;  %v309_v16 = vor.u32 %v308_v63, %v305_v56  ;;  %v498_v17 = vshll.u32 %v4184_v53, 16  ;;  %v504_v8 = vshll.u32 %v4191_v59, 16  ;;  %v508_v27 = vshrl.u32 %v4191_v59, 16 }
  0x2f   : > { %v493_v29 = vsel %vm4080_vm5, %v488_v7, %v492_v50  ;;  %v319_v32 = vor.u32 %v318_v1, %v314_v0  ;;  %v324_v34 = vrot.slane %v322_v4, 5  ;;  %v497_v35 = vrot.slane %v495_v15, 4  ;;  %v4230_v7 = vld [vmem:[%s4027_s23 + $0x90] sm:$0xf] }
  0x30   : > { %v4216_v41 = vcombine.low %v483_v62, %v493_v29  ;;  %v310_v42 = vrot.slane %v309_v16, 4  ;;  %v500_v45 = vrot.slane %v498_v17, 5  ;;  %v506_v46 = vrot.slane %v504_v8, 5  ;;  %v4235_v17 = vld [vmem:[%s4027_s23 + $0x94] sm:$0xf] }
  0x31   : > { %v320_v51 = vrot.slane %v319_v32, 4  ;;  %v510_v52 = vrot.slane %v508_v27, 4  ;;  %v514_v54 = vshll.u32 %v4200_v14, 16  ;;  %v327_v55 = vshrl.u32 %v4209_v28, 16 }
  0x32   : > { %5595 = vst [vmem:[#allocation13_spill] sm:$0xff] %v4216_v41  ;;  %3652 = vmatprep.mubr.msk.bf16.mxu1 %vm664_vm4, %v4216_v41  ;;  %v315_v50 = vsel %vm4080_vm5, %v310_v42, %v314_v0  ;;  %v501_v56 = vor.u32 %v500_v45, %v497_v35  ;;  %v330_v62 = vshll.u32 %v4209_v28, 16  ;;  %v336_v63 = vshll.u32 %v4214_v36, 16 }
  0x33   : > { %v325_v1 = vsel %vm4080_vm5, %v320_v51, %v324_v34  ;;  %v511_v4 = vor.u32 %v510_v52, %v506_v46  ;;  %v516_v15 = vrot.slane %v514_v54, 5  ;;  %v329_v16 = vrot.slane %v327_v55, 4  ;;  %v4247_v52 = vld [vmem:[%s4027_s23 + $0x98] sm:$0x1] }
  0x34   : > { %v4237_v0 = vcombine.low %v315_v50, %v325_v1  ;;  %v502_v8 = vrot.slane %v501_v56, 4  ;;  %v332_v27 = vrot.slane %v330_v62, 5  ;;  %v338_v29 = vrot.slane %v336_v63, 5  ;;  %v4252_v50 = vld [vmem:[%s4027_s23 + $0x3c] sm:$0xf] }
  0x35   : > { %v512_v32 = vrot.slane %v511_v4, 4  ;;  %v340_v35 = vshrl.u32 %v4214_v36, 16  ;;  %v346_v42 = vshll.u32 %v4225_v58, 16  ;;  %v519_v34 = vshrl.u32 %v4230_v7, 16  ;;  %v4257_v4 = vld [vmem:[%s4027_s23 + $0x40] sm:$0xf] }
  0x36   : > { %5596 = vst [vmem:[#allocation14_spill] sm:$0xff] %v4237_v0  ;;  %3637 = vmatmul.mubr.msk.bf16.gmra.mxu0 %vm664_vm4, %v4237_v0  ;;  %v507_v45 = vsel %vm4080_vm5, %v502_v8, %v506_v46  ;;  %v333_v51 = vor.u32 %v332_v27, %v329_v16  ;;  %v522_v54 = vshll.u32 %v4230_v7, 16  ;;  %v528_v55 = vshll.u32 %v4235_v17, 16  ;;  %v4311_v0 = vld [vmem:[%s4027_s23 + $0x50] sm:$0x1] }
  0x37   : > { %v517_v56 = vsel %vm4080_vm5, %v512_v32, %v516_v15  ;;  %v342_v62 = vrot.slane %v340_v35, 4  ;;  %v348_v63 = vrot.slane %v346_v42, 5  ;;  %v521_v1 = vrot.slane %v519_v34, 4  ;;  %v4269_v35 = vld [vmem:[%s4027_s23 + $0x44] sm:$0x1] }
  0x38   : > { %v4259_v46 = vcombine.low %v507_v45, %v517_v56  ;;  %v334_v16 = vrot.slane %v333_v51, 4  ;;  %v524_v8 = vrot.slane %v522_v54, 5  ;;  %v530_v27 = vrot.slane %v528_v55, 5  ;;  %v4274_v45 = vld [vmem:[%s4027_s23 + $0x9c] sm:$0xf] }
  0x39   : > { %v343_v43 = vor.u32 %v342_v62, %v338_v29  ;;  %v532_v9 = vshrl.u32 %v4235_v17, 16  ;;  %v538_v20 = vshll.u32 %v4247_v52, 16  ;;  %v351_v6 = vshrl.u32 %v4252_v50, 16 }
  0x3a   : > { %5597 = vst [vmem:[#allocation15_spill] sm:$0xff] %v4259_v46  ;;  %3653 = vmatmul.mubr.msk.bf16.gmra.mxu1 %vm664_vm4, %v4259_v46  ;;  %v339_v15 = vsel %vm4080_vm5, %v334_v16, %v338_v29  ;;  %v525_v32 = vor.u32 %v524_v8, %v521_v1  ;;  %v354_v42 = vshll.u32 %v4252_v50, 16  ;;  %v360_v34 = vshll.u32 %v4257_v4, 16 }
  0x3b   : > { %v344_v51 = vrot.slane %v343_v43, 4  ;;  %v534_v54 = vrot.slane %v532_v9, 4  ;;  %v540_v55 = vrot.slane %v538_v20, 5  ;;  %v353_v56 = vrot.slane %v351_v6, 4 }
  0x3c   : > { %v526_v62 = vrot.slane %v525_v32, 4  ;;  %v356_v46 = vrot.slane %v354_v42, 5  ;;  %v362_v41 = vrot.slane %v360_v34, 5  ;;  %v364_v29 = vshrl.u32 %v4257_v4, 16  ;;  %v4289_v42 = vld [vmem:[%s4027_s23 + $0xa4] sm:$0x1] }
  0x3d   : > { %v349_v1 = vsel %vm4080_vm5, %v344_v51, %v348_v63  ;;  %v535_v16 = vor.u32 %v534_v54, %v530_v27  ;;  %v370_v8 = vshll.u32 %v4269_v35, 16  ;;  %v543_v43 = vshrl.u32 %v4274_v45, 16  ;;  %5599 = vst [vmem:[#allocation17_spill] sm:$0xff] %v4289_v42  ;;  %v4292_v34 = vld [vmem:[%s4027_s23 + $0x48] sm:$0xf] }
  0x3e   : > { %v4284_v9 = vcombine.low %v339_v15, %v349_v1  ;;  %v531_v20 = vsel %vm4080_vm5, %v526_v62, %v530_v27  ;;  %v357_v6 = vor.u32 %v356_v46, %v353_v56  ;;  %v366_v32 = vrot.slane %v364_v29, 4 }
  0x3f   : > { %v536_v63 = vrot.slane %v535_v16, 4  ;;  %v372_v51 = vrot.slane %v370_v8, 5  ;;  %v545_v54 = vrot.slane %v543_v43, 4  ;;  %v546_v25 = vshll.u32 %v4274_v45, 16  ;;  %v4303_v16 = vld [vmem:[%s4027_s23 + $0x4c] sm:$0xf] }
  0x40   : > { %5598 = vst [vmem:[#allocation16_spill] sm:$0xff] %v4284_v9  ;;  %3640 = vmatprep.mubr.msk.bf16.mxu0 %vm664_vm4, %v4284_v9  ;;  %v358_v15 = vrot.slane %v357_v6, 4  ;;  %v367_v1 = vor.u32 %v366_v32, %v362_v41  ;;  %v552_v27 = vshll.u32 %v4281_v31, 16  ;;  %v556_v46 = vshrl.u32 %v4281_v31, 16 }
  0x41   : > { %v541_v56 = vsel %vm4080_vm5, %v536_v63, %v540_v55  ;;  %v548_v62 = vrot.slane %v546_v25, 5  ;;  %v562_v29 = vshll.u32 %v4289_v42, 16  ;;  %v375_v8 = vshrl.u32 %v4292_v34, 16  ;;  %v4314_v63 = vld [vmem:[%s4027_s23 + $0xa8] sm:$0xf] }
  0x42   : > { %v4306_v43 = vcombine.low %v531_v20, %v541_v56  ;;  %v363_v6 = vsel %vm4080_vm5, %v358_v15, %v362_v41  ;;  %v368_v32 = vrot.slane %v367_v1, 4  ;;  %v554_v9 = vrot.slane %v552_v27, 5  ;;  %5601 = vst [vmem:[#allocation19_spill] sm:$0xff] %v4314_v63 }
  0x43   : > { %v549_v60 = vor.u32 %v548_v62, %v545_v54  ;;  %v558_v48 = vrot.slane %v556_v46, 4  ;;  %v564_v55 = vrot.slane %v562_v29, 5  ;;  %v377_v25 = vrot.slane %v375_v8, 4  ;;  %v4327_v62 = vld [vmem:[%s4027_s23 + $0xac] sm:$0xf] }
  0x44   : > { %5600 = vst [vmem:[#allocation18_spill] sm:$0xff] %v4306_v43  ;;  %3656 = vmatprep.mubr.msk.bf16.mxu1 %vm664_vm4, %v4306_v43  ;;  %v373_v20 = vsel %vm4080_vm5, %v368_v32, %v372_v51  ;;  %v378_v41 = vshll.u32 %v4292_v34, 16  ;;  %v384_v15 = vshll.u32 %v4303_v16, 16  ;;  %v388_v1 = vshrl.u32 %v4303_v16, 16  ;;  %5603 = vst [vmem:[#allocation21_spill] sm:$0xff] %v4327_v62 }
  0x45   : > { %v4323_v27 = vcombine.low %v363_v6, %v373_v20  ;;  %v550_v54 = vrot.slane %v549_v60, 4  ;;  %v559_v46 = vor.u32 %v558_v48, %v554_v9  ;;  %v394_v56 = vshll.u32 %v4311_v0, 16 }
  0x46   : > { %v380_v29 = vrot.slane %v378_v41, 5  ;;  %v386_v8 = vrot.slane %v384_v15, 5  ;;  %v390_v43 = vrot.slane %v388_v1, 4  ;;  %v567_v51 = vshrl.u32 %v4314_v63, 16  ;;  %v4340_v1 = vld [vmem:[%s4027_s23 + $0x54] sm:$0xf] }
  0x47   : > { %5602 = vst [vmem:[#allocation20_spill] sm:$0xff] %v4323_v27  ;;  %3641 = vmatmul.mubr.msk.bf16.gmra.mxu0 %vm664_vm4, %v4323_v27  ;;  %v555_v60 = vsel %vm4080_vm5, %v550_v54, %v554_v9  ;;  %v560_v48 = vrot.slane %v559_v46, 4  ;;  %v396_v6 = vrot.slane %v394_v56, 5  ;;  %v570_v32 = vshll.u32 %v4314_v63, 16  ;;  %v4347_v46 = vld [vmem:[%s4027_s23 + $0x58] sm:$0xf] }
  0x48   : > { %v381_v20 = vor.u32 %v380_v29, %v377_v25  ;;  %v391_v47 = vor.u32 %v390_v43, %v386_v8  ;;  %v569_v41 = vrot.slane %v567_v51, 4  ;;  %v576_v15 = vshll.u32 %v4327_v62, 16  ;;  %v4352_v63 = vld [vmem:[%s4027_s23 + $0x5c] sm:$0x1] }
  0x49   : > { %v565_v27 = vsel %vm4080_vm5, %v560_v48, %v564_v55  ;;  %v572_v10 = vrot.slane %v570_v32, 5  ;;  %v580_v9 = vshrl.u32 %v4327_v62, 16  ;;  %v586_v54 = vshll.u32 %v4330_v5, 16 }
  0x4a   : > { %v4349_v43 = vcombine.low %v555_v60, %v565_v27  ;;  %v382_v25 = vrot.slane %v381_v20, 4  ;;  %v392_v56 = vrot.slane %v391_v47, 4  ;;  %v578_v29 = vrot.slane %v576_v15, 5 }
  0x4b   : > { %v573_v51 = vor.u32 %v572_v10, %v569_v41  ;;  %v582_v61 = vrot.slane %v580_v9, 4  ;;  %v588_v3 = vrot.slane %v586_v54, 5  ;;  %v399_v55 = vshrl.u32 %v4340_v1, 16  ;;  %v4364_v10 = vld [vmem:[%s4027_s23 + $0xb4] sm:$0xf] }
  0x4c   : > { %5605 = vst [vmem:[#allocation23_spill] sm:$0xff] %v4349_v43  ;;  %3657 = vmatmul.mubr.msk.bf16.gmra.mxu1 %vm664_vm4, %v4349_v43  ;;  %v387_v48 = vsel %vm4080_vm5, %v382_v25, %v386_v8  ;;  %v397_v27 = vsel %vm4080_vm5, %v392_v56, %v396_v6  ;;  %v402_v47 = vshll.u32 %v4340_v1, 16  ;;  %v408_v60 = vshll.u32 %v4347_v46, 16  ;;  %5606 = vst [vmem:[#allocation24_spill] sm:$0xff] %v4364_v10  ;;  %v4369_v9 = vld [vmem:[%s4027_s23 + $0xb8] sm:$0xf] }
  0x4d   : > { %v4366_v32 = vcombine.low %v387_v48, %v397_v27  ;;  %v574_v20 = vrot.slane %v573_v51, 4  ;;  %v583_v41 = vor.u32 %v582_v61, %v578_v29  ;;  %v401_v15 = vrot.slane %v399_v55, 4 }
  0x4e   : > { %v404_v54 = vrot.slane %v402_v47, 5  ;;  %v410_v43 = vrot.slane %v408_v60, 5  ;;  %v412_v8 = vshrl.u32 %v4347_v46, 16  ;;  %v418_v6 = vshll.u32 %v4352_v63, 16  ;;  %v4380_v47 = vld [vmem:[%s4027_s23 + $0xbc] sm:$0x1] }
  0x4f   : > { %5607 = vst [vmem:[#allocation25_spill] sm:$0xff] %v4366_v32  ;;  %3644 = vmatprep.mubr.msk.bf16.mxu0 %vm664_vm4, %v4366_v32  ;;  %v579_v25 = vsel %vm4080_vm5, %v574_v20, %v578_v29  ;;  %v584_v56 = vrot.slane %v583_v41, 4  ;;  %v591_v51 = vshrl.u32 %v4364_v10, 16  ;;  %v594_v61 = vshll.u32 %v4364_v10, 16 }
  0x50   : > { %v405_v55 = vor.u32 %v404_v54, %v401_v15  ;;  %v414_v48 = vrot.slane %v412_v8, 4  ;;  %v420_v27 = vrot.slane %v418_v6, 5  ;;  %v600_v60 = vshll.u32 %v4369_v9, 16 }
  0x51   : > { %v589_v5 = vsel %vm4080_vm5, %v584_v56, %v588_v3  ;;  %v593_v62 = vrot.slane %v591_v51, 4  ;;  %v596_v32 = vrot.slane %v594_v61, 5  ;;  %v604_v42 = vshrl.u32 %v4369_v9, 16 }
  0x52   : > { %v4386_v29 = vcombine.low %v579_v25, %v589_v5  ;;  %v406_v20 = vrot.slane %v405_v55, 4  ;;  %v415_v41 = vor.u32 %v414_v48, %v410_v43  ;;  %v602_v57 = vrot.slane %v600_v60, 5 }
  0x53   : > { %v597_v10 = vor.u32 %v596_v32, %v593_v62  ;;  %v606_v15 = vrot.slane %v604_v42, 4  ;;  %v610_v54 = vshll.u32 %v4380_v47, 16  ;;  %v3250_v3 = vrot.slane %v4036_v11, 9 }
  0x54   : > { %3660 = vmatprep.mubr.msk.bf16.mxu1 %vm664_vm4, %v4386_v29  ;;  %v411_v5 = vsel %vm4080_vm5, %v406_v20, %v410_v43  ;;  %v416_v6 = vrot.slane %v415_v41, 4  ;;  %v1194_v62 = vrot.slane %v4039_v12, 5  ;;  %v4403_v42 = vcombine.low %v4073_v37, %v4076_v38 }
  0x55   : > { %v598_v32 = vrot.slane %v597_v10, 4  ;;  %v607_v25 = vor.u32 %v606_v15, %v602_v57  ;;  %v612_v56 = vrot.slane %v610_v54, 5  ;;  %v3251_v51 = vrot.slane %v4073_v37, 9 }
  0x56   : > { %v421_v61 = vsel %vm4080_vm5, %v416_v6, %v420_v27  ;;  %v1195_v55 = vsel %vm4391_vm8, %v3250_v3, %v1194_v62  ;;  %v1196_v48 = vrot.slane %v1194_v62, 4  ;;  %v5610_v43 = vrot.slane %v4076_v38, 5 }
  0x57   : > { %v4412_v20 = vcombine.low %v411_v5, %v421_v61  ;;  %v603_v41 = vsel %vm4080_vm5, %v598_v32, %v602_v57  ;;  %v608_v10 = vrot.slane %v607_v25, 4  ;;  %v5612_v27 = vrot.slane %v4042_v13, 5 }
  0x58   : > { %v1203_v60 = vrot.slane %v5610_v43, 4  ;;  %v5611_v15 = vmov %v5610_v43  ;;  %v5613_v3 = vrot.slane %v4087_v49, 5  ;;  %v4430_v6 = vcombine.low %v4116_v19, %v4125_v33 }
  0x59   : > { %v1202_v37 = vsel %vm4391_vm8, %v3251_v51, %v5611_v15  ;;  %v1198_v54 = vsel %vm4391_vm8, %v1196_v48, %v5612_v27  ;;  %v3252_v57 = vrot.slane %v4116_v19, 9  ;;  %3645 = vmatmul.mubr.msk.bf16.gmra.mxu0 %vm664_vm4, %v4412_v20  ;;  %v613_v13 = vsel %vm4080_vm5, %v608_v10, %v612_v56 }
  0x5a   : > { %v1205_v5 = vsel %vm4391_vm8, %v1203_v60, %v5613_v3  ;;  %v3267_v38 = vcombine.low %v1195_v55, %v1198_v54  ;;  %v1208_v49 = vrot.slane %v4125_v33, 5  ;;  %v4440_v32 = vcombine.low %v603_v41, %v613_v13 }
  0x5b   : > { %v4437_v62 = vcombine.low %v1202_v37, %v1205_v5  ;;  %v1211_v25 = vrot.slane %v4132_v40, 5  ;;  %v1215_v61 = vrot.slane %v4168_v30, 5  ;;  %v3253_v56 = vrot.slane %v4161_v26, 9 }
  0x5c   : > { %5614 = vst [vmem:[#allocation26_spill] sm:$0xff] %v4440_v32  ;;  %3700 = vmatprep.mubr.msk.bf16.mxu0 %vm664_vm4, %v3267_v38  ;;  %v1209_v19 = vsel %vm4391_vm8, %v3252_v57, %v1208_v49  ;;  %v1210_v51 = vrot.slane %v1208_v49, 4  ;;  %3661 = vmatmul.mubr.msk.bf16.gmra.mxu1 %vm664_vm4, %v4440_v32  ;;  %v3254_v55 = vrot.slane %v4209_v28, 9  ;;  %v1222_v33 = vrot.slane %v4214_v36, 5 }
  0x5d   : > { %v5615_v40 = vcombine.low %v4036_v11, %v4039_v12  ;;  %v1217_v43 = vrot.slane %v1215_v61, 4  ;;  %v1218_v60 = vrot.slane %v4176_v44, 5  ;;  %v1225_v41 = vrot.slane %v4225_v58, 5 }
  0x5e   : > { %v1212_v48 = vsel %vm4391_vm8, %v1210_v51, %v1211_v25  ;;  %v1224_v15 = vrot.slane %v1222_v33, 4  ;;  %v1229_v37 = vrot.slane %v4257_v4, 5  ;;  %v1216_v27 = vsel %vm4391_vm8, %v3253_v56, %v1215_v61 }
  0x5f   : > { %3666 = vmatprep.mubr.msk.bf16.mxu1 %vm664_vm4, %v5615_v40  ;;  %v4460_v10 = vcombine.low %v1209_v19, %v1212_v48  ;;  %v1223_v11 = vsel %vm4391_vm8, %v3254_v55, %v1222_v33  ;;  %v1236_v12 = vrot.slane %v4303_v16, 5  ;;  %v1219_v44 = vsel %vm4391_vm8, %v1217_v43, %v1218_v60 }
  0x60   : > { %v1226_v58 = vsel %vm4391_vm8, %v1224_v15, %v1225_v41  ;;  %v3255_v54 = vrot.slane %v4252_v50, 9  ;;  %v1232_v3 = vrot.slane %v4269_v35, 5  ;;  %v1231_v5 = vrot.slane %v1229_v37, 4 }
  0x61   : > { %3701 = vmatmul.mubr.msk.bf16.vlgmr.msra.gmra.mxu0 %vm664_vm4, %v4437_v62  ;;  %v3256_v57 = vrot.slane %v4292_v34, 9  ;;  %v1238_v13 = vrot.slane %v1236_v12, 4  ;;  %v1239_v38 = vrot.slane %v4311_v0, 5  ;;  %v1243_v49 = vrot.slane %v4347_v46, 5 }
  0x62   : > { %3767 = vmatpush3.bf16.msra.mxu0 %v4065_v24  ;;  %3704 = vmatprep.mubr.msk.bf16.mxu0 %vm664_vm4, %v4460_v10  ;;  %v4487_v24 = vcombine.low %v1216_v27, %v1219_v44  ;;  %v4489_v35 = vcombine.low %v1223_v11, %v1226_v58  ;;  %v1230_v25 = vsel %vm4391_vm8, %v3255_v54, %v1229_v37  ;;  %v1250_v19 = vrot.slane %v4056_v21, 5  ;;  %v5616_v54 = vld [vmem:[#allocation9_spill] sm:$0xff] }
  0x63   : > { %v1233_v0 = vsel %vm4391_vm8, %v1231_v5, %v1232_v3  ;;  %v1237_v51 = vsel %vm4391_vm8, %v3256_v57, %v1236_v12  ;;  %v3257_v61 = vrot.slane %v4340_v1, 9  ;;  %v1253_v56 = vrot.slane %v4059_v22, 5 }
  0x64   : > { %3667 = vmatmul.mubr.msk.bf16.vlgmr.msra.gmra.mxu1 %vm664_vm4, %v4403_v42  ;;  %v1245_v55 = vrot.slane %v1243_v49, 4  ;;  %v1246_v33 = vrot.slane %v4352_v63, 5  ;;  %v3258_v40 = vrot.slane %v4051_v18, 9  ;;  %v4506_v48 = vcombine.low %v4161_v26, %v4168_v30 }
  0x65   : > { %3733 = vmatpush3.bf16.msra.mxu1 %v4062_v23  ;;  %3670 = vmatprep.mubr.msk.bf16.mxu1 %vm664_vm4, %v4430_v6  ;;  %v1240_v23 = vsel %vm4391_vm8, %v1238_v13, %v1239_v38  ;;  %v4510_v43 = vcombine.low %v4209_v28, %v4214_v36  ;;  %v4514_v60 = vcombine.low %v4252_v50, %v4257_v4  ;;  %v1252_v26 = vrot.slane %v1250_v19, 4 }
  0x66   : > { %v4518_v22 = vcombine.low %v4292_v34, %v4303_v16  ;;  %v4522_v63 = vcombine.low %v1230_v25, %v1233_v0  ;;  %v4524_v41 = vcombine.low %v1237_v51, %v1240_v23  ;;  %v4528_v30 = vcombine.low %v4184_v53, %v4191_v59  ;;  %v5619_v25 = vld [vmem:[#allocation19_spill] sm:$0xff] }
  0x67   : > { %v1244_v28 = vsel %vm4391_vm8, %v3257_v61, %v1243_v49  ;;  %v3261_v36 = vrot.slane %v4184_v53, 9  ;;  %v1271_v50 = vrot.slane %v4191_v59, 5  ;;  %v1274_v4 = vrot.slane %v4200_v14, 5  ;;  %v5618_v49 = vld [vmem:[#allocation21_spill] sm:$0xff]  ;;  %v5620_v61 = vld [vmem:[#allocation22_spill] sm:$0xff] }
  0x68   : > { %v1247_v34 = vsel %vm4391_vm8, %v1245_v55, %v1246_v33  ;;  %v1251_v16 = vsel %vm4391_vm8, %v3258_v40, %v1250_v19  ;;  %v1257_v15 = vrot.slane %v4102_v2, 5  ;;  %v4544_v37 = vcombine.low %v4230_v7, %v4235_v17 }
  0x69   : > { %3705 = vmatmul.mubr.msk.bf16.gmra.mxu0 %vm664_vm4, %v4487_v24  ;;  %v1272_v53 = vsel %vm4391_vm8, %v3261_v36, %v1271_v50  ;;  %v1273_v59 = vrot.slane %v1271_v50, 4  ;;  %v3262_v14 = vrot.slane %v4230_v7, 9  ;;  %v1278_v27 = vrot.slane %v4235_v17, 5 }
  0x6a   : > { %3708 = vmatprep.mubr.msk.bf16.mxu0 %vm664_vm4, %v4489_v35  ;;  %v1254_v11 = vsel %vm4391_vm8, %v1252_v26, %v1253_v56  ;;  %v1281_v12 = vrot.slane %v4247_v52, 5  ;;  %v4559_v44 = vcombine.low %v4274_v45, %v4281_v31  ;;  %v3263_v58 = vrot.slane %v4274_v45, 9  ;;  %v5617_v52 = vld [vmem:[#allocation17_spill] sm:$0xff]  ;;  %v3336_v45 = vld [vmem:[%s5534_s1 + $0xa] sm:$0x3]  ;;  %v5621_v26 = vld [vmem:[#allocation24_spill] sm:$0xff] }
  0x6b   : > { %v1264_v3 = vrot.slane %v5616_v54, 5  ;;  %v1275_v7 = vsel %vm4391_vm8, %v1273_v59, %v1274_v4  ;;  %v1279_v17 = vsel %vm4391_vm8, %v3262_v14, %v1278_v27  ;;  %v1280_v5 = vrot.slane %v1278_v27, 4 }
  0x6c   : > { %3671 = vmatmul.mubr.msk.bf16.gmra.mxu1 %vm664_vm4, %v4506_v48  ;;  %v4567_v57 = vcombine.low %v1272_v53, %v1275_v7  ;;  %v1285_v13 = vrot.slane %v4281_v31, 5  ;;  %v1288_v38 = vrot.slane %v5617_v52, 5  ;;  %v4573_v19 = vcombine.low %v5619_v25, %v5618_v49  ;;  %v3354_v31 = vld [vmem:[%s5534_s1 + $0xc] sm:$0x3]  ;;  %v5623_v52 = vld [vmem:[#allocation4_spill] sm:$0xff] }
  0x6d   : > { %3674 = vmatprep.mubr.msk.bf16.mxu1 %vm664_vm4, %v4510_v43  ;;  %v1282_v0 = vsel %vm4391_vm8, %v1280_v5, %v1281_v12  ;;  %v3264_v51 = vrot.slane %v5619_v25, 9  ;;  %v1292_v23 = vrot.slane %v5618_v49, 5  ;;  %v1295_v56 = vrot.slane %v5620_v61, 5  ;;  %v5622_v12 = vld [vmem:[#allocation2_spill] sm:$0xff] }
  0x6e   : > { %v4588_v55 = vcombine.low %v1279_v17, %v1282_v0  ;;  %v1286_v33 = vsel %vm4391_vm8, %v3263_v58, %v1285_v13  ;;  %v1287_v40 = vrot.slane %v1285_v13, 4  ;;  %v4594_v36 = vcombine.low %v5621_v26, %v4369_v9  ;;  %v5624_v0 = vld [vmem:[#allocation5_spill] sm:$0xff] }
  0x6f   : > { %v1293_v50 = vsel %vm4391_vm8, %v3264_v51, %v1292_v23  ;;  %v1294_v4 = vrot.slane %v1292_v23, 4  ;;  %v3265_v53 = vrot.slane %v5621_v26, 9  ;;  %v1299_v59 = vrot.slane %v4369_v9, 5 }
  0x70   : > { %v1289_v14 = vsel %vm4391_vm8, %v1287_v40, %v1288_v38  ;;  %v1302_v27 = vrot.slane %v4380_v47, 5  ;;  %v4606_v58 = vand.u32 %v3336_v45, %v5622_v12  ;;  %v4609_v7 = vand.u32 %v3354_v31, %v5622_v12 }
  0x71   : > { %3709 = vmatmul.mubr.msk.bf16.gmra.mxu0 %vm664_vm4, %v4522_v63  ;;  %v4613_v17 = vcombine.low %v1286_v33, %v1289_v14  ;;  %v1296_v5 = vsel %vm4391_vm8, %v1294_v4, %v1295_v56  ;;  %v1300_v9 = vsel %vm4391_vm8, %v3265_v53, %v1299_v59  ;;  %v1301_v13 = vrot.slane %v1299_v59, 4  ;;  %v5626_v56 = vld [vmem:[#allocation10_spill] sm:$0xff]  ;;  %v222_v4 = vld [vmem:[%s4027_s23 + $0xc8] sm:$0x1] }
  0x72   : > { %3712 = vmatprep.mubr.msk.bf16.mxu0 %vm664_vm4, %v4524_v41  ;;  %v4621_v47 = vcombine.low %v1244_v28, %v1247_v34  ;;  %v3259_v38 = vrot.slane %v5623_v52, 9  ;;  %v4624_v49 = vcombine.low %v1293_v50, %v1296_v5  ;;  %3800 = vmatprep.subr.bf16.mxu1 %v4606_v58  ;;  %v4627_v25 = vcombine.low %v1251_v16, %v1254_v11  ;;  %v5625_v28 = vld [vmem:[#allocation7_spill] sm:$0xff]  ;;  %v4706_v50 = vld [vmem:[%s4027_s23 + $0xc0] sm:$0xf] }
  0x73   : > { %v1259_v45 = vrot.slane %v1257_v15, 4  ;;  %v1260_v51 = vrot.slane %v5624_v0, 5  ;;  %v1303_v23 = vsel %vm4391_vm8, %v1301_v13, %v1302_v27  ;;  %3834 = vmatprep.subr.bf16.mxu0 %v4609_v7  ;;  %v3260_v34 = vrot.slane %v5625_v28, 9  ;;  %v5628_v0 = vld [vmem:[#allocation12_spill] sm:$0xff] }
  0x74   : > { %3675 = vmatmul.mubr.msk.bf16.gmra.mxu1 %vm664_vm4, %v4514_v60  ;;  %v1266_v61 = vrot.slane %v1264_v3, 4  ;;  %v1267_v31 = vrot.slane %v5626_v56, 5  ;;  %v4637_v33 = vcombine.low %v1300_v9, %v1303_v23  ;;  %v4641_v16 = vcombine.low %v4340_v1, %v4347_v46  ;;  %v5627_v9 = vld [vmem:[#allocation8_spill] sm:$0xff] }
  0x75   : > { %3678 = vmatprep.mubr.msk.bf16.mxu1 %vm664_vm4, %v4518_v22  ;;  %v4647_v11 = vcombine.low %v4051_v18, %v4056_v21  ;;  %v1258_v40 = vsel %vm4391_vm8, %v3259_v38, %v1257_v15  ;;  %v1261_v26 = vsel %vm4391_vm8, %v1259_v45, %v1260_v51  ;;  %v1265_v1 = vsel %vm4391_vm8, %v3260_v34, %v1264_v3  ;;  %v3372_v38 = vld [vmem:[%s5534_s1 + $0xe] sm:$0x3]  ;;  %v5629_v51 = vld [vmem:[#allocation14_spill] sm:$0xff]  ;;  %v5635_v34 = vld [vmem:[#allocation13_spill] sm:$0xff] }
  0x76   : > { %v1268_v46 = vsel %vm4391_vm8, %v1266_v61, %v1267_v31  ;;  %v4665_v18 = vcombine.low %v1258_v40, %v1261_v26  ;;  %v4671_v15 = vcombine.low %v5623_v52, %v4102_v2  ;;  %v4677_v3 = vcombine.low %v5625_v28, %v5616_v54  ;;  %v4700_v2 = vld [vmem:[%s4027_s23 + $0xc4] sm:$0xf]  ;;  %v3391_v52 = vld [vmem:[%s5534_s1 + $0x10] sm:$0x3]  ;;  %v5636_v61 = vld [vmem:[#allocation15_spill] sm:$0xff] }
  0x77   : > { %v4667_v21 = vcombine.low %v1265_v1, %v1268_v46  ;;  %v2035_v54 = vrot.slane %v4700_v2, 5  ;;  %v3335_v53 = vrot.slane %v4706_v50, 9  ;;  %v2038_v14 = vrot.slane %v222_v4, 5  ;;  %v5631_v28 = vld [vmem:[#allocation20_spill] sm:$0xff] }
  0x78   : > { %v2695_v45 = vand.u32 %v3391_v52, %v5622_v12  ;;  %v2483_v23 = vand.u32 %v3372_v38, %v5622_v12  ;;  %v5632_v12 = vld [vmem:[#allocation25_spill] sm:$0xff]  ;;  %v1805_v56 = vshrl.u32 %v4706_v50, 16  ;;  %v1808_v31 = vshll.u32 %v4706_v50, 16 }
  0x79   : > { %3713 = vmatmul.mubr.msk.bf16.gmra.mxu0 %vm664_vm4, %v4621_v47  ;;  %v2037_v59 = vrot.slane %v2035_v54, 4  ;;  %v2036_v27 = vsel %vm4391_vm8, %v3335_v53, %v2035_v54  ;;  %v1818_v40 = vshrl.u32 %v4700_v2, 16  ;;  %v1814_v26 = vshll.u32 %v4700_v2, 16 }
  0x7a   : > { %3716 = vmatprep.mubr.msk.bf16.mxu0 %vm664_vm4, %v4627_v25  ;;  %v1807_v1 = vrot.slane %v1805_v56, 4  ;;  %v1810_v46 = vrot.slane %v1808_v31, 5 }
  0x7b   : > { %v2039_v5 = vsel %vm4391_vm8, %v2037_v59, %v2038_v14  ;;  %v1816_v54 = vrot.slane %v1814_v26, 5  ;;  %v1820_v53 = vrot.slane %v1818_v40, 4  ;;  %v5637_v59 = vld [vmem:[#allocation18_spill] sm:$0xff]  ;;  %v5638_v14 = vld [vmem:[#allocation23_spill] sm:$0xff]  ;;  %v3300_v26 = vcombine.low %v4706_v50, %v4700_v2 }
  0x7c   : > { %3679 = vmatmul.mubr.msk.bf16.gmra.mxu1 %vm664_vm4, %v4641_v16  ;;  %v4718_v13 = vcombine.low %v2036_v27, %v2039_v5  ;;  %v1811_v27 = vor.u32 %v1810_v46, %v1807_v1 }
  0x7d   : > { %3682 = vmatprep.mubr.msk.bf16.mxu1 %vm664_vm4, %v4647_v11  ;;  %v1821_v5 = vor.u32 %v1820_v53, %v1816_v54 }
  0x7e   : > { %v1812_v52 = vrot.slane %v1811_v27, 4  ;;  %v4906_v27 = vld [vmem:[%s4027_s23 + $0xd0] sm:$0xf] }
  0x7f   : > { %v1822_v38 = vrot.slane %v1821_v5, 4 }
  0x80   : > { %v1817_v31 = vsel %vm4080_vm5, %v1812_v52, %v1816_v54 }
  0x81   : > { %3717 = vmatmul.mubr.msk.bf16.gmra.mxu0 %vm664_vm4, %v4665_v18 }
  0x82   : > { %3720 = vmatprep.mubr.msk.bf16.mxu0 %vm664_vm4, %v4667_v21 }
  0x84   : > { %3683 = vmatmul.mubr.msk.bf16.gmra.mxu1 %vm664_vm4, %v4671_v15 }
  0x85   : > { %3686 = vmatprep.mubr.msk.bf16.mxu1 %vm664_vm4, %v4677_v3 }
  0x89   : > { %3721 = vmatmul.mubr.msk.bf16.gmra.mxu0 %vm664_vm4, %v4567_v57 }
  0x8a   : > { %3724 = vmatprep.mubr.msk.bf16.mxu0 %vm664_vm4, %v4588_v55 }
  0x8c   : > { %3687 = vmatmul.mubr.msk.bf16.gmra.mxu1 %vm664_vm4, %v4528_v30 }
  0x8d   : > { %3690 = vmatprep.mubr.msk.bf16.mxu1 %vm664_vm4, %v4544_v37 }
  0x91   : > { %3725 = vmatmul.mubr.msk.bf16.gmra.mxu0 %vm664_vm4, %v4613_v17 }
  0x92   : > { %3728 = vmatprep.mubr.msk.bf16.mxu0 %vm664_vm4, %v4624_v49 }
  0x94   : > { %3691 = vmatmul.mubr.msk.bf16.gmra.mxu1 %vm664_vm4, %v4559_v44 }
  0x95   : > { %3694 = vmatprep.mubr.msk.bf16.mxu1 %vm664_vm4, %v4573_v19 }
  0x99   : > { %3729 = vmatmul.mubr.msk.bf16.gmra.mxu0 %vm664_vm4, %v4637_v33 }
  0x9a   : > { %3768 = vmatprep.mubr.msk.bf16.mxu0 %vm664_vm4, %v5627_v9  ;;  %v1824_v9 = vshll.u32 %v222_v4, 16 }
  0x9c   : > { %3695 = vmatmul.mubr.msk.bf16.gmra.mxu1 %vm664_vm4, %v4594_v36  ;;  %v1826_v56 = vrot.slane %v1824_v9, 5 }
  0x9d   : > { %3734 = vmatprep.mubr.msk.bf16.mxu1 %vm664_vm4, %v4403_v42  ;;  %v5630_v42 = vld [vmem:[#allocation16_spill] sm:$0xff] }
  0x9e   : > { %v1827_v4 = vsel %vm4080_vm5, %v1822_v38, %v1826_v56 }
  0x9f   : > { %v4798_v40 = vcombine.low %v1817_v31, %v1827_v4 }
  0xa1   : > { %3769 = vmatmul.mubr.msk.bf16.vlgmr.msra.gmra.mxu0 %vm664_vm4, %v5628_v0  ;;  %5639 = vst [vmem:[#allocation9_spill] sm:$0xff] %v4798_v40 }
  0xa2   : > { %3835 = vmatpush3.bf16.msra.mxu0 %v4609_v7  ;;  %3772 = vmatprep.mubr.msk.bf16.mxu0 %vm664_vm4, %v5629_v51  ;;  %v5634_v7 = vld [vmem:[#allocation11_spill] sm:$0xff] }
  0xa3   : > { %3902 = vmatprep.subr.bf16.mxu0 %v2695_v45 }
  0xa4   : > { %3735 = vmatmul.mubr.msk.bf16.vlgmr.msra.gmra.mxu1 %vm664_vm4, %v4430_v6 }
  0xa5   : > { %3801 = vmatpush3.bf16.msra.mxu1 %v4606_v58  ;;  %3738 = vmatprep.mubr.msk.bf16.mxu1 %vm664_vm4, %v4506_v48  ;;  %v5633_v58 = vld [vmem:[#allocation6_spill] sm:$0xff] }
  0xa6   : > { %3868 = vmatprep.subr.bf16.mxu1 %v2483_v23 }
  0xa9   : > { %3773 = vmatmul.mubr.msk.bf16.gmra.mxu0 %vm664_vm4, %v5630_v42 }
  0xaa   : > { %3776 = vmatprep.mubr.msk.bf16.mxu0 %vm664_vm4, %v5631_v28 }
  0xac   : > { %3739 = vmatmul.mubr.msk.bf16.gmra.mxu1 %vm664_vm4, %v4510_v43 }
  0xad   : > { %3742 = vmatprep.mubr.msk.bf16.mxu1 %vm664_vm4, %v4514_v60 }
  0xb1   : > { %3777 = vmatmul.mubr.msk.bf16.gmra.mxu0 %vm664_vm4, %v5632_v12 }
  0xb2   : > { %3780 = vmatprep.mubr.msk.bf16.mxu0 %vm664_vm4, %v4412_v20 }
  0xb4   : > { %3743 = vmatmul.mubr.msk.bf16.gmra.mxu1 %vm664_vm4, %v4518_v22 }
  0xb5   : > { %3746 = vmatprep.mubr.msk.bf16.mxu1 %vm664_vm4, %v4641_v16 }
  0xb9   : > { %3781 = vmatmul.mubr.msk.bf16.gmra.mxu0 %vm664_vm4, %v5633_v58 }
  0xba   : > { %3784 = vmatprep.mubr.msk.bf16.mxu0 %vm664_vm4, %v5634_v7 }
  0xbc   : > { %3747 = vmatmul.mubr.msk.bf16.gmra.mxu1 %vm664_vm4, %v4647_v11 }
  0xbd   : > { %3750 = vmatprep.mubr.msk.bf16.mxu1 %vm664_vm4, %v4671_v15 }
  0xc1   : > { %3785 = vmatmul.mubr.msk.bf16.gmra.mxu0 %vm664_vm4, %v5635_v34 }
  0xc2   : > { %3788 = vmatprep.mubr.msk.bf16.mxu0 %vm664_vm4, %v5636_v61 }
  0xc4   : > { %3751 = vmatmul.mubr.msk.bf16.gmra.mxu1 %vm664_vm4, %v4677_v3 }
  0xc5   : > { %3754 = vmatprep.mubr.msk.bf16.mxu1 %vm664_vm4, %v4528_v30 }
  0xc9   : > { %3789 = vmatmul.mubr.msk.bf16.gmra.mxu0 %vm664_vm4, %v5637_v59 }
  0xca   : > { %3792 = vmatprep.mubr.msk.bf16.mxu0 %vm664_vm4, %v5638_v14 }
  0xcc   : > { %3755 = vmatmul.mubr.msk.bf16.gmra.mxu1 %vm664_vm4, %v4544_v37 }
  0xcd   : > { %3758 = vmatprep.mubr.msk.bf16.mxu1 %vm664_vm4, %v4559_v44 }
  0xd1   : > { %3793 = vmatmul.mubr.msk.bf16.gmra.mxu0 %vm664_vm4, %v4386_v29 }
  0xd2   : > { %3796 = vmatprep.mubr.msk.bf16.mxu0 %vm664_vm4, %v4440_v32 }
  0xd4   : > { %3759 = vmatmul.mubr.msk.bf16.gmra.mxu1 %vm664_vm4, %v4573_v19 }
  0xd5   : > { %3762 = vmatprep.mubr.msk.bf16.mxu1 %vm664_vm4, %v4594_v36 }
  0xd9   : > { %3797 = vmatmul.mubr.msk.bf16.gmra.mxu0 %vm664_vm4, %v4798_v40 }
  0xda   : > { %3836 = vmatprep.mubr.msk.bf16.mxu0 %vm664_vm4, %v4430_v6 }
  0xdc   : > { %3763 = vmatmul.mubr.msk.bf16.gmra.mxu1 %vm664_vm4, %v3300_v26 }
  0xdd   : > { %3802 = vmatprep.mubr.msk.bf16.mxu1 %vm664_vm4, %v4437_v62 }
  0xe1   : > { %3837 = vmatmul.mubr.msk.bf16.vlgmr.msra.gmra.mxu0 %vm664_vm4, %v4506_v48 }
  0xe2   : > { %3903 = vmatpush3.bf16.msra.mxu0 %v2695_v45  ;;  %3840 = vmatprep.mubr.msk.bf16.mxu0 %vm664_vm4, %v4510_v43 }
  0xe4   : > { %3803 = vmatmul.mubr.msk.bf16.vlgmr.msra.gmra.mxu1 %vm664_vm4, %v4460_v10 }
  0xe5   : > { %3869 = vmatpush3.bf16.msra.mxu1 %v2483_v23  ;;  %3806 = vmatprep.mubr.msk.bf16.mxu1 %vm664_vm4, %v4487_v24  ;;  %v4819_v6 = vpop.f32.mrf.mxu0 }
  0xe7   : > { %v4829_v48 = vpop.f32.mrf.mxu0 }
  0xe9   : > { %3841 = vmatmul.mubr.msk.bf16.gmra.mxu0 %vm664_vm4, %v4514_v60  ;;  %v4835_v60 = vpop.f32.mrf.mxu0 }
  0xea   : > { %3844 = vmatprep.mubr.msk.bf16.mxu0 %vm664_vm4, %v4518_v22  ;;  %v4825_v62 = vpop.f32.mrf.mxu1 }
  0xeb   : > { %v4845_v2 = vpop.f32.mrf.mxu0 }
  0xec   : > { %3807 = vmatmul.mubr.msk.bf16.gmra.mxu1 %vm664_vm4, %v4489_v35  ;;  %v4831_v43 = vpop.f32.mrf.mxu1 }
  0xed   : > { %3810 = vmatprep.mubr.msk.bf16.mxu1 %vm664_vm4, %v4522_v63 }
  0xee   : > { %v4841_v22 = vpop.f32.mrf.mxu1 }
  0xf0   : > { %v4847_v50 = vpop.f32.mrf.mxu1 }
  0xf1   : > { %3845 = vmatmul.mubr.msk.bf16.gmra.mxu0 %vm664_vm4, %v4641_v16 }
  0xf2   : > { %3848 = vmatprep.mubr.msk.bf16.mxu0 %vm664_vm4, %v4647_v11 }
  0xf4   : > { %3811 = vmatmul.mubr.msk.bf16.gmra.mxu1 %vm664_vm4, %v4524_v41 }
  0xf5   : > { %3814 = vmatprep.mubr.msk.bf16.mxu1 %vm664_vm4, %v4621_v47 }
  0xf6   : > { %v4851_v16 = vpop.f32.mrf.mxu0 }
  0xf8   : > { %v4861_v45 = vpop.f32.mrf.mxu0 }
  0xf9   : > { %3849 = vmatmul.mubr.msk.bf16.gmra.mxu0 %vm664_vm4, %v4671_v15 }
  0xfa   : > { %3852 = vmatprep.mubr.msk.bf16.mxu0 %vm664_vm4, %v4677_v3  ;;  %v4857_v11 = vpop.f32.mrf.mxu1  ;;  %v4867_v15 = vpop.f32.mrf.mxu0 }
  0xfc   : > { %3815 = vmatmul.mubr.msk.bf16.gmra.mxu1 %vm664_vm4, %v4627_v25  ;;  %v4863_v23 = vpop.f32.mrf.mxu1  ;;  %v4877_v1 = vpop.f32.mrf.mxu0 }
  0xfd   : > { %3818 = vmatprep.mubr.msk.bf16.mxu1 %vm664_vm4, %v4665_v18 }
  0xfe   : > { %v4873_v3 = vpop.f32.mrf.mxu1 }
 0x100   : > { %v4879_v46 = vpop.f32.mrf.mxu1 }
 0x101   : > { %3853 = vmatmul.mubr.msk.bf16.gmra.mxu0 %vm664_vm4, %v4528_v30 }
 0x102   : > { %3856 = vmatprep.mubr.msk.bf16.mxu0 %vm664_vm4, %v4544_v37 }
 0x104   : > { %3819 = vmatmul.mubr.msk.bf16.gmra.mxu1 %vm664_vm4, %v4667_v21 }
 0x105   : > { %3822 = vmatprep.mubr.msk.bf16.mxu1 %vm664_vm4, %v4567_v57 }
 0x107   : > { %v4883_v30 = vpop.f32.mrf.mxu0 }
 0x109   : > { %3857 = vmatmul.mubr.msk.bf16.gmra.mxu0 %vm664_vm4, %v4559_v44  ;;  %v4893_v54 = vpop.f32.mrf.mxu0 }
 0x10a   : > { %3860 = vmatprep.mubr.msk.bf16.mxu0 %vm664_vm4, %v4573_v19  ;;  %v4903_v19 = vld [vmem:[%s4027_s23 + $0xcc] sm:$0xf] }
 0x10b   : > { %v4899_v44 = vpop.f32.mrf.mxu0 }
 0x10c   : > { %3823 = vmatmul.mubr.msk.bf16.gmra.mxu1 %vm664_vm4, %v4588_v55  ;;  %v4889_v37 = vpop.f32.mrf.mxu1 }
 0x10d   : > { %5640 = vst [vmem:[#allocation17_spill] sm:$0xff] %v4889_v37  ;;  %3826 = vmatprep.mubr.msk.bf16.mxu1 %vm664_vm4, %v4613_v17  ;;  %v4912_v9 = vpop.f32.mrf.mxu0 }
 0x10e   : > { %v4895_v53 = vpop.f32.mrf.mxu1 }
 0x10f   : > { %5641 = vst [vmem:[#allocation21_spill] sm:$0xff] %v4895_v53 }
 0x110   : > { %v4910_v5 = vpop.f32.mrf.mxu1 }
 0x111   : > { %3861 = vmatmul.mubr.msk.bf16.gmra.mxu0 %vm664_vm4, %v4594_v36  ;;  %5642 = vst [vmem:[#allocation19_spill] sm:$0xff] %v4910_v5  ;;  %v3355_v36 = vcombine.low %v4903_v19, %v4906_v27 }
 0x112   : > { %3864 = vmatprep.mubr.msk.bf16.mxu0 %vm664_vm4, %v3300_v26  ;;  %v4918_v52 = vpop.f32.mrf.mxu1 }
 0x113   : > { %5643 = vst [vmem:[#allocation22_spill] sm:$0xff] %v4918_v52 }
 0x114   : > { %3827 = vmatmul.mubr.msk.bf16.gmra.mxu1 %vm664_vm4, %v4624_v49 }
 0x115   : > { %3830 = vmatprep.mubr.msk.bf16.mxu1 %vm664_vm4, %v4637_v33 }
 0x119   : > { %v4920_v38 = vpop.f32.mrf.mxu0  ;;  %3865 = vmatmul.mubr.msk.bf16.gmra.mxu0 %vm664_vm4, %v3355_v36 }
 0x11a   : > { %3904 = vmatprep.mubr.msk.bf16.mxu0 %vm664_vm4, %v4460_v10 }
 0x11b   : > { %v4925_v56 = vpop.f32.mrf.mxu0 }
 0x11c   : > { %v4927_v31 = vpop.f32.mrf.mxu1  ;;  %3831 = vmatmul.mubr.msk.bf16.gmra.mxu1 %vm664_vm4, %v4718_v13 }
 0x11d   : > { %5644 = vst [vmem:[#allocation24_spill] sm:$0xff] %v4927_v31  ;;  %v4931_v4 = vpop.f32.mrf.mxu0  ;;  %3870 = vmatprep.mubr.msk.bf16.mxu1 %vm664_vm4, %v5628_v0 }
 0x11e   : > { %v4935_v26 = vpop.f32.mrf.mxu1 }
 0x11f   : > { %5645 = vst [vmem:[#allocation2_spill] sm:$0xff] %v4935_v26  ;;  %v4937_v52 = vpop.f32.mrf.mxu0 }
 0x120   : > { %v4939_v36 = vpop.f32.mrf.mxu1 }
 0x121   : > { %5646 = vst [vmem:[#allocation4_spill] sm:$0xff] %v4939_v36  ;;  %v3702_v5 = vpop.f32.mrf.mxu0  ;;  %3905 = vmatmul.mubr.msk.bf16.vlgmr.msra.gmra.mxu0 %vm664_vm4, %v4487_v24 }
 0x122   : > { %v4943_v10 = vpop.f32.mrf.mxu1  ;;  %3908 = vmatprep.mubr.msk.bf16.mxu0 %vm664_vm4, %v4489_v35 }
 0x123   : > { %5647 = vst [vmem:[#allocation5_spill] sm:$0xff] %v4943_v10  ;;  %v1439_v31 = vpop.f32.mrf.mxu0 }
 0x124   : > { %v3668_v53 = vpop.f32.mrf.mxu1  ;;  %3871 = vmatmul.mubr.msk.bf16.vlgmr.msra.gmra.mxu1 %vm664_vm4, %v5629_v51 }
 0x125   : > { %v1055_v0 = vadd.f32 %v3668_v53, %v4819_v6  ;;  %v3703_v26 = vpop.f32.mrf.mxu0  ;;  %3874 = vmatprep.mubr.msk.bf16.mxu1 %vm664_vm4, %v5630_v42 }
 0x126   : > { %v1046_v36 = vpop.f32.mrf.mxu1 }
 0x127   : > { %v4952_v40 = vadd.f32 %v3702_v5, %v1055_v0  ;;  %v1047_v24 = vadd.f32 %v1046_v36, %v4829_v48  ;;  %v1442_v10 = vpop.f32.mrf.mxu0 }
 0x128   : > { %v3669_v37 = vpop.f32.mrf.mxu1 }
 0x129   : > { %v4955_v39 = vadd.f32 %v1439_v31, %v1047_v24  ;;  %v1058_v35 = vadd.f32 %v3669_v37, %v4835_v60  ;;  %v3706_v32 = vpop.f32.mrf.mxu0  ;;  %3909 = vmatmul.mubr.msk.bf16.gmra.mxu0 %vm664_vm4, %v4522_v63 }
 0x12a   : > { %v1049_v51 = vpop.f32.mrf.mxu1  ;;  %3912 = vmatprep.mubr.msk.bf16.mxu0 %vm664_vm4, %v4524_v41 }
 0x12b   : > { %v4962_v42 = vadd.f32 %v3703_v26, %v1058_v35  ;;  %v1050_v6 = vadd.f32 %v1049_v51, %v4845_v2  ;;  %v1455_v53 = vpop.f32.mrf.mxu0 }
 0x12c   : > { %v3672_v48 = vpop.f32.mrf.mxu1  ;;  %3875 = vmatmul.mubr.msk.bf16.gmra.mxu1 %vm664_vm4, %v5631_v28 }
 0x12d   : > { %v4967_v5 = vadd.f32 %v1442_v10, %v1050_v6  ;;  %v1071_v60 = vadd.f32 %v3672_v48, %v4851_v16  ;;  %v3707_v37 = vpop.f32.mrf.mxu0  ;;  %3878 = vmatprep.mubr.msk.bf16.mxu1 %vm664_vm4, %v5632_v12 }
 0x12e   : > { %v1062_v63 = vpop.f32.mrf.mxu1 }
 0x12f   : > { %v4972_v31 = vadd.f32 %v3706_v32, %v1071_v60  ;;  %v1063_v41 = vadd.f32 %v1062_v63, %v4861_v45  ;;  %v1458_v26 = vpop.f32.mrf.mxu0 }
 0x130   : > { %v3673_v2 = vpop.f32.mrf.mxu1 }
 0x131   : > { %v4975_v36 = vadd.f32 %v1455_v53, %v1063_v41  ;;  %v1074_v0 = vadd.f32 %v3673_v2, %v4867_v15  ;;  %v3710_v28 = vpop.f32.mrf.mxu0  ;;  %3913 = vmatmul.mubr.msk.bf16.gmra.mxu0 %vm664_vm4, %v4621_v47 }
 0x132   : > { %v1065_v16 = vpop.f32.mrf.mxu1  ;;  %3916 = vmatprep.mubr.msk.bf16.mxu0 %vm664_vm4, %v4627_v25 }
 0x133   : > { %v4982_v12 = vadd.f32 %v3707_v37, %v1074_v0  ;;  %v1066_v32 = vadd.f32 %v1065_v16, %v4877_v1  ;;  %v1471_v10 = vpop.f32.mrf.mxu0 }
 0x134   : > { %v3676_v45 = vpop.f32.mrf.mxu1  ;;  %3879 = vmatmul.mubr.msk.bf16.gmra.mxu1 %vm664_vm4, %v4412_v20 }
 0x135   : > { %v4987_v24 = vadd.f32 %v1458_v26, %v1066_v32  ;;  %v1087_v15 = vadd.f32 %v3676_v45, %v4883_v30  ;;  %v3711_v35 = vpop.f32.mrf.mxu0  ;;  %3882 = vmatprep.mubr.msk.bf16.mxu1 %vm664_vm4, %v5633_v58 }
 0x136   : > { %v1078_v47 = vpop.f32.mrf.mxu1 }
 0x137   : > { %v4992_v51 = vadd.f32 %v3710_v28, %v1087_v15  ;;  %v1079_v25 = vadd.f32 %v1078_v47, %v4893_v54  ;;  %v1474_v6 = vpop.f32.mrf.mxu0 }
 0x138   : > { %v3677_v1 = vpop.f32.mrf.mxu1 }
 0x139   : > { %v4995_v53 = vadd.f32 %v1471_v10, %v1079_v25  ;;  %v1090_v48 = vadd.f32 %v3677_v1, %v4899_v44  ;;  %v3714_v20 = vpop.f32.mrf.mxu0  ;;  %3917 = vmatmul.mubr.msk.bf16.gmra.mxu0 %vm664_vm4, %v4665_v18  ;;  %v2454_v10 = vshll.u32 %v4903_v19, 16 }
 0x13a   : > { %v1081_v30 = vpop.f32.mrf.mxu1  ;;  %3920 = vmatprep.mubr.msk.bf16.mxu0 %vm664_vm4, %v4667_v21 }
 0x13b   : > { %v5002_v58 = vadd.f32 %v3711_v35, %v1090_v48  ;;  %v1082_v60 = vadd.f32 %v1081_v30, %v4912_v9  ;;  %v1487_v37 = vpop.f32.mrf.mxu0  ;;  %v2456_v1 = vrot.slane %v2454_v10, 5 }
 0x13c   : > { %v3680_v54 = vpop.f32.mrf.mxu1  ;;  %3883 = vmatmul.mubr.msk.bf16.gmra.mxu1 %vm664_vm4, %v5634_v7 }
 0x13d   : > { %v5007_v63 = vadd.f32 %v1474_v6, %v1082_v60  ;;  %v1103_v44 = vadd.f32 %v3680_v54, %v4920_v38  ;;  %v3715_v41 = vpop.f32.mrf.mxu0  ;;  %3886 = vmatprep.mubr.msk.bf16.mxu1 %vm664_vm4, %v5635_v34 }
 0x13e   : > { %v1094_v18 = vpop.f32.mrf.mxu1 }
 0x13f   : > { %v5012_v26 = vadd.f32 %v3714_v20, %v1103_v44  ;;  %v1095_v21 = vadd.f32 %v1094_v18, %v4925_v56  ;;  %v1490_v2 = vpop.f32.mrf.mxu0  ;;  %v2451_v56 = vshrl.u32 %v4903_v19, 16 }
 0x140   : > { %v3681_v9 = vpop.f32.mrf.mxu1 }
 0x141   : > { %v5015_v0 = vadd.f32 %v1487_v37, %v1095_v21  ;;  %v1106_v28 = vadd.f32 %v3681_v9, %v4931_v4  ;;  %v3718_v7 = vpop.f32.mrf.mxu0  ;;  %3921 = vmatmul.mubr.msk.bf16.gmra.mxu0 %vm664_vm4, %v4567_v57  ;;  %v2460_v4 = vshll.u32 %v4906_v27, 16  ;;  %v2464_v57 = vshrl.u32 %v4906_v27, 16 }
 0x142   : > { %v1097_v38 = vpop.f32.mrf.mxu1  ;;  %3924 = vmatprep.mubr.msk.bf16.mxu0 %vm664_vm4, %v4588_v55 }
 0x143   : > { %v5022_v34 = vadd.f32 %v3715_v41, %v1106_v28  ;;  %v1098_v16 = vadd.f32 %v1097_v38, %v4937_v52  ;;  %v1503_v32 = vpop.f32.mrf.mxu0  ;;  %v2462_v20 = vrot.slane %v2460_v4, 5  ;;  %v2466_v30 = vrot.slane %v2464_v57, 4 }
 0x144   : > { %v3684_v45 = vpop.f32.mrf.mxu1  ;;  %3887 = vmatmul.mubr.msk.bf16.gmra.mxu1 %vm664_vm4, %v5636_v61  ;;  %v2453_v61 = vrot.slane %v2451_v56, 4  ;;  %v3390_v28 = vrot.slane %v4903_v19, 9 }
 0x145   : > { %v5031_v15 = vadd.f32 %v1490_v2, %v1098_v16  ;;  %v1119_v55 = vadd.f32 %v3684_v45, %v4825_v62  ;;  %v3719_v35 = vpop.f32.mrf.mxu0  ;;  %3890 = vmatprep.mubr.msk.bf16.mxu1 %vm664_vm4, %v5637_v59  ;;  %v2681_v59 = vrot.slane %v4906_v27, 5 }
 0x146   : > { %v1110_v52 = vpop.f32.mrf.mxu1 }
 0x147   : > { %v5036_v47 = vadd.f32 %v3718_v7, %v1119_v55  ;;  %v1111_v25 = vadd.f32 %v1110_v52, %v4831_v43  ;;  %v1506_v6 = vpop.f32.mrf.mxu0  ;;  %v225_v43 = vld [vmem:[%s4027_s23 + $0xd4] sm:$0x1] }
 0x148   : > { %v3685_v48 = vpop.f32.mrf.mxu1  ;;  %v2470_v9 = vshll.u32 %v225_v43, 16  ;;  %v2684_v38 = vrot.slane %v225_v43, 5 }
 0x149   : > { %v5039_v60 = vadd.f32 %v1503_v32, %v1111_v25  ;;  %v1122_v62 = vadd.f32 %v3685_v48, %v4841_v22  ;;  %v3722_v37 = vpop.f32.mrf.mxu0  ;;  %3925 = vmatmul.mubr.msk.bf16.gmra.mxu0 %vm664_vm4, %v4613_v17  ;;  %v2457_v22 = vor.u32 %v2456_v1, %v2453_v61 }
 0x14a   : > { %v1113_v54 = vpop.f32.mrf.mxu1  ;;  %3928 = vmatprep.mubr.msk.bf16.mxu0 %vm664_vm4, %v4624_v49  ;;  %v2467_v49 = vor.u32 %v2466_v30, %v2462_v20  ;;  %v2472_v19 = vrot.slane %v2470_v9, 5 }
 0x14b   : > { %v5048_v44 = vadd.f32 %v3719_v35, %v1122_v62  ;;  %v1114_v41 = vadd.f32 %v1113_v54, %v4847_v50  ;;  %v1519_v18 = vpop.f32.mrf.mxu0  ;;  %v2683_v50 = vrot.slane %v2681_v59, 4  ;;  %v2458_v10 = vrot.slane %v2457_v22, 4  ;;  %v5651_v62 = vld [vmem:[#allocation9_spill] sm:$0xff]  ;;  %v5653_v22 = vld [vmem:[#allocation19_spill] sm:$0xff] }
 0x14c   : > { %v3688_v21 = vpop.f32.mrf.mxu1  ;;  %3891 = vmatmul.mubr.msk.bf16.gmra.mxu1 %vm664_vm4, %v5638_v14  ;;  %v5652_v54 = vld [vmem:[#allocation21_spill] sm:$0xff] }
 0x14d   : > { %v5053_v2 = vadd.f32 %v1506_v6, %v1114_v41  ;;  %v1135_v17 = vadd.f32 %v3688_v21, %v4857_v11  ;;  %v3723_v27 = vpop.f32.mrf.mxu0  ;;  %3894 = vmatprep.mubr.msk.bf16.mxu1 %vm664_vm4, %v4386_v29  ;;  %v2468_v29 = vrot.slane %v2467_v49, 4  ;;  %v2685_v55 = vsel %vm4391_vm8, %v2683_v50, %v2684_v38  ;;  %v5648_v6 = vld [vmem:[#allocation26_spill] sm:$0xff] }
 0x14e   : > { %v1126_v7 = vpop.f32.mrf.mxu1  ;;  %v2463_v61 = vsel %vm4080_vm5, %v2458_v10, %v2462_v20 }
 0x14f   : > { %v5059_v16 = vadd.f32 %v3722_v37, %v1135_v17  ;;  %v1127_v14 = vadd.f32 %v1126_v7, %v4863_v23  ;;  %v1522_v32 = vpop.f32.mrf.mxu0  ;;  %v2682_v23 = vsel %vm4391_vm8, %v3390_v28, %v2681_v59  ;;  %v2473_v8 = vsel %vm4080_vm5, %v2468_v29, %v2472_v19  ;;  %v5654_v28 = vld [vmem:[#allocation22_spill] sm:$0xff] }
 0x150   : > { %v3689_v56 = vpop.f32.mrf.mxu1  ;;  %v3373_v20 = vcombine.low %v2463_v61, %v2473_v8  ;;  %v5656_v29 = vld [vmem:[#allocation2_spill] sm:$0xff]  ;;  %v5658_v61 = vld [vmem:[#allocation5_spill] sm:$0xff] }
 0x151   : > { %v5062_v45 = vadd.f32 %v1519_v18, %v1127_v14  ;;  %v1138_v11 = vadd.f32 %v3689_v56, %v4873_v3  ;;  %v3726_v4 = vpop.f32.mrf.mxu0  ;;  %3929 = vmatmul.mubr.msk.bf16.gmra.mxu0 %vm664_vm4, %v4637_v33 }
 0x152   : > { %v1129_v57 = vpop.f32.mrf.mxu1  ;;  %3932 = vmatprep.mubr.msk.bf16.mxu0 %vm664_vm4, %v4718_v13  ;;  %v5650_v13 = vld [vmem:[#allocation17_spill] sm:$0xff] }
 0x153   : > { %v5073_v35 = vadd.f32 %v3723_v27, %v1138_v11  ;;  %v1130_v3 = vadd.f32 %v1129_v57, %v4879_v46  ;;  %v1535_v52 = vpop.f32.mrf.mxu0  ;;  %v3392_v46 = vcombine.low %v2682_v23, %v2685_v55 }
 0x154   : > { %v3692_v25 = vpop.f32.mrf.mxu1  ;;  %3895 = vmatmul.mubr.msk.bf16.gmra.mxu1 %vm664_vm4, %v5648_v6 }
 0x155   : > { %v5080_v1 = vadd.f32 %v1522_v32, %v1130_v3  ;;  %v1151_v48 = vadd.f32 %v3692_v25, %v5650_v13  ;;  %v3727_v30 = vpop.f32.mrf.mxu0  ;;  %3898 = vmatprep.mubr.msk.bf16.mxu1 %vm664_vm4, %v5651_v62  ;;  %v5655_v32 = vld [vmem:[#allocation24_spill] sm:$0xff] }
 0x156   : > { %v1142_v37 = vpop.f32.mrf.mxu1  ;;  %v5657_v3 = vld [vmem:[#allocation4_spill] sm:$0xff] }
 0x157   : > { %v5087_v59 = vadd.f32 %v3726_v4, %v1151_v48  ;;  %v1143_v43 = vadd.f32 %v1142_v37, %v5652_v54  ;;  %v1538_v41 = vpop.f32.mrf.mxu0 }
 0x158   : > { %v3693_v18 = vpop.f32.mrf.mxu1 }
 0x159   : > { %v5090_v21 = vadd.f32 %v1535_v52, %v1143_v43  ;;  %v1154_v17 = vadd.f32 %v3693_v18, %v5653_v22  ;;  %v3730_v27 = vpop.f32.mrf.mxu0  ;;  %3933 = vmatmul.mubr.msk.bf16.gmra.mxu0 %vm664_vm4, %v3392_v46 }
 0x15a   : > { %v1145_v49 = vpop.f32.mrf.mxu1 }
 0x15b   : > { %v5094_v9 = vadd.f32 %v3727_v30, %v1154_v17  ;;  %v1146_v7 = vadd.f32 %v1145_v49, %v5654_v28  ;;  %v1551_v50 = vpop.f32.mrf.mxu0 }
 0x15c   : > { %v3696_v38 = vpop.f32.mrf.mxu1  ;;  %3899 = vmatmul.mubr.msk.bf16.gmra.mxu1 %vm664_vm4, %v3373_v20 }
 0x15d   : > { %v5098_v14 = vadd.f32 %v1538_v41, %v1146_v7  ;;  %v1167_v56 = vadd.f32 %v3696_v38, %v5655_v32  ;;  %v3731_v10 = vpop.f32.mrf.mxu0 }
 0x15e   : > { %v1158_v11 = vpop.f32.mrf.mxu1 }
 0x15f   : > { %v5101_v4 = vadd.f32 %v3730_v27, %v1167_v56  ;;  %v1159_v19 = vadd.f32 %v1158_v11, %v5656_v29  ;;  %v1554_v57 = vpop.f32.mrf.mxu0 }
 0x160   : > { %v3697_v23 = vpop.f32.mrf.mxu1 }
 0x161   : > { %v5104_v55 = vadd.f32 %v1551_v50, %v1159_v19  ;;  %v1170_v52 = vadd.f32 %v3697_v23, %v5657_v3  ;;  %v3770_v25 = vpop.f32.mrf.mxu0 }
 0x162   : > { %v1161_v6 = vpop.f32.mrf.mxu1 }
 0x163   : > { %v5107_v33 = vadd.f32 %v3731_v10, %v1170_v52  ;;  %v1162_v13 = vadd.f32 %v1161_v6, %v5658_v61  ;;  %v1873_v48 = vpop.f32.mrf.mxu0 }
 0x164   : > { %v3736_v30 = vpop.f32.mrf.mxu1 }
 0x165   : > { %v5110_v62 = vadd.f32 %v1554_v57, %v1162_v13  ;;  %v1774_v8 = vadd.f32 %v3736_v30, %v4952_v40  ;;  %v3771_v46 = vpop.f32.mrf.mxu0 }
 0x166   : > { %v1645_v37 = vpop.f32.mrf.mxu1 }
 0x167   : > { %v5113_v54 = vadd.f32 %v3770_v25, %v1774_v8  ;;  %v1772_v43 = vadd.f32 %v1645_v37, %v4955_v39  ;;  %v1876_v41 = vpop.f32.mrf.mxu0 }
 0x168   : > { %v3737_v18 = vpop.f32.mrf.mxu1 }
 0x169   : > { %v5116_v20 = vadd.f32 %v1873_v48, %v1772_v43  ;;  %v1775_v22 = vadd.f32 %v3737_v18, %v4962_v42  ;;  %v3774_v17 = vpop.f32.mrf.mxu0 }
 0x16a   : > { %v1648_v27 = vpop.f32.mrf.mxu1 }
 0x16b   : > { %v5119_v49 = vadd.f32 %v3771_v46, %v1775_v22  ;;  %v1773_v28 = vadd.f32 %v1648_v27, %v4967_v5  ;;  %v1889_v7 = vpop.f32.mrf.mxu0 }
 0x16c   : > { %v3740_v40 = vpop.f32.mrf.mxu1 }
 0x16d   : > { %v5122_v50 = vadd.f32 %v1876_v41, %v1773_v28  ;;  %v1778_v38 = vadd.f32 %v3740_v40, %v4972_v31  ;;  %v3775_v32 = vpop.f32.mrf.mxu0 }
 0x16e   : > { %v1661_v39 = vpop.f32.mrf.mxu1 }
 0x16f   : > { %v5125_v56 = vadd.f32 %v3774_v17, %v1778_v38  ;;  %v1776_v10 = vadd.f32 %v1661_v39, %v4975_v36  ;;  %v1892_v11 = vpop.f32.mrf.mxu0 }
 0x170   : > { %v3741_v42 = vpop.f32.mrf.mxu1 }
 0x171   : > { %v5128_v29 = vadd.f32 %v1889_v7, %v1776_v10  ;;  %v1779_v19 = vadd.f32 %v3741_v42, %v4982_v12  ;;  %v3778_v57 = vpop.f32.mrf.mxu0 }
 0x172   : > { %v1664_v5 = vpop.f32.mrf.mxu1 }
 0x173   : > { %v5131_v23 = vadd.f32 %v3775_v32, %v1779_v19  ;;  %v1777_v3 = vadd.f32 %v1664_v5, %v4987_v24  ;;  %v1905_v52 = vpop.f32.mrf.mxu0 }
 0x174   : > { %v3744_v31 = vpop.f32.mrf.mxu1 }
 0x175   : > { %v5134_v25 = vadd.f32 %v1892_v11, %v1777_v3  ;;  %v1782_v6 = vadd.f32 %v3744_v31, %v4992_v51  ;;  %v3779_v61 = vpop.f32.mrf.mxu0 }
 0x176   : > { %v1677_v36 = vpop.f32.mrf.mxu1 }
 0x177   : > { %v5137_v13 = vadd.f32 %v3778_v57, %v1782_v6  ;;  %v1780_v48 = vadd.f32 %v1677_v36, %v4995_v53  ;;  %v1908_v30 = vpop.f32.mrf.mxu0 }
 0x178   : > { %v3745_v12 = vpop.f32.mrf.mxu1 }
 0x179   : > { %v5140_v8 = vadd.f32 %v1905_v52, %v1780_v48  ;;  %v1783_v46 = vadd.f32 %v3745_v12, %v5002_v58  ;;  %v3782_v37 = vpop.f32.mrf.mxu0 }
 0x17a   : > { %v1680_v24 = vpop.f32.mrf.mxu1 }
 0x17b   : > { %v5143_v43 = vadd.f32 %v3779_v61, %v1783_v46  ;;  %v1781_v41 = vadd.f32 %v1680_v24, %v5007_v63  ;;  %v1921_v18 = vpop.f32.mrf.mxu0 }
 0x17c   : > { %v3748_v51 = vpop.f32.mrf.mxu1 }
 0x17d   : > { %v5146_v22 = vadd.f32 %v1908_v30, %v1781_v41  ;;  %v1786_v17 = vadd.f32 %v3748_v51, %v5012_v26  ;;  %v3783_v27 = vpop.f32.mrf.mxu0 }
 0x17e   : > { %v1693_v53 = vpop.f32.mrf.mxu1 }
 0x17f   : > { %v5149_v28 = vadd.f32 %v3782_v37, %v1786_v17  ;;  %v1784_v7 = vadd.f32 %v1693_v53, %v5015_v0  ;;  %v1924_v40 = vpop.f32.mrf.mxu0 }
 0x180   : > { %v3749_v58 = vpop.f32.mrf.mxu1 }
 0x181   : > { %v5152_v38 = vadd.f32 %v1921_v18, %v1784_v7  ;;  %v1787_v32 = vadd.f32 %v3749_v58, %v5022_v34  ;;  %v3786_v39 = vpop.f32.mrf.mxu0 }
 0x182   : > { %v1696_v63 = vpop.f32.mrf.mxu1 }
 0x183   : > { %v5155_v10 = vadd.f32 %v3783_v27, %v1787_v32  ;;  %v1785_v11 = vadd.f32 %v1696_v63, %v5031_v15  ;;  %v1937_v42 = vpop.f32.mrf.mxu0 }
 0x184   : > { %v3752_v26 = vpop.f32.mrf.mxu1 }
 0x185   : > { %v5158_v19 = vadd.f32 %v1924_v40, %v1785_v11  ;;  %v1790_v57 = vadd.f32 %v3752_v26, %v5036_v47  ;;  %v3787_v5 = vpop.f32.mrf.mxu0 }
 0x186   : > { %v1709_v0 = vpop.f32.mrf.mxu1 }
 0x187   : > { %v5161_v3 = vadd.f32 %v3786_v39, %v1790_v57  ;;  %v1788_v52 = vadd.f32 %v1709_v0, %v5039_v60  ;;  %v1940_v31 = vpop.f32.mrf.mxu0 }
 0x188   : > { %v3753_v34 = vpop.f32.mrf.mxu1 }
 0x189   : > { %v5164_v6 = vadd.f32 %v1937_v42, %v1788_v52  ;;  %v1791_v61 = vadd.f32 %v3753_v34, %v5048_v44  ;;  %v3790_v36 = vpop.f32.mrf.mxu0 }
 0x18a   : > { %v1712_v15 = vpop.f32.mrf.mxu1 }
 0x18b   : > { %v5167_v48 = vadd.f32 %v3787_v5, %v1791_v61  ;;  %v1789_v30 = vadd.f32 %v1712_v15, %v5053_v2  ;;  %v1953_v12 = vpop.f32.mrf.mxu0 }
 0x18c   : > { %v3756_v47 = vpop.f32.mrf.mxu1 }
 0x18d   : > { %5659 = vst [vmem:[#allocation7_spill] sm:$0xff] %v5167_v48  ;;  %v5170_v46 = vadd.f32 %v1940_v31, %v1789_v30  ;;  %v1794_v37 = vadd.f32 %v3756_v47, %v5059_v16  ;;  %v3791_v24 = vpop.f32.mrf.mxu0 }
 0x18e   : > { %v1725_v60 = vpop.f32.mrf.mxu1 }
 0x18f   : > { %5660 = vst [vmem:[#allocation10_spill] sm:$0xff] %v5170_v46  ;;  %v5173_v41 = vadd.f32 %v3790_v36, %v1794_v37  ;;  %v1792_v18 = vadd.f32 %v1725_v60, %v5062_v45  ;;  %v1956_v51 = vpop.f32.mrf.mxu0 }
 0x190   : > { %v3757_v44 = vpop.f32.mrf.mxu1 }
 0x191   : > { %5661 = vst [vmem:[#allocation8_spill] sm:$0xff] %v5173_v41  ;;  %v5176_v17 = vadd.f32 %v1953_v12, %v1792_v18  ;;  %v1795_v27 = vadd.f32 %v3757_v44, %v5073_v35  ;;  %v3794_v53 = vpop.f32.mrf.mxu0 }
 0x192   : > { %v1728_v2 = vpop.f32.mrf.mxu1 }
 0x193   : > { %5662 = vst [vmem:[#allocation12_spill] sm:$0xff] %v5176_v17  ;;  %v5179_v7 = vadd.f32 %v3791_v24, %v1795_v27  ;;  %v1793_v40 = vadd.f32 %v1728_v2, %v5080_v1  ;;  %v1969_v58 = vpop.f32.mrf.mxu0 }
 0x194   : > { %v3760_v16 = vpop.f32.mrf.mxu1 }
 0x195   : > { %5663 = vst [vmem:[#allocation14_spill] sm:$0xff] %v5179_v7  ;;  %v5182_v32 = vadd.f32 %v1956_v51, %v1793_v40  ;;  %v1798_v39 = vadd.f32 %v3760_v16, %v5087_v59  ;;  %v3795_v63 = vpop.f32.mrf.mxu0 }
 0x196   : > { %v1741_v45 = vpop.f32.mrf.mxu1 }
 0x197   : > { %5664 = vst [vmem:[#allocation16_spill] sm:$0xff] %v5182_v32  ;;  %v5185_v11 = vadd.f32 %v3794_v53, %v1798_v39  ;;  %v1796_v42 = vadd.f32 %v1741_v45, %v5090_v21  ;;  %v1972_v26 = vpop.f32.mrf.mxu0 }
 0x198   : > { %v3761_v35 = vpop.f32.mrf.mxu1 }
 0x199   : > { %5665 = vst [vmem:[#allocation20_spill] sm:$0xff] %v5185_v11  ;;  %v5188_v57 = vadd.f32 %v1969_v58, %v1796_v42  ;;  %v1799_v5 = vadd.f32 %v3761_v35, %v5094_v9  ;;  %v3798_v0 = vpop.f32.mrf.mxu0 }
 0x19a   : > { %v1744_v1 = vpop.f32.mrf.mxu1 }
 0x19b   : > { %5666 = vst [vmem:[#allocation25_spill] sm:$0xff] %v5188_v57  ;;  %v5191_v52 = vadd.f32 %v3795_v63, %v1799_v5  ;;  %v1797_v31 = vadd.f32 %v1744_v1, %v5098_v14  ;;  %v1985_v34 = vpop.f32.mrf.mxu0 }
 0x19c   : > { %v3764_v59 = vpop.f32.mrf.mxu1 }
 0x19d   : > { %5667 = vst [vmem:[#allocation6_spill] sm:$0xff] %v5191_v52  ;;  %v5194_v61 = vadd.f32 %v1972_v26, %v1797_v31  ;;  %v1802_v36 = vadd.f32 %v3764_v59, %v5101_v4  ;;  %v3799_v15 = vpop.f32.mrf.mxu0 }
 0x19e   : > { %v1757_v21 = vpop.f32.mrf.mxu1 }
 0x19f   : > { %5668 = vst [vmem:[#allocation11_spill] sm:$0xff] %v5194_v61  ;;  %v5197_v30 = vadd.f32 %v3798_v0, %v1802_v36  ;;  %v1800_v12 = vadd.f32 %v1757_v21, %v5104_v55  ;;  %v1988_v47 = vpop.f32.mrf.mxu0 }
 0x1a0   : > { %v3765_v9 = vpop.f32.mrf.mxu1 }
 0x1a1   : > { %5669 = vst [vmem:[#allocation13_spill] sm:$0xff] %v5197_v30  ;;  %v5200_v37 = vadd.f32 %v1985_v34, %v1800_v12  ;;  %v1803_v24 = vadd.f32 %v3765_v9, %v5107_v33  ;;  %v5203_v60 = vpop.f32.mrf.mxu0 }
 0x1a2   : > { %v1760_v14 = vpop.f32.mrf.mxu1 }
 0x1a3   : > { %5670 = vst [vmem:[#allocation15_spill] sm:$0xff] %v5200_v37  ;;  %v5205_v18 = vadd.f32 %v3799_v15, %v1803_v24  ;;  %v1801_v51 = vadd.f32 %v1760_v14, %v5110_v62  ;;  %v5208_v4 = vpop.f32.mrf.mxu0 }
 0x1a4   : > { %v3804_v44 = vpop.f32.mrf.mxu1 }
 0x1a5   : > { %5671 = vst [vmem:[#allocation18_spill] sm:$0xff] %v5205_v18  ;;  %v5210_v27 = vadd.f32 %v1988_v47, %v1801_v51  ;;  %v5212_v53 = vpop.f32.mrf.mxu0 }
 0x1a6   : > { %v2085_v55 = vpop.f32.mrf.mxu1 }
 0x1a7   : > { %5672 = vst [vmem:[#allocation23_spill] sm:$0xff] %v5210_v27  ;;  %v5214_v2 = vpop.f32.mrf.mxu0 }
 0x1a8   : > { %v3805_v40 = vpop.f32.mrf.mxu1 }
 0x1a9   : > { %v5216_v58 = vpop.f32.mrf.mxu0 }
 0x1aa   : > { %v5218_v33 = vpop.f32.mrf.mxu1 }
 0x1ab   : > { %v5220_v16 = vpop.f32.mrf.mxu0 }
 0x1ac   : > { %v5222_v39 = vpop.f32.mrf.mxu1 }
 0x1ad   : > { %v5224_v62 = vpop.f32.mrf.mxu0 }
 0x1ae   : > { %v5226_v63 = vpop.f32.mrf.mxu1 }
 0x1af   : > { %v5228_v45 = vpop.f32.mrf.mxu0 }
 0x1b0   : > { %v5230_v42 = vpop.f32.mrf.mxu1 }
 0x1b1   : > { %v5232_v26 = vpop.f32.mrf.mxu0 }
 0x1b2   : > { %v5234_v35 = vpop.f32.mrf.mxu1 }
 0x1b3   : > { %v5236_v5 = vpop.f32.mrf.mxu0 }
 0x1b4   : > { %v5238_v0 = vpop.f32.mrf.mxu1 }
 0x1b5   : > { %v5240_v1 = vpop.f32.mrf.mxu0 }
 0x1b6   : > { %v5242_v31 = vpop.f32.mrf.mxu1 }
 0x1b7   : > { %v5244_v34 = vpop.f32.mrf.mxu0 }
 0x1b8   : > { %v5246_v59 = vpop.f32.mrf.mxu1 }
 0x1b9   : > { %v5248_v36 = vpop.f32.mrf.mxu0 }
 0x1ba   : > { %v5250_v15 = vpop.f32.mrf.mxu1 }
 0x1bb   : > { %v5252_v21 = vpop.f32.mrf.mxu0 }
 0x1bc   : > { %v5254_v12 = vpop.f32.mrf.mxu1 }
 0x1bd   : > { %v5256_v47 = vpop.f32.mrf.mxu0 }
 0x1be   : > { %v5258_v9 = vpop.f32.mrf.mxu1 }
 0x1bf   : > { %v5260_v24 = vpop.f32.mrf.mxu0 }
 0x1c0   : > { %v5262_v14 = vpop.f32.mrf.mxu1 }
 0x1c1   : > { %v5264_v51 = vpop.f32.mrf.mxu0 }
 0x1c2   : > { %v5266_v27 = vpop.f32.mrf.mxu1 }
 0x1c3   : > { %v5268_v18 = vpop.f32.mrf.mxu0 }
 0x1c4   : > { %5673 = vst [vmem:[#allocation26_spill] sm:$0xff] %v5268_v18  ;;  %v5270_v37 = vpop.f32.mrf.mxu1 }
 0x1c5   : > { %v5272_v30 = vpop.f32.mrf.mxu0 }
 0x1c6   : > { %5674 = vst [vmem:[#allocation3_spill] sm:$0xff] %v5272_v30  ;;  %v5274_v61 = vpop.f32.mrf.mxu1 }
 0x1c7   : > { %v5276_v52 = vpop.f32.mrf.mxu0 }
 0x1c8   : > { %5675 = vst [vmem:[#allocation17_spill] sm:$0xff] %v5276_v52  ;;  %v5278_v57 = vpop.f32.mrf.mxu1 }
 0x1c9   : > { %5676 = vst [vmem:[#allocation9_spill] sm:$0xff] %v5278_v57  ;;  %v5280_v11 = vpop.f32.mrf.mxu0 }
 0x1ca   : > { %5677 = vst [vmem:[#allocation21_spill] sm:$0xff] %v5280_v11  ;;  %v5282_v32 = vpop.f32.mrf.mxu1 }
 0x1cb   : > { %5678 = vst [vmem:[#allocation19_spill] sm:$0xff] %v5282_v32  ;;  %v5284_v7 = vpop.f32.mrf.mxu0 }
 0x1cc   : > { %5679 = vst [vmem:[#allocation22_spill] sm:$0xff] %v5284_v7  ;;  %v5286_v17 = vpop.f32.mrf.mxu1 }
 0x1cd   : > { %5680 = vst [vmem:[#allocation24_spill] sm:$0xff] %v5286_v17  ;;  %v5288_v41 = vpop.f32.mrf.mxu0 }
 0x1ce   : > { %5681 = vst [vmem:[#allocation2_spill] sm:$0xff] %v5288_v41  ;;  %v5290_v46 = vpop.f32.mrf.mxu1 }
 0x1cf   : > { %5682 = vst [vmem:[#allocation4_spill] sm:$0xff] %v5290_v46  ;;  %v5292_v18 = vpop.f32.mrf.mxu0 }
 0x1d0   : > { %5683 = vst [vmem:[#allocation5_spill] sm:$0xff] %v5292_v18  ;;  %v5294_v30 = vpop.f32.mrf.mxu1 }
 0x1d1   : > { %5684 = vst [vmem:[#allocation27_spill] sm:$0xff] %v5294_v30  ;;  %v5296_v48 = vpop.f32.mrf.mxu0 }
 0x1d2   : > { %5685 = vst [vmem:[#allocation28_spill] sm:$0xff] %v5296_v48  ;;  %v5298_v52 = vpop.f32.mrf.mxu1 }
 0x1d3   : > { %5686 = vst [vmem:[#allocation29_spill] sm:$0xff] %v5298_v52  ;;  %v5300_v57 = vpop.f32.mrf.mxu0 }
 0x1d4   : > { %5687 = vst [vmem:[#allocation30_spill] sm:$0xff] %v5300_v57  ;;  %v5302_v11 = vpop.f32.mrf.mxu1 }
 0x1d5   : > { %5688 = vst [vmem:[#allocation31_spill] sm:$0xff] %v5302_v11  ;;  %v5304_v32 = vpop.f32.mrf.mxu0 }
 0x1d6   : > { %5689 = vst [vmem:[#allocation32_spill] sm:$0xff] %v5304_v32  ;;  %v5306_v7 = vpop.f32.mrf.mxu1  ;;  %v2214_v32 = vadd.f32 %v3804_v44, %v5113_v54  ;;  %v2213_v54 = vadd.f32 %v5218_v33, %v5122_v50 }
 0x1d7   : > { %5690 = vst [vmem:[#allocation33_spill] sm:$0xff] %v5306_v7  ;;  %v5308_v17 = vpop.f32.mrf.mxu0 }
 0x1d8   : > { %5691 = vst [vmem:[#allocation34_spill] sm:$0xff] %v5308_v17  ;;  %v5310_v41 = vpop.f32.mrf.mxu1  ;;  %v2212_v17 = vadd.f32 %v2085_v55, %v5116_v20  ;;  %v5340_v20 = vld [vmem:[%s5535_s2] ss:$0 sm:$0xff] }
 0x1d9   : > { %5692 = vst [vmem:[#allocation35_spill] sm:$0xff] %v5310_v41  ;;  %v5312_v46 = vpop.f32.mrf.mxu0 }
 0x1da   : > { %5693 = vst [vmem:[#allocation36_spill] sm:$0xff] %v5312_v46  ;;  %v5314_v18 = vpop.f32.mrf.mxu1 }
 0x1db   : > { %5694 = vst [vmem:[#allocation37_spill] sm:$0xff] %v5314_v18  ;;  %v5316_v30 = vpop.f32.mrf.mxu0  ;;  %v2420_v18 = vadd.f32 %v5203_v60, %v2214_v32 }
 0x1dc   : > { %5695 = vst [vmem:[#allocation38_spill] sm:$0xff] %v5316_v30  ;;  %v5318_v48 = vpop.f32.mrf.mxu1  ;;  %v2215_v30 = vadd.f32 %v3805_v40, %v5119_v49 }
 0x1dd   : > { %5696 = vst [vmem:[#allocation39_spill] sm:$0xff] %v5318_v48  ;;  %v5320_v52 = vpop.f32.mrf.mxu0 }
 0x1de   : > { %5697 = vst [vmem:[#allocation40_spill] sm:$0xff] %v5320_v52  ;;  %v5322_v57 = vpop.f32.mrf.mxu1  ;;  %v2421_v32 = vadd.f32 %v5212_v53, %v2215_v30 }
 0x1df   : > { %5698 = vst [vmem:[#allocation41_spill] sm:$0xff] %v5322_v57  ;;  %v5325_v11 = vpop.f32.mrf.mxu0  ;;  %v2418_v57 = vadd.f32 %v5208_v4, %v2212_v17  ;;  %v2216_v17 = vadd.f32 %v5226_v63, %v5128_v29  ;;  %v2217_v63 = vadd.f32 %v5234_v35, %v5134_v25  ;;  %v2222_v25 = vadd.f32 %v5238_v0, %v5137_v13 }
 0x1e0   : > { %5699 = vst [vmem:[#allocation42_spill] sm:$0xff] %v5325_v11  ;;  %v5327_v7 = vpop.f32.mrf.mxu1 }
 0x1e1   : > { %5700 = vst [vmem:[#allocation43_spill] sm:$0xff] %v5327_v7  ;;  %v3906_v41 = vpop.f32.mrf.mxu0 }
 0x1e2   : > { %v5330_v46 = vpop.f32.mrf.mxu1 }
 0x1e3   : > { %5701 = vst [vmem:[#allocation44_spill] sm:$0xff] %v5330_v46  ;;  %v2731_v48 = vpop.f32.mrf.mxu0  ;;  %v2218_v46 = vadd.f32 %v5222_v39, %v5125_v56 }
 0x1e4   : > { %v3872_v52 = vpop.f32.mrf.mxu1 }
 0x1e5   : > { %v2648_v44 = vadd.f32 %v3872_v52, %v2420_v18  ;;  %v3907_v11 = vpop.f32.mrf.mxu0  ;;  %v2419_v52 = vadd.f32 %v5214_v2, %v2213_v54  ;;  %v2424_v29 = vadd.f32 %v5216_v58, %v2218_v46  ;;  %v2422_v2 = vadd.f32 %v5220_v16, %v2216_v17 }
 0x1e6   : > { %v2519_v55 = vpop.f32.mrf.mxu1 }
 0x1e7   : > { %v2860_v60 = vadd.f32 %v3906_v41, %v2648_v44  ;;  %v2646_v49 = vadd.f32 %v2519_v55, %v2418_v57  ;;  %v2734_v40 = vpop.f32.mrf.mxu0  ;;  %v2219_v41 = vadd.f32 %v5230_v42, %v5131_v23 }
 0x1e8   : > { %v3873_v50 = vpop.f32.mrf.mxu1 }
 0x1e9   : > { %v2899_v18 = vadd.f32 %v5340_v20, %v2860_v60  ;;  %v2858_v4 = vadd.f32 %v2731_v48, %v2646_v49  ;;  %v2649_v33 = vadd.f32 %v3873_v50, %v2421_v32  ;;  %v3910_v7 = vpop.f32.mrf.mxu0  ;;  %v2425_v58 = vadd.f32 %v5224_v62, %v2219_v41 }
 0x1ea   : > { %v2522_v57 = vpop.f32.mrf.mxu1  ;;  %v2423_v50 = vadd.f32 %v5228_v45, %v2217_v63  ;;  %v2220_v41 = vadd.f32 %v5242_v31, %v5140_v8 }
 0x1eb   : > { %v2931_v30 = vmax.f32 %v2899_v18, 0.0  ;;  %v2897_v53 = vadd.f32 %v5340_v20, %v2858_v4  ;;  %v2861_v56 = vadd.f32 %v3907_v11, %v2649_v33  ;;  %v2647_v39 = vadd.f32 %v2522_v57, %v2419_v52  ;;  %v2747_v44 = vpop.f32.mrf.mxu0 }
 0x1ec   : > { %v3876_v23 = vpop.f32.mrf.mxu1  ;;  %v2428_v33 = vadd.f32 %v5232_v26, %v2222_v25  ;;  %v2223_v57 = vadd.f32 %v5246_v59, %v5143_v43  ;;  %v2221_v26 = vadd.f32 %v5250_v15, %v5146_v22 }
 0x1ed   : > { %v3447_v48 = vpack.c.bf16 %v2931_v30, %v2931_v30  ;;  %v2929_v42 = vmax.f32 %v2897_v53, 0.0  ;;  %v2900_v11 = vadd.f32 %v5340_v20, %v2861_v56  ;;  %v2859_v54 = vadd.f32 %v2734_v40, %v2647_v39  ;;  %v3911_v46 = vpop.f32.mrf.mxu0 }
 0x1ee   : > { %v2652_v16 = vadd.f32 %v3876_v23, %v2424_v29  ;;  %v2535_v35 = vpop.f32.mrf.mxu1  ;;  %v2426_v23 = vadd.f32 %v5236_v5, %v2220_v41 }
 0x1ef   : > { %3092 = vst.msk [vmem:[%s5360_s15 + $0x8] sm:$0xf] %vm3089_vm9, %v3447_v48  ;;  %v3445_v55 = vpack.c.bf16 %v2929_v42, %v2929_v42  ;;  %v2932_v32 = vmax.f32 %v2900_v11, 0.0  ;;  %v2898_v60 = vadd.f32 %v5340_v20, %v2859_v54  ;;  %v2650_v49 = vadd.f32 %v2535_v35, %v2422_v2  ;;  %v2750_v17 = vpop.f32.mrf.mxu0 }
 0x1f0   : > { %v2864_v40 = vadd.f32 %v3910_v7, %v2652_v16  ;;  %v3877_v52 = vpop.f32.mrf.mxu1  ;;  %v2429_v48 = vadd.f32 %v5240_v1, %v2223_v57  ;;  %v2226_v42 = vadd.f32 %v5254_v12, %v5149_v28  ;;  %v2427_v16 = vadd.f32 %v5244_v34, %v2221_v26 }
 0x1f1   : > { %3090 = vst.msk [vmem:[%s5360_s15] sm:$0xf] %vm3089_vm9, %v3445_v55  ;;  %v3448_v62 = vpack.c.bf16 %v2932_v32, %v2932_v32  ;;  %v2930_v18 = vmax.f32 %v2898_v60, 0.0  ;;  %v2862_v13 = vadd.f32 %v2747_v44, %v2650_v49  ;;  %v2653_v0 = vadd.f32 %v3877_v52, %v2425_v58  ;;  %v3914_v4 = vpop.f32.mrf.mxu0 }
 0x1f2   : > { %v2903_v45 = vadd.f32 %v5340_v20, %v2864_v40  ;;  %v2538_v7 = vpop.f32.mrf.mxu1  ;;  %v2224_v35 = vadd.f32 %v5258_v9, %v5152_v38  ;;  %v2432_v49 = vadd.f32 %v5248_v36, %v2226_v42 }
 0x1f3   : > { %3093 = vst.msk [vmem:[%s5360_s15 + $0xc] sm:$0xf] %vm3089_vm9, %v3448_v62  ;;  %v3446_v30 = vpack.c.bf16 %v2930_v18, %v2930_v18  ;;  %v2901_v53 = vadd.f32 %v5340_v20, %v2862_v13  ;;  %v2865_v56 = vadd.f32 %v3911_v46, %v2653_v0  ;;  %v2651_v39 = vadd.f32 %v2538_v7, %v2423_v50  ;;  %v2763_v44 = vpop.f32.mrf.mxu0 }
 0x1f4   : > { %v2935_v29 = vmax.f32 %v2903_v45, 0.0  ;;  %v3880_v2 = vpop.f32.mrf.mxu1  ;;  %v2430_v62 = vadd.f32 %v5252_v21, %v2224_v35  ;;  %v2227_v18 = vadd.f32 %v5262_v14, %v5155_v10  ;;  %v2225_v13 = vadd.f32 %v5266_v27, %v5158_v19 }
 0x1f5   : > { %3091 = vst.msk [vmem:[%s5360_s15 + $0x4] sm:$0xf] %vm3089_vm9, %v3446_v30  ;;  %v2933_v8 = vmax.f32 %v2901_v53, 0.0  ;;  %v2904_v43 = vadd.f32 %v5340_v20, %v2865_v56  ;;  %v2863_v31 = vadd.f32 %v2750_v17, %v2651_v39  ;;  %v2656_v59 = vadd.f32 %v3880_v2, %v2428_v33  ;;  %v3915_v63 = vpop.f32.mrf.mxu0 }
 0x1f6   : > { %v3451_v22 = vpack.c.bf16 %v2935_v29, %v2935_v29  ;;  %v2551_v15 = vpop.f32.mrf.mxu1  ;;  %v2230_v21 = vadd.f32 %v5270_v37, %v5161_v3  ;;  %v2433_v56 = vadd.f32 %v5256_v47, %v2227_v18  ;;  %v2431_v39 = vadd.f32 %v5260_v24, %v2225_v13  ;;  %v5711_v18 = vld [vmem:[#allocation4_spill] sm:$0xff] }
 0x1f7   : > { %v3449_v11 = vpack.c.bf16 %v2933_v8, %v2933_v8  ;;  %v2936_v54 = vmax.f32 %v2904_v43, 0.0  ;;  %v2902_v46 = vadd.f32 %v5340_v20, %v2863_v31  ;;  %v2868_v58 = vadd.f32 %v3914_v4, %v2656_v59  ;;  %v2766_v25 = vpop.f32.mrf.mxu0  ;;  %v5702_v59 = vld [vmem:[#allocation7_spill] sm:$0xff] }
 0x1f8   : > { %3096 = vst.msk [vmem:[%s5360_s15 + $0x18] sm:$0xf] %vm3089_vm9, %v3451_v22  ;;  %v2654_v5 = vadd.f32 %v2551_v15, %v2426_v23  ;;  %v3881_v1 = vpop.f32.mrf.mxu1  ;;  %v2436_v31 = vadd.f32 %v5264_v51, %v2230_v21  ;;  %v5704_v15 = vld [vmem:[#allocation26_spill] sm:$0xff]  ;;  %v5712_v21 = vld [vmem:[#allocation17_spill] sm:$0xff] }
 0x1f9   : > { %3094 = vst.msk [vmem:[%s5360_s15 + $0x10] sm:$0xf] %vm3089_vm9, %v3449_v11  ;;  %v3452_v28 = vpack.c.bf16 %v2936_v54, %v2936_v54  ;;  %v2934_v12 = vmax.f32 %v2902_v46, 0.0  ;;  %v2907_v55 = vadd.f32 %v5340_v20, %v2868_v58  ;;  %v2657_v32 = vadd.f32 %v3881_v1, %v2429_v48  ;;  %v3918_v60 = vpop.f32.mrf.mxu0 }
 0x1fa   : > { %v2866_v17 = vadd.f32 %v2763_v44, %v2654_v5  ;;  %v2554_v34 = vpop.f32.mrf.mxu1  ;;  %v2228_v44 = vadd.f32 %v5274_v61, %v5164_v6  ;;  %v5705_v5 = vld [vmem:[#allocation3_spill] sm:$0xff] }
 0x1fb   : > { %3097 = vst.msk [vmem:[%s5360_s15 + $0x1c] sm:$0xf] %vm3089_vm9, %v3452_v28  ;;  %v3450_v38 = vpack.c.bf16 %v2934_v12, %v2934_v12  ;;  %v2939_v9 = vmax.f32 %v2907_v55, 0.0  ;;  %v2869_v50 = vadd.f32 %v3915_v63, %v2657_v32  ;;  %v2655_v40 = vadd.f32 %v2554_v34, %v2427_v16  ;;  %v2779_v52 = vpop.f32.mrf.mxu0  ;;  %v5703_v63 = vld [vmem:[#allocation9_spill] sm:$0xff]  ;;  %v5706_v28 = vld [vmem:[#allocation10_spill] sm:$0xff]  ;;  %v5707_v12 = vld [vmem:[#allocation19_spill] sm:$0xff] }
 0x1fc   : > { %v2905_v36 = vadd.f32 %v5340_v20, %v2866_v17  ;;  %v3884_v0 = vpop.f32.mrf.mxu1  ;;  %v2231_v23 = vadd.f32 %v5703_v63, %v5702_v59  ;;  %v2434_v11 = vadd.f32 %v5704_v15, %v2228_v44  ;;  %v2229_v55 = vadd.f32 %v5707_v12, %v5706_v28  ;;  %v5708_v32 = vld [vmem:[#allocation8_spill] sm:$0xff]  ;;  %v5723_v28 = vld [vmem:[#allocation25_spill] sm:$0xff] }
 0x1fd   : > { %3095 = vst.msk [vmem:[%s5360_s15 + $0x14] sm:$0xf] %vm3089_vm9, %v3450_v38  ;;  %v3455_v4 = vpack.c.bf16 %v2939_v9, %v2939_v9  ;;  %v2908_v33 = vadd.f32 %v5340_v20, %v2869_v50  ;;  %v2867_v41 = vadd.f32 %v2766_v25, %v2655_v40  ;;  %v2660_v57 = vadd.f32 %v3884_v0, %v2432_v49  ;;  %v3919_v45 = vpop.f32.mrf.mxu0  ;;  %v5724_v12 = vld [vmem:[#allocation33_spill] sm:$0xff] }
 0x1fe   : > { %v2937_v7 = vmax.f32 %v2905_v36, 0.0  ;;  %v2567_v30 = vpop.f32.mrf.mxu1  ;;  %v2437_v1 = vadd.f32 %v5705_v5, %v2231_v23  ;;  %v5722_v5 = vld [vmem:[#allocation31_spill] sm:$0xff] }
 0x1ff   : > { %3100 = vst.msk [vmem:[%s5360_s15 + $0x28] sm:$0xf] %vm3089_vm9, %v3455_v4  ;;  %v2940_v10 = vmax.f32 %v2908_v33, 0.0  ;;  %v2906_v19 = vadd.f32 %v5340_v20, %v2867_v41  ;;  %v2872_v27 = vadd.f32 %v3918_v60, %v2660_v57  ;;  %v2658_v14 = vadd.f32 %v2567_v30, %v2430_v62  ;;  %v2782_v53 = vpop.f32.mrf.mxu0  ;;  %v5709_v60 = vld [vmem:[#allocation24_spill] sm:$0xff]  ;;  %v5713_v30 = vld [vmem:[#allocation21_spill] sm:$0xff] }
 0x200   : > { %v3453_v3 = vpack.c.bf16 %v2937_v7, %v2937_v7  ;;  %v3885_v37 = vpop.f32.mrf.mxu1  ;;  %v2234_v49 = vadd.f32 %v5709_v60, %v5708_v32  ;;  %v5710_v62 = vld [vmem:[#allocation12_spill] sm:$0xff]  ;;  %v2435_v7 = vadd.f32 %v5712_v21, %v2229_v55  ;;  %v2236_v55 = vadd.f32 %v5724_v12, %v5723_v28 }
 0x201   : > { %v3456_v26 = vpack.c.bf16 %v2940_v10, %v2940_v10  ;;  %v2938_v29 = vmax.f32 %v2906_v19, 0.0  ;;  %v2911_v2 = vadd.f32 %v5340_v20, %v2872_v27  ;;  %v2870_v8 = vadd.f32 %v2779_v52, %v2658_v14  ;;  %v3922_v43 = vpop.f32.mrf.mxu0  ;;  %v5714_v19 = vld [vmem:[#allocation14_spill] sm:$0xff]  ;;  %v5715_v27 = vld [vmem:[#allocation27_spill] sm:$0xff] }
 0x202   : > { %3098 = vst.msk [vmem:[%s5360_s15 + $0x20] sm:$0xf] %vm3089_vm9, %v3453_v3  ;;  %v2661_v47 = vadd.f32 %v3885_v37, %v2433_v56  ;;  %v2570_v24 = vpop.f32.mrf.mxu1  ;;  %v2232_v13 = vadd.f32 %v5711_v18, %v5710_v62  ;;  %v2440_v10 = vadd.f32 %v5713_v30, %v2234_v49  ;;  %v2235_v14 = vadd.f32 %v5715_v27, %v5714_v19  ;;  %v5730_v30 = vld [vmem:[#allocation37_spill] sm:$0xff] }
 0x203   : > { %3101 = vst.msk [vmem:[%s5360_s15 + $0x2c] sm:$0xf] %vm3089_vm9, %v3456_v26  ;;  %v3454_v6 = vpack.c.bf16 %v2938_v29, %v2938_v29  ;;  %v2943_v61 = vmax.f32 %v2911_v2, 0.0  ;;  %v2909_v48 = vadd.f32 %v5340_v20, %v2870_v8  ;;  %v2659_v42 = vadd.f32 %v2570_v24, %v2431_v39  ;;  %v2795_v22 = vpop.f32.mrf.mxu0  ;;  %v5716_v29 = vld [vmem:[#allocation22_spill] sm:$0xff]  ;;  %v5717_v8 = vld [vmem:[#allocation16_spill] sm:$0xff] }
 0x204   : > { %v2873_v54 = vadd.f32 %v3919_v45, %v2661_v47  ;;  %v3888_v51 = vpop.f32.mrf.mxu1  ;;  %v2438_v2 = vadd.f32 %v5716_v29, %v2232_v13  ;;  %v5733_v29 = vld [vmem:[#allocation39_spill] sm:$0xff] }
 0x205   : > { %3099 = vst.msk [vmem:[%s5360_s15 + $0x24] sm:$0xf] %vm3089_vm9, %v3454_v6  ;;  %v3459_v46 = vpack.c.bf16 %v2943_v61, %v2943_v61  ;;  %v2941_v58 = vmax.f32 %v2909_v48, 0.0  ;;  %v2871_v25 = vadd.f32 %v2782_v53, %v2659_v42  ;;  %v2664_v16 = vadd.f32 %v3888_v51, %v2436_v31  ;;  %v3923_v35 = vpop.f32.mrf.mxu0  ;;  %v5719_v48 = vld [vmem:[#allocation2_spill] sm:$0xff] }
 0x206   : > { %v2912_v17 = vadd.f32 %v5340_v20, %v2873_v54  ;;  %v2583_v34 = vpop.f32.mrf.mxu1  ;;  %v2441_v42 = vadd.f32 %v5719_v48, %v2235_v14 }
 0x207   : > { %3104 = vst.msk [vmem:[%s5360_s15 + $0x38] sm:$0xf] %vm3089_vm9, %v3459_v46  ;;  %v3457_v38 = vpack.c.bf16 %v2941_v58, %v2941_v58  ;;  %v2910_v9 = vadd.f32 %v5340_v20, %v2871_v25  ;;  %v2876_v50 = vadd.f32 %v3922_v43, %v2664_v16  ;;  %v2662_v40 = vadd.f32 %v2583_v34, %v2434_v11  ;;  %v2798_v52 = vpop.f32.mrf.mxu0  ;;  %v5718_v43 = vld [vmem:[#allocation29_spill] sm:$0xff] }
 0x208   : > { %v2944_v36 = vmax.f32 %v2912_v17, 0.0  ;;  %v3889_v0 = vpop.f32.mrf.mxu1  ;;  %v2233_v31 = vadd.f32 %v5718_v43, %v5717_v8  ;;  %v5720_v25 = vld [vmem:[#allocation5_spill] sm:$0xff] }
 0x209   : > { %3102 = vst.msk [vmem:[%s5360_s15 + $0x30] sm:$0xf] %vm3089_vm9, %v3457_v38  ;;  %v2942_v4 = vmax.f32 %v2910_v9, 0.0  ;;  %v2915_v33 = vadd.f32 %v5340_v20, %v2876_v50  ;;  %v2874_v41 = vadd.f32 %v2795_v22, %v2662_v40  ;;  %v2665_v57 = vadd.f32 %v3889_v0, %v2437_v1  ;;  %v3926_v45 = vpop.f32.mrf.mxu0  ;;  %v5725_v50 = vld [vmem:[#allocation6_spill] sm:$0xff]  ;;  %v5726_v40 = vld [vmem:[#allocation35_spill] sm:$0xff] }
 0x20a   : > { %v3460_v53 = vpack.c.bf16 %v2944_v36, %v2944_v36  ;;  %v2586_v56 = vpop.f32.mrf.mxu1  ;;  %v2439_v16 = vadd.f32 %v5720_v25, %v2233_v31  ;;  %v5737_v25 = vld [vmem:[#allocation41_spill] sm:$0xff] }
 0x20b   : > { %v3458_v39 = vpack.c.bf16 %v2942_v4, %v2942_v4  ;;  %v2947_v44 = vmax.f32 %v2915_v33, 0.0  ;;  %v2913_v3 = vadd.f32 %v5340_v20, %v2874_v41  ;;  %v2877_v37 = vadd.f32 %v3923_v35, %v2665_v57  ;;  %v2811_v26 = vpop.f32.mrf.mxu0  ;;  %v5721_v35 = vld [vmem:[#allocation20_spill] sm:$0xff] }
 0x20c   : > { %3105 = vst.msk [vmem:[%s5360_s15 + $0x3c] sm:$0xf] %vm3089_vm9, %v3460_v53  ;;  %v2663_v59 = vadd.f32 %v2586_v56, %v2435_v7  ;;  %v3892_v63 = vpop.f32.mrf.mxu1  ;;  %v2238_v1 = vadd.f32 %v5722_v5, %v5721_v35  ;;  %v5727_v41 = vld [vmem:[#allocation28_spill] sm:$0xff]  ;;  %v5729_v7 = vld [vmem:[#allocation11_spill] sm:$0xff]  ;;  %v5738_v35 = vld [vmem:[#allocation18_spill] sm:$0xff] }
 0x20d   : > { %3103 = vst.msk [vmem:[%s5360_s15 + $0x34] sm:$0xf] %vm3089_vm9, %v3458_v39  ;;  %v3463_v23 = vpack.c.bf16 %v2947_v44, %v2947_v44  ;;  %v2945_v47 = vmax.f32 %v2913_v3, 0.0  ;;  %v2916_v24 = vadd.f32 %v5340_v20, %v2877_v37  ;;  %v2668_v6 = vadd.f32 %v3892_v63, %v2440_v10  ;;  %v3927_v61 = vpop.f32.mrf.mxu0  ;;  %v5731_v3 = vld [vmem:[#allocation32_spill] sm:$0xff]  ;;  %v5739_v5 = vld [vmem:[#allocation43_spill] sm:$0xff] }
 0x20e   : > { %v2875_v22 = vadd.f32 %v2798_v52, %v2663_v59  ;;  %v2599_v15 = vpop.f32.mrf.mxu1  ;;  %v2239_v52 = vadd.f32 %v5726_v40, %v5725_v50  ;;  %v2444_v57 = vadd.f32 %v5727_v41, %v2238_v1  ;;  %v2237_v10 = vadd.f32 %v5730_v30, %v5729_v7 }
 0x20f   : > { %3108 = vst.msk [vmem:[%s5360_s15 + $0x48] sm:$0xf] %vm3089_vm9, %v3463_v23  ;;  %v3461_v11 = vpack.c.bf16 %v2945_v47, %v2945_v47  ;;  %v2948_v54 = vmax.f32 %v2916_v24, 0.0  ;;  %v2880_v51 = vadd.f32 %v3926_v45, %v2668_v6  ;;  %v2666_v46 = vadd.f32 %v2599_v15, %v2438_v2  ;;  %v2814_v58 = vpop.f32.mrf.mxu0  ;;  %v5728_v45 = vld [vmem:[#allocation30_spill] sm:$0xff] }
 0x210   : > { %v2914_v32 = vadd.f32 %v5340_v20, %v2875_v22  ;;  %v3893_v60 = vpop.f32.mrf.mxu1  ;;  %v2442_v21 = vadd.f32 %v5728_v45, %v2236_v55  ;;  %v2445_v37 = vadd.f32 %v5731_v3, %v2239_v52  ;;  %v5734_v24 = vld [vmem:[#allocation34_spill] sm:$0xff]  ;;  %v2243_v1 = vadd.f32 %v5739_v5, %v5738_v35 }
 0x211   : > { %3106 = vst.msk [vmem:[%s5360_s15 + $0x40] sm:$0xf] %vm3089_vm9, %v3461_v11  ;;  %v3464_v49 = vpack.c.bf16 %v2948_v54, %v2948_v54  ;;  %v2919_v17 = vadd.f32 %v5340_v20, %v2880_v51  ;;  %v2878_v34 = vadd.f32 %v2811_v26, %v2666_v46  ;;  %v2669_v38 = vadd.f32 %v3893_v60, %v2441_v42  ;;  %v3930_v9 = vpop.f32.mrf.mxu0  ;;  %v5732_v26 = vld [vmem:[#allocation13_spill] sm:$0xff]  ;;  %v5735_v51 = vld [vmem:[#allocation36_spill] sm:$0xff] }
 0x212   : > { %v2946_v62 = vmax.f32 %v2914_v32, 0.0  ;;  %v2602_v18 = vpop.f32.mrf.mxu1  ;;  %v2242_v2 = vadd.f32 %v5733_v29, %v5732_v26  ;;  %v2443_v6 = vadd.f32 %v5734_v24, %v2237_v10  ;;  %v5744_v10 = vld [vmem:[#allocation42_spill] sm:$0xff] }
 0x213   : > { %3109 = vst.msk [vmem:[%s5360_s15 + $0x4c] sm:$0xf] %vm3089_vm9, %v3464_v49  ;;  %v2951_v13 = vmax.f32 %v2919_v17, 0.0  ;;  %v2917_v36 = vadd.f32 %v5340_v20, %v2878_v34  ;;  %v2881_v0 = vadd.f32 %v3927_v61, %v2669_v38  ;;  %v2667_v4 = vadd.f32 %v2602_v18, %v2439_v16  ;;  %v2827_v33 = vpop.f32.mrf.mxu0  ;;  %v5740_v17 = vld [vmem:[#allocation23_spill] sm:$0xff]  ;;  %v5741_v34 = vld [vmem:[#allocation44_spill] sm:$0xff] }
 0x214   : > { %v3462_v19 = vpack.c.bf16 %v2946_v62, %v2946_v62  ;;  %v3896_v27 = vpop.f32.mrf.mxu1  ;;  %v2448_v46 = vadd.f32 %v5735_v51, %v2242_v2  ;;  %v2241_v38 = vadd.f32 %v5741_v34, %v5740_v17 }
 0x215   : > { %v3467_v14 = vpack.c.bf16 %v2951_v13, %v2951_v13  ;;  %v2949_v53 = vmax.f32 %v2917_v36, 0.0  ;;  %v2920_v56 = vadd.f32 %v5340_v20, %v2881_v0  ;;  %v2879_v39 = vadd.f32 %v2814_v58, %v2667_v4  ;;  %v3931_v44 = vpop.f32.mrf.mxu0  ;;  %v5736_v58 = vld [vmem:[#allocation15_spill] sm:$0xff]  ;;  %v5742_v36 = vld [vmem:[#allocation38_spill] sm:$0xff]  ;;  %v5743_v4 = vld [vmem:[#allocation40_spill] sm:$0xff] }
 0x216   : > { %3107 = vst.msk [vmem:[%s5360_s15 + $0x44] sm:$0xf] %vm3089_vm9, %v3462_v19  ;;  %v2672_v8 = vadd.f32 %v3896_v27, %v2444_v57  ;;  %v2615_v43 = vpop.f32.mrf.mxu1  ;;  %v2240_v16 = vadd.f32 %v5737_v25, %v5736_v58  ;;  %v2447_v19 = vadd.f32 %v5744_v10, %v2241_v38 }
 0x217   : > { %3112 = vst.msk [vmem:[%s5360_s15 + $0x58] sm:$0xf] %vm3089_vm9, %v3467_v14  ;;  %v3465_v31 = vpack.c.bf16 %v2949_v53, %v2949_v53  ;;  %v2952_v59 = vmax.f32 %v2920_v56, 0.0  ;;  %v2918_v63 = vadd.f32 %v5340_v20, %v2879_v39  ;;  %v2670_v23 = vadd.f32 %v2615_v43, %v2442_v21  ;;  %v2830_v47 = vpop.f32.mrf.mxu0 }
 0x218   : > { %v2884_v61 = vadd.f32 %v3930_v9, %v2672_v8  ;;  %v3897_v48 = vpop.f32.mrf.mxu1  ;;  %v2446_v0 = vadd.f32 %v5742_v36, %v2240_v16 }
 0x219   : > { %3110 = vst.msk [vmem:[%s5360_s15 + $0x50] sm:$0xf] %vm3089_vm9, %v3465_v31  ;;  %v3468_v42 = vpack.c.bf16 %v2952_v59, %v2952_v59  ;;  %v2950_v22 = vmax.f32 %v2918_v63, 0.0  ;;  %v2882_v15 = vadd.f32 %v2827_v33, %v2670_v23  ;;  %v2673_v11 = vadd.f32 %v3897_v48, %v2445_v37  ;;  %v3934_v54 = vpop.f32.mrf.mxu0 }
 0x21a   : > { %v2923_v28 = vadd.f32 %v5340_v20, %v2884_v61  ;;  %v2618_v12 = vpop.f32.mrf.mxu1  ;;  %v2449_v33 = vadd.f32 %v5743_v4, %v2243_v1 }
 0x21b   : > { %3113 = vst.msk [vmem:[%s5360_s15 + $0x5c] sm:$0xf] %vm3089_vm9, %v3468_v42  ;;  %v3466_v55 = vpack.c.bf16 %v2950_v22, %v2950_v22  ;;  %v2921_v32 = vadd.f32 %v5340_v20, %v2882_v15  ;;  %v2885_v60 = vadd.f32 %v3931_v44, %v2673_v11  ;;  %v2671_v49 = vadd.f32 %v2618_v12, %v2443_v6  ;;  %v2843_v40 = vpop.f32.mrf.mxu0 }
 0x21c   : > { %v2955_v9 = vmax.f32 %v2923_v28, 0.0  ;;  %v3900_v50 = vpop.f32.mrf.mxu1 }
 0x21d   : > { %3111 = vst.msk [vmem:[%s5360_s15 + $0x54] sm:$0xf] %vm3089_vm9, %v3466_v55  ;;  %v2953_v52 = vmax.f32 %v2921_v32, 0.0  ;;  %v2924_v62 = vadd.f32 %v5340_v20, %v2885_v60  ;;  %v2883_v18 = vadd.f32 %v2830_v47, %v2671_v49  ;;  %v2676_v13 = vadd.f32 %v3900_v50, %v2448_v46  ;;  %v3935_v53 = vpop.f32.mrf.mxu0 }
 0x21e   : > { %v3471_v41 = vpack.c.bf16 %v2955_v9, %v2955_v9  ;;  %v2631_v57 = vpop.f32.mrf.mxu1 }
 0x21f   : > { %v3469_v45 = vpack.c.bf16 %v2953_v52, %v2953_v52  ;;  %v2956_v21 = vmax.f32 %v2924_v62, 0.0  ;;  %v2922_v7 = vadd.f32 %v5340_v20, %v2883_v18  ;;  %v2888_v30 = vadd.f32 %v3934_v54, %v2676_v13  ;;  %v2846_v59 = vpop.f32.mrf.mxu0 }
 0x220   : > { %3116 = vst.msk [vmem:[%s5360_s15 + $0x68] sm:$0xf] %vm3089_vm9, %v3471_v41  ;;  %v2674_v27 = vadd.f32 %v2631_v57, %v2446_v0  ;;  %v3901_v14 = vpop.f32.mrf.mxu1 }
 0x221   : > { %3114 = vst.msk [vmem:[%s5360_s15 + $0x60] sm:$0xf] %vm3089_vm9, %v3469_v45  ;;  %v3472_v56 = vpack.c.bf16 %v2956_v21, %v2956_v21  ;;  %v2954_v39 = vmax.f32 %v2922_v7, 0.0  ;;  %v2927_v44 = vadd.f32 %v5340_v20, %v2888_v30  ;;  %v2677_v3 = vadd.f32 %v3901_v14, %v2449_v33 }
 0x222   : > { %v2886_v37 = vadd.f32 %v2843_v40, %v2674_v27  ;;  %v2634_v26 = vpop.f32.mrf.mxu1 }
 0x223   : > { %3117 = vst.msk [vmem:[%s5360_s15 + $0x6c] sm:$0xf] %vm3089_vm9, %v3472_v56  ;;  %v3470_v29 = vpack.c.bf16 %v2954_v39, %v2954_v39  ;;  %v2959_v2 = vmax.f32 %v2927_v44, 0.0  ;;  %v2889_v8 = vadd.f32 %v3935_v53, %v2677_v3  ;;  %v2675_v43 = vadd.f32 %v2634_v26, %v2447_v19 }
 0x224   : > { %v2925_v31 = vadd.f32 %v5340_v20, %v2886_v37 }
 0x225   : > { %3115 = vst.msk [vmem:[%s5360_s15 + $0x64] sm:$0xf] %vm3089_vm9, %v3470_v29  ;;  %v3475_v63 = vpack.c.bf16 %v2959_v2, %v2959_v2  ;;  %v2928_v23 = vadd.f32 %v5340_v20, %v2889_v8  ;;  %v2887_v47 = vadd.f32 %v2846_v59, %v2675_v43 }
 0x226   : > { %v2957_v24 = vmax.f32 %v2925_v31, 0.0 }
 0x227   : > { %3120 = vst.msk [vmem:[%s5360_s15 + $0x78] sm:$0xf] %vm3089_vm9, %v3475_v63  ;;  %v2960_v6 = vmax.f32 %v2928_v23, 0.0  ;;  %v2926_v61 = vadd.f32 %v5340_v20, %v2887_v47 }
 0x228   : > { %v3473_v48 = vpack.c.bf16 %v2957_v24, %v2957_v24 }
 0x229   : > { %v3476_v42 = vpack.c.bf16 %v2960_v6, %v2960_v6  ;;  %v2958_v22 = vmax.f32 %v2926_v61, 0.0 }
 0x22a   : > { %3118 = vst.msk [vmem:[%s5360_s15 + $0x70] sm:$0xf] %vm3089_vm9, %v3473_v48 }
 0x22b   : > { %3121 = vst.msk [vmem:[%s5360_s15 + $0x7c] sm:$0xf] %vm3089_vm9, %v3476_v42  ;;  %v3474_v15 = vpack.c.bf16 %v2958_v22, %v2958_v22 }
 0x22d   : > { %3119 = vst.msk [vmem:[%s5360_s15 + $0x74] sm:$0xf] %vm3089_vm9, %v3474_v15 }
 0x22e PF: > { %s13_s12 = sadd.s32 1, %s3972_s12  }
 0x22f   : > { %p10_p4 = scmp.ge.s32.totalorder %s13_s12, 6  }
 0x231   :  { %12 = sbr.rel (!%p10_p4) target bundleno = 1 (0x1), region = 70 }

// kernel: combined_loss.14
= control target key start
LH: loop header
LB: loop body
LE: loop exit
PB: predicated region body
PF: predicated region fallthrough
CT: control target
= control target key end

     0   :  { %s4461_s12 = smov 0   ;;  %s6071_s0 = inlined_call_operand.vmem [shape: bf16[4,18,18,64], index: 0, kind: input, shape index: {}]   ;;  %s6072_s1 = inlined_call_operand.vmem [shape: bf16[9,64,64], index: 1, kind: input, shape index: {}]   ;;  %s6073_s2 = inlined_call_operand.vmem [shape: f32[1,64], index: 2, kind: input, shape index: {}]   ;;  %s6074_s3 = inlined_call_operand.vmem [shape: bf16[4,256,64], index: 3, kind: output, shape index: {}]  }
   0x1 LB: > { %s3425_s13 = sadd.s32 4294967295, %s4439_s12   ;;  %p3429_p0 = scmp.ge.s32.totalorder %s4439_s12, 1  ;;  %s4439_s12 = sphi %s4461_s12, %s13_s12  }
   0x2   : > { %p137_p1 = scmp.lt.s32.totalorder %s4439_s12, 5 }
   0x4   : > { %p138_p2 = pnand %p3429_p0, %p137_p1 }
   0x6   : > { %141 = sbr.rel (%p138_p2) target bundleno = 558 (0x22e), region = 32 }
   0xb   : > { %v4374_v0 = vld [vmem:[%s6072_s1 + $0x38] sm:$0xff]   ;;  %p161_p3 = scmp.lt.s32.totalorder %s3425_s13, 3  ;;  %v4375_v1 = vld [vmem:[%s6072_s1 + $0x30] sm:$0xff]   ;;  %v4376_v2 = vld [vmem:[%s6072_s1 + $0x28] sm:$0xff]   ;;  %vm234_vm0 = vsmask.f32 3328 }
   0xc   : > { %4357 = vmatprep.subr.bf16.mxu1 %v4374_v0  ;;  %3997 = vmatprep.subr.bf16.mxu0 %v4374_v0  ;;  %v4377_v3 = vld [vmem:[%s6072_s1 + $0x20] sm:$0xff]   ;;  %vm235_vm1 = vsmask.f32 7440  ;;  %vm702_vm2 = vcmask 523264   ;;  %v4519_v24 = vld [vmem:[%s6072_s1 + $0x18] sm:$0xff]   ;;  %v6117_v32 = vmov 0 }
   0xd   : > { %s6277_s13 = smov (!%p161_p3, %s3425_s13), 3  ;;  %4361 = vmatpush3.bf16.msra.mxu1 %v4374_v0  ;;  %3998 = vmatpush3.bf16.msra.mxu0 %v4374_v0  ;;  %v4524_v25 = vld [vmem:[%s6072_s1 + $0x58] sm:$0xff]   ;;  %vm4536_vm3 = vmor %vm234_vm0, %vm235_vm1  ;;  %vm1241_vm4 = vcmask 1042432   ;;  %vm1242_vm5 = vcmask 1046532   ;;  %vm3337_vm7 = vcmask 519168  }
   0xe   : > { %4358 = vmatprep.subr.bf16.mxu1 %v4375_v1  ;;  %3999 = vmatprep.subr.bf16.mxu0 %v4375_v1  ;;  %s4365_s20 = smul.u32 216, %s6277_s13  ;;  %v6118_v32 = vsel %vm4536_vm3, 4294967295, %v6117_v32  ;;  %vm4870_vm6 = vmor %vm1241_vm4, %vm1242_vm5  ;;  %s3784_s18 = sshll.u32 %s6277_s13, 7 }
   0xf   : > { %6119 = vst [vmem:[#allocation2_spill] sm:$0xff] %v6118_v32 }
  0x10   : > { %s4487_s25 = scalar_lea.vmem %s6071_s0, %s4365_s20  ;;  %s5898_s20 = scalar_lea.vmem %s6074_s3, %s3784_s18 }
  0x11   : > { %4362 = vmatpush3.bf16.msra.mxu1 %v4375_v1  ;;  %4000 = vmatpush3.bf16.msra.mxu0 %v4375_v1  ;;  %v4490_v4 = vld [vmem:[%s4487_s25] sm:$0xf]  ;;  %v4493_v5 = vld [vmem:[%s4487_s25 + $0x4] sm:$0xf]  ;;  %v4496_v6 = vld [vmem:[%s4487_s25 + $0x8] sm:$0x1] }
  0x12   : > { %4359 = vmatprep.subr.bf16.mxu1 %v4376_v2  ;;  %4001 = vmatprep.subr.bf16.mxu0 %v4376_v2  ;;  %v238_v7 = vshrl.u32 %v4490_v4, 16  ;;  %v241_v8 = vshll.u32 %v4490_v4, 16  ;;  %v247_v9 = vshll.u32 %v4493_v5, 16  ;;  %v251_v10 = vshrl.u32 %v4493_v5, 16  ;;  %v4503_v11 = vld [vmem:[%s4487_s25 + $0x60] sm:$0xf] }
  0x13   : > { %v257_v12 = vshll.u32 %v4496_v6, 16  ;;  %v4508_v14 = vld [vmem:[%s4487_s25 + $0x64] sm:$0xf]  ;;  %v4511_v15 = vld [vmem:[%s4487_s25 + $0x68] sm:$0x1]  ;;  %v430_v21 = vshrl.u32 %v4503_v11, 16 }
  0x14   : > { %v240_v16 = vrot.slane %v238_v7, 4  ;;  %v243_v17 = vrot.slane %v241_v8, 5  ;;  %v249_v18 = vrot.slane %v247_v9, 5  ;;  %v253_v19 = vrot.slane %v251_v10, 4  ;;  %v4529_v30 = vld [vmem:[%s4487_s25 + $0xc] sm:$0xf] }
  0x15   : > { %4363 = vmatpush3.bf16.msra.mxu1 %v4376_v2  ;;  %4002 = vmatpush3.bf16.msra.mxu0 %v4376_v2  ;;  %v259_v20 = vrot.slane %v257_v12, 5  ;;  %v433_v22 = vshll.u32 %v4503_v11, 16  ;;  %v439_v23 = vshll.u32 %v4508_v14, 16  ;;  %v443_v28 = vshrl.u32 %v4508_v14, 16  ;;  %v4532_v31 = vld [vmem:[%s4487_s25 + $0x10] sm:$0xf] }
  0x16   : > { %4360 = vmatprep.subr.bf16.mxu1 %v4377_v3  ;;  %4003 = vmatprep.subr.bf16.mxu0 %v4377_v3  ;;  %v244_v26 = vor.u32 %v243_v17, %v240_v16  ;;  %v254_v27 = vor.u32 %v253_v19, %v249_v18  ;;  %v449_v29 = vshll.u32 %v4511_v15, 16  ;;  %v432_v33 = vrot.slane %v430_v21, 4  ;;  %v4543_v42 = vld [vmem:[%s4487_s25 + $0x14] sm:$0x1]  ;;  %v199_v54 = vld [vmem:[%s4487_s25 + $0x6c] sm:$0xf] }
  0x17   : > { %v435_v34 = vrot.slane %v433_v22, 5  ;;  %v441_v35 = vrot.slane %v439_v23, 5  ;;  %v445_v39 = vrot.slane %v443_v28, 4  ;;  %v262_v43 = vshrl.u32 %v4529_v30, 16  ;;  %v4558_v59 = vld [vmem:[%s4487_s25 + $0x70] sm:$0xf] }
  0x18   : > { %v245_v37 = vrot.slane %v244_v26, 4  ;;  %v255_v38 = vrot.slane %v254_v27, 4  ;;  %v451_v40 = vrot.slane %v449_v29, 5  ;;  %v265_v44 = vshll.u32 %v4529_v30, 16  ;;  %v201_v0 = vld [vmem:[%s4487_s25 + $0x74] sm:$0x1] }
  0x19   : > { %4364 = vmatpush3.bf16.msra.mxu1 %v4377_v3  ;;  %4004 = vmatpush3.bf16.msra.mxu0 %v4377_v3  ;;  %v436_v41 = vor.u32 %v435_v34, %v432_v33  ;;  %v271_v45 = vshll.u32 %v4532_v31, 16  ;;  %v446_v48 = vor.u32 %v445_v39, %v441_v35  ;;  %v275_v49 = vshrl.u32 %v4532_v31, 16  ;;  %v4569_v8 = vld [vmem:[%s4487_s25 + $0x18] sm:$0xf]  ;;  %v4576_v21 = vld [vmem:[%s4487_s25 + $0x1c] sm:$0xf] }
  0x1a   : > { %v250_v46 = vsel %vm4536_vm3, %v245_v37, %v249_v18  ;;  %v260_v47 = vsel %vm4536_vm3, %v255_v38, %v259_v20  ;;  %4037 = vmatprep.subr.bf16.mxu1 %v4519_v24  ;;  %4077 = vmatprep.subr.bf16.mxu0 %v4524_v25  ;;  %v264_v52 = vrot.slane %v262_v43, 4  ;;  %v267_v53 = vrot.slane %v265_v44, 5  ;;  %v4583_v27 = vld [vmem:[%s4487_s25 + $0x20] sm:$0x1]  ;;  %v4590_v37 = vld [vmem:[%s4487_s25 + $0x78] sm:$0xf] }
  0x1b   : > { %v3441_v50 = vcombine.low %v250_v46, %v260_v47  ;;  %v437_v51 = vrot.slane %v436_v41, 4  ;;  %v447_v55 = vrot.slane %v446_v48, 4  ;;  %v273_v56 = vrot.slane %v271_v45, 5  ;;  %6121 = vst [vmem:[#allocation4_spill] sm:$0xff] %v4590_v37  ;;  %v4381_v38 = vld [vmem:[%s6072_s1 + $0x50] sm:$0xff]  }
  0x1c   : > { %v277_v57 = vrot.slane %v275_v49, 4  ;;  %v281_v58 = vshll.u32 %v4543_v42, 16  ;;  %v268_v61 = vor.u32 %v267_v53, %v264_v52  ;;  %v454_v7 = vshrl.u32 %v199_v54, 16  ;;  %v4599_v44 = vld [vmem:[%s4487_s25 + $0x7c] sm:$0xf] }
  0x1d   : > { %4005 = vmatprep.mubr.msk.bf16.mxu0 %vm702_vm2, %v3441_v50  ;;  %v442_v60 = vsel %vm4536_vm3, %v437_v51, %v441_v35  ;;  %v452_v1 = vsel %vm4536_vm3, %v447_v55, %v451_v40  ;;  %v457_v12 = vshll.u32 %v199_v54, 16  ;;  %v463_v16 = vshll.u32 %v4558_v59, 16  ;;  %6123 = vst [vmem:[#allocation6_spill] sm:$0xff] %v4599_v44  ;;  %v4756_v36 = vld [vmem:[%s4487_s25 + $0xa0] sm:$0xf] }
  0x1e   : > { %v278_v2 = vor.u32 %v277_v57, %v273_v56  ;;  %v283_v3 = vrot.slane %v281_v58, 5  ;;  %v4571_v9 = vcombine.low %v442_v60, %v452_v1  ;;  %v269_v10 = vrot.slane %v268_v61, 4  ;;  %v4609_v57 = vld [vmem:[%s4487_s25 + $0x80] sm:$0x1]  ;;  %v4615_v1 = vld [vmem:[%s4487_s25 + $0x24] sm:$0xf] }
  0x1f   : > { %v456_v18 = vrot.slane %v454_v7, 4  ;;  %v467_v19 = vshrl.u32 %v4558_v59, 16  ;;  %v473_v20 = vshll.u32 %v201_v0, 16  ;;  %v459_v23 = vrot.slane %v457_v12, 5  ;;  %6124 = vst [vmem:[#allocation7_spill] sm:$0xff] %v4609_v57  ;;  %v4380_v12 = vld [vmem:[%s6072_s1 + $0x10] sm:$0xff]  }
  0x20   : > { %6120 = vst [vmem:[#allocation3_spill] sm:$0xff] %v4571_v9  ;;  %v279_v17 = vrot.slane %v278_v2, 4  ;;  %4021 = vmatprep.mubr.msk.bf16.mxu1 %vm702_vm2, %v4571_v9  ;;  %v274_v22 = vsel %vm4536_vm3, %v269_v10, %v273_v56  ;;  %v465_v26 = vrot.slane %v463_v16, 5  ;;  %v286_v28 = vshrl.u32 %v4569_v8, 16  ;;  %v4627_v16 = vld [vmem:[%s4487_s25 + $0x28] sm:$0xf] }
  0x21   : > { %v469_v33 = vrot.slane %v467_v19, 4  ;;  %v475_v34 = vrot.slane %v473_v20, 5  ;;  %v289_v35 = vshll.u32 %v4569_v8, 16  ;;  %v460_v40 = vor.u32 %v459_v23, %v456_v18  ;;  %v4636_v23 = vld [vmem:[%s4487_s25 + $0x84] sm:$0xf]  ;;  %6131 = vst [vmem:[#allocation14_spill] sm:$0xff] %v4756_v36 }
  0x22   : > { %v284_v29 = vsel %vm4536_vm3, %v279_v17, %v283_v3  ;;  %v288_v41 = vrot.slane %v286_v28, 4  ;;  %v295_v43 = vshll.u32 %v4576_v21, 16  ;;  %v299_v47 = vshrl.u32 %v4576_v21, 16 }
  0x23   : > { %v4595_v39 = vcombine.low %v274_v22, %v284_v29  ;;  %v470_v45 = vor.u32 %v469_v33, %v465_v26  ;;  %v291_v46 = vrot.slane %v289_v35, 5  ;;  %v305_v48 = vshll.u32 %v4583_v27, 16  ;;  %v4633_v22 = vld [vmem:[%s4487_s25 + $0x2c] sm:$0x1] }
  0x24   : > { %v461_v49 = vrot.slane %v460_v40, 4  ;;  %v297_v50 = vrot.slane %v295_v43, 5  ;;  %v478_v51 = vshrl.u32 %v4590_v37, 16  ;;  %v481_v52 = vshll.u32 %v4590_v37, 16  ;;  %v4385_v43 = vld [vmem:[%s6072_s1 + $0x40] sm:$0xff]  }
  0x25   : > { %6122 = vst [vmem:[#allocation5_spill] sm:$0xff] %v4595_v39  ;;  %4006 = vmatmul.mubr.msk.bf16.vlgmr.msra.gmra.mxu0 %vm702_vm2, %v4595_v39  ;;  %v471_v53 = vrot.slane %v470_v45, 4  ;;  %v292_v54 = vor.u32 %v291_v46, %v288_v41  ;;  %v301_v55 = vrot.slane %v299_v47, 4  ;;  %v307_v56 = vrot.slane %v305_v48, 5  ;;  %v4653_v48 = vld [vmem:[%s4487_s25 + $0x88] sm:$0xf] }
  0x26   : > { %4078 = vmatpush3.bf16.msra.mxu0 %v4524_v25  ;;  %v466_v58 = vsel %vm4536_vm3, %v461_v49, %v465_v26  ;;  %v480_v60 = vrot.slane %v478_v51, 4  ;;  %v483_v61 = vrot.slane %v481_v52, 5  ;;  %v487_v0 = vshll.u32 %v4599_v44, 16  ;;  %v4383_v25 = vld [vmem:[%s6072_s1 + $0x48] sm:$0xff]  }
  0x27   : > { %4079 = vmatprep.subr.bf16.mxu0 %v4381_v38  ;;  %v476_v2 = vsel %vm4536_vm3, %v471_v53, %v475_v34  ;;  %v293_v3 = vrot.slane %v292_v54, 4  ;;  %v302_v7 = vor.u32 %v301_v55, %v297_v50  ;;  %v491_v10 = vshrl.u32 %v4599_v44, 16  ;;  %v4660_v53 = vld [vmem:[%s4487_s25 + $0x8c] sm:$0x1] }
  0x28   : > { %v4629_v17 = vcombine.low %v466_v58, %v476_v2  ;;  %v484_v18 = vor.u32 %v483_v61, %v480_v60  ;;  %v489_v19 = vrot.slane %v487_v0, 5  ;;  %v497_v20 = vshll.u32 %v4609_v57, 16  ;;  %v4668_v60 = vld [vmem:[%s4487_s25 + $0x30] sm:$0xf] }
  0x29   : > { %v298_v26 = vsel %vm4536_vm3, %v293_v3, %v297_v50  ;;  %v303_v28 = vrot.slane %v302_v7, 4  ;;  %v493_v29 = vrot.slane %v491_v10, 4  ;;  %v310_v33 = vshrl.u32 %v4615_v1, 16  ;;  %v4678_v7 = vld [vmem:[%s6072_s1 + $0x98] sm:$0xff]  }
  0x2a   : > { %6125 = vst [vmem:[#allocation8_spill] sm:$0xff] %v4629_v17  ;;  %4080 = vmatpush3.bf16.msra.mxu0 %v4381_v38  ;;  %4022 = vmatmul.mubr.msk.bf16.vlgmr.msra.gmra.mxu1 %vm702_vm2, %v4629_v17  ;;  %v485_v34 = vrot.slane %v484_v18, 4  ;;  %v499_v35 = vrot.slane %v497_v20, 5  ;;  %v313_v40 = vshll.u32 %v4615_v1, 16  ;;  %v319_v41 = vshll.u32 %v4627_v16, 16 }
  0x2b   : > { %4081 = vmatprep.subr.bf16.mxu0 %v4383_v25  ;;  %4038 = vmatpush3.bf16.msra.mxu1 %v4519_v24  ;;  %v308_v38 = vsel %vm4536_vm3, %v303_v28, %v307_v56  ;;  %v494_v45 = vor.u32 %v493_v29, %v489_v19  ;;  %v312_v46 = vrot.slane %v310_v33, 4  ;;  %v323_v47 = vshrl.u32 %v4627_v16, 16  ;;  %v4382_v24 = vld [vmem:[%s6072_s1 + $0x8] sm:$0xff]   ;;  %v4683_v20 = vld [vmem:[%s4487_s25 + $0x34] sm:$0xf] }
  0x2c   : > { %v4655_v49 = vcombine.low %v298_v26, %v308_v38  ;;  %v490_v50 = vsel %vm4536_vm3, %v485_v34, %v489_v19  ;;  %4039 = vmatprep.subr.bf16.mxu1 %v4380_v12  ;;  %v315_v51 = vrot.slane %v313_v40, 5  ;;  %v321_v52 = vrot.slane %v319_v41, 5  ;;  %v4384_v34 = vld [vmem:[%s6072_s1] sm:$0xff]  }
  0x2d   : > { %v495_v54 = vrot.slane %v494_v45, 4  ;;  %v325_v55 = vrot.slane %v323_v47, 4  ;;  %v329_v56 = vshll.u32 %v4633_v22, 16  ;;  %v502_v58 = vshrl.u32 %v4636_v23, 16 }
  0x2e   : > { %6126 = vst [vmem:[#allocation9_spill] sm:$0xff] %v4655_v49  ;;  %4082 = vmatpush3.bf16.msra.mxu0 %v4383_v25  ;;  %4009 = vmatprep.mubr.msk.bf16.mxu0 %vm702_vm2, %v4655_v49  ;;  %v316_v61 = vor.u32 %v315_v51, %v312_v46  ;;  %v505_v0 = vshll.u32 %v4636_v23, 16  ;;  %v511_v2 = vshll.u32 %v4653_v48, 16  ;;  %v515_v3 = vshrl.u32 %v4653_v48, 16  ;;  %v4697_v46 = vld [vmem:[%s4487_s25 + $0x38] sm:$0x1] }
  0x2f   : > { %4083 = vmatprep.subr.bf16.mxu0 %v4385_v43  ;;  %v500_v10 = vsel %vm4536_vm3, %v495_v54, %v499_v35  ;;  %v326_v25 = vor.u32 %v325_v55, %v321_v52  ;;  %v331_v18 = vrot.slane %v329_v56, 5  ;;  %v504_v19 = vrot.slane %v502_v58, 4  ;;  %4040 = vmatpush3.bf16.msra.mxu1 %v4380_v12  ;;  %v4702_v51 = vld [vmem:[%s4487_s25 + $0x90] sm:$0xf]  ;;  %v4708_v58 = vld [vmem:[%s4487_s25 + $0x94] sm:$0xf] }
  0x30   : > { %v4685_v26 = vcombine.low %v490_v50, %v500_v10  ;;  %v317_v28 = vrot.slane %v316_v61, 4  ;;  %v507_v29 = vrot.slane %v505_v0, 5  ;;  %v513_v33 = vrot.slane %v511_v2, 5  ;;  %4041 = vmatprep.subr.bf16.mxu1 %v4382_v24 }
  0x31   : > { %v327_v40 = vrot.slane %v326_v25, 4  ;;  %v517_v35 = vrot.slane %v515_v3, 4  ;;  %v521_v41 = vshll.u32 %v4660_v53, 16  ;;  %v334_v12 = vshrl.u32 %v4668_v60, 16  ;;  %v4715_v3 = vld [vmem:[%s6072_s1 + $0x78] sm:$0xff]  }
  0x32   : > { %6127 = vst [vmem:[#allocation10_spill] sm:$0xff] %v4685_v26  ;;  %4084 = vmatpush3.bf16.msra.mxu0 %v4385_v43  ;;  %4025 = vmatprep.mubr.msk.bf16.mxu1 %vm702_vm2, %v4685_v26  ;;  %v322_v38 = vsel %vm4536_vm3, %v317_v28, %v321_v52  ;;  %v508_v45 = vor.u32 %v507_v29, %v504_v19  ;;  %v337_v47 = vshll.u32 %v4668_v60, 16  ;;  %v343_v50 = vshll.u32 %v4683_v20, 16  ;;  %v4725_v29 = vld [vmem:[%s4487_s25 + $0x98] sm:$0x1] }
  0x33   : > { %4157 = vmatprep.subr.bf16.mxu0 %v4678_v7  ;;  %v332_v43 = vsel %vm4536_vm3, %v327_v40, %v331_v18  ;;  %v518_v54 = vor.u32 %v517_v35, %v513_v33  ;;  %v523_v55 = vrot.slane %v521_v41, 5  ;;  %v336_v56 = vrot.slane %v334_v12, 4  ;;  %4042 = vmatpush3.bf16.msra.mxu1 %v4382_v24  ;;  %v4730_v41 = vld [vmem:[%s4487_s25 + $0x3c] sm:$0xf]  ;;  %v4760_v26 = vld [vmem:[%s4487_s25 + $0xa4] sm:$0x1] }
  0x34   : > { %v4710_v52 = vcombine.low %v322_v38, %v332_v43  ;;  %v509_v61 = vrot.slane %v508_v45, 4  ;;  %v339_v0 = vrot.slane %v337_v47, 5  ;;  %v345_v2 = vrot.slane %v343_v50, 5  ;;  %4043 = vmatprep.subr.bf16.mxu1 %v4384_v34  ;;  %v4735_v50 = vld [vmem:[%s4487_s25 + $0x40] sm:$0xf]  ;;  %6132 = vst [vmem:[#allocation15_spill] sm:$0xff] %v4760_v26 }
  0x35   : > { %v519_v10 = vrot.slane %v518_v54, 4  ;;  %v347_v25 = vshrl.u32 %v4683_v20, 16  ;;  %v353_v18 = vshll.u32 %v4697_v46, 16  ;;  %v526_v24 = vshrl.u32 %v4702_v51, 16 }
  0x36   : > { %6128 = vst [vmem:[#allocation11_spill] sm:$0xff] %v4710_v52  ;;  %4010 = vmatmul.mubr.msk.bf16.gmra.mxu0 %vm702_vm2, %v4710_v52  ;;  %v514_v19 = vsel %vm4536_vm3, %v509_v61, %v513_v33  ;;  %v340_v28 = vor.u32 %v339_v0, %v336_v56  ;;  %v529_v40 = vshll.u32 %v4702_v51, 16  ;;  %v535_v35 = vshll.u32 %v4708_v58, 16  ;;  %v4740_v61 = vld [vmem:[%s4487_s25 + $0x44] sm:$0x1] }
  0x37   : > { %v524_v12 = vsel %vm4536_vm3, %v519_v10, %v523_v55  ;;  %v349_v38 = vrot.slane %v347_v25, 4  ;;  %v355_v45 = vrot.slane %v353_v18, 5  ;;  %v528_v47 = vrot.slane %v526_v24, 4  ;;  %4044 = vmatpush3.bf16.msra.mxu1 %v4384_v34  ;;  %v4747_v18 = vld [vmem:[%s4487_s25 + $0x9c] sm:$0xf] }
  0x38   : > { %v4737_v33 = vcombine.low %v514_v19, %v524_v12  ;;  %v341_v43 = vrot.slane %v340_v28, 4  ;;  %v531_v54 = vrot.slane %v529_v40, 5  ;;  %v537_v56 = vrot.slane %v535_v35, 5  ;;  %4117 = vmatprep.subr.bf16.mxu1 %v4715_v3  ;;  %6130 = vst [vmem:[#allocation13_spill] sm:$0xff] %v4747_v18 }
  0x39   : > { %v350_v0 = vor.u32 %v349_v38, %v345_v2  ;;  %v539_v55 = vshrl.u32 %v4708_v58, 16  ;;  %v545_v10 = vshll.u32 %v4725_v29, 16  ;;  %v358_v25 = vshrl.u32 %v4730_v41, 16 }
  0x3a   : > { %6129 = vst [vmem:[#allocation12_spill] sm:$0xff] %v4737_v33  ;;  %4026 = vmatmul.mubr.msk.bf16.gmra.mxu1 %vm702_vm2, %v4737_v33  ;;  %v346_v34 = vsel %vm4536_vm3, %v341_v43, %v345_v2  ;;  %v532_v24 = vor.u32 %v531_v54, %v528_v47  ;;  %v361_v19 = vshll.u32 %v4730_v41, 16  ;;  %v367_v28 = vshll.u32 %v4735_v50, 16  ;;  %v4763_v2 = vld [vmem:[%s4487_s25 + $0x48] sm:$0xf] }
  0x3b   : > { %v351_v40 = vrot.slane %v350_v0, 4  ;;  %v541_v35 = vrot.slane %v539_v55, 4  ;;  %v547_v12 = vrot.slane %v545_v10, 5  ;;  %v360_v38 = vrot.slane %v358_v25, 4 }
  0x3c   : > { %v533_v63 = vrot.slane %v532_v24, 4  ;;  %v363_v13 = vrot.slane %v361_v19, 5  ;;  %v369_v62 = vrot.slane %v367_v28, 5  ;;  %v371_v33 = vshrl.u32 %v4735_v50, 16 }
  0x3d   : > { %v356_v47 = vsel %vm4536_vm3, %v351_v40, %v355_v45  ;;  %v542_v43 = vor.u32 %v541_v35, %v537_v56  ;;  %v377_v54 = vshll.u32 %v4740_v61, 16  ;;  %v550_v0 = vshrl.u32 %v4747_v18, 16  ;;  %v4775_v45 = vld [vmem:[%s4487_s25 + $0x4c] sm:$0xf] }
  0x3e   : > { %v4769_v55 = vcombine.low %v346_v34, %v356_v47  ;;  %v538_v10 = vsel %vm4536_vm3, %v533_v63, %v537_v56  ;;  %v364_v25 = vor.u32 %v363_v13, %v360_v38  ;;  %v373_v24 = vrot.slane %v371_v33, 4  ;;  %v4782_v13 = vld [vmem:[%s4487_s25 + $0x50] sm:$0x1] }
  0x3f   : > { %v543_v19 = vrot.slane %v542_v43, 4  ;;  %v379_v28 = vrot.slane %v377_v54, 5  ;;  %v552_v17 = vrot.slane %v550_v0, 4  ;;  %v553_v9 = vshll.u32 %v4747_v18, 16  ;;  %v4789_v43 = vld [vmem:[%s4487_s25 + $0xa8] sm:$0xf] }
  0x40   : > { %6133 = vst [vmem:[#allocation16_spill] sm:$0xff] %v4769_v55  ;;  %4013 = vmatprep.mubr.msk.bf16.mxu0 %vm702_vm2, %v4769_v55  ;;  %v365_v40 = vrot.slane %v364_v25, 4  ;;  %v374_v35 = vor.u32 %v373_v24, %v369_v62  ;;  %v559_v34 = vshll.u32 %v4756_v36, 16  ;;  %v563_v63 = vshrl.u32 %v4756_v36, 16  ;;  %6134 = vst [vmem:[#allocation17_spill] sm:$0xff] %v4789_v43 }
  0x41   : > { %v548_v33 = vsel %vm4536_vm3, %v543_v19, %v547_v12  ;;  %v555_v56 = vrot.slane %v553_v9, 5  ;;  %v569_v38 = vshll.u32 %v4760_v26, 16  ;;  %v382_v47 = vshrl.u32 %v4763_v2, 16  ;;  %v4796_v9 = vld [vmem:[%s4487_s25 + $0xac] sm:$0xf] }
  0x42   : > { %v4791_v54 = vcombine.low %v538_v10, %v548_v33  ;;  %v370_v0 = vsel %vm4536_vm3, %v365_v40, %v369_v62  ;;  %v375_v25 = vrot.slane %v374_v35, 4  ;;  %v561_v24 = vrot.slane %v559_v34, 5  ;;  %6136 = vst [vmem:[#allocation19_spill] sm:$0xff] %v4796_v9 }
  0x43   : > { %v556_v55 = vor.u32 %v555_v56, %v552_v17  ;;  %v565_v52 = vrot.slane %v563_v63, 4  ;;  %v571_v49 = vrot.slane %v569_v38, 5  ;;  %v384_v39 = vrot.slane %v382_v47, 4  ;;  %v4806_v17 = vld [vmem:[%s4487_s25 + $0xb0] sm:$0x1] }
  0x44   : > { %6135 = vst [vmem:[#allocation18_spill] sm:$0xff] %v4791_v54  ;;  %4029 = vmatprep.mubr.msk.bf16.mxu1 %vm702_vm2, %v4791_v54  ;;  %v380_v12 = vsel %vm4536_vm3, %v375_v25, %v379_v28  ;;  %v385_v10 = vshll.u32 %v4763_v2, 16  ;;  %v391_v19 = vshll.u32 %v4775_v45, 16  ;;  %v395_v62 = vshrl.u32 %v4775_v45, 16  ;;  %6137 = vst [vmem:[#allocation20_spill] sm:$0xff] %v4806_v17 }
  0x45   : > { %v4808_v40 = vcombine.low %v370_v0, %v380_v12  ;;  %v557_v35 = vrot.slane %v556_v55, 4  ;;  %v566_v34 = vor.u32 %v565_v52, %v561_v24  ;;  %v401_v63 = vshll.u32 %v4782_v13, 16  ;;  %v4813_v47 = vld [vmem:[%s4487_s25 + $0x54] sm:$0xf]  ;;  %v4821_v55 = vld [vmem:[%s4487_s25 + $0x58] sm:$0xf] }
  0x46   : > { %v387_v33 = vrot.slane %v385_v10, 5  ;;  %v393_v56 = vrot.slane %v391_v19, 5  ;;  %v397_v38 = vrot.slane %v395_v62, 4  ;;  %v574_v28 = vshrl.u32 %v4789_v43, 16 }
  0x47   : > { %6138 = vst [vmem:[#allocation21_spill] sm:$0xff] %v4808_v40  ;;  %4014 = vmatmul.mubr.msk.bf16.gmra.mxu0 %vm702_vm2, %v4808_v40  ;;  %v562_v25 = vsel %vm4536_vm3, %v557_v35, %v561_v24  ;;  %v567_v0 = vrot.slane %v566_v34, 4  ;;  %v403_v12 = vrot.slane %v401_v63, 5  ;;  %v577_v52 = vshll.u32 %v4789_v43, 16  ;;  %v4829_v34 = vld [vmem:[%s4487_s25 + $0x5c] sm:$0x1] }
  0x48   : > { %v388_v10 = vor.u32 %v387_v33, %v384_v39  ;;  %v398_v19 = vor.u32 %v397_v38, %v393_v56  ;;  %v576_v62 = vrot.slane %v574_v28, 4  ;;  %v583_v54 = vshll.u32 %v4796_v9, 16  ;;  %v4834_v28 = vld [vmem:[%s4487_s25 + $0xb4] sm:$0xf] }
  0x49   : > { %v572_v40 = vsel %vm4536_vm3, %v567_v0, %v571_v49  ;;  %v579_v57 = vrot.slane %v577_v52, 5  ;;  %v587_v24 = vshrl.u32 %v4796_v9, 16  ;;  %v593_v35 = vshll.u32 %v4806_v17, 16  ;;  %v4838_v0 = vld [vmem:[%s4487_s25 + $0xb8] sm:$0xf] }
  0x4a   : > { %v4831_v63 = vcombine.low %v562_v25, %v572_v40  ;;  %v389_v39 = vrot.slane %v388_v10, 4  ;;  %v399_v33 = vrot.slane %v398_v19, 4  ;;  %v585_v38 = vrot.slane %v583_v54, 5  ;;  %v4853_v9 = vld [vmem:[%s4487_s25 + $0xbc] sm:$0x1] }
  0x4b   : > { %v580_v37 = vor.u32 %v579_v57, %v576_v62  ;;  %v589_v44 = vrot.slane %v587_v24, 4  ;;  %v595_v43 = vrot.slane %v593_v35, 5  ;;  %v406_v49 = vshrl.u32 %v4813_v47, 16 }
  0x4c   : > { %6139 = vst [vmem:[#allocation22_spill] sm:$0xff] %v4831_v63  ;;  %4030 = vmatmul.mubr.msk.bf16.gmra.mxu1 %vm702_vm2, %v4831_v63  ;;  %v394_v40 = vsel %vm4536_vm3, %v389_v39, %v393_v56  ;;  %v404_v25 = vsel %vm4536_vm3, %v399_v33, %v403_v12  ;;  %v409_v54 = vshll.u32 %v4813_v47, 16  ;;  %v415_v57 = vshll.u32 %v4821_v55, 16 }
  0x4d   : > { %v4848_v52 = vcombine.low %v394_v40, %v404_v25  ;;  %v581_v10 = vrot.slane %v580_v37, 4  ;;  %v590_v19 = vor.u32 %v589_v44, %v585_v38  ;;  %v408_v62 = vrot.slane %v406_v49, 4 }
  0x4e   : > { %v411_v24 = vrot.slane %v409_v54, 5  ;;  %v417_v35 = vrot.slane %v415_v57, 5  ;;  %v419_v17 = vshrl.u32 %v4821_v55, 16  ;;  %v425_v63 = vshll.u32 %v4829_v34, 16 }
  0x4f   : > { %6140 = vst [vmem:[#allocation23_spill] sm:$0xff] %v4848_v52  ;;  %4017 = vmatprep.mubr.msk.bf16.mxu0 %vm702_vm2, %v4848_v52  ;;  %v586_v56 = vsel %vm4536_vm3, %v581_v10, %v585_v38  ;;  %v591_v12 = vrot.slane %v590_v19, 4  ;;  %v598_v39 = vshrl.u32 %v4834_v28, 16  ;;  %v601_v37 = vshll.u32 %v4834_v28, 16 }
  0x50   : > { %v412_v44 = vor.u32 %v411_v24, %v408_v62  ;;  %v421_v33 = vrot.slane %v419_v17, 4  ;;  %v427_v49 = vrot.slane %v425_v63, 5  ;;  %v607_v40 = vshll.u32 %v4838_v0, 16 }
  0x51   : > { %v596_v25 = vsel %vm4536_vm3, %v591_v12, %v595_v43  ;;  %v600_v54 = vrot.slane %v598_v39, 4  ;;  %v603_v57 = vrot.slane %v601_v37, 5  ;;  %v611_v52 = vshrl.u32 %v4838_v0, 16 }
  0x52   : > { %v4865_v26 = vcombine.low %v586_v56, %v596_v25  ;;  %v413_v38 = vrot.slane %v412_v44, 4  ;;  %v422_v10 = vor.u32 %v421_v33, %v417_v35  ;;  %v609_v19 = vrot.slane %v607_v40, 5 }
  0x53   : > { %v604_v18 = vor.u32 %v603_v57, %v600_v54  ;;  %v613_v36 = vrot.slane %v611_v52, 4  ;;  %v617_v62 = vshll.u32 %v4853_v9, 16  ;;  %v3513_v43 = vrot.slane %v4490_v4, 9 }
  0x54   : > { %4033 = vmatprep.mubr.msk.bf16.mxu1 %vm702_vm2, %v4865_v26  ;;  %v418_v63 = vsel %vm4536_vm3, %v413_v38, %v417_v35  ;;  %v423_v24 = vrot.slane %v422_v10, 4  ;;  %v1246_v56 = vrot.slane %v4493_v5, 5  ;;  %v4882_v52 = vcombine.low %v4529_v30, %v4532_v31 }
  0x55   : > { %v605_v12 = vrot.slane %v604_v18, 4  ;;  %v614_v39 = vor.u32 %v613_v36, %v609_v19  ;;  %v619_v37 = vrot.slane %v617_v62, 5  ;;  %v3514_v44 = vrot.slane %v4529_v30, 9 }
  0x56   : > { %v428_v33 = vsel %vm4536_vm3, %v423_v24, %v427_v49  ;;  %v1247_v40 = vsel %vm4870_vm6, %v3513_v43, %v1246_v56  ;;  %v1248_v25 = vrot.slane %v1246_v56, 4  ;;  %v6143_v35 = vrot.slane %v4532_v31, 5 }
  0x57   : > { %v4891_v57 = vcombine.low %v418_v63, %v428_v33  ;;  %v610_v38 = vsel %vm4536_vm3, %v605_v12, %v609_v19  ;;  %v615_v18 = vrot.slane %v614_v39, 4  ;;  %v6145_v49 = vrot.slane %v4496_v6, 5 }
  0x58   : > { %v1255_v54 = vrot.slane %v6143_v35, 4  ;;  %v6144_v36 = vmov %v6143_v35  ;;  %v6146_v62 = vrot.slane %v4543_v42, 5  ;;  %v4909_v63 = vcombine.low %v4569_v8, %v4576_v21 }
  0x59   : > { %v1254_v30 = vsel %vm4870_vm6, %v3514_v44, %v6144_v36  ;;  %v1250_v10 = vsel %vm4870_vm6, %v1248_v25, %v6145_v49  ;;  %v3515_v19 = vrot.slane %v4569_v8, 9  ;;  %4018 = vmatmul.mubr.msk.bf16.gmra.mxu0 %vm702_vm2, %v4891_v57  ;;  %v620_v6 = vsel %vm4536_vm3, %v615_v18, %v619_v37  ;;  %v4395_v36 = vld [vmem:[%s6072_s1 + $0x90] sm:$0xff]  }
  0x5a   : > { %v1257_v43 = vsel %vm4870_vm6, %v1255_v54, %v6146_v62  ;;  %v3537_v31 = vcombine.low %v1247_v40, %v1250_v10  ;;  %v1260_v42 = vrot.slane %v4576_v21, 5  ;;  %v4919_v56 = vcombine.low %v610_v38, %v620_v6 }
  0x5b   : > { %v4916_v24 = vcombine.low %v1254_v30, %v1257_v43  ;;  %v1263_v12 = vrot.slane %v4583_v27, 5  ;;  %v1267_v44 = vrot.slane %v4627_v16, 5  ;;  %v3516_v37 = vrot.slane %v4615_v1, 9  ;;  %v4393_v43 = vld [vmem:[%s6072_s1 + $0x70] sm:$0xff]  }
  0x5c   : > { %6147 = vst [vmem:[#allocation24_spill] sm:$0xff] %v4919_v56  ;;  %4085 = vmatprep.mubr.msk.bf16.mxu0 %vm702_vm2, %v3537_v31  ;;  %v1261_v8 = vsel %vm4870_vm6, %v3515_v19, %v1260_v42  ;;  %v1262_v39 = vrot.slane %v1260_v42, 4  ;;  %4034 = vmatmul.mubr.msk.bf16.gmra.mxu1 %vm702_vm2, %v4919_v56  ;;  %v1270_v33 = vrot.slane %v4633_v22, 5  ;;  %v3517_v21 = vrot.slane %v4668_v60, 9 }
  0x5d   : > { %v1274_v40 = vrot.slane %v4683_v20, 5  ;;  %v6148_v27 = vcombine.low %v4490_v4, %v4493_v5  ;;  %v1269_v35 = vrot.slane %v1267_v44, 4  ;;  %v1277_v54 = vrot.slane %v4697_v46, 5 }
  0x5e   : > { %v1264_v25 = vsel %vm4870_vm6, %v1262_v39, %v1263_v12  ;;  %v1281_v22 = vrot.slane %v4735_v50, 5  ;;  %v1268_v4 = vsel %vm4870_vm6, %v3516_v37, %v1267_v44  ;;  %v1288_v30 = vrot.slane %v4775_v45, 5  ;;  %v4399_v37 = vld [vmem:[%s6072_s1 + $0x68] sm:$0xff]  }
  0x5f   : > { %4045 = vmatprep.mubr.msk.bf16.mxu1 %vm702_vm2, %v6148_v27  ;;  %v4939_v38 = vcombine.low %v1261_v8, %v1264_v25  ;;  %v1276_v18 = vrot.slane %v1274_v40, 4  ;;  %v1275_v5 = vsel %vm4870_vm6, %v3517_v21, %v1274_v40  ;;  %v1271_v46 = vsel %vm4870_vm6, %v1269_v35, %v1270_v33 }
  0x60   : > { %v3518_v10 = vrot.slane %v4730_v41, 9  ;;  %v1284_v62 = vrot.slane %v4740_v61, 5  ;;  %v1283_v19 = vrot.slane %v1281_v22, 4  ;;  %v3519_v6 = vrot.slane %v4763_v2, 9  ;;  %v4401_v61 = vld [vmem:[%s6072_s1 + $0x88] sm:$0xff]  }
  0x61   : > { %4086 = vmatmul.mubr.msk.bf16.vlgmr.msra.gmra.mxu0 %vm702_vm2, %v4916_v24  ;;  %v1278_v49 = vsel %vm4870_vm6, %v1276_v18, %v1277_v54  ;;  %v1290_v31 = vrot.slane %v1288_v30, 4  ;;  %v1291_v42 = vrot.slane %v4782_v13, 5  ;;  %v1295_v44 = vrot.slane %v4821_v55, 5 }
  0x62   : > { %4158 = vmatpush3.bf16.msra.mxu0 %v4678_v7  ;;  %4089 = vmatprep.mubr.msk.bf16.mxu0 %vm702_vm2, %v4939_v38  ;;  %v4974_v7 = vcombine.low %v1268_v4, %v1271_v46  ;;  %v4976_v12 = vcombine.low %v1275_v5, %v1278_v49  ;;  %v1282_v13 = vsel %vm4870_vm6, %v3518_v10, %v1281_v22  ;;  %v1305_v33 = vrot.slane %v4511_v15, 5  ;;  %v6149_v10 = vld [vmem:[#allocation14_spill] sm:$0xff] }
  0x63   : > { %4159 = vmatprep.subr.bf16.mxu0 %v4395_v36  ;;  %v1285_v8 = vsel %vm4870_vm6, %v1283_v19, %v1284_v62  ;;  %v1289_v39 = vsel %vm4870_vm6, %v3519_v6, %v1288_v30  ;;  %v3520_v21 = vrot.slane %v4813_v47, 9  ;;  %v3521_v40 = vrot.slane %v4503_v11, 9  ;;  %v4407_v11 = vld [vmem:[%s6072_s1 + $0x80] sm:$0xff]   ;;  %v5049_v30 = vld [vmem:[%s6072_s1 + $0xd8] sm:$0xff]  }
  0x64   : > { %4046 = vmatmul.mubr.msk.bf16.vlgmr.msra.gmra.mxu1 %vm702_vm2, %v4882_v52  ;;  %v1302_v27 = vrot.slane %v4508_v14, 5  ;;  %v4996_v25 = vcombine.low %v4615_v1, %v4627_v16  ;;  %v5000_v35 = vcombine.low %v4668_v60, %v4683_v20  ;;  %v5004_v54 = vcombine.low %v4730_v41, %v4735_v50  ;;  %v6150_v62 = vld [vmem:[#allocation13_spill] sm:$0xff] }
  0x65   : > { %4118 = vmatpush3.bf16.msra.mxu1 %v4715_v3  ;;  %4049 = vmatprep.mubr.msk.bf16.mxu1 %vm702_vm2, %v4909_v63  ;;  %v1292_v3 = vsel %vm4870_vm6, %v1290_v31, %v1291_v42  ;;  %v5008_v18 = vcombine.low %v4763_v2, %v4775_v45  ;;  %v5015_v14 = vcombine.low %v1282_v13, %v1285_v8  ;;  %v1298_v16 = vrot.slane %v4829_v34, 5  ;;  %v4405_v45 = vld [vmem:[%s6072_s1 + $0x60] sm:$0xff]   ;;  %v6151_v13 = vld [vmem:[#allocation15_spill] sm:$0xff] }
  0x66   : > { %4119 = vmatprep.subr.bf16.mxu1 %v4393_v43  ;;  %4160 = vmatpush3.bf16.msra.mxu0 %v4395_v36  ;;  %v5017_v1 = vcombine.low %v1289_v39, %v1292_v3  ;;  %v5022_v60 = vcombine.low %v4636_v23, %v4653_v48  ;;  %v1297_v20 = vrot.slane %v1295_v44, 4  ;;  %v3524_v41 = vrot.slane %v4636_v23, 9  ;;  %v6152_v39 = vld [vmem:[#allocation19_spill] sm:$0xff]  ;;  %v6153_v3 = vld [vmem:[#allocation17_spill] sm:$0xff] }
  0x67   : > { %4161 = vmatprep.subr.bf16.mxu0 %v4401_v61  ;;  %v1323_v50 = vrot.slane %v4653_v48, 5  ;;  %v1326_v2 = vrot.slane %v4660_v53, 5  ;;  %v1296_v34 = vsel %vm4870_vm6, %v3520_v21, %v1295_v44  ;;  %v1303_v22 = vsel %vm4870_vm6, %v3521_v40, %v1302_v27 }
  0x68   : > { %v1304_v36 = vrot.slane %v1302_v27, 4  ;;  %v5038_v4 = vcombine.low %v4702_v51, %v4708_v58  ;;  %v3525_v53 = vrot.slane %v4702_v51, 9  ;;  %v1330_v5 = vrot.slane %v4708_v58, 5  ;;  %v6154_v27 = vld [vmem:[#allocation20_spill] sm:$0xff] }
  0x69   : > { %4090 = vmatmul.mubr.msk.bf16.gmra.mxu0 %vm702_vm2, %v4974_v7  ;;  %4120 = vmatpush3.bf16.msra.mxu1 %v4393_v43  ;;  %v1324_v23 = vsel %vm4870_vm6, %v3524_v41, %v1323_v50  ;;  %v1325_v48 = vrot.slane %v1323_v50, 4  ;;  %v1309_v46 = vrot.slane %v4558_v59, 5  ;;  %v1333_v49 = vrot.slane %v4725_v29, 5  ;;  %v5069_v29 = vld [vmem:[%s6072_s1 + $0xb8] sm:$0xff]  }
  0x6a   : > { %4093 = vmatprep.mubr.msk.bf16.mxu0 %vm702_vm2, %v4976_v12  ;;  %4121 = vmatprep.subr.bf16.mxu1 %v4399_v37  ;;  %v5057_v43 = vcombine.low %v6150_v62, %v6149_v10  ;;  %v3526_v51 = vrot.slane %v6150_v62, 9  ;;  %v1299_v58 = vsel %vm4870_vm6, %v1297_v20, %v1298_v16  ;;  %v1331_v6 = vsel %vm4870_vm6, %v3525_v53, %v1330_v5 }
  0x6b   : > { %4162 = vmatpush3.bf16.msra.mxu0 %v4401_v61  ;;  %v1327_v19 = vsel %vm4870_vm6, %v1325_v48, %v1326_v2  ;;  %v1332_v31 = vrot.slane %v1330_v5, 4  ;;  %v1337_v61 = vrot.slane %v6149_v10, 5  ;;  %v1340_v8 = vrot.slane %v6151_v13, 5  ;;  %v6155_v5 = vld [vmem:[#allocation6_spill] sm:$0xff] }
  0x6c   : > { %4050 = vmatmul.mubr.msk.bf16.gmra.mxu1 %vm702_vm2, %v4996_v25  ;;  %4163 = vmatprep.subr.bf16.mxu0 %v4407_v11  ;;  %v5071_v42 = vcombine.low %v1324_v23, %v1327_v19  ;;  %v5077_v44 = vcombine.low %v6153_v3, %v6152_v39  ;;  %v3527_v21 = vrot.slane %v6153_v3, 9  ;;  %v1344_v40 = vrot.slane %v6152_v39, 5  ;;  %v6156_v39 = vld [vmem:[#allocation4_spill] sm:$0xff] }
  0x6d   : > { %4053 = vmatprep.mubr.msk.bf16.mxu1 %vm702_vm2, %v5000_v35  ;;  %4122 = vmatpush3.bf16.msra.mxu1 %v4399_v37  ;;  %v1334_v37 = vsel %vm4870_vm6, %v1332_v31, %v1333_v49  ;;  %v1347_v16 = vrot.slane %v6154_v27, 5  ;;  %v1339_v41 = vrot.slane %v1337_v61, 4  ;;  %v5093_v50 = vcombine.low %v4834_v28, %v4838_v0  ;;  %v4431_v27 = vld [vmem:[%s4487_s25 + $0x64] sm:$0xf] }
  0x6e   : > { %4123 = vmatprep.subr.bf16.mxu1 %v4405_v45  ;;  %v5087_v20 = vcombine.low %v1331_v6, %v1334_v37  ;;  %v1345_v2 = vsel %vm4870_vm6, %v3527_v21, %v1344_v40  ;;  %v1346_v23 = vrot.slane %v1344_v40, 4  ;;  %v3528_v48 = vrot.slane %v4834_v28, 9  ;;  %v4430_v40 = vld [vmem:[%s4487_s25 + $0x60] sm:$0xf] }
  0x6f   : > { %4164 = vmatpush3.bf16.msra.mxu0 %v4407_v11  ;;  %v1338_v11 = vsel %vm4870_vm6, %v3526_v51, %v1337_v61  ;;  %v1351_v53 = vrot.slane %v4838_v0, 5  ;;  %v1316_v49 = vrot.slane %v6155_v5, 5  ;;  %v1341_v10 = vsel %vm4870_vm6, %v1339_v41, %v1340_v8  ;;  %v4429_v61 = vld [vmem:[%s4487_s25 + $0x74] sm:$0x1] }
  0x70   : > { %4237 = vmatprep.subr.bf16.mxu0 %v5049_v30  ;;  %v1354_v62 = vrot.slane %v4853_v9, 5  ;;  %v5112_v28 = vcombine.low %v1338_v11, %v1341_v10  ;;  %v1348_v0 = vsel %vm4870_vm6, %v1346_v23, %v1347_v16  ;;  %v4428_v9 = vld [vmem:[%s4487_s25 + $0x6c] sm:$0xf]  ;;  %v1311_v31 = vrot.slane %v1309_v46, 4 }
  0x71   : > { %4094 = vmatmul.mubr.msk.bf16.gmra.mxu0 %vm702_vm2, %v5015_v14  ;;  %4124 = vmatpush3.bf16.msra.mxu1 %v4405_v45  ;;  %v1306_v45 = vsel %vm4870_vm6, %v1304_v36, %v1305_v33  ;;  %v1352_v15 = vsel %vm4870_vm6, %v3528_v48, %v1351_v53  ;;  %v1353_v33 = vrot.slane %v1351_v53, 4  ;;  %v5120_v36 = vcombine.low %v1296_v34, %v1299_v58  ;;  %v6157_v34 = vld [vmem:[#allocation7_spill] sm:$0xff]  ;;  %v5196_v53 = vld [vmem:[%s4487_s25 + $0xc4] sm:$0xf] }
  0x72   : > { %4097 = vmatprep.mubr.msk.bf16.mxu0 %vm702_vm2, %v5017_v1  ;;  %4197 = vmatprep.subr.bf16.mxu1 %v5069_v29  ;;  %v3522_v51 = vrot.slane %v4428_v9, 9  ;;  %v5123_v19 = vcombine.low %v1345_v2, %v1348_v0  ;;  %v5125_v6 = vcombine.low %v1303_v22, %v1306_v45  ;;  %v1312_v13 = vrot.slane %v4429_v61, 5  ;;  %v6159_v61 = vld [vmem:[#allocation9_spill] sm:$0xff] }
  0x73   : > { %v1355_v8 = vsel %vm4870_vm6, %v1353_v33, %v1354_v62  ;;  %v3523_v3 = vrot.slane %v6156_v39, 9  ;;  %v1318_v37 = vrot.slane %v1316_v49, 4  ;;  %v1319_v58 = vrot.slane %v6157_v34, 5  ;;  %v4420_v34 = vld [vmem:[%s6072_s1 + $0x118] sm:$0xff]  }
  0x74   : > { %4054 = vmatmul.mubr.msk.bf16.gmra.mxu1 %vm702_vm2, %v5004_v54  ;;  %v5134_v21 = vcombine.low %v1352_v15, %v1355_v8  ;;  %v5138_v22 = vcombine.low %v4813_v47, %v4821_v55  ;;  %v5144_v16 = vcombine.low %v4430_v40, %v4431_v27  ;;  %v1310_v11 = vsel %vm4870_vm6, %v3522_v51, %v1309_v46  ;;  %v4432_v46 = vld [vmem:[%s4487_s25 + $0x70] sm:$0xf]  ;;  %v6163_v40 = vld [vmem:[#allocation23_spill] sm:$0xff] }
  0x75   : > { %4057 = vmatprep.mubr.msk.bf16.mxu1 %vm702_vm2, %v5008_v18  ;;  %v1313_v41 = vsel %vm4870_vm6, %v1311_v31, %v1312_v13  ;;  %v1317_v47 = vsel %vm4870_vm6, %v3523_v3, %v1316_v49  ;;  %v1320_v55 = vsel %vm4870_vm6, %v1318_v37, %v1319_v58  ;;  %v5167_v23 = vcombine.low %v4428_v9, %v4432_v46  ;;  %v5205_v49 = vld [vmem:[%s4487_s25 + $0xc8] sm:$0x1]  ;;  %v6158_v9 = vld [vmem:[#allocation5_spill] sm:$0xff]  ;;  %v4413_v31 = vld [vmem:[%s6072_s1 + $0xd0] sm:$0xff]  }
  0x76   : > { %v5162_v2 = vcombine.low %v1310_v11, %v1313_v41  ;;  %v5164_v59 = vcombine.low %v1317_v47, %v1320_v55  ;;  %v5173_v48 = vcombine.low %v6156_v39, %v6155_v5  ;;  %v2171_v45 = vrot.slane %v5196_v53, 5  ;;  %v5202_v5 = vld [vmem:[%s4487_s25 + $0xc0] sm:$0xf]  ;;  %v6160_v13 = vld [vmem:[#allocation11_spill] sm:$0xff]  ;;  %v4412_v8 = vld [vmem:[%s6072_s1 + $0xb0] sm:$0xff]  }
  0x77   : > { %v3631_v10 = vrot.slane %v5202_v5, 9  ;;  %v2174_v0 = vrot.slane %v5205_v49, 5  ;;  %v4417_v39 = vld [vmem:[%s6072_s1 + $0xc0] sm:$0xff]   ;;  %v6161_v3 = vld [vmem:[#allocation16_spill] sm:$0xff]  ;;  %v6162_v37 = vld [vmem:[#allocation21_spill] sm:$0xff]  ;;  %v1913_v55 = vshrl.u32 %v5202_v5, 16 }
  0x78   : > { %v2173_v62 = vrot.slane %v2171_v45, 4  ;;  %v4419_v58 = vld [vmem:[%s6072_s1 + $0xf8] sm:$0xff]   ;;  %v6164_v27 = vld [vmem:[#allocation3_spill] sm:$0xff]  ;;  %v6165_v11 = vld [vmem:[#allocation8_spill] sm:$0xff]  ;;  %v1916_v46 = vshll.u32 %v5202_v5, 16 }
  0x79   : > { %4098 = vmatmul.mubr.msk.bf16.gmra.mxu0 %vm702_vm2, %v5120_v36  ;;  %v2172_v15 = vsel %vm4870_vm6, %v3631_v10, %v2171_v45  ;;  %v6166_v41 = vld [vmem:[#allocation10_spill] sm:$0xff]  ;;  %v6167_v47 = vld [vmem:[#allocation12_spill] sm:$0xff]  ;;  %v1926_v45 = vshrl.u32 %v5196_v53, 16  ;;  %v1922_v10 = vshll.u32 %v5196_v53, 16 }
  0x7a   : > { %4101 = vmatprep.mubr.msk.bf16.mxu0 %vm702_vm2, %v5125_v6  ;;  %v2175_v33 = vsel %vm4870_vm6, %v2173_v62, %v2174_v0  ;;  %v1915_v62 = vrot.slane %v1913_v55, 4  ;;  %v1918_v0 = vrot.slane %v1916_v46, 5 }
  0x7b   : > { %v5217_v51 = vcombine.low %v2172_v15, %v2175_v33  ;;  %v1924_v15 = vrot.slane %v1922_v10, 5  ;;  %v1928_v33 = vrot.slane %v1926_v45, 4  ;;  %v5318_v10 = vcombine.low %v5202_v5, %v5196_v53  ;;  %v4425_v5 = vld [vmem:[%s6072_s1 + $0xe0] sm:$0xff]  }
  0x7c   : > { %4058 = vmatmul.mubr.msk.bf16.gmra.mxu1 %vm702_vm2, %v5138_v22 }
  0x7d   : > { %4061 = vmatprep.mubr.msk.bf16.mxu1 %vm702_vm2, %v5144_v16 }
  0x81   : > { %4102 = vmatmul.mubr.msk.bf16.gmra.mxu0 %vm702_vm2, %v5162_v2 }
  0x82   : > { %4105 = vmatprep.mubr.msk.bf16.mxu0 %vm702_vm2, %v5164_v59 }
  0x84   : > { %4062 = vmatmul.mubr.msk.bf16.gmra.mxu1 %vm702_vm2, %v5167_v23 }
  0x85   : > { %4065 = vmatprep.mubr.msk.bf16.mxu1 %vm702_vm2, %v5173_v48 }
  0x89   : > { %4106 = vmatmul.mubr.msk.bf16.gmra.mxu0 %vm702_vm2, %v5071_v42 }
  0x8a   : > { %4109 = vmatprep.mubr.msk.bf16.mxu0 %vm702_vm2, %v5087_v20 }
  0x8c   : > { %4066 = vmatmul.mubr.msk.bf16.gmra.mxu1 %vm702_vm2, %v5022_v60 }
  0x8d   : > { %4069 = vmatprep.mubr.msk.bf16.mxu1 %vm702_vm2, %v5038_v4 }
  0x91   : > { %4110 = vmatmul.mubr.msk.bf16.gmra.mxu0 %vm702_vm2, %v5112_v28 }
  0x92   : > { %4113 = vmatprep.mubr.msk.bf16.mxu0 %vm702_vm2, %v5123_v19 }
  0x94   : > { %4070 = vmatmul.mubr.msk.bf16.gmra.mxu1 %vm702_vm2, %v5057_v43 }
  0x95   : > { %4073 = vmatprep.mubr.msk.bf16.mxu1 %vm702_vm2, %v5077_v44 }
  0x99   : > { %4114 = vmatmul.mubr.msk.bf16.gmra.mxu0 %vm702_vm2, %v5134_v21 }
  0x9a   : > { %4165 = vmatprep.mubr.msk.bf16.mxu0 %vm702_vm2, %v6158_v9  ;;  %v6168_v9 = vld [vmem:[#allocation18_spill] sm:$0xff] }
  0x9c   : > { %4074 = vmatmul.mubr.msk.bf16.gmra.mxu1 %vm702_vm2, %v5093_v50 }
  0x9d   : > { %4125 = vmatprep.mubr.msk.bf16.mxu1 %vm702_vm2, %v4882_v52  ;;  %v4415_v52 = vld [vmem:[%s6072_s1 + $0xc8] sm:$0xff]  }
  0xa1   : > { %4166 = vmatmul.mubr.msk.bf16.vlgmr.msra.gmra.mxu0 %vm702_vm2, %v6159_v61 }
  0xa2   : > { %4238 = vmatpush3.bf16.msra.mxu0 %v5049_v30  ;;  %4169 = vmatprep.mubr.msk.bf16.mxu0 %vm702_vm2, %v6160_v13  ;;  %v4414_v30 = vld [vmem:[%s6072_s1 + $0xa8] sm:$0xff]  }
  0xa3   : > { %4239 = vmatprep.subr.bf16.mxu0 %v4413_v31 }
  0xa4   : > { %4126 = vmatmul.mubr.msk.bf16.vlgmr.msra.gmra.mxu1 %vm702_vm2, %v4909_v63 }
  0xa5   : > { %4198 = vmatpush3.bf16.msra.mxu1 %v5069_v29  ;;  %4129 = vmatprep.mubr.msk.bf16.mxu1 %vm702_vm2, %v4996_v25  ;;  %v4416_v29 = vld [vmem:[%s6072_s1 + $0xa0] sm:$0xff]  }
  0xa6   : > { %4199 = vmatprep.subr.bf16.mxu1 %v4412_v8  ;;  %4240 = vmatpush3.bf16.msra.mxu0 %v4413_v31  ;;  %v6169_v31 = vld [vmem:[#allocation22_spill] sm:$0xff] }
  0xa7   : > { %4241 = vmatprep.subr.bf16.mxu0 %v4415_v52 }
  0xa9   : > { %4170 = vmatmul.mubr.msk.bf16.gmra.mxu0 %vm702_vm2, %v6161_v3  ;;  %4200 = vmatpush3.bf16.msra.mxu1 %v4412_v8  ;;  %v1919_v8 = vor.u32 %v1918_v0, %v1915_v62  ;;  %v4422_v62 = vld [vmem:[%s6072_s1 + $0x110] sm:$0xff]  }
  0xaa   : > { %4173 = vmatprep.mubr.msk.bf16.mxu0 %vm702_vm2, %v6162_v37  ;;  %4201 = vmatprep.subr.bf16.mxu1 %v4414_v30 }
  0xab   : > { %4242 = vmatpush3.bf16.msra.mxu0 %v4415_v52  ;;  %v1929_v52 = vor.u32 %v1928_v33, %v1924_v15 }
  0xac   : > { %4130 = vmatmul.mubr.msk.bf16.gmra.mxu1 %vm702_vm2, %v5000_v35  ;;  %4243 = vmatprep.subr.bf16.mxu0 %v4417_v39 }
  0xad   : > { %4133 = vmatprep.mubr.msk.bf16.mxu1 %vm702_vm2, %v5004_v54  ;;  %4202 = vmatpush3.bf16.msra.mxu1 %v4414_v30  ;;  %v1932_v30 = vshll.u32 %v5205_v49, 16 }
  0xae   : > { %4203 = vmatprep.subr.bf16.mxu1 %v4416_v29 }
  0xaf   : > { %4244 = vmatpush3.bf16.msra.mxu0 %v4417_v39  ;;  %v1920_v39 = vrot.slane %v1919_v8, 4  ;;  %v1934_v55 = vrot.slane %v1932_v30, 5 }
  0xb0   : > { %4317 = vmatprep.subr.bf16.mxu0 %v4420_v34 }
  0xb1   : > { %4174 = vmatmul.mubr.msk.bf16.gmra.mxu0 %vm702_vm2, %v6163_v40  ;;  %4204 = vmatpush3.bf16.msra.mxu1 %v4416_v29  ;;  %v1930_v29 = vrot.slane %v1929_v52, 4  ;;  %v1925_v46 = vsel %vm4536_vm3, %v1920_v39, %v1924_v15 }
  0xb2   : > { %4177 = vmatprep.mubr.msk.bf16.mxu0 %vm702_vm2, %v4891_v57  ;;  %4277 = vmatprep.subr.bf16.mxu1 %v4419_v58 }
  0xb3   : > { %v1935_v49 = vsel %vm4536_vm3, %v1930_v29, %v1934_v55 }
  0xb4   : > { %4134 = vmatmul.mubr.msk.bf16.gmra.mxu1 %vm702_vm2, %v5008_v18  ;;  %v5314_v45 = vcombine.low %v1925_v46, %v1935_v49  ;;  %v5444_v46 = vld [vmem:[%s4487_s25 + $0xd0] sm:$0xf] }
  0xb5   : > { %4137 = vmatprep.mubr.msk.bf16.mxu1 %vm702_vm2, %v5138_v22 }
  0xb6   : > { %6170 = vst [vmem:[#allocation14_spill] sm:$0xff] %v5314_v45 }
  0xb9   : > { %4178 = vmatmul.mubr.msk.bf16.gmra.mxu0 %vm702_vm2, %v6164_v27 }
  0xba   : > { %4181 = vmatprep.mubr.msk.bf16.mxu0 %vm702_vm2, %v6165_v11 }
  0xbc   : > { %4138 = vmatmul.mubr.msk.bf16.gmra.mxu1 %vm702_vm2, %v5144_v16 }
  0xbd   : > { %4141 = vmatprep.mubr.msk.bf16.mxu1 %vm702_vm2, %v5167_v23 }
  0xc1   : > { %4182 = vmatmul.mubr.msk.bf16.gmra.mxu0 %vm702_vm2, %v6166_v41 }
  0xc2   : > { %4185 = vmatprep.mubr.msk.bf16.mxu0 %vm702_vm2, %v6167_v47 }
  0xc4   : > { %4142 = vmatmul.mubr.msk.bf16.gmra.mxu1 %vm702_vm2, %v5173_v48 }
  0xc5   : > { %4145 = vmatprep.mubr.msk.bf16.mxu1 %vm702_vm2, %v5022_v60 }
  0xc9   : > { %4186 = vmatmul.mubr.msk.bf16.gmra.mxu0 %vm702_vm2, %v6168_v9 }
  0xca   : > { %4189 = vmatprep.mubr.msk.bf16.mxu0 %vm702_vm2, %v6169_v31 }
  0xcc   : > { %4146 = vmatmul.mubr.msk.bf16.gmra.mxu1 %vm702_vm2, %v5038_v4 }
  0xcd   : > { %4149 = vmatprep.mubr.msk.bf16.mxu1 %vm702_vm2, %v5057_v43 }
  0xd1   : > { %4190 = vmatmul.mubr.msk.bf16.gmra.mxu0 %vm702_vm2, %v4865_v26 }
  0xd2   : > { %4193 = vmatprep.mubr.msk.bf16.mxu0 %vm702_vm2, %v4919_v56 }
  0xd4   : > { %4150 = vmatmul.mubr.msk.bf16.gmra.mxu1 %vm702_vm2, %v5077_v44 }
  0xd5   : > { %4153 = vmatprep.mubr.msk.bf16.mxu1 %vm702_vm2, %v5093_v50 }
  0xd9   : > { %4194 = vmatmul.mubr.msk.bf16.gmra.mxu0 %vm702_vm2, %v5314_v45 }
  0xda   : > { %4245 = vmatprep.mubr.msk.bf16.mxu0 %vm702_vm2, %v4909_v63  ;;  %v4421_v63 = vld [vmem:[%s6072_s1 + $0xf0] sm:$0xff]  }
  0xdc   : > { %4154 = vmatmul.mubr.msk.bf16.gmra.mxu1 %vm702_vm2, %v5318_v10 }
  0xdd   : > { %4205 = vmatprep.mubr.msk.bf16.mxu1 %vm702_vm2, %v4916_v24  ;;  %v4424_v24 = vld [vmem:[%s6072_s1 + $0x108] sm:$0xff]  }
  0xe1   : > { %4246 = vmatmul.mubr.msk.bf16.vlgmr.msra.gmra.mxu0 %vm702_vm2, %v4996_v25  ;;  %v4423_v25 = vld [vmem:[%s6072_s1 + $0xe8] sm:$0xff]  }
  0xe2   : > { %4318 = vmatpush3.bf16.msra.mxu0 %v4420_v34  ;;  %4249 = vmatprep.mubr.msk.bf16.mxu0 %vm702_vm2, %v5000_v35  ;;  %v4426_v35 = vld [vmem:[%s6072_s1 + $0x100] sm:$0xff]  }
  0xe3   : > { %4319 = vmatprep.subr.bf16.mxu0 %v4422_v62 }
  0xe4   : > { %4206 = vmatmul.mubr.msk.bf16.vlgmr.msra.gmra.mxu1 %vm702_vm2, %v4939_v38 }
  0xe5   : > { %4278 = vmatpush3.bf16.msra.mxu1 %v4419_v58  ;;  %4209 = vmatprep.mubr.msk.bf16.mxu1 %vm702_vm2, %v4974_v7  ;;  %v5353_v53 = vpop.f32.mrf.mxu0 }
  0xe6   : > { %4279 = vmatprep.subr.bf16.mxu1 %v4421_v63  ;;  %4320 = vmatpush3.bf16.msra.mxu0 %v4422_v62 }
  0xe7   : > { %4321 = vmatprep.subr.bf16.mxu0 %v4424_v24 }
  0xe9   : > { %4250 = vmatmul.mubr.msk.bf16.gmra.mxu0 %vm702_vm2, %v5004_v54  ;;  %4280 = vmatpush3.bf16.msra.mxu1 %v4421_v63  ;;  %v5366_v54 = vpop.f32.mrf.mxu0 }
  0xea   : > { %4253 = vmatprep.mubr.msk.bf16.mxu0 %vm702_vm2, %v5008_v18  ;;  %4281 = vmatprep.subr.bf16.mxu1 %v4423_v25  ;;  %v5362_v34 = vpop.f32.mrf.mxu1 }
  0xeb   : > { %4322 = vmatpush3.bf16.msra.mxu0 %v4424_v24  ;;  %v5372_v58 = vpop.f32.mrf.mxu0 }
  0xec   : > { %4210 = vmatmul.mubr.msk.bf16.gmra.mxu1 %vm702_vm2, %v4976_v12  ;;  %4323 = vmatprep.subr.bf16.mxu0 %v4426_v35  ;;  %v5368_v18 = vpop.f32.mrf.mxu1 }
  0xed   : > { %4213 = vmatprep.mubr.msk.bf16.mxu1 %vm702_vm2, %v5015_v14  ;;  %4282 = vmatpush3.bf16.msra.mxu1 %v4423_v25  ;;  %v5382_v15 = vpop.f32.mrf.mxu0 }
  0xee   : > { %4283 = vmatprep.subr.bf16.mxu1 %v4425_v5  ;;  %v5378_v0 = vpop.f32.mrf.mxu1 }
  0xef   : > { %4324 = vmatpush3.bf16.msra.mxu0 %v4426_v35 }
  0xf0   : > { %v5384_v33 = vpop.f32.mrf.mxu1 }
  0xf1   : > { %4254 = vmatmul.mubr.msk.bf16.gmra.mxu0 %vm702_vm2, %v5138_v22  ;;  %4284 = vmatpush3.bf16.msra.mxu1 %v4425_v5 }
  0xf2   : > { %4257 = vmatprep.mubr.msk.bf16.mxu0 %vm702_vm2, %v5144_v16 }
  0xf4   : > { %4214 = vmatmul.mubr.msk.bf16.gmra.mxu1 %vm702_vm2, %v5017_v1 }
  0xf5   : > { %4217 = vmatprep.mubr.msk.bf16.mxu1 %vm702_vm2, %v5120_v36 }
  0xf6   : > { %v5388_v22 = vpop.f32.mrf.mxu0 }
  0xf8   : > { %v5398_v8 = vpop.f32.mrf.mxu0 }
  0xf9   : > { %4258 = vmatmul.mubr.msk.bf16.gmra.mxu0 %vm702_vm2, %v5167_v23 }
  0xfa   : > { %4261 = vmatprep.mubr.msk.bf16.mxu0 %vm702_vm2, %v5173_v48  ;;  %v5394_v16 = vpop.f32.mrf.mxu1  ;;  %v5404_v23 = vpop.f32.mrf.mxu0 }
  0xfc   : > { %4218 = vmatmul.mubr.msk.bf16.gmra.mxu1 %vm702_vm2, %v5125_v6  ;;  %v5400_v52 = vpop.f32.mrf.mxu1  ;;  %v5414_v30 = vpop.f32.mrf.mxu0 }
  0xfd   : > { %4221 = vmatprep.mubr.msk.bf16.mxu1 %vm702_vm2, %v5162_v2 }
  0xfe   : > { %v5410_v48 = vpop.f32.mrf.mxu1 }
 0x100   : > { %v5416_v39 = vpop.f32.mrf.mxu1 }
 0x101   : > { %4262 = vmatmul.mubr.msk.bf16.gmra.mxu0 %vm702_vm2, %v5022_v60 }
 0x102   : > { %4265 = vmatprep.mubr.msk.bf16.mxu0 %vm702_vm2, %v5038_v4 }
 0x104   : > { %4222 = vmatmul.mubr.msk.bf16.gmra.mxu1 %vm702_vm2, %v5164_v59 }
 0x105   : > { %4225 = vmatprep.mubr.msk.bf16.mxu1 %vm702_vm2, %v5071_v42 }
 0x107   : > { %v5420_v60 = vpop.f32.mrf.mxu0 }
 0x109   : > { %4266 = vmatmul.mubr.msk.bf16.gmra.mxu0 %vm702_vm2, %v5057_v43  ;;  %v5430_v29 = vpop.f32.mrf.mxu0 }
 0x10a   : > { %4269 = vmatprep.mubr.msk.bf16.mxu0 %vm702_vm2, %v5077_v44  ;;  %v5441_v44 = vld [vmem:[%s4487_s25 + $0xcc] sm:$0xf] }
 0x10b   : > { %v5436_v43 = vpop.f32.mrf.mxu0 }
 0x10c   : > { %4226 = vmatmul.mubr.msk.bf16.gmra.mxu1 %vm702_vm2, %v5087_v20  ;;  %v5426_v4 = vpop.f32.mrf.mxu1 }
 0x10d   : > { %6171 = vst [vmem:[#allocation13_spill] sm:$0xff] %v5426_v4  ;;  %4229 = vmatprep.mubr.msk.bf16.mxu1 %vm702_vm2, %v5112_v28  ;;  %v5450_v62 = vpop.f32.mrf.mxu0 }
 0x10e   : > { %v5432_v55 = vpop.f32.mrf.mxu1 }
 0x10f   : > { %6172 = vst [vmem:[#allocation15_spill] sm:$0xff] %v5432_v55 }
 0x110   : > { %v5448_v49 = vpop.f32.mrf.mxu1 }
 0x111   : > { %4270 = vmatmul.mubr.msk.bf16.gmra.mxu0 %vm702_vm2, %v5093_v50  ;;  %6173 = vst [vmem:[#allocation19_spill] sm:$0xff] %v5448_v49  ;;  %v3669_v50 = vcombine.low %v5441_v44, %v5444_v46 }
 0x112   : > { %4273 = vmatprep.mubr.msk.bf16.mxu0 %vm702_vm2, %v5318_v10  ;;  %v5456_v63 = vpop.f32.mrf.mxu1 }
 0x113   : > { %6174 = vst [vmem:[#allocation17_spill] sm:$0xff] %v5456_v63 }
 0x114   : > { %4230 = vmatmul.mubr.msk.bf16.gmra.mxu1 %vm702_vm2, %v5123_v19 }
 0x115   : > { %4233 = vmatprep.mubr.msk.bf16.mxu1 %vm702_vm2, %v5134_v21 }
 0x119   : > { %v5458_v10 = vpop.f32.mrf.mxu0  ;;  %4274 = vmatmul.mubr.msk.bf16.gmra.mxu0 %vm702_vm2, %v3669_v50 }
 0x11a   : > { %4325 = vmatprep.mubr.msk.bf16.mxu0 %vm702_vm2, %v4939_v38 }
 0x11b   : > { %v5463_v24 = vpop.f32.mrf.mxu0 }
 0x11c   : > { %v5465_v25 = vpop.f32.mrf.mxu1  ;;  %4234 = vmatmul.mubr.msk.bf16.gmra.mxu1 %vm702_vm2, %v5217_v51 }
 0x11d   : > { %6175 = vst [vmem:[#allocation20_spill] sm:$0xff] %v5465_v25  ;;  %v5469_v35 = vpop.f32.mrf.mxu0  ;;  %4285 = vmatprep.mubr.msk.bf16.mxu1 %vm702_vm2, %v6159_v61 }
 0x11e   : > { %v5473_v5 = vpop.f32.mrf.mxu1 }
 0x11f   : > { %6176 = vst [vmem:[#allocation6_spill] sm:$0xff] %v5473_v5  ;;  %v5475_v63 = vpop.f32.mrf.mxu0 }
 0x120   : > { %v5477_v50 = vpop.f32.mrf.mxu1 }
 0x121   : > { %6177 = vst [vmem:[#allocation4_spill] sm:$0xff] %v5477_v50  ;;  %v4087_v49 = vpop.f32.mrf.mxu0  ;;  %4326 = vmatmul.mubr.msk.bf16.vlgmr.msra.gmra.mxu0 %vm702_vm2, %v4974_v7 }
 0x122   : > { %v5481_v38 = vpop.f32.mrf.mxu1  ;;  %4329 = vmatprep.mubr.msk.bf16.mxu0 %vm702_vm2, %v4976_v12 }
 0x123   : > { %6178 = vst [vmem:[#allocation7_spill] sm:$0xff] %v5481_v38  ;;  %v1519_v25 = vpop.f32.mrf.mxu0 }
 0x124   : > { %v4047_v55 = vpop.f32.mrf.mxu1  ;;  %4286 = vmatmul.mubr.msk.bf16.vlgmr.msra.gmra.mxu1 %vm702_vm2, %v6160_v13 }
 0x125   : > { %v1107_v61 = vadd.f32 %v4047_v55, %v5353_v53  ;;  %v4088_v5 = vpop.f32.mrf.mxu0  ;;  %4289 = vmatprep.mubr.msk.bf16.mxu1 %vm702_vm2, %v6161_v3 }
 0x126   : > { %v1098_v50 = vpop.f32.mrf.mxu1 }
 0x127   : > { %v5490_v45 = vadd.f32 %v4087_v49, %v1107_v61  ;;  %v1099_v7 = vadd.f32 %v1098_v50, %v5366_v54  ;;  %v1522_v38 = vpop.f32.mrf.mxu0 }
 0x128   : > { %v4048_v4 = vpop.f32.mrf.mxu1 }
 0x129   : > { %v5493_v32 = vadd.f32 %v1519_v25, %v1099_v7  ;;  %v1110_v12 = vadd.f32 %v4048_v4, %v5372_v58  ;;  %v4091_v56 = vpop.f32.mrf.mxu0  ;;  %4330 = vmatmul.mubr.msk.bf16.gmra.mxu0 %vm702_vm2, %v5015_v14 }
 0x12a   : > { %v1101_v13 = vpop.f32.mrf.mxu1  ;;  %4333 = vmatprep.mubr.msk.bf16.mxu0 %vm702_vm2, %v5017_v1 }
 0x12b   : > { %v5500_v3 = vadd.f32 %v4088_v5, %v1110_v12  ;;  %v1102_v53 = vadd.f32 %v1101_v13, %v5382_v15  ;;  %v1535_v55 = vpop.f32.mrf.mxu0 }
 0x12c   : > { %v4051_v54 = vpop.f32.mrf.mxu1  ;;  %4290 = vmatmul.mubr.msk.bf16.gmra.mxu1 %vm702_vm2, %v6162_v37 }
 0x12d   : > { %v5505_v49 = vadd.f32 %v1522_v38, %v1102_v53  ;;  %v1123_v58 = vadd.f32 %v4051_v54, %v5388_v22  ;;  %v4092_v4 = vpop.f32.mrf.mxu0  ;;  %4293 = vmatprep.mubr.msk.bf16.mxu1 %vm702_vm2, %v6163_v40 }
 0x12e   : > { %v1114_v14 = vpop.f32.mrf.mxu1 }
 0x12f   : > { %v5510_v25 = vadd.f32 %v4091_v56, %v1123_v58  ;;  %v1115_v1 = vadd.f32 %v1114_v14, %v5398_v8  ;;  %v1538_v5 = vpop.f32.mrf.mxu0 }
 0x130   : > { %v4052_v15 = vpop.f32.mrf.mxu1 }
 0x131   : > { %v5513_v50 = vadd.f32 %v1535_v55, %v1115_v1  ;;  %v1126_v61 = vadd.f32 %v4052_v15, %v5404_v23  ;;  %v4095_v37 = vpop.f32.mrf.mxu0  ;;  %4334 = vmatmul.mubr.msk.bf16.gmra.mxu0 %vm702_vm2, %v5120_v36 }
 0x132   : > { %v1117_v22 = vpop.f32.mrf.mxu1  ;;  %4337 = vmatprep.mubr.msk.bf16.mxu0 %vm702_vm2, %v5125_v6 }
 0x133   : > { %v5520_v40 = vadd.f32 %v4092_v4, %v1126_v61  ;;  %v1118_v56 = vadd.f32 %v1117_v22, %v5414_v30  ;;  %v1551_v38 = vpop.f32.mrf.mxu0 }
 0x134   : > { %v4055_v8 = vpop.f32.mrf.mxu1  ;;  %4294 = vmatmul.mubr.msk.bf16.gmra.mxu1 %vm702_vm2, %v4891_v57 }
 0x135   : > { %v5525_v7 = vadd.f32 %v1538_v5, %v1118_v56  ;;  %v1139_v23 = vadd.f32 %v4055_v8, %v5420_v60  ;;  %v4096_v12 = vpop.f32.mrf.mxu0  ;;  %4297 = vmatprep.mubr.msk.bf16.mxu1 %vm702_vm2, %v6164_v27 }
 0x136   : > { %v1130_v36 = vpop.f32.mrf.mxu1 }
 0x137   : > { %v5530_v13 = vadd.f32 %v4095_v37, %v1139_v23  ;;  %v1131_v6 = vadd.f32 %v1130_v36, %v5430_v29  ;;  %v1554_v53 = vpop.f32.mrf.mxu0 }
 0x138   : > { %v4056_v30 = vpop.f32.mrf.mxu1 }
 0x139   : > { %v5533_v55 = vadd.f32 %v1551_v38, %v1131_v6  ;;  %v1142_v54 = vadd.f32 %v4056_v30, %v5436_v43  ;;  %v4099_v57 = vpop.f32.mrf.mxu0  ;;  %4338 = vmatmul.mubr.msk.bf16.gmra.mxu0 %vm702_vm2, %v5162_v2  ;;  %v2646_v38 = vshll.u32 %v5441_v44, 16 }
 0x13a   : > { %v1133_v60 = vpop.f32.mrf.mxu1  ;;  %4341 = vmatprep.mubr.msk.bf16.mxu0 %vm702_vm2, %v5164_v59 }
 0x13b   : > { %v5540_v27 = vadd.f32 %v4096_v12, %v1142_v54  ;;  %v1134_v58 = vadd.f32 %v1133_v60, %v5450_v62  ;;  %v1567_v4 = vpop.f32.mrf.mxu0  ;;  %v2648_v30 = vrot.slane %v2646_v38, 5 }
 0x13c   : > { %v4059_v29 = vpop.f32.mrf.mxu1  ;;  %4298 = vmatmul.mubr.msk.bf16.gmra.mxu1 %vm702_vm2, %v6165_v11 }
 0x13d   : > { %v5545_v14 = vadd.f32 %v1554_v53, %v1134_v58  ;;  %v1155_v43 = vadd.f32 %v4059_v29, %v5458_v10  ;;  %v4100_v1 = vpop.f32.mrf.mxu0  ;;  %4301 = vmatprep.mubr.msk.bf16.mxu1 %vm702_vm2, %v6166_v41 }
 0x13e   : > { %v1146_v2 = vpop.f32.mrf.mxu1 }
 0x13f   : > { %v5550_v5 = vadd.f32 %v4099_v57, %v1155_v43  ;;  %v1147_v59 = vadd.f32 %v1146_v2, %v5463_v24  ;;  %v1570_v15 = vpop.f32.mrf.mxu0  ;;  %v2643_v24 = vshrl.u32 %v5441_v44, 16 }
 0x140   : > { %v4060_v62 = vpop.f32.mrf.mxu1 }
 0x141   : > { %v5553_v61 = vadd.f32 %v1567_v4, %v1147_v59  ;;  %v1158_v37 = vadd.f32 %v4060_v62, %v5469_v35  ;;  %v4103_v11 = vpop.f32.mrf.mxu0  ;;  %4342 = vmatmul.mubr.msk.bf16.gmra.mxu0 %vm702_vm2, %v5071_v42  ;;  %v2652_v35 = vshll.u32 %v5444_v46, 16  ;;  %v2656_v42 = vshrl.u32 %v5444_v46, 16 }
 0x142   : > { %v1149_v10 = vpop.f32.mrf.mxu1  ;;  %4345 = vmatprep.mubr.msk.bf16.mxu0 %vm702_vm2, %v5087_v20 }
 0x143   : > { %v5560_v41 = vadd.f32 %v4100_v1, %v1158_v37  ;;  %v1150_v22 = vadd.f32 %v1149_v10, %v5475_v63  ;;  %v1583_v56 = vpop.f32.mrf.mxu0  ;;  %v2654_v57 = vrot.slane %v2652_v35, 5  ;;  %v2658_v60 = vrot.slane %v2656_v42, 4 }
 0x144   : > { %v4063_v8 = vpop.f32.mrf.mxu1  ;;  %4302 = vmatmul.mubr.msk.bf16.gmra.mxu1 %vm702_vm2, %v6167_v47  ;;  %v2645_v47 = vrot.slane %v2643_v24, 4  ;;  %v3719_v37 = vrot.slane %v5441_v44, 9 }
 0x145   : > { %v5569_v23 = vadd.f32 %v1570_v15, %v1150_v22  ;;  %v1171_v20 = vadd.f32 %v4063_v8, %v5362_v34  ;;  %v4104_v12 = vpop.f32.mrf.mxu0  ;;  %4305 = vmatprep.mubr.msk.bf16.mxu1 %vm702_vm2, %v6168_v9  ;;  %v2901_v9 = vrot.slane %v5444_v46, 5 }
 0x146   : > { %v1162_v63 = vpop.f32.mrf.mxu1 }
 0x147   : > { %v5574_v36 = vadd.f32 %v4103_v11, %v1171_v20  ;;  %v1163_v6 = vadd.f32 %v1162_v63, %v5368_v18  ;;  %v1586_v53 = vpop.f32.mrf.mxu0  ;;  %v225_v18 = vld [vmem:[%s4487_s25 + $0xd4] sm:$0x1] }
 0x148   : > { %v4064_v54 = vpop.f32.mrf.mxu1  ;;  %v2662_v62 = vshll.u32 %v225_v18, 16  ;;  %v2904_v10 = vrot.slane %v225_v18, 5 }
 0x149   : > { %v5577_v58 = vadd.f32 %v1583_v56, %v1163_v6  ;;  %v1174_v34 = vadd.f32 %v4064_v54, %v5378_v0  ;;  %v4107_v4 = vpop.f32.mrf.mxu0  ;;  %4346 = vmatmul.mubr.msk.bf16.gmra.mxu0 %vm702_vm2, %v5112_v28  ;;  %v2649_v0 = vor.u32 %v2648_v30, %v2645_v47 }
 0x14a   : > { %v1165_v29 = vpop.f32.mrf.mxu1  ;;  %4349 = vmatprep.mubr.msk.bf16.mxu0 %vm702_vm2, %v5123_v19  ;;  %v2659_v19 = vor.u32 %v2658_v60, %v2654_v57  ;;  %v2664_v44 = vrot.slane %v2662_v62, 5 }
 0x14b   : > { %v5586_v43 = vadd.f32 %v4104_v12, %v1174_v34  ;;  %v1166_v1 = vadd.f32 %v1165_v29, %v5384_v33  ;;  %v1599_v2 = vpop.f32.mrf.mxu0  ;;  %v2903_v33 = vrot.slane %v2901_v9, 4  ;;  %v2650_v38 = vrot.slane %v2649_v0, 4  ;;  %v6182_v34 = vld [vmem:[#allocation14_spill] sm:$0xff]  ;;  %v6183_v29 = vld [vmem:[#allocation15_spill] sm:$0xff] }
 0x14c   : > { %v4067_v59 = vpop.f32.mrf.mxu1  ;;  %4306 = vmatmul.mubr.msk.bf16.gmra.mxu1 %vm702_vm2, %v6169_v31  ;;  %v6184_v0 = vld [vmem:[#allocation19_spill] sm:$0xff] }
 0x14d   : > { %v5591_v15 = vadd.f32 %v1586_v53, %v1166_v1  ;;  %v1187_v28 = vadd.f32 %v4067_v59, %v5394_v16  ;;  %v4108_v46 = vpop.f32.mrf.mxu0  ;;  %4309 = vmatprep.mubr.msk.bf16.mxu1 %vm702_vm2, %v4865_v26  ;;  %v2660_v26 = vrot.slane %v2659_v19, 4  ;;  %v2905_v20 = vsel %vm4870_vm6, %v2903_v33, %v2904_v10  ;;  %v6179_v53 = vld [vmem:[#allocation24_spill] sm:$0xff] }
 0x14e   : > { %v1178_v11 = vpop.f32.mrf.mxu1  ;;  %v2655_v47 = vsel %vm4536_vm3, %v2650_v38, %v2654_v57 }
 0x14f   : > { %v5597_v22 = vadd.f32 %v4107_v4, %v1187_v28  ;;  %v1179_v31 = vadd.f32 %v1178_v11, %v5400_v52  ;;  %v1602_v56 = vpop.f32.mrf.mxu0  ;;  %v2902_v52 = vsel %vm4870_vm6, %v3719_v37, %v2901_v9  ;;  %v2665_v17 = vsel %vm4536_vm3, %v2660_v26, %v2664_v44  ;;  %v6185_v37 = vld [vmem:[#allocation17_spill] sm:$0xff]  ;;  %v6187_v26 = vld [vmem:[#allocation6_spill] sm:$0xff] }
 0x150   : > { %v4068_v24 = vpop.f32.mrf.mxu1  ;;  %v3698_v57 = vcombine.low %v2655_v47, %v2665_v17  ;;  %v6189_v47 = vld [vmem:[#allocation7_spill] sm:$0xff] }
 0x151   : > { %v5600_v8 = vadd.f32 %v1599_v2, %v1179_v31  ;;  %v1190_v16 = vadd.f32 %v4068_v24, %v5410_v48  ;;  %v4111_v35 = vpop.f32.mrf.mxu0  ;;  %4350 = vmatmul.mubr.msk.bf16.gmra.mxu0 %vm702_vm2, %v5134_v21 }
 0x152   : > { %v1181_v42 = vpop.f32.mrf.mxu1  ;;  %4353 = vmatprep.mubr.msk.bf16.mxu0 %vm702_vm2, %v5217_v51  ;;  %v6181_v51 = vld [vmem:[#allocation13_spill] sm:$0xff] }
 0x153   : > { %v5611_v12 = vadd.f32 %v4108_v46, %v1190_v16  ;;  %v1182_v48 = vadd.f32 %v1181_v42, %v5416_v39  ;;  %v1615_v63 = vpop.f32.mrf.mxu0  ;;  %v3728_v39 = vcombine.low %v2902_v52, %v2905_v20 }
 0x154   : > { %v4071_v6 = vpop.f32.mrf.mxu1  ;;  %4310 = vmatmul.mubr.msk.bf16.gmra.mxu1 %vm702_vm2, %v6179_v53 }
 0x155   : > { %v5618_v30 = vadd.f32 %v1602_v56, %v1182_v48  ;;  %v1203_v54 = vadd.f32 %v4071_v6, %v6181_v51  ;;  %v4112_v60 = vpop.f32.mrf.mxu0  ;;  %4313 = vmatprep.mubr.msk.bf16.mxu1 %vm702_vm2, %v6182_v34  ;;  %v6186_v56 = vld [vmem:[#allocation20_spill] sm:$0xff] }
 0x156   : > { %v1194_v4 = vpop.f32.mrf.mxu1  ;;  %v6188_v48 = vld [vmem:[#allocation4_spill] sm:$0xff] }
 0x157   : > { %v5625_v9 = vadd.f32 %v4111_v35, %v1203_v54  ;;  %v1195_v18 = vadd.f32 %v1194_v4, %v6183_v29  ;;  %v1618_v1 = vpop.f32.mrf.mxu0 }
 0x158   : > { %v4072_v2 = vpop.f32.mrf.mxu1 }
 0x159   : > { %v5628_v59 = vadd.f32 %v1615_v63, %v1195_v18  ;;  %v1206_v28 = vadd.f32 %v4072_v2, %v6184_v0  ;;  %v4115_v46 = vpop.f32.mrf.mxu0  ;;  %4354 = vmatmul.mubr.msk.bf16.gmra.mxu0 %vm702_vm2, %v3728_v39 }
 0x15a   : > { %v1197_v19 = vpop.f32.mrf.mxu1 }
 0x15b   : > { %v5632_v62 = vadd.f32 %v4112_v60, %v1206_v28  ;;  %v1198_v11 = vadd.f32 %v1197_v19, %v6185_v37  ;;  %v1631_v33 = vpop.f32.mrf.mxu0 }
 0x15c   : > { %v4075_v10 = vpop.f32.mrf.mxu1  ;;  %4314 = vmatmul.mubr.msk.bf16.gmra.mxu1 %vm702_vm2, %v3698_v57 }
 0x15d   : > { %v5636_v31 = vadd.f32 %v1618_v1, %v1198_v11  ;;  %v1219_v24 = vadd.f32 %v4075_v10, %v6186_v56  ;;  %v4116_v38 = vpop.f32.mrf.mxu0 }
 0x15e   : > { %v1210_v16 = vpop.f32.mrf.mxu1 }
 0x15f   : > { %v5639_v35 = vadd.f32 %v4115_v46, %v1219_v24  ;;  %v1211_v44 = vadd.f32 %v1210_v16, %v6187_v26  ;;  %v1634_v42 = vpop.f32.mrf.mxu0 }
 0x160   : > { %v4076_v52 = vpop.f32.mrf.mxu1 }
 0x161   : > { %v5642_v20 = vadd.f32 %v1631_v33, %v1211_v44  ;;  %v1222_v63 = vadd.f32 %v4076_v52, %v6188_v48  ;;  %v4167_v6 = vpop.f32.mrf.mxu0 }
 0x162   : > { %v1213_v53 = vpop.f32.mrf.mxu1 }
 0x163   : > { %v5645_v21 = vadd.f32 %v4116_v38, %v1222_v63  ;;  %v1214_v51 = vadd.f32 %v1213_v53, %v6189_v47  ;;  %v2009_v54 = vpop.f32.mrf.mxu0 }
 0x164   : > { %v4127_v60 = vpop.f32.mrf.mxu1 }
 0x165   : > { %v5648_v34 = vadd.f32 %v1634_v42, %v1214_v51  ;;  %v1882_v17 = vadd.f32 %v4127_v60, %v5490_v45  ;;  %v4168_v39 = vpop.f32.mrf.mxu0 }
 0x166   : > { %v1753_v4 = vpop.f32.mrf.mxu1 }
 0x167   : > { %v5651_v29 = vadd.f32 %v4167_v6, %v1882_v17  ;;  %v1880_v18 = vadd.f32 %v1753_v4, %v5493_v32  ;;  %v2012_v1 = vpop.f32.mrf.mxu0 }
 0x168   : > { %v4128_v2 = vpop.f32.mrf.mxu1 }
 0x169   : > { %v5654_v57 = vadd.f32 %v2009_v54, %v1880_v18  ;;  %v1883_v0 = vadd.f32 %v4128_v2, %v5500_v3  ;;  %v4171_v28 = vpop.f32.mrf.mxu0 }
 0x16a   : > { %v1756_v46 = vpop.f32.mrf.mxu1 }
 0x16b   : > { %v5657_v19 = vadd.f32 %v4168_v39, %v1883_v0  ;;  %v1881_v37 = vadd.f32 %v1756_v46, %v5505_v49  ;;  %v2025_v11 = vpop.f32.mrf.mxu0 }
 0x16c   : > { %v4131_v45 = vpop.f32.mrf.mxu1 }
 0x16d   : > { %v5660_v33 = vadd.f32 %v2012_v1, %v1881_v37  ;;  %v1886_v10 = vadd.f32 %v4131_v45, %v5510_v25  ;;  %v4172_v56 = vpop.f32.mrf.mxu0 }
 0x16e   : > { %v1769_v32 = vpop.f32.mrf.mxu1 }
 0x16f   : > { %v5663_v24 = vadd.f32 %v4171_v28, %v1886_v10  ;;  %v1884_v38 = vadd.f32 %v1769_v32, %v5513_v50  ;;  %v2028_v16 = vpop.f32.mrf.mxu0 }
 0x170   : > { %v4132_v3 = vpop.f32.mrf.mxu1 }
 0x171   : > { %v5666_v26 = vadd.f32 %v2025_v11, %v1884_v38  ;;  %v1887_v44 = vadd.f32 %v4132_v3, %v5520_v40  ;;  %v4175_v42 = vpop.f32.mrf.mxu0 }
 0x172   : > { %v1772_v49 = vpop.f32.mrf.mxu1 }
 0x173   : > { %v5669_v52 = vadd.f32 %v4172_v56, %v1887_v44  ;;  %v1885_v48 = vadd.f32 %v1772_v49, %v5525_v7  ;;  %v2041_v63 = vpop.f32.mrf.mxu0 }
 0x174   : > { %v4135_v25 = vpop.f32.mrf.mxu1 }
 0x175   : > { %v5672_v6 = vadd.f32 %v2028_v16, %v1885_v48  ;;  %v1890_v53 = vadd.f32 %v4135_v25, %v5530_v13  ;;  %v4176_v47 = vpop.f32.mrf.mxu0 }
 0x176   : > { %v1785_v50 = vpop.f32.mrf.mxu1 }
 0x177   : > { %v5675_v51 = vadd.f32 %v4175_v42, %v1890_v53  ;;  %v1888_v54 = vadd.f32 %v1785_v50, %v5533_v55  ;;  %v2044_v60 = vpop.f32.mrf.mxu0 }
 0x178   : > { %v4136_v40 = vpop.f32.mrf.mxu1 }
 0x179   : > { %v5678_v17 = vadd.f32 %v2041_v63, %v1888_v54  ;;  %v1891_v39 = vadd.f32 %v4136_v40, %v5540_v27  ;;  %v4179_v4 = vpop.f32.mrf.mxu0 }
 0x17a   : > { %v1788_v7 = vpop.f32.mrf.mxu1 }
 0x17b   : > { %v5681_v18 = vadd.f32 %v4176_v47, %v1891_v39  ;;  %v1889_v1 = vadd.f32 %v1788_v7, %v5545_v14  ;;  %v2057_v2 = vpop.f32.mrf.mxu0 }
 0x17c   : > { %v4139_v13 = vpop.f32.mrf.mxu1 }
 0x17d   : > { %v5684_v0 = vadd.f32 %v2044_v60, %v1889_v1  ;;  %v1894_v28 = vadd.f32 %v4139_v13, %v5550_v5  ;;  %v4180_v46 = vpop.f32.mrf.mxu0 }
 0x17e   : > { %v1801_v55 = vpop.f32.mrf.mxu1 }
 0x17f   : > { %v5687_v37 = vadd.f32 %v4179_v4, %v1894_v28  ;;  %v1892_v11 = vadd.f32 %v1801_v55, %v5553_v61  ;;  %v2060_v45 = vpop.f32.mrf.mxu0 }
 0x180   : > { %v4140_v27 = vpop.f32.mrf.mxu1 }
 0x181   : > { %v5690_v10 = vadd.f32 %v2057_v2, %v1892_v11  ;;  %v1895_v56 = vadd.f32 %v4140_v27, %v5560_v41  ;;  %v4183_v32 = vpop.f32.mrf.mxu0 }
 0x182   : > { %v1804_v14 = vpop.f32.mrf.mxu1 }
 0x183   : > { %v5693_v38 = vadd.f32 %v4180_v46, %v1895_v56  ;;  %v1893_v16 = vadd.f32 %v1804_v14, %v5569_v23  ;;  %v2073_v3 = vpop.f32.mrf.mxu0 }
 0x184   : > { %v4143_v5 = vpop.f32.mrf.mxu1 }
 0x185   : > { %v5696_v44 = vadd.f32 %v2060_v45, %v1893_v16  ;;  %v1898_v42 = vadd.f32 %v4143_v5, %v5574_v36  ;;  %v4184_v49 = vpop.f32.mrf.mxu0 }
 0x186   : > { %v1817_v61 = vpop.f32.mrf.mxu1 }
 0x187   : > { %v5699_v48 = vadd.f32 %v4183_v32, %v1898_v42  ;;  %v1896_v63 = vadd.f32 %v1817_v61, %v5577_v58  ;;  %v2076_v25 = vpop.f32.mrf.mxu0 }
 0x188   : > { %v4144_v41 = vpop.f32.mrf.mxu1 }
 0x189   : > { %v5702_v53 = vadd.f32 %v2073_v3, %v1896_v63  ;;  %v1899_v47 = vadd.f32 %v4144_v41, %v5586_v43  ;;  %v4187_v50 = vpop.f32.mrf.mxu0 }
 0x18a   : > { %v1820_v23 = vpop.f32.mrf.mxu1 }
 0x18b   : > { %v5705_v54 = vadd.f32 %v4184_v49, %v1899_v47  ;;  %v1897_v60 = vadd.f32 %v1820_v23, %v5591_v15  ;;  %v2089_v40 = vpop.f32.mrf.mxu0 }
 0x18c   : > { %v4147_v36 = vpop.f32.mrf.mxu1 }
 0x18d   : > { %6190 = vst [vmem:[#allocation5_spill] sm:$0xff] %v5705_v54  ;;  %v5708_v39 = vadd.f32 %v2076_v25, %v1897_v60  ;;  %v1902_v4 = vadd.f32 %v4147_v36, %v5597_v22  ;;  %v4188_v7 = vpop.f32.mrf.mxu0 }
 0x18e   : > { %v1833_v58 = vpop.f32.mrf.mxu1 }
 0x18f   : > { %6191 = vst [vmem:[#allocation9_spill] sm:$0xff] %v5708_v39  ;;  %v5711_v1 = vadd.f32 %v4187_v50, %v1902_v4  ;;  %v1900_v2 = vadd.f32 %v1833_v58, %v5600_v8  ;;  %v2092_v13 = vpop.f32.mrf.mxu0 }
 0x190   : > { %v4148_v43 = vpop.f32.mrf.mxu1 }
 0x191   : > { %6192 = vst [vmem:[#allocation11_spill] sm:$0xff] %v5711_v1  ;;  %v5714_v28 = vadd.f32 %v2089_v40, %v1900_v2  ;;  %v1903_v46 = vadd.f32 %v4148_v43, %v5611_v12  ;;  %v4191_v55 = vpop.f32.mrf.mxu0 }
 0x192   : > { %v1836_v15 = vpop.f32.mrf.mxu1 }
 0x193   : > { %6193 = vst [vmem:[#allocation16_spill] sm:$0xff] %v5714_v28  ;;  %v5717_v11 = vadd.f32 %v4188_v7, %v1903_v46  ;;  %v1901_v45 = vadd.f32 %v1836_v15, %v5618_v30  ;;  %v2105_v27 = vpop.f32.mrf.mxu0 }
 0x194   : > { %v4151_v22 = vpop.f32.mrf.mxu1 }
 0x195   : > { %6194 = vst [vmem:[#allocation21_spill] sm:$0xff] %v5717_v11  ;;  %v5720_v56 = vadd.f32 %v2092_v13, %v1901_v45  ;;  %v1906_v32 = vadd.f32 %v4151_v22, %v5625_v9  ;;  %v4192_v14 = vpop.f32.mrf.mxu0 }
 0x196   : > { %v1849_v8 = vpop.f32.mrf.mxu1 }
 0x197   : > { %6195 = vst [vmem:[#allocation23_spill] sm:$0xff] %v5720_v56  ;;  %v5723_v16 = vadd.f32 %v4191_v55, %v1906_v32  ;;  %v1904_v3 = vadd.f32 %v1849_v8, %v5628_v59  ;;  %v2108_v5 = vpop.f32.mrf.mxu0 }
 0x198   : > { %v4152_v12 = vpop.f32.mrf.mxu1 }
 0x199   : > { %6196 = vst [vmem:[#allocation3_spill] sm:$0xff] %v5723_v16  ;;  %v5726_v42 = vadd.f32 %v2105_v27, %v1904_v3  ;;  %v1907_v49 = vadd.f32 %v4152_v12, %v5632_v62  ;;  %v4195_v61 = vpop.f32.mrf.mxu0 }
 0x19a   : > { %v1852_v30 = vpop.f32.mrf.mxu1 }
 0x19b   : > { %6197 = vst [vmem:[#allocation8_spill] sm:$0xff] %v5726_v42  ;;  %v5729_v63 = vadd.f32 %v4192_v14, %v1907_v49  ;;  %v1905_v25 = vadd.f32 %v1852_v30, %v5636_v31  ;;  %v2121_v41 = vpop.f32.mrf.mxu0 }
 0x19c   : > { %v4155_v9 = vpop.f32.mrf.mxu1 }
 0x19d   : > { %6198 = vst [vmem:[#allocation10_spill] sm:$0xff] %v5729_v63  ;;  %v5732_v47 = vadd.f32 %v2108_v5, %v1905_v25  ;;  %v1910_v50 = vadd.f32 %v4155_v9, %v5639_v35  ;;  %v4196_v23 = vpop.f32.mrf.mxu0 }
 0x19e   : > { %v1865_v59 = vpop.f32.mrf.mxu1 }
 0x19f   : > { %6199 = vst [vmem:[#allocation12_spill] sm:$0xff] %v5732_v47  ;;  %v5735_v60 = vadd.f32 %v4195_v61, %v1910_v50  ;;  %v1908_v40 = vadd.f32 %v1865_v59, %v5642_v20  ;;  %v2124_v36 = vpop.f32.mrf.mxu0 }
 0x1a0   : > { %v4156_v62 = vpop.f32.mrf.mxu1 }
 0x1a1   : > { %6200 = vst [vmem:[#allocation18_spill] sm:$0xff] %v5735_v60  ;;  %v5738_v4 = vadd.f32 %v2121_v41, %v1908_v40  ;;  %v1911_v7 = vadd.f32 %v4156_v62, %v5645_v21  ;;  %v5741_v58 = vpop.f32.mrf.mxu0 }
 0x1a2   : > { %v1868_v31 = vpop.f32.mrf.mxu1 }
 0x1a3   : > { %6201 = vst [vmem:[#allocation22_spill] sm:$0xff] %v5738_v4  ;;  %v5743_v2 = vadd.f32 %v4196_v23, %v1911_v7  ;;  %v1909_v13 = vadd.f32 %v1868_v31, %v5648_v34  ;;  %v5746_v35 = vpop.f32.mrf.mxu0 }
 0x1a4   : > { %v4207_v43 = vpop.f32.mrf.mxu1 }
 0x1a5   : > { %6202 = vst [vmem:[#allocation24_spill] sm:$0xff] %v5743_v2  ;;  %v5748_v46 = vadd.f32 %v2124_v36, %v1909_v13  ;;  %v5750_v55 = vpop.f32.mrf.mxu0 }
 0x1a6   : > { %v2249_v20 = vpop.f32.mrf.mxu1 }
 0x1a7   : > { %6203 = vst [vmem:[#allocation2_spill] sm:$0xff] %v5748_v46  ;;  %v5752_v15 = vpop.f32.mrf.mxu0 }
 0x1a8   : > { %v4208_v45 = vpop.f32.mrf.mxu1 }
 0x1a9   : > { %v5754_v27 = vpop.f32.mrf.mxu0 }
 0x1aa   : > { %v5756_v21 = vpop.f32.mrf.mxu1 }
 0x1ab   : > { %v5758_v22 = vpop.f32.mrf.mxu0 }
 0x1ac   : > { %v5760_v32 = vpop.f32.mrf.mxu1 }
 0x1ad   : > { %v5762_v34 = vpop.f32.mrf.mxu0 }
 0x1ae   : > { %v5764_v14 = vpop.f32.mrf.mxu1 }
 0x1af   : > { %v5766_v8 = vpop.f32.mrf.mxu0 }
 0x1b0   : > { %v5768_v3 = vpop.f32.mrf.mxu1 }
 0x1b1   : > { %v5770_v5 = vpop.f32.mrf.mxu0 }
 0x1b2   : > { %v5772_v12 = vpop.f32.mrf.mxu1 }
 0x1b3   : > { %v5774_v49 = vpop.f32.mrf.mxu0 }
 0x1b4   : > { %v5776_v61 = vpop.f32.mrf.mxu1 }
 0x1b5   : > { %v5778_v30 = vpop.f32.mrf.mxu0 }
 0x1b6   : > { %v5780_v25 = vpop.f32.mrf.mxu1 }
 0x1b7   : > { %v5782_v41 = vpop.f32.mrf.mxu0 }
 0x1b8   : > { %v5784_v9 = vpop.f32.mrf.mxu1 }
 0x1b9   : > { %v5786_v50 = vpop.f32.mrf.mxu0 }
 0x1ba   : > { %v5788_v23 = vpop.f32.mrf.mxu1 }
 0x1bb   : > { %v5790_v59 = vpop.f32.mrf.mxu0 }
 0x1bc   : > { %v5792_v40 = vpop.f32.mrf.mxu1 }
 0x1bd   : > { %v5794_v36 = vpop.f32.mrf.mxu0 }
 0x1be   : > { %v5796_v62 = vpop.f32.mrf.mxu1 }
 0x1bf   : > { %v5798_v7 = vpop.f32.mrf.mxu0 }
 0x1c0   : > { %v5800_v31 = vpop.f32.mrf.mxu1 }
 0x1c1   : > { %v5802_v13 = vpop.f32.mrf.mxu0 }
 0x1c2   : > { %v5804_v46 = vpop.f32.mrf.mxu1 }
 0x1c3   : > { %v5806_v2 = vpop.f32.mrf.mxu0 }
 0x1c4   : > { %6204 = vst [vmem:[#allocation13_spill] sm:$0xff] %v5806_v2  ;;  %v5808_v4 = vpop.f32.mrf.mxu1 }
 0x1c5   : > { %v5810_v60 = vpop.f32.mrf.mxu0 }
 0x1c6   : > { %6205 = vst [vmem:[#allocation14_spill] sm:$0xff] %v5810_v60  ;;  %v5812_v47 = vpop.f32.mrf.mxu1 }
 0x1c7   : > { %v5814_v63 = vpop.f32.mrf.mxu0 }
 0x1c8   : > { %6206 = vst [vmem:[#allocation15_spill] sm:$0xff] %v5814_v63  ;;  %v5816_v42 = vpop.f32.mrf.mxu1 }
 0x1c9   : > { %6207 = vst [vmem:[#allocation19_spill] sm:$0xff] %v5816_v42  ;;  %v5818_v16 = vpop.f32.mrf.mxu0 }
 0x1ca   : > { %6208 = vst [vmem:[#allocation17_spill] sm:$0xff] %v5818_v16  ;;  %v5820_v56 = vpop.f32.mrf.mxu1 }
 0x1cb   : > { %6209 = vst [vmem:[#allocation20_spill] sm:$0xff] %v5820_v56  ;;  %v5822_v11 = vpop.f32.mrf.mxu0 }
 0x1cc   : > { %6210 = vst [vmem:[#allocation6_spill] sm:$0xff] %v5822_v11  ;;  %v5824_v28 = vpop.f32.mrf.mxu1 }
 0x1cd   : > { %6211 = vst [vmem:[#allocation4_spill] sm:$0xff] %v5824_v28  ;;  %v5826_v1 = vpop.f32.mrf.mxu0 }
 0x1ce   : > { %6212 = vst [vmem:[#allocation7_spill] sm:$0xff] %v5826_v1  ;;  %v5828_v39 = vpop.f32.mrf.mxu1 }
 0x1cf   : > { %6213 = vst [vmem:[#allocation25_spill] sm:$0xff] %v5828_v39  ;;  %v5830_v2 = vpop.f32.mrf.mxu0 }
 0x1d0   : > { %6214 = vst [vmem:[#allocation26_spill] sm:$0xff] %v5830_v2  ;;  %v5832_v60 = vpop.f32.mrf.mxu1 }
 0x1d1   : > { %6215 = vst [vmem:[#allocation27_spill] sm:$0xff] %v5832_v60  ;;  %v5834_v54 = vpop.f32.mrf.mxu0 }
 0x1d2   : > { %6216 = vst [vmem:[#allocation28_spill] sm:$0xff] %v5834_v54  ;;  %v5836_v63 = vpop.f32.mrf.mxu1 }
 0x1d3   : > { %6217 = vst [vmem:[#allocation29_spill] sm:$0xff] %v5836_v63  ;;  %v5838_v42 = vpop.f32.mrf.mxu0 }
 0x1d4   : > { %6218 = vst [vmem:[#allocation30_spill] sm:$0xff] %v5838_v42  ;;  %v5840_v16 = vpop.f32.mrf.mxu1 }
 0x1d5   : > { %6219 = vst [vmem:[#allocation31_spill] sm:$0xff] %v5840_v16  ;;  %v5842_v56 = vpop.f32.mrf.mxu0 }
 0x1d6   : > { %6220 = vst [vmem:[#allocation32_spill] sm:$0xff] %v5842_v56  ;;  %v5844_v11 = vpop.f32.mrf.mxu1  ;;  %v2378_v56 = vadd.f32 %v4207_v43, %v5651_v29  ;;  %v2377_v29 = vadd.f32 %v5756_v21, %v5660_v33 }
 0x1d7   : > { %6221 = vst [vmem:[#allocation33_spill] sm:$0xff] %v5844_v11  ;;  %v5846_v28 = vpop.f32.mrf.mxu0 }
 0x1d8   : > { %6222 = vst [vmem:[#allocation34_spill] sm:$0xff] %v5846_v28  ;;  %v5848_v1 = vpop.f32.mrf.mxu1  ;;  %v2376_v28 = vadd.f32 %v2249_v20, %v5654_v57  ;;  %v5878_v57 = vld [vmem:[%s6073_s2] ss:$0 sm:$0xff] }
 0x1d9   : > { %6223 = vst [vmem:[#allocation35_spill] sm:$0xff] %v5848_v1  ;;  %v5850_v39 = vpop.f32.mrf.mxu0 }
 0x1da   : > { %6224 = vst [vmem:[#allocation36_spill] sm:$0xff] %v5850_v39  ;;  %v5852_v2 = vpop.f32.mrf.mxu1 }
 0x1db   : > { %6225 = vst [vmem:[#allocation37_spill] sm:$0xff] %v5852_v2  ;;  %v5854_v60 = vpop.f32.mrf.mxu0  ;;  %v2612_v2 = vadd.f32 %v5741_v58, %v2378_v56 }
 0x1dc   : > { %6226 = vst [vmem:[#allocation38_spill] sm:$0xff] %v5854_v60  ;;  %v5856_v54 = vpop.f32.mrf.mxu1  ;;  %v2379_v60 = vadd.f32 %v4208_v45, %v5657_v19 }
 0x1dd   : > { %6227 = vst [vmem:[#allocation39_spill] sm:$0xff] %v5856_v54  ;;  %v5858_v63 = vpop.f32.mrf.mxu0 }
 0x1de   : > { %6228 = vst [vmem:[#allocation40_spill] sm:$0xff] %v5858_v63  ;;  %v5860_v42 = vpop.f32.mrf.mxu1  ;;  %v2613_v56 = vadd.f32 %v5750_v55, %v2379_v60 }
 0x1df   : > { %6229 = vst [vmem:[#allocation41_spill] sm:$0xff] %v5860_v42  ;;  %v5863_v16 = vpop.f32.mrf.mxu0  ;;  %v2610_v42 = vadd.f32 %v5746_v35, %v2376_v28  ;;  %v2380_v28 = vadd.f32 %v5764_v14, %v5666_v26  ;;  %v2381_v14 = vadd.f32 %v5772_v12, %v5672_v6  ;;  %v2386_v6 = vadd.f32 %v5776_v61, %v5675_v51 }
 0x1e0   : > { %6230 = vst [vmem:[#allocation42_spill] sm:$0xff] %v5863_v16  ;;  %v5865_v11 = vpop.f32.mrf.mxu1 }
 0x1e1   : > { %6231 = vst [vmem:[#allocation43_spill] sm:$0xff] %v5865_v11  ;;  %v4327_v1 = vpop.f32.mrf.mxu0 }
 0x1e2   : > { %v5868_v39 = vpop.f32.mrf.mxu1 }
 0x1e3   : > { %6232 = vst [vmem:[#allocation44_spill] sm:$0xff] %v5868_v39  ;;  %v2979_v54 = vpop.f32.mrf.mxu0  ;;  %v2382_v39 = vadd.f32 %v5760_v32, %v5663_v24 }
 0x1e4   : > { %v4287_v63 = vpop.f32.mrf.mxu1 }
 0x1e5   : > { %v2868_v43 = vadd.f32 %v4287_v63, %v2612_v2  ;;  %v4328_v16 = vpop.f32.mrf.mxu0  ;;  %v2611_v63 = vadd.f32 %v5752_v15, %v2377_v29  ;;  %v2616_v26 = vadd.f32 %v5754_v27, %v2382_v39  ;;  %v2614_v15 = vadd.f32 %v5758_v22, %v2380_v28 }
 0x1e6   : > { %v2739_v20 = vpop.f32.mrf.mxu1 }
 0x1e7   : > { %v3108_v58 = vadd.f32 %v4327_v1, %v2868_v43  ;;  %v2866_v19 = vadd.f32 %v2739_v20, %v2610_v42  ;;  %v2982_v45 = vpop.f32.mrf.mxu0  ;;  %v2383_v1 = vadd.f32 %v5768_v3, %v5669_v52 }
 0x1e8   : > { %v4288_v33 = vpop.f32.mrf.mxu1 }
 0x1e9   : > { %v3147_v2 = vadd.f32 %v5878_v57, %v3108_v58  ;;  %v3106_v35 = vadd.f32 %v2979_v54, %v2866_v19  ;;  %v2869_v21 = vadd.f32 %v4288_v33, %v2613_v56  ;;  %v4331_v11 = vpop.f32.mrf.mxu0  ;;  %v2617_v27 = vadd.f32 %v5762_v34, %v2383_v1 }
 0x1ea   : > { %v2742_v42 = vpop.f32.mrf.mxu1  ;;  %v2615_v33 = vadd.f32 %v5766_v8, %v2381_v14  ;;  %v2384_v1 = vadd.f32 %v5780_v25, %v5678_v17 }
 0x1eb   : > { %v3179_v60 = vmax.f32 %v3147_v2, 0.0  ;;  %v3145_v55 = vadd.f32 %v5878_v57, %v3106_v35  ;;  %v3109_v24 = vadd.f32 %v4328_v16, %v2869_v21  ;;  %v2867_v32 = vadd.f32 %v2742_v42, %v2611_v63  ;;  %v2995_v43 = vpop.f32.mrf.mxu0 }
 0x1ec   : > { %v4291_v52 = vpop.f32.mrf.mxu1  ;;  %v2620_v21 = vadd.f32 %v5770_v5, %v2386_v6  ;;  %v2387_v42 = vadd.f32 %v5784_v9, %v5681_v18  ;;  %v2385_v5 = vadd.f32 %v5788_v23, %v5684_v0 }
 0x1ed   : > { %v3787_v54 = vpack.c.bf16 %v3179_v60, %v3179_v60  ;;  %v3177_v3 = vmax.f32 %v3145_v55, 0.0  ;;  %v3148_v16 = vadd.f32 %v5878_v57, %v3109_v24  ;;  %v3107_v29 = vadd.f32 %v2982_v45, %v2867_v32  ;;  %v4332_v39 = vpop.f32.mrf.mxu0 }
 0x1ee   : > { %v2872_v22 = vadd.f32 %v4291_v52, %v2616_v26  ;;  %v2755_v12 = vpop.f32.mrf.mxu1  ;;  %v2618_v52 = vadd.f32 %v5774_v49, %v2384_v1 }
 0x1ef   : > { %3340 = vst.msk [vmem:[%s5898_s20 + $0x8] sm:$0xf] %vm3337_vm7, %v3787_v54  ;;  %v3785_v20 = vpack.c.bf16 %v3177_v3, %v3177_v3  ;;  %v3180_v56 = vmax.f32 %v3148_v16, 0.0  ;;  %v3146_v58 = vadd.f32 %v5878_v57, %v3107_v29  ;;  %v2870_v19 = vadd.f32 %v2755_v12, %v2614_v15  ;;  %v2998_v28 = vpop.f32.mrf.mxu0 }
 0x1f0   : > { %v3112_v45 = vadd.f32 %v4331_v11, %v2872_v22  ;;  %v4292_v63 = vpop.f32.mrf.mxu1  ;;  %v2621_v54 = vadd.f32 %v5778_v30, %v2387_v42  ;;  %v2390_v3 = vadd.f32 %v5792_v40, %v5687_v37  ;;  %v2619_v22 = vadd.f32 %v5782_v41, %v2385_v5 }
 0x1f1   : > { %3338 = vst.msk [vmem:[%s5898_s20] sm:$0xf] %vm3337_vm7, %v3785_v20  ;;  %v3788_v34 = vpack.c.bf16 %v3180_v56, %v3180_v56  ;;  %v3178_v2 = vmax.f32 %v3146_v58, 0.0  ;;  %v3110_v51 = vadd.f32 %v2995_v43, %v2870_v19  ;;  %v2873_v61 = vadd.f32 %v4292_v63, %v2617_v27  ;;  %v4335_v35 = vpop.f32.mrf.mxu0 }
 0x1f2   : > { %v3151_v8 = vadd.f32 %v5878_v57, %v3112_v45  ;;  %v2758_v11 = vpop.f32.mrf.mxu1  ;;  %v2388_v12 = vadd.f32 %v5796_v62, %v5690_v10  ;;  %v2624_v19 = vadd.f32 %v5786_v50, %v2390_v3 }
 0x1f3   : > { %3341 = vst.msk [vmem:[%s5898_s20 + $0xc] sm:$0xf] %vm3337_vm7, %v3788_v34  ;;  %v3786_v60 = vpack.c.bf16 %v3178_v2, %v3178_v2  ;;  %v3149_v55 = vadd.f32 %v5878_v57, %v3110_v51  ;;  %v3113_v24 = vadd.f32 %v4332_v39, %v2873_v61  ;;  %v2871_v32 = vadd.f32 %v2758_v11, %v2615_v33  ;;  %v3011_v43 = vpop.f32.mrf.mxu0 }
 0x1f4   : > { %v3183_v26 = vmax.f32 %v3151_v8, 0.0  ;;  %v4295_v15 = vpop.f32.mrf.mxu1  ;;  %v2622_v34 = vadd.f32 %v5790_v59, %v2388_v12  ;;  %v2391_v2 = vadd.f32 %v5800_v31, %v5693_v38  ;;  %v2389_v51 = vadd.f32 %v5804_v46, %v5696_v44 }
 0x1f5   : > { %3339 = vst.msk [vmem:[%s5898_s20 + $0x4] sm:$0xf] %vm3337_vm7, %v3786_v60  ;;  %v3181_v17 = vmax.f32 %v3149_v55, 0.0  ;;  %v3152_v18 = vadd.f32 %v5878_v57, %v3113_v24  ;;  %v3111_v25 = vadd.f32 %v2998_v28, %v2871_v32  ;;  %v2876_v9 = vadd.f32 %v4295_v15, %v2620_v21  ;;  %v4336_v14 = vpop.f32.mrf.mxu0 }
 0x1f6   : > { %v3791_v0 = vpack.c.bf16 %v3183_v26, %v3183_v26  ;;  %v2771_v23 = vpop.f32.mrf.mxu1  ;;  %v2394_v59 = vadd.f32 %v5808_v4, %v5699_v48  ;;  %v2625_v24 = vadd.f32 %v5794_v36, %v2391_v2  ;;  %v2623_v32 = vadd.f32 %v5798_v7, %v2389_v51  ;;  %v6242_v2 = vld [vmem:[#allocation25_spill] sm:$0xff] }
 0x1f7   : > { %v3789_v16 = vpack.c.bf16 %v3181_v17, %v3181_v17  ;;  %v3184_v29 = vmax.f32 %v3152_v18, 0.0  ;;  %v3150_v39 = vadd.f32 %v5878_v57, %v3111_v25  ;;  %v3116_v27 = vadd.f32 %v4335_v35, %v2876_v9  ;;  %v3014_v6 = vpop.f32.mrf.mxu0  ;;  %v6233_v9 = vld [vmem:[#allocation5_spill] sm:$0xff] }
 0x1f8   : > { %3344 = vst.msk [vmem:[%s5898_s20 + $0x18] sm:$0xf] %vm3337_vm7, %v3791_v0  ;;  %v2874_v49 = vadd.f32 %v2771_v23, %v2618_v52  ;;  %v4296_v30 = vpop.f32.mrf.mxu1  ;;  %v2628_v25 = vadd.f32 %v5802_v13, %v2394_v59  ;;  %v6235_v23 = vld [vmem:[#allocation13_spill] sm:$0xff]  ;;  %v6243_v59 = vld [vmem:[#allocation15_spill] sm:$0xff] }
 0x1f9   : > { %3342 = vst.msk [vmem:[%s5898_s20 + $0x10] sm:$0xf] %vm3337_vm7, %v3789_v16  ;;  %v3792_v37 = vpack.c.bf16 %v3184_v29, %v3184_v29  ;;  %v3182_v40 = vmax.f32 %v3150_v39, 0.0  ;;  %v3155_v20 = vadd.f32 %v5878_v57, %v3116_v27  ;;  %v2877_v56 = vadd.f32 %v4296_v30, %v2621_v54  ;;  %v4339_v58 = vpop.f32.mrf.mxu0 }
 0x1fa   : > { %v3114_v28 = vadd.f32 %v3011_v43, %v2874_v49  ;;  %v2774_v41 = vpop.f32.mrf.mxu1  ;;  %v2392_v43 = vadd.f32 %v5812_v47, %v5702_v53  ;;  %v6236_v49 = vld [vmem:[#allocation14_spill] sm:$0xff] }
 0x1fb   : > { %3345 = vst.msk [vmem:[%s5898_s20 + $0x1c] sm:$0xf] %vm3337_vm7, %v3792_v37  ;;  %v3790_v10 = vpack.c.bf16 %v3182_v40, %v3182_v40  ;;  %v3187_v62 = vmax.f32 %v3155_v20, 0.0  ;;  %v3117_v33 = vadd.f32 %v4336_v14, %v2877_v56  ;;  %v2875_v45 = vadd.f32 %v2774_v41, %v2619_v22  ;;  %v3027_v63 = vpop.f32.mrf.mxu0  ;;  %v6234_v14 = vld [vmem:[#allocation19_spill] sm:$0xff]  ;;  %v6237_v37 = vld [vmem:[#allocation9_spill] sm:$0xff]  ;;  %v6238_v40 = vld [vmem:[#allocation20_spill] sm:$0xff] }
 0x1fc   : > { %v3153_v50 = vadd.f32 %v5878_v57, %v3114_v28  ;;  %v4299_v61 = vpop.f32.mrf.mxu1  ;;  %v2395_v52 = vadd.f32 %v6234_v14, %v6233_v9  ;;  %v2626_v16 = vadd.f32 %v6235_v23, %v2392_v43  ;;  %v2393_v20 = vadd.f32 %v6238_v40, %v6237_v37  ;;  %v6239_v56 = vld [vmem:[#allocation11_spill] sm:$0xff]  ;;  %v6254_v37 = vld [vmem:[#allocation8_spill] sm:$0xff]  ;;  %v6255_v40 = vld [vmem:[#allocation33_spill] sm:$0xff] }
 0x1fd   : > { %3343 = vst.msk [vmem:[%s5898_s20 + $0x14] sm:$0xf] %vm3337_vm7, %v3790_v10  ;;  %v3795_v35 = vpack.c.bf16 %v3187_v62, %v3187_v62  ;;  %v3156_v21 = vadd.f32 %v5878_v57, %v3117_v33  ;;  %v3115_v1 = vadd.f32 %v3014_v6, %v2875_v45  ;;  %v2880_v42 = vadd.f32 %v4299_v61, %v2624_v19  ;;  %v4340_v8 = vpop.f32.mrf.mxu0 }
 0x1fe   : > { %v3185_v11 = vmax.f32 %v3153_v50, 0.0  ;;  %v2787_v60 = vpop.f32.mrf.mxu1  ;;  %v2629_v30 = vadd.f32 %v6236_v49, %v2395_v52  ;;  %v6253_v49 = vld [vmem:[#allocation31_spill] sm:$0xff] }
 0x1ff   : > { %3348 = vst.msk [vmem:[%s5898_s20 + $0x28] sm:$0xf] %vm3337_vm7, %v3795_v35  ;;  %v3188_v38 = vmax.f32 %v3156_v21, 0.0  ;;  %v3154_v44 = vadd.f32 %v5878_v57, %v3115_v1  ;;  %v3120_v46 = vadd.f32 %v4339_v58, %v2880_v42  ;;  %v2878_v31 = vadd.f32 %v2787_v60, %v2622_v34  ;;  %v3030_v55 = vpop.f32.mrf.mxu0  ;;  %v6240_v58 = vld [vmem:[#allocation4_spill] sm:$0xff]  ;;  %v6244_v60 = vld [vmem:[#allocation17_spill] sm:$0xff] }
 0x200   : > { %v3793_v48 = vpack.c.bf16 %v3185_v11, %v3185_v11  ;;  %v4300_v4 = vpop.f32.mrf.mxu1  ;;  %v2398_v19 = vadd.f32 %v6240_v58, %v6239_v56  ;;  %v6241_v34 = vld [vmem:[#allocation16_spill] sm:$0xff]  ;;  %v2627_v11 = vadd.f32 %v6243_v59, %v2393_v20  ;;  %v2400_v20 = vadd.f32 %v6255_v40, %v6254_v37 }
 0x201   : > { %v3796_v5 = vpack.c.bf16 %v3188_v38, %v3188_v38  ;;  %v3186_v26 = vmax.f32 %v3154_v44, 0.0  ;;  %v3159_v15 = vadd.f32 %v5878_v57, %v3120_v46  ;;  %v3118_v17 = vadd.f32 %v3027_v63, %v2878_v31  ;;  %v4343_v18 = vpop.f32.mrf.mxu0  ;;  %v6245_v44 = vld [vmem:[#allocation21_spill] sm:$0xff]  ;;  %v6246_v46 = vld [vmem:[#allocation27_spill] sm:$0xff] }
 0x202   : > { %3346 = vst.msk [vmem:[%s5898_s20 + $0x20] sm:$0xf] %vm3337_vm7, %v3793_v48  ;;  %v2881_v36 = vadd.f32 %v4300_v4, %v2625_v24  ;;  %v2790_v7 = vpop.f32.mrf.mxu1  ;;  %v2396_v51 = vadd.f32 %v6242_v2, %v6241_v34  ;;  %v2632_v38 = vadd.f32 %v6244_v60, %v2398_v19  ;;  %v2399_v31 = vadd.f32 %v6246_v46, %v6245_v44  ;;  %v6261_v60 = vld [vmem:[#allocation37_spill] sm:$0xff] }
 0x203   : > { %3349 = vst.msk [vmem:[%s5898_s20 + $0x2c] sm:$0xf] %vm3337_vm7, %v3796_v5  ;;  %v3794_v53 = vpack.c.bf16 %v3186_v26, %v3186_v26  ;;  %v3191_v47 = vmax.f32 %v3159_v15, 0.0  ;;  %v3157_v54 = vadd.f32 %v5878_v57, %v3118_v17  ;;  %v2879_v3 = vadd.f32 %v2790_v7, %v2623_v32  ;;  %v3043_v0 = vpop.f32.mrf.mxu0  ;;  %v6247_v26 = vld [vmem:[#allocation6_spill] sm:$0xff]  ;;  %v6248_v17 = vld [vmem:[#allocation23_spill] sm:$0xff] }
 0x204   : > { %v3121_v29 = vadd.f32 %v4340_v8, %v2881_v36  ;;  %v4303_v13 = vpop.f32.mrf.mxu1  ;;  %v2630_v15 = vadd.f32 %v6247_v26, %v2396_v51  ;;  %v6264_v26 = vld [vmem:[#allocation39_spill] sm:$0xff] }
 0x205   : > { %3347 = vst.msk [vmem:[%s5898_s20 + $0x24] sm:$0xf] %vm3337_vm7, %v3794_v53  ;;  %v3799_v39 = vpack.c.bf16 %v3191_v47, %v3191_v47  ;;  %v3189_v27 = vmax.f32 %v3157_v54, 0.0  ;;  %v3119_v6 = vadd.f32 %v3030_v55, %v2879_v3  ;;  %v2884_v22 = vadd.f32 %v4303_v13, %v2628_v25  ;;  %v4344_v12 = vpop.f32.mrf.mxu0  ;;  %v6250_v54 = vld [vmem:[#allocation7_spill] sm:$0xff] }
 0x206   : > { %v3160_v28 = vadd.f32 %v5878_v57, %v3121_v29  ;;  %v2803_v41 = vpop.f32.mrf.mxu1  ;;  %v2633_v3 = vadd.f32 %v6250_v54, %v2399_v31 }
 0x207   : > { %3352 = vst.msk [vmem:[%s5898_s20 + $0x38] sm:$0xf] %vm3337_vm7, %v3799_v39  ;;  %v3797_v10 = vpack.c.bf16 %v3189_v27, %v3189_v27  ;;  %v3158_v62 = vadd.f32 %v5878_v57, %v3119_v6  ;;  %v3124_v33 = vadd.f32 %v4343_v18, %v2884_v22  ;;  %v2882_v45 = vadd.f32 %v2803_v41, %v2626_v16  ;;  %v3046_v63 = vpop.f32.mrf.mxu0  ;;  %v6249_v18 = vld [vmem:[#allocation29_spill] sm:$0xff]  ;;  %v6251_v6 = vld [vmem:[#allocation26_spill] sm:$0xff] }
 0x208   : > { %v3192_v50 = vmax.f32 %v3160_v28, 0.0  ;;  %v4304_v61 = vpop.f32.mrf.mxu1  ;;  %v2397_v25 = vadd.f32 %v6249_v18, %v6248_v17 }
 0x209   : > { %3350 = vst.msk [vmem:[%s5898_s20 + $0x30] sm:$0xf] %vm3337_vm7, %v3797_v10  ;;  %v3190_v35 = vmax.f32 %v3158_v62, 0.0  ;;  %v3163_v21 = vadd.f32 %v5878_v57, %v3124_v33  ;;  %v3122_v1 = vadd.f32 %v3043_v0, %v2882_v45  ;;  %v2885_v42 = vadd.f32 %v4304_v61, %v2629_v30  ;;  %v4347_v8 = vpop.f32.mrf.mxu0  ;;  %v6256_v33 = vld [vmem:[#allocation10_spill] sm:$0xff]  ;;  %v6257_v45 = vld [vmem:[#allocation35_spill] sm:$0xff] }
 0x20a   : > { %v3800_v55 = vpack.c.bf16 %v3192_v50, %v3192_v50  ;;  %v2806_v24 = vpop.f32.mrf.mxu1  ;;  %v2631_v22 = vadd.f32 %v6251_v6, %v2397_v25  ;;  %v6268_v6 = vld [vmem:[#allocation41_spill] sm:$0xff] }
 0x20b   : > { %v3798_v32 = vpack.c.bf16 %v3190_v35, %v3190_v35  ;;  %v3195_v43 = vmax.f32 %v3163_v21, 0.0  ;;  %v3161_v48 = vadd.f32 %v5878_v57, %v3122_v1  ;;  %v3125_v4 = vadd.f32 %v4344_v12, %v2885_v42  ;;  %v3059_v5 = vpop.f32.mrf.mxu0  ;;  %v6252_v12 = vld [vmem:[#allocation3_spill] sm:$0xff]  ;;  %v6258_v1 = vld [vmem:[#allocation28_spill] sm:$0xff] }
 0x20c   : > { %3353 = vst.msk [vmem:[%s5898_s20 + $0x3c] sm:$0xf] %vm3337_vm7, %v3800_v55  ;;  %v2883_v9 = vadd.f32 %v2806_v24, %v2627_v11  ;;  %v4307_v14 = vpop.f32.mrf.mxu1  ;;  %v2402_v30 = vadd.f32 %v6253_v49, %v6252_v12  ;;  %v6260_v11 = vld [vmem:[#allocation12_spill] sm:$0xff]  ;;  %v6270_v49 = vld [vmem:[#allocation43_spill] sm:$0xff] }
 0x20d   : > { %3351 = vst.msk [vmem:[%s5898_s20 + $0x34] sm:$0xf] %vm3337_vm7, %v3798_v32  ;;  %v3803_v52 = vpack.c.bf16 %v3195_v43, %v3195_v43  ;;  %v3193_v36 = vmax.f32 %v3161_v48, 0.0  ;;  %v3164_v7 = vadd.f32 %v5878_v57, %v3125_v4  ;;  %v2888_v53 = vadd.f32 %v4307_v14, %v2632_v38  ;;  %v4348_v47 = vpop.f32.mrf.mxu0  ;;  %v6262_v48 = vld [vmem:[#allocation32_spill] sm:$0xff] }
 0x20e   : > { %v3123_v0 = vadd.f32 %v3046_v63, %v2883_v9  ;;  %v2819_v23 = vpop.f32.mrf.mxu1  ;;  %v2403_v63 = vadd.f32 %v6257_v45, %v6256_v33  ;;  %v2636_v42 = vadd.f32 %v6258_v1, %v2402_v30  ;;  %v2401_v38 = vadd.f32 %v6261_v60, %v6260_v11  ;;  %v6269_v12 = vld [vmem:[#allocation24_spill] sm:$0xff] }
 0x20f   : > { %3356 = vst.msk [vmem:[%s5898_s20 + $0x48] sm:$0xf] %vm3337_vm7, %v3803_v52  ;;  %v3801_v16 = vpack.c.bf16 %v3193_v36, %v3193_v36  ;;  %v3196_v29 = vmax.f32 %v3164_v7, 0.0  ;;  %v3128_v13 = vadd.f32 %v4347_v8, %v2888_v53  ;;  %v2886_v39 = vadd.f32 %v2819_v23, %v2630_v15  ;;  %v3062_v27 = vpop.f32.mrf.mxu0  ;;  %v6259_v8 = vld [vmem:[#allocation30_spill] sm:$0xff] }
 0x210   : > { %v3162_v56 = vadd.f32 %v5878_v57, %v3123_v0  ;;  %v4308_v58 = vpop.f32.mrf.mxu1  ;;  %v2634_v59 = vadd.f32 %v6259_v8, %v2400_v20  ;;  %v2637_v4 = vadd.f32 %v6262_v48, %v2403_v63  ;;  %v6265_v7 = vld [vmem:[#allocation34_spill] sm:$0xff]  ;;  %v2407_v30 = vadd.f32 %v6270_v49, %v6269_v12 }
 0x211   : > { %3354 = vst.msk [vmem:[%s5898_s20 + $0x40] sm:$0xf] %vm3337_vm7, %v3801_v16  ;;  %v3804_v19 = vpack.c.bf16 %v3196_v29, %v3196_v29  ;;  %v3167_v28 = vadd.f32 %v5878_v57, %v3128_v13  ;;  %v3126_v41 = vadd.f32 %v3059_v5, %v2886_v39  ;;  %v2889_v10 = vadd.f32 %v4308_v58, %v2633_v3  ;;  %v4351_v62 = vpop.f32.mrf.mxu0  ;;  %v6263_v5 = vld [vmem:[#allocation18_spill] sm:$0xff]  ;;  %v6266_v13 = vld [vmem:[#allocation36_spill] sm:$0xff] }
 0x212   : > { %v3194_v34 = vmax.f32 %v3162_v56, 0.0  ;;  %v2822_v2 = vpop.f32.mrf.mxu1  ;;  %v2406_v15 = vadd.f32 %v6264_v26, %v6263_v5  ;;  %v2635_v53 = vadd.f32 %v6265_v7, %v2401_v38  ;;  %v6275_v38 = vld [vmem:[#allocation42_spill] sm:$0xff] }
 0x213   : > { %3357 = vst.msk [vmem:[%s5898_s20 + $0x4c] sm:$0xf] %vm3337_vm7, %v3804_v19  ;;  %v3199_v51 = vmax.f32 %v3167_v28, 0.0  ;;  %v3165_v50 = vadd.f32 %v5878_v57, %v3126_v41  ;;  %v3129_v61 = vadd.f32 %v4348_v47, %v2889_v10  ;;  %v2887_v35 = vadd.f32 %v2822_v2, %v2631_v22  ;;  %v3075_v21 = vpop.f32.mrf.mxu0  ;;  %v6271_v28 = vld [vmem:[#allocation2_spill] sm:$0xff]  ;;  %v6272_v41 = vld [vmem:[#allocation44_spill] sm:$0xff] }
 0x214   : > { %v3802_v44 = vpack.c.bf16 %v3194_v34, %v3194_v34  ;;  %v4311_v46 = vpop.f32.mrf.mxu1  ;;  %v2640_v39 = vadd.f32 %v6266_v13, %v2406_v15  ;;  %v2405_v10 = vadd.f32 %v6272_v41, %v6271_v28 }
 0x215   : > { %v3807_v31 = vpack.c.bf16 %v3199_v51, %v3199_v51  ;;  %v3197_v55 = vmax.f32 %v3165_v50, 0.0  ;;  %v3168_v24 = vadd.f32 %v5878_v57, %v3129_v61  ;;  %v3127_v32 = vadd.f32 %v3062_v27, %v2887_v35  ;;  %v4352_v43 = vpop.f32.mrf.mxu0  ;;  %v6267_v27 = vld [vmem:[#allocation22_spill] sm:$0xff]  ;;  %v6274_v35 = vld [vmem:[#allocation40_spill] sm:$0xff] }
 0x216   : > { %3355 = vst.msk [vmem:[%s5898_s20 + $0x44] sm:$0xf] %vm3337_vm7, %v3802_v44  ;;  %v2892_v17 = vadd.f32 %v4311_v46, %v2636_v42  ;;  %v2835_v18 = vpop.f32.mrf.mxu1  ;;  %v2404_v22 = vadd.f32 %v6268_v6, %v6267_v27  ;;  %v6273_v50 = vld [vmem:[#allocation38_spill] sm:$0xff]  ;;  %v2639_v44 = vadd.f32 %v6275_v38, %v2405_v10 }
 0x217   : > { %3360 = vst.msk [vmem:[%s5898_s20 + $0x58] sm:$0xf] %vm3337_vm7, %v3807_v31  ;;  %v3805_v25 = vpack.c.bf16 %v3197_v55, %v3197_v55  ;;  %v3200_v9 = vmax.f32 %v3168_v24, 0.0  ;;  %v3166_v14 = vadd.f32 %v5878_v57, %v3127_v32  ;;  %v2890_v52 = vadd.f32 %v2835_v18, %v2634_v59  ;;  %v3078_v36 = vpop.f32.mrf.mxu0 }
 0x218   : > { %v3132_v47 = vadd.f32 %v4351_v62, %v2892_v17  ;;  %v4312_v54 = vpop.f32.mrf.mxu1  ;;  %v2638_v61 = vadd.f32 %v6273_v50, %v2404_v22 }
 0x219   : > { %3358 = vst.msk [vmem:[%s5898_s20 + $0x50] sm:$0xf] %vm3337_vm7, %v3805_v25  ;;  %v3808_v3 = vpack.c.bf16 %v3200_v9, %v3200_v9  ;;  %v3198_v0 = vmax.f32 %v3166_v14, 0.0  ;;  %v3130_v23 = vadd.f32 %v3075_v21, %v2890_v52  ;;  %v2893_v16 = vadd.f32 %v4312_v54, %v2637_v4  ;;  %v4355_v29 = vpop.f32.mrf.mxu0 }
 0x21a   : > { %v3171_v37 = vadd.f32 %v5878_v57, %v3132_v47  ;;  %v2838_v40 = vpop.f32.mrf.mxu1  ;;  %v2641_v21 = vadd.f32 %v6274_v35, %v2407_v30 }
 0x21b   : > { %3361 = vst.msk [vmem:[%s5898_s20 + $0x5c] sm:$0xf] %vm3337_vm7, %v3808_v3  ;;  %v3806_v20 = vpack.c.bf16 %v3198_v0, %v3198_v0  ;;  %v3169_v56 = vadd.f32 %v5878_v57, %v3130_v23  ;;  %v3133_v58 = vadd.f32 %v4352_v43, %v2893_v16  ;;  %v2891_v19 = vadd.f32 %v2838_v40, %v2635_v53  ;;  %v3091_v45 = vpop.f32.mrf.mxu0 }
 0x21c   : > { %v3203_v62 = vmax.f32 %v3171_v37, 0.0  ;;  %v4315_v33 = vpop.f32.mrf.mxu1 }
 0x21d   : > { %3359 = vst.msk [vmem:[%s5898_s20 + $0x54] sm:$0xf] %vm3337_vm7, %v3806_v20  ;;  %v3201_v63 = vmax.f32 %v3169_v56, 0.0  ;;  %v3172_v34 = vadd.f32 %v5878_v57, %v3133_v58  ;;  %v3131_v2 = vadd.f32 %v3078_v36, %v2891_v19  ;;  %v2896_v51 = vadd.f32 %v4315_v33, %v2640_v39  ;;  %v4356_v55 = vpop.f32.mrf.mxu0 }
 0x21e   : > { %v3811_v1 = vpack.c.bf16 %v3203_v62, %v3203_v62  ;;  %v2851_v42 = vpop.f32.mrf.mxu1 }
 0x21f   : > { %v3809_v8 = vpack.c.bf16 %v3201_v63, %v3201_v63  ;;  %v3204_v59 = vmax.f32 %v3172_v34, 0.0  ;;  %v3170_v11 = vadd.f32 %v5878_v57, %v3131_v2  ;;  %v3136_v60 = vadd.f32 %v4355_v29, %v2896_v51  ;;  %v3094_v9 = vpop.f32.mrf.mxu0 }
 0x220   : > { %3364 = vst.msk [vmem:[%s5898_s20 + $0x68] sm:$0xf] %vm3337_vm7, %v3811_v1  ;;  %v2894_v46 = vadd.f32 %v2851_v42, %v2638_v61  ;;  %v4316_v31 = vpop.f32.mrf.mxu1 }
 0x221   : > { %3362 = vst.msk [vmem:[%s5898_s20 + $0x60] sm:$0xf] %vm3337_vm7, %v3809_v8  ;;  %v3812_v24 = vpack.c.bf16 %v3204_v59, %v3204_v59  ;;  %v3202_v32 = vmax.f32 %v3170_v11, 0.0  ;;  %v3175_v43 = vadd.f32 %v5878_v57, %v3136_v60  ;;  %v2897_v48 = vadd.f32 %v4316_v31, %v2641_v21 }
 0x222   : > { %v3134_v4 = vadd.f32 %v3091_v45, %v2894_v46  ;;  %v2854_v5 = vpop.f32.mrf.mxu1 }
 0x223   : > { %3365 = vst.msk [vmem:[%s5898_s20 + $0x6c] sm:$0xf] %vm3337_vm7, %v3812_v24  ;;  %v3810_v26 = vpack.c.bf16 %v3202_v32, %v3202_v32  ;;  %v3207_v15 = vmax.f32 %v3175_v43, 0.0  ;;  %v3137_v17 = vadd.f32 %v4356_v55, %v2897_v48  ;;  %v2895_v18 = vadd.f32 %v2854_v5, %v2639_v44 }
 0x224   : > { %v3173_v25 = vadd.f32 %v5878_v57, %v3134_v4 }
 0x225   : > { %3363 = vst.msk [vmem:[%s5898_s20 + $0x64] sm:$0xf] %vm3337_vm7, %v3810_v26  ;;  %v3815_v14 = vpack.c.bf16 %v3207_v15, %v3207_v15  ;;  %v3176_v52 = vadd.f32 %v5878_v57, %v3137_v17  ;;  %v3135_v36 = vadd.f32 %v3094_v9, %v2895_v18 }
 0x226   : > { %v3205_v7 = vmax.f32 %v3173_v25, 0.0 }
 0x227   : > { %3368 = vst.msk [vmem:[%s5898_s20 + $0x78] sm:$0xf] %vm3337_vm7, %v3815_v14  ;;  %v3208_v53 = vmax.f32 %v3176_v52, 0.0  ;;  %v3174_v47 = vadd.f32 %v5878_v57, %v3135_v36 }
 0x228   : > { %v3813_v54 = vpack.c.bf16 %v3205_v7, %v3205_v7 }
 0x229   : > { %v3816_v3 = vpack.c.bf16 %v3208_v53, %v3208_v53  ;;  %v3206_v0 = vmax.f32 %v3174_v47, 0.0 }
 0x22a   : > { %3366 = vst.msk [vmem:[%s5898_s20 + $0x70] sm:$0xf] %vm3337_vm7, %v3813_v54 }
 0x22b   : > { %3369 = vst.msk [vmem:[%s5898_s20 + $0x7c] sm:$0xf] %vm3337_vm7, %v3816_v3  ;;  %v3814_v23 = vpack.c.bf16 %v3206_v0, %v3206_v0 }
 0x22d   : > { %3367 = vst.msk [vmem:[%s5898_s20 + $0x74] sm:$0xf] %vm3337_vm7, %v3814_v23 }
 0x22e PF: > { %s13_s12 = sadd.s32 1, %s4439_s12  }
 0x22f   : > { %p10_p4 = scmp.ge.s32.totalorder %s13_s12, 6  }
 0x231   :  { %12 = sbr.rel (!%p10_p4) target bundleno = 1 (0x1), region = 70 }

// kernel: combined_loss.15
= control target key start
LH: loop header
LB: loop body
LE: loop exit
PB: predicated region body
PF: predicated region fallthrough
CT: control target
= control target key end

     0   :  { %s2122_s12 = smov 0   ;;  %s2588_s0 = inlined_call_operand.vmem [shape: bf16[4,10,10,64], index: 0, kind: input, shape index: {}]   ;;  %s2589_s1 = inlined_call_operand.vmem [shape: bf16[9,64,128], index: 1, kind: input, shape index: {}]   ;;  %s2590_s2 = inlined_call_operand.vmem [shape: f32[1,128], index: 2, kind: input, shape index: {}]   ;;  %s2591_s3 = inlined_call_operand.vmem [shape: bf16[4,64,128], index: 3, kind: output, shape index: {}]  }
   0x1 LB: > { %s1592_s13 = sadd.s32 4294967295, %s2100_s12   ;;  %p1596_p0 = scmp.ge.s32.totalorder %s2100_s12, 1  ;;  %s2100_s12 = sphi %s2122_s12, %s13_s12  }
   0x2   : > { %p137_p1 = scmp.lt.s32.totalorder %s2100_s12, 5 }
   0x4   : > { %p138_p2 = pnand %p1596_p0, %p137_p1 }
   0x6   : > { %141 = sbr.rel (%p138_p2) target bundleno = 311 (0x137), region = 32 }
   0xb   : > { %v2049_v0 = vld [vmem:[%s2589_s1 + $0x38] sm:$0xff]   ;;  %p161_p3 = scmp.lt.s32.totalorder %s1592_s13, 3  ;;  %v2051_v2 = vld [vmem:[%s2589_s1 + $0x30] sm:$0xff]   ;;  %v2053_v4 = vld [vmem:[%s2589_s1 + $0x28] sm:$0xff]   ;;  %vm360_vm0 = vcmask 523264   ;;  %vm567_vm4 = vcmask 1042432  }
   0xc   : > { %v2050_v1 = vld [vmem:[%s2589_s1 + $0x18] sm:$0xff]   ;;  %1888 = vmatprep.subr.bf16.mxu0 %v2049_v0  ;;  %v2052_v3 = vld [vmem:[%s2589_s1 + $0x10] sm:$0xff]   ;;  %v2054_v5 = vld [vmem:[%s2589_s1 + $0x8] sm:$0xff]   ;;  %vm200_vm1 = vsmask.f32 3328  ;;  %vm568_vm5 = vcmask 1046532  }
   0xd   : > { %s2607_s13 = smov (!%p161_p3, %s1592_s13), 3  ;;  %1904 = vmatprep.subr.bf16.mxu1 %v2050_v1  ;;  %1889 = vmatpush3.bf16.msra.mxu0 %v2049_v0  ;;  %v2055_v6 = vld [vmem:[%s2589_s1 + $0x20] sm:$0xff]   ;;  %v2196_v20 = vld [vmem:[%s2589_s1 + $0x58] sm:$0xff]   ;;  %vm201_vm2 = vsmask.f32 7440  ;;  %v2062_v59 = vld [vmem:[%s2589_s1 + $0x70] sm:$0xff]  }
   0xe   : > { %1905 = vmatpush3.bf16.msra.mxu1 %v2050_v1  ;;  %1890 = vmatprep.subr.bf16.mxu0 %v2051_v2  ;;  %s2040_s24 = smul.u32 80, %s2607_s13  ;;  %v2056_v9 = vld [vmem:[%s2589_s1] sm:$0xff]   ;;  %v2060_v33 = vld [vmem:[%s2589_s1 + $0x78] sm:$0xff]   ;;  %vm2219_vm3 = vmor %vm200_vm1, %vm201_vm2  ;;  %s1784_s18 = sshll.u32 %s2607_s13, 5 }
   0xf   : > { %1906 = vmatprep.subr.bf16.mxu1 %v2052_v3  ;;  %vm2314_vm6 = vmor %vm567_vm4, %vm568_vm5  ;;  %v2093_v39 = vld [vmem:[%s2589_s1 + $0x100] sm:$0xff]   ;;  %s170_s21 = scalar_lea.vmem %s2591_s3, %s1784_s18 }
  0x10   : > { %s2154_s29 = scalar_lea.vmem %s2588_s0, %s2040_s24 }
  0x11   : > { %1891 = vmatpush3.bf16.msra.mxu0 %v2051_v2  ;;  %v2160_v7 = vld [vmem:[%s2154_s29] sm:$0xf]  ;;  %v2163_v8 = vld [vmem:[%s2154_s29 + $0x8] sm:$0xf]  ;;  %v2173_v13 = vld [vmem:[%s2154_s29 + $0x4] sm:$0x1] }
  0x12   : > { %1907 = vmatpush3.bf16.msra.mxu1 %v2052_v3  ;;  %1892 = vmatprep.subr.bf16.mxu0 %v2053_v4  ;;  %v204_v10 = vshrl.u32 %v2160_v7, 16  ;;  %v207_v11 = vshll.u32 %v2160_v7, 16  ;;  %v1620_v12 = vcombine.low %v2160_v7, %v2163_v8  ;;  %v2176_v14 = vld [vmem:[%s2154_s29 + $0xc] sm:$0x1]  ;;  %v2179_v15 = vld [vmem:[%s2154_s29 + $0x10] sm:$0xf] }
  0x13   : > { %1908 = vmatprep.subr.bf16.mxu1 %v2054_v5  ;;  %v2182_v16 = vld [vmem:[%s2154_s29 + $0x18] sm:$0xf]  ;;  %v1632_v17 = vrot.slane %v2160_v7, 9  ;;  %v2187_v18 = vld [vmem:[%s2154_s29 + $0x14] sm:$0x1]  ;;  %v213_v25 = vshll.u32 %v2173_v13, 16 }
  0x14   : > { %1912 = vmatprep.mubr.msk.bf16.mxu1 %vm360_vm0, %v1620_v12  ;;  %v2191_v19 = vcombine.low %v2179_v15, %v2182_v16  ;;  %v2199_v21 = vld [vmem:[%s2154_s29 + $0x1c] sm:$0x1]  ;;  %v206_v22 = vrot.slane %v204_v10, 4  ;;  %v209_v23 = vrot.slane %v207_v11, 5  ;;  %v2202_v24 = vld [vmem:[%s2154_s29 + $0x20] sm:$0xf] }
  0x15   : > { %1893 = vmatpush3.bf16.msra.mxu0 %v2053_v4  ;;  %v218_v26 = vshrl.u32 %v2163_v8, 16  ;;  %v221_v27 = vshll.u32 %v2163_v8, 16  ;;  %v227_v28 = vshll.u32 %v2176_v14, 16  ;;  %v232_v30 = vshrl.u32 %v2179_v15, 16  ;;  %v2215_v34 = vld [vmem:[%s2154_s29 + $0x24] sm:$0x1] }
  0x16   : > { %1909 = vmatpush3.bf16.msra.mxu1 %v2054_v5  ;;  %1894 = vmatprep.subr.bf16.mxu0 %v2055_v6  ;;  %v210_v29 = vor.u32 %v209_v23, %v206_v22  ;;  %v235_v31 = vshll.u32 %v2179_v15, 16  ;;  %v241_v32 = vshll.u32 %v2187_v18, 16  ;;  %v215_v35 = vrot.slane %v213_v25, 5  ;;  %v2245_v3 = vld [vmem:[%s2154_s29 + $0x28] sm:$0xf]  ;;  %v2061_v23 = vld [vmem:[%s2589_s1 + $0x50] sm:$0xff]  }
  0x17   : > { %1910 = vmatprep.subr.bf16.mxu1 %v2056_v9  ;;  %v220_v36 = vrot.slane %v218_v26, 4  ;;  %v223_v37 = vrot.slane %v221_v27, 5  ;;  %v229_v38 = vrot.slane %v227_v28, 5  ;;  %v234_v41 = vrot.slane %v232_v30, 4  ;;  %v2248_v4 = vld [vmem:[%s2154_s29 + $0x2c] sm:$0x1] }
  0x18   : > { %v211_v40 = vrot.slane %v210_v29, 4  ;;  %v237_v42 = vrot.slane %v235_v31, 5  ;;  %v243_v43 = vrot.slane %v241_v32, 5  ;;  %v246_v45 = vshrl.u32 %v2182_v16, 16  ;;  %v2066_v5 = vld [vmem:[%s2589_s1 + $0x68] sm:$0xff]  }
  0x19   : > { %1895 = vmatpush3.bf16.msra.mxu0 %v2055_v6  ;;  %v224_v44 = vor.u32 %v223_v37, %v220_v36  ;;  %v249_v46 = vshll.u32 %v2182_v16, 16  ;;  %v255_v47 = vshll.u32 %v2199_v21, 16  ;;  %v260_v49 = vshrl.u32 %v2202_v24, 16  ;;  %v2258_v11 = vld [vmem:[%s2154_s29 + $0x30] sm:$0xf] }
  0x1a   : > { %1911 = vmatpush3.bf16.msra.mxu1 %v2056_v9  ;;  %1920 = vmatprep.subr.bf16.mxu0 %v2196_v20  ;;  %v238_v48 = vor.u32 %v237_v42, %v234_v41  ;;  %v263_v50 = vshll.u32 %v2202_v24, 16  ;;  %v216_v51 = vsel %vm2219_vm3, %v211_v40, %v215_v35  ;;  %v248_v53 = vrot.slane %v246_v45, 4  ;;  %v2271_v26 = vld [vmem:[%s2154_s29 + $0x38] sm:$0xf]  ;;  %v2280_v30 = vld [vmem:[%s2154_s29 + $0x34] sm:$0x1] }
  0x1b   : > { %1936 = vmatprep.subr.bf16.mxu1 %v2060_v33  ;;  %v225_v52 = vrot.slane %v224_v44, 4  ;;  %v251_v54 = vrot.slane %v249_v46, 5  ;;  %v262_v56 = vrot.slane %v260_v49, 4  ;;  %v269_v58 = vshll.u32 %v2215_v34, 16  ;;  %v2290_v35 = vld [vmem:[%s2154_s29 + $0x3c] sm:$0x1] }
  0x1c   : > { %v239_v55 = vrot.slane %v238_v48, 4  ;;  %v265_v57 = vrot.slane %v263_v50, 5  ;;  %v257_v62 = vrot.slane %v255_v47, 5  ;;  %v572_v63 = vrot.slane %v2173_v13, 5  ;;  %v2068_v44 = vld [vmem:[%s2589_s1 + $0x60] sm:$0xff]   ;;  %v2065_v46 = vld [vmem:[%s2589_s1 + $0x48] sm:$0xff]  }
  0x1d   : > { %1913 = vmatmul.mubr.msk.bf16.vlgmr.msra.gmra.mxu1 %vm360_vm0, %v2191_v19  ;;  %v2239_v60 = vsel %vm2219_vm3, %v225_v52, %v229_v38  ;;  %v252_v61 = vor.u32 %v251_v54, %v248_v53  ;;  %v576_v2 = vrot.slane %v2176_v14, 5  ;;  %v271_v10 = vrot.slane %v269_v58, 5  ;;  %v2072_v53 = vld [vmem:[%s2589_s1 + $0xb8] sm:$0xff]  }
  0x1e   : > { %1937 = vmatpush3.bf16.msra.mxu1 %v2060_v33  ;;  %v266_v0 = vor.u32 %v265_v57, %v262_v56  ;;  %v1608_v1 = vcombine.low %v216_v51, %v2239_v60  ;;  %v2255_v6 = vsel %vm2219_vm3, %v239_v55, %v243_v43  ;;  %v1634_v12 = vrot.slane %v2179_v15, 9 }
  0x1f   : > { %1938 = vmatprep.subr.bf16.mxu1 %v2062_v59  ;;  %v253_v9 = vrot.slane %v252_v61, 4  ;;  %v580_v22 = vrot.slane %v2187_v18, 5  ;;  %v2268_v25 = vcombine.low %v2202_v24, %v2245_v3  ;;  %v274_v28 = vshrl.u32 %v2245_v3, 16 }
  0x20   : > { %1896 = vmatprep.mubr.msk.bf16.mxu0 %vm360_vm0, %v1608_v1  ;;  %v277_v29 = vshll.u32 %v2245_v3, 16  ;;  %v267_v31 = vrot.slane %v266_v0, 4  ;;  %v283_v33 = vshll.u32 %v2248_v4, 16  ;;  %v1668_v38 = vcombine.low %v2163_v8, %v2179_v15 }
  0x21   : > { %v2275_v27 = vsel %vm2219_vm3, %v253_v9, %v257_v62  ;;  %1916 = vmatprep.mubr.msk.bf16.mxu1 %vm360_vm0, %v2268_v25  ;;  %v276_v36 = vrot.slane %v274_v28, 4  ;;  %v2298_v41 = vcombine.low %v2258_v11, %v2271_v26  ;;  %v288_v42 = vshrl.u32 %v2258_v11, 16  ;;  %v2074_v28 = vld [vmem:[%s2589_s1 + $0xb0] sm:$0xff]  }
  0x22   : > { %1939 = vmatpush3.bf16.msra.mxu1 %v2062_v59  ;;  %v2284_v32 = vcombine.low %v2255_v6, %v2275_v27  ;;  %v279_v37 = vrot.slane %v277_v29, 5  ;;  %v285_v40 = vrot.slane %v283_v33, 5  ;;  %v291_v43 = vshll.u32 %v2258_v11, 16 }
  0x23   : > { %1940 = vmatprep.subr.bf16.mxu1 %v2066_v5  ;;  %v297_v47 = vshll.u32 %v2280_v30, 16  ;;  %v302_v48 = vshrl.u32 %v2271_v26, 16  ;;  %v305_v49 = vshll.u32 %v2271_v26, 16  ;;  %v311_v52 = vshll.u32 %v2290_v35, 16 }
  0x24   : > { %1897 = vmatmul.mubr.msk.bf16.vlgmr.msra.gmra.mxu0 %vm360_vm0, %v2284_v32  ;;  %v280_v45 = vor.u32 %v279_v37, %v276_v36  ;;  %v293_v51 = vrot.slane %v291_v43, 5  ;;  %v2326_v54 = vsel %vm2219_vm3, %v267_v31, %v271_v10  ;;  %v1633_v61 = vrot.slane %v2163_v8, 9  ;;  %v2067_v10 = vld [vmem:[%s2589_s1 + $0x40] sm:$0xff]  }
  0x25   : > { %1921 = vmatpush3.bf16.msra.mxu0 %v2196_v20  ;;  %1917 = vmatmul.mubr.msk.bf16.gmra.mxu1 %vm360_vm0, %v2298_v41  ;;  %v290_v20 = vrot.slane %v288_v42, 4  ;;  %v304_v56 = vrot.slane %v302_v48, 4  ;;  %v307_v57 = vrot.slane %v305_v49, 5  ;;  %v299_v59 = vrot.slane %v297_v47, 5  ;;  %v2073_v48 = vld [vmem:[%s2589_s1 + $0x90] sm:$0xff]  }
  0x26   : > { %1941 = vmatpush3.bf16.msra.mxu1 %v2066_v5  ;;  %1922 = vmatprep.subr.bf16.mxu0 %v2061_v23  ;;  %v281_v55 = vrot.slane %v280_v45, 4  ;;  %v313_v1 = vrot.slane %v311_v52, 5  ;;  %v573_v5 = vsel %vm2314_vm6, %v1632_v17, %v572_v63  ;;  %v577_v13 = vsel %vm2314_vm6, %v1633_v61, %v576_v2  ;;  %v2077_v52 = vld [vmem:[%s2589_s1 + $0x88] sm:$0xff]  }
  0x27   : > { %1942 = vmatprep.subr.bf16.mxu1 %v2068_v44  ;;  %1944 = vmatprep.mubr.msk.bf16.mxu1 %vm360_vm0, %v1668_v38  ;;  %v294_v58 = vor.u32 %v293_v51, %v290_v20  ;;  %v308_v0 = vor.u32 %v307_v57, %v304_v56  ;;  %v1669_v7 = vcombine.low %v2182_v16, %v2202_v24  ;;  %v1635_v17 = vrot.slane %v2182_v16, 9  ;;  %v2071_v16 = vld [vmem:[%s2589_s1 + $0x98] sm:$0xff]   ;;  %v2444_v57 = vld [vmem:[%s2154_s29 + $0x48] sm:$0xf] }
  0x28   : > { %v2332_v62 = vsel %vm2219_vm3, %v281_v55, %v285_v40  ;;  %v584_v63 = vrot.slane %v2199_v21, 5  ;;  %v1670_v29 = vcombine.low %v2245_v3, %v2258_v11  ;;  %v1648_v2 = vcombine.low %v573_v5, %v577_v13  ;;  %v2384_v40 = vld [vmem:[%s2154_s29 + $0x40] sm:$0xf]  ;;  %v2084_v55 = vld [vmem:[%s2589_s1 + $0xf0] sm:$0xff]  }
  0x29   : > { %1923 = vmatpush3.bf16.msra.mxu0 %v2061_v23  ;;  %v2342_v9 = vcombine.low %v2326_v54, %v2332_v62  ;;  %v295_v8 = vrot.slane %v294_v58, 4  ;;  %v309_v23 = vrot.slane %v308_v0, 4  ;;  %v1636_v31 = vrot.slane %v2202_v24, 9  ;;  %v2078_v24 = vld [vmem:[%s2589_s1 + $0xa8] sm:$0xff]   ;;  %v2079_v5 = vld [vmem:[%s2589_s1 + $0x80] sm:$0xff]  }
  0x2a   : > { %1943 = vmatpush3.bf16.msra.mxu1 %v2068_v44  ;;  %1924 = vmatprep.subr.bf16.mxu0 %v2065_v46  ;;  %v588_v33 = vrot.slane %v2215_v34, 5  ;;  %v1637_v37 = vrot.slane %v2245_v3, 9  ;;  %v592_v38 = vrot.slane %v2248_v4, 5  ;;  %v581_v34 = vsel %vm2314_vm6, %v1634_v12, %v580_v22  ;;  %v2080_v44 = vld [vmem:[%s2589_s1 + $0xa0] sm:$0xff]  }
  0x2b   : > { %1968 = vmatprep.subr.bf16.mxu1 %v2072_v53  ;;  %1900 = vmatprep.mubr.msk.bf16.mxu0 %vm360_vm0, %v2342_v9  ;;  %v2364_v14 = vsel %vm2219_vm3, %v295_v8, %v299_v59  ;;  %v2371_v21 = vsel %vm2219_vm3, %v309_v23, %v313_v1  ;;  %v585_v3 = vsel %vm2314_vm6, %v1635_v17, %v584_v63  ;;  %v1638_v22 = vrot.slane %v2258_v11, 9  ;;  %v2082_v11 = vld [vmem:[%s2589_s1 + $0xf8] sm:$0xff]  }
  0x2c   : > { %v2377_v36 = vcombine.low %v2364_v14, %v2371_v21  ;;  %v589_v4 = vsel %vm2314_vm6, %v1636_v31, %v588_v33  ;;  %v593_v42 = vsel %vm2314_vm6, %v1637_v37, %v592_v38  ;;  %v1671_v18 = vcombine.low %v2271_v26, %v2384_v40  ;;  %v2081_v17 = vld [vmem:[%s2589_s1 + $0xd8] sm:$0xff]   ;;  %v2083_v38 = vld [vmem:[%s2589_s1 + $0xd0] sm:$0xff]  }
  0x2d   : > { %1925 = vmatpush3.bf16.msra.mxu0 %v2065_v46  ;;  %1945 = vmatmul.mubr.msk.bf16.vlgmr.msra.gmra.mxu1 %vm360_vm0, %v1669_v7  ;;  %v1709_v15 = vcombine.low %v577_v13, %v581_v34  ;;  %v2406_v12 = vcombine.low %v581_v34, %v585_v3  ;;  %v596_v43 = vrot.slane %v2280_v30, 5  ;;  %v2413_v45 = vcombine.low %v589_v4, %v593_v42 }
  0x2e   : > { %1926 = vmatprep.subr.bf16.mxu0 %v2067_v10  ;;  %1969 = vmatpush3.bf16.msra.mxu1 %v2072_v53  ;;  %v1639_v46 = vrot.slane %v2271_v26, 9  ;;  %v600_v47 = vrot.slane %v2290_v35, 5  ;;  %v189_v26 = vld [vmem:[%s2154_s29 + $0x44] sm:$0x1]  ;;  %v857_v49 = vshrl.u32 %v2384_v40, 16  ;;  %v860_v20 = vshll.u32 %v2384_v40, 16 }
  0x2f   : > { %1948 = vmatprep.mubr.msk.bf16.mxu1 %vm360_vm0, %v1670_v29  ;;  %1901 = vmatmul.mubr.msk.bf16.gmra.mxu0 %vm360_vm0, %v2377_v36  ;;  %v597_v30 = vsel %vm2314_vm6, %v1638_v22, %v596_v43  ;;  %v1710_v51 = vcombine.low %v585_v3, %v589_v4  ;;  %v1700_v53 = vrot.slane %v2384_v40, 9  ;;  %v996_v58 = vrot.slane %v189_v26, 5  ;;  %v2090_v4 = vld [vmem:[%s2589_s1 + $0x110] sm:$0xff]  }
  0x30   : > { %1970 = vmatprep.subr.bf16.mxu1 %v2074_v28  ;;  %1928 = vmatprep.mubr.msk.bf16.mxu0 %vm360_vm0, %v1648_v2  ;;  %v601_v35 = vsel %vm2314_vm6, %v1639_v46, %v600_v47  ;;  %v1711_v56 = vcombine.low %v593_v42, %v597_v30  ;;  %v1688_v61 = vcombine.low %v2239_v60, %v2255_v6  ;;  %v859_v0 = vrot.slane %v857_v49, 4  ;;  %v2086_v6 = vld [vmem:[%s2589_s1 + $0xe8] sm:$0xff]   ;;  %v2088_v2 = vld [vmem:[%s2589_s1 + $0xe0] sm:$0xff]  }
  0x31   : > { %1927 = vmatpush3.bf16.msra.mxu0 %v2067_v10  ;;  %v2446_v59 = vcombine.low %v597_v30, %v601_v35  ;;  %v862_v1 = vrot.slane %v860_v20, 5  ;;  %v2457_v8 = vsel %vm2314_vm6, %v1700_v53, %v996_v58  ;;  %v1234_v10 = vshrl.u32 %v2444_v57, 16  ;;  %v2087_v42 = vld [vmem:[%s2589_s1 + $0xc0] sm:$0xff]  }
  0x32   : > { %1952 = vmatprep.subr.bf16.mxu0 %v2071_v16  ;;  %1971 = vmatpush3.bf16.msra.mxu1 %v2074_v28  ;;  %v1237_v60 = vshll.u32 %v2444_v57, 16  ;;  %v866_v7 = vshll.u32 %v189_v26, 16  ;;  %v1712_v63 = vcombine.low %v601_v35, %v2457_v8  ;;  %v1689_v29 = vcombine.low %v2275_v27, %v2326_v54 }
  0x33   : > { %1972 = vmatprep.subr.bf16.mxu1 %v2078_v24  ;;  %v863_v13 = vor.u32 %v862_v1, %v859_v0  ;;  %v1236_v23 = vrot.slane %v1234_v10, 4  ;;  %v1690_v31 = vcombine.low %v2332_v62, %v2364_v14  ;;  %v2089_v62 = vld [vmem:[%s2589_s1 + $0x118] sm:$0xff]   ;;  %v1729_v50 = vcombine.low %v2384_v40, %v2444_v57 }
  0x34   : > { %v1239_v28 = vrot.slane %v1237_v60, 5  ;;  %v868_v37 = vrot.slane %v866_v7, 5 }
  0x35   : > { %1949 = vmatmul.mubr.msk.bf16.gmra.mxu1 %vm360_vm0, %v1671_v18  ;;  %v864_v33 = vrot.slane %v863_v13, 4  ;;  %v2091_v18 = vld [vmem:[%s2589_s1 + $0x108] sm:$0xff]  }
  0x36   : > { %1973 = vmatpush3.bf16.msra.mxu1 %v2078_v24  ;;  %1976 = vmatprep.mubr.msk.bf16.mxu1 %vm360_vm0, %v1709_v15  ;;  %v1240_v27 = vor.u32 %v1239_v28, %v1236_v23  ;;  %v1755_v15 = vrot.slane %v2444_v57, 9 }
  0x37   : > { %1929 = vmatmul.mubr.msk.bf16.vlgmr.msra.gmra.mxu0 %vm360_vm0, %v2406_v12  ;;  %1974 = vmatprep.subr.bf16.mxu1 %v2080_v44  ;;  %v869_v14 = vsel %vm2219_vm3, %v864_v33, %v868_v37 }
  0x38   : > { %1953 = vmatpush3.bf16.msra.mxu0 %v2071_v16  ;;  %1932 = vmatprep.mubr.msk.bf16.mxu0 %vm360_vm0, %v2413_v45  ;;  %v191_v16 = vld [vmem:[%s2154_s29 + $0x4c] sm:$0x1]  ;;  %v1241_v24 = vrot.slane %v1240_v27, 4  ;;  %v1691_v3 = vcombine.low %v2371_v21, %v869_v14 }
  0x39   : > { %1954 = vmatprep.subr.bf16.mxu0 %v2073_v48  ;;  %v1243_v54 = vshll.u32 %v191_v16, 16  ;;  %v1361_v22 = vrot.slane %v191_v16, 5 }
  0x3a   : > { %1975 = vmatpush3.bf16.msra.mxu1 %v2080_v44 }
  0x3b   : > { %2000 = vmatprep.subr.bf16.mxu1 %v2082_v11  ;;  %v1245_v34 = vrot.slane %v1243_v54, 5 }
  0x3c   : > { %1955 = vmatpush3.bf16.msra.mxu0 %v2073_v48 }
  0x3d   : > { %1956 = vmatprep.subr.bf16.mxu0 %v2077_v52  ;;  %1977 = vmatmul.mubr.msk.bf16.vlgmr.msra.gmra.mxu1 %vm360_vm0, %v1710_v51  ;;  %v1246_v21 = vsel %vm2219_vm3, %v1241_v24, %v1245_v34 }
  0x3e   : > { %2001 = vmatpush3.bf16.msra.mxu1 %v2082_v11  ;;  %1980 = vmatprep.mubr.msk.bf16.mxu1 %vm360_vm0, %v1711_v56 }
  0x3f   : > { %1933 = vmatmul.mubr.msk.bf16.gmra.mxu0 %vm360_vm0, %v2446_v59  ;;  %2002 = vmatprep.subr.bf16.mxu1 %v2084_v55 }
  0x40   : > { %1957 = vmatpush3.bf16.msra.mxu0 %v2077_v52  ;;  %1960 = vmatprep.mubr.msk.bf16.mxu0 %vm360_vm0, %v1688_v61 }
  0x41   : > { %1958 = vmatprep.subr.bf16.mxu0 %v2079_v5 }
  0x42   : > { %2003 = vmatpush3.bf16.msra.mxu1 %v2084_v55 }
  0x43   : > { %2004 = vmatprep.subr.bf16.mxu1 %v2086_v6 }
  0x44   : > { %1959 = vmatpush3.bf16.msra.mxu0 %v2079_v5 }
  0x45   : > { %1984 = vmatprep.subr.bf16.mxu0 %v2081_v17  ;;  %1981 = vmatmul.mubr.msk.bf16.gmra.mxu1 %vm360_vm0, %v1712_v63 }
  0x46   : > { %2005 = vmatpush3.bf16.msra.mxu1 %v2086_v6  ;;  %2008 = vmatprep.mubr.msk.bf16.mxu1 %vm360_vm0, %v2284_v32  ;;  %v2085_v32 = vld [vmem:[%s2589_s1 + $0xc8] sm:$0xff]  }
  0x47   : > { %1961 = vmatmul.mubr.msk.bf16.vlgmr.msra.gmra.mxu0 %vm360_vm0, %v1689_v29  ;;  %2006 = vmatprep.subr.bf16.mxu1 %v2088_v2 }
  0x48   : > { %1985 = vmatpush3.bf16.msra.mxu0 %v2081_v17  ;;  %1964 = vmatprep.mubr.msk.bf16.mxu0 %vm360_vm0, %v1690_v31 }
  0x49   : > { %1986 = vmatprep.subr.bf16.mxu0 %v2083_v38 }
  0x4a   : > { %2007 = vmatpush3.bf16.msra.mxu1 %v2088_v2 }
  0x4b   : > { %2032 = vmatprep.subr.bf16.mxu1 %v2089_v62 }
  0x4c   : > { %1987 = vmatpush3.bf16.msra.mxu0 %v2083_v38 }
  0x4d   : > { %1988 = vmatprep.subr.bf16.mxu0 %v2085_v32  ;;  %2009 = vmatmul.mubr.msk.bf16.vlgmr.msra.gmra.mxu1 %vm360_vm0, %v2342_v9  ;;  %v1746_v9 = vcombine.low %v869_v14, %v1246_v21 }
  0x4e   : > { %2036 = vmatpush3.bf16.msra.mxu1 %v2089_v62  ;;  %2012 = vmatprep.mubr.msk.bf16.mxu1 %vm360_vm0, %v2377_v36  ;;  %v1362_v36 = vsel %vm2314_vm6, %v1755_v15, %v1361_v22 }
  0x4f   : > { %1965 = vmatmul.mubr.msk.bf16.gmra.mxu0 %vm360_vm0, %v1691_v3  ;;  %2033 = vmatprep.subr.bf16.mxu1 %v2090_v4 }
  0x50   : > { %1989 = vmatpush3.bf16.msra.mxu0 %v2085_v32  ;;  %1992 = vmatprep.mubr.msk.bf16.mxu0 %vm360_vm0, %v2191_v19  ;;  %v1764_v19 = vcombine.low %v2457_v8, %v1362_v36 }
  0x51   : > { %1990 = vmatprep.subr.bf16.mxu0 %v2087_v42 }
  0x52   : > { %2037 = vmatpush3.bf16.msra.mxu1 %v2090_v4 }
  0x53   : > { %2034 = vmatprep.subr.bf16.mxu1 %v2091_v18 }
  0x54   : > { %1991 = vmatpush3.bf16.msra.mxu0 %v2087_v42 }
  0x55   : > { %2016 = vmatprep.subr.bf16.mxu0 %v2089_v62  ;;  %2013 = vmatmul.mubr.msk.bf16.gmra.mxu1 %vm360_vm0, %v1746_v9 }
  0x56   : > { %2038 = vmatpush3.bf16.msra.mxu1 %v2091_v18  ;;  %2028 = vmatprep.mubr.msk.bf16.mxu1 %vm360_vm0, %v2446_v59 }
  0x57   : > { %1993 = vmatmul.mubr.msk.bf16.vlgmr.msra.gmra.mxu0 %vm360_vm0, %v2268_v25  ;;  %2035 = vmatprep.subr.bf16.mxu1 %v2093_v39 }
  0x58   : > { %2017 = vmatpush3.bf16.msra.mxu0 %v2089_v62  ;;  %1996 = vmatprep.mubr.msk.bf16.mxu0 %vm360_vm0, %v2298_v41 }
  0x59   : > { %2018 = vmatprep.subr.bf16.mxu0 %v2090_v4 }
  0x5a   : > { %2039 = vmatpush3.bf16.msra.mxu1 %v2093_v39 }
  0x5c   : > { %2019 = vmatpush3.bf16.msra.mxu0 %v2090_v4 }
  0x5d   : > { %2020 = vmatprep.subr.bf16.mxu0 %v2091_v18  ;;  %2029 = vmatmul.mubr.msk.bf16.vlgmr.msra.gmra.mxu1 %vm360_vm0, %v1764_v19 }
  0x5f   : > { %1997 = vmatmul.mubr.msk.bf16.gmra.mxu0 %vm360_vm0, %v1729_v50 }
  0x60   : > { %2021 = vmatpush3.bf16.msra.mxu0 %v2091_v18  ;;  %2024 = vmatprep.mubr.msk.bf16.mxu0 %vm360_vm0, %v2406_v12 }
  0x61   : > { %2022 = vmatprep.subr.bf16.mxu0 %v2093_v39 }
  0x64   : > { %2023 = vmatpush3.bf16.msra.mxu0 %v2093_v39 }
  0x67   : > { %2025 = vmatmul.mubr.msk.bf16.vlgmr.msra.gmra.mxu0 %vm360_vm0, %v2413_v45 }
  0xdd   : > { %v1914_v25 = vpop.f32.mrf.mxu1 }
  0xdf   : > { %v528_v41 = vpop.f32.mrf.mxu1 }
  0xe1   : > { %v1915_v43 = vpop.f32.mrf.mxu1 }
  0xe3   : > { %v2536_v44 = vpop.f32.mrf.mxu1 }
  0xe4   : > { %v1898_v40 = vpop.f32.mrf.mxu0 }
  0xe5   : > { %v1918_v47 = vpop.f32.mrf.mxu1  ;;  %v537_v3 = vadd.f32 %v1914_v25, %v1898_v40 }
  0xe6   : > { %v407_v46 = vpop.f32.mrf.mxu0 }
  0xe7   : > { %v544_v11 = vpop.f32.mrf.mxu1  ;;  %v529_v21 = vadd.f32 %v528_v41, %v407_v46 }
  0xe8   : > { %v1899_v48 = vpop.f32.mrf.mxu0 }
  0xe9   : > { %v1919_v26 = vpop.f32.mrf.mxu1  ;;  %v540_v36 = vadd.f32 %v1915_v43, %v1899_v48 }
  0xea   : > { %v410_v30 = vpop.f32.mrf.mxu0 }
  0xeb   : > { %v547_v35 = vpop.f32.mrf.mxu1 }
  0xed   : > { %v1946_v49 = vpop.f32.mrf.mxu1 }
  0xef   : > { %v1902_v12 = vpop.f32.mrf.mxu0  ;;  %v2538_v20 = vpop.f32.mrf.mxu1 }
  0xf0   : > { %v553_v32 = vadd.f32 %v1918_v47, %v1902_v12  ;;  %v532_v47 = vadd.f32 %v2536_v44, %v410_v30 }
  0xf1   : > { %v423_v51 = vpop.f32.mrf.mxu0  ;;  %v2540_v52 = vpop.f32.mrf.mxu1 }
  0xf2   : > { %v545_v4 = vadd.f32 %v544_v11, %v423_v51 }
  0xf3   : > { %v1903_v45 = vpop.f32.mrf.mxu0  ;;  %v2542_v53 = vpop.f32.mrf.mxu1 }
  0xf4   : > { %v556_v15 = vadd.f32 %v1919_v26, %v1903_v45 }
  0xf5   : > { %v426_v55 = vpop.f32.mrf.mxu0  ;;  %v1950_v56 = vpop.f32.mrf.mxu1 }
  0xf7   : > { %v1930_v57 = vpop.f32.mrf.mxu0  ;;  %v833_v58 = vpop.f32.mrf.mxu1 }
  0xf8   : > { %v726_v22 = vadd.f32 %v1930_v57, %v537_v3 }
  0xf9   : > { %v693_v59 = vpop.f32.mrf.mxu0  ;;  %v1951_v61 = vpop.f32.mrf.mxu1 }
  0xfa   : > { %v724_v19 = vadd.f32 %v693_v59, %v529_v21  ;;  %v850_v11 = vadd.f32 %v1946_v49, %v726_v22 }
  0xfb   : > { %v1931_v0 = vpop.f32.mrf.mxu0  ;;  %v836_v1 = vpop.f32.mrf.mxu1 }
  0xfc   : > { %v727_v12 = vadd.f32 %v1931_v0, %v540_v36  ;;  %v848_v26 = vadd.f32 %v2538_v20, %v724_v19 }
  0xfd   : > { %v696_v5 = vpop.f32.mrf.mxu0  ;;  %v2544_v8 = vpop.f32.mrf.mxu1 }
  0xfe   : > { %v725_v51 = vadd.f32 %v696_v5, %v532_v47 }
  0xff   : > { %v1934_v10 = vpop.f32.mrf.mxu0  ;;  %v2546_v60 = vpop.f32.mrf.mxu1 }
 0x100   : > { %v730_v42 = vadd.f32 %v1934_v10, %v553_v32  ;;  %v849_v49 = vadd.f32 %v2542_v53, %v725_v51 }
 0x101   : > { %v709_v6 = vpop.f32.mrf.mxu0  ;;  %v2548_v13 = vpop.f32.mrf.mxu1 }
 0x102   : > { %v728_v39 = vadd.f32 %v709_v6, %v545_v4 }
 0x103   : > { %v1935_v7 = vpop.f32.mrf.mxu0  ;;  %v2550_v17 = vpop.f32.mrf.mxu1 }
 0x104   : > { %2596 = vst [vmem:[#allocation2_spill] sm:$0xff] %v2550_v17  ;;  %v731_v17 = vadd.f32 %v1935_v7, %v556_v15  ;;  %v852_v46 = vadd.f32 %v833_v58, %v728_v39 }
 0x105   : > { %v712_v63 = vpop.f32.mrf.mxu0  ;;  %v1982_v23 = vpop.f32.mrf.mxu1 }
 0x106   : > { %v855_v59 = vadd.f32 %v1951_v61, %v731_v17 }
 0x107   : > { %v1962_v28 = vpop.f32.mrf.mxu0  ;;  %v1098_v29 = vpop.f32.mrf.mxu1 }
 0x108   : > { %v987_v48 = vadd.f32 %v1962_v28, %v850_v11 }
 0x109   : > { %v954_v16 = vpop.f32.mrf.mxu0  ;;  %v2552_v2 = vpop.f32.mrf.mxu1 }
 0x10a   : > { %v1115_v20 = vadd.f32 %v2544_v8, %v987_v48 }
 0x10b   : > { %v1963_v31 = vpop.f32.mrf.mxu0  ;;  %v2554_v33 = vpop.f32.mrf.mxu1 }
 0x10d   : > { %v957_v37 = vpop.f32.mrf.mxu0  ;;  %v2556_v38 = vpop.f32.mrf.mxu1 }
 0x10e   : > { %2597 = vst [vmem:[#allocation3_spill] sm:$0xff] %v2556_v38  ;;  %v548_v38 = vadd.f32 %v547_v35, %v426_v55  ;;  %v985_v35 = vadd.f32 %v954_v16, %v848_v26  ;;  %v851_v55 = vadd.f32 %v2540_v52, %v727_v12 }
 0x10f   : > { %v1966_v27 = vpop.f32.mrf.mxu0  ;;  %v2558_v54 = vpop.f32.mrf.mxu1 }
 0x110   : > { %2598 = vst [vmem:[#allocation4_spill] sm:$0xff] %v2558_v54  ;;  %v729_v40 = vadd.f32 %v712_v63, %v548_v38  ;;  %v988_v6 = vadd.f32 %v1963_v31, %v851_v55  ;;  %v986_v38 = vadd.f32 %v957_v37, %v849_v49  ;;  %v1113_v61 = vadd.f32 %v2546_v60, %v985_v35  ;;  %v1773_v60 = vld [vmem:[%s2590_s2] ss:$0 sm:$0xff] }
 0x111   : > { %v970_v62 = vpop.f32.mrf.mxu0  ;;  %v2560_v14 = vpop.f32.mrf.mxu1 }
 0x112   : > { %2599 = vst [vmem:[#allocation5_spill] sm:$0xff] %v2560_v14  ;;  %v854_v14 = vadd.f32 %v1950_v56, %v730_v42  ;;  %v989_v57 = vadd.f32 %v970_v62, %v852_v46  ;;  %v853_v0 = vadd.f32 %v836_v1, %v729_v40 }
 0x113   : > { %v1967_v24 = vpop.f32.mrf.mxu0  ;;  %v2562_v34 = vpop.f32.mrf.mxu1 }
 0x114   : > { %2600 = vst [vmem:[#allocation6_spill] sm:$0xff] %v2562_v34  ;;  %v991_v41 = vadd.f32 %v1966_v27, %v854_v14  ;;  %v992_v30 = vadd.f32 %v1967_v24, %v855_v59  ;;  %v1117_v63 = vadd.f32 %v1098_v29, %v989_v57  ;;  %v2601_v29 = vld [vmem:[#allocation2_spill] sm:$0xff] }
 0x115   : > { %v973_v18 = vpop.f32.mrf.mxu0  ;;  %v2014_v9 = vpop.f32.mrf.mxu1  ;;  %v1114_v24 = vadd.f32 %v2601_v29, %v986_v38  ;;  %v2602_v42 = vld [vmem:[#allocation3_spill] sm:$0xff] }
 0x116   : > { %v1119_v10 = vadd.f32 %v1982_v23, %v991_v41  ;;  %v990_v5 = vadd.f32 %v973_v18, %v853_v0  ;;  %v1120_v27 = vadd.f32 %v2552_v2, %v992_v30  ;;  %v1116_v23 = vadd.f32 %v2548_v13, %v988_v6 }
 0x117   : > { %v1994_v50 = vpop.f32.mrf.mxu0  ;;  %v1335_v54 = vpop.f32.mrf.mxu1  ;;  %v2603_v22 = vld [vmem:[#allocation4_spill] sm:$0xff] }
 0x118   : > { %v1227_v52 = vadd.f32 %v1994_v50, %v1115_v20  ;;  %v1118_v14 = vadd.f32 %v2554_v33, %v990_v5 }
 0x119   : > { %v1194_v34 = vpop.f32.mrf.mxu0  ;;  %v2015_v25 = vpop.f32.mrf.mxu1  ;;  %v2604_v40 = vld [vmem:[#allocation5_spill] sm:$0xff] }
 0x11a   : > { %v1225_v53 = vadd.f32 %v1194_v34, %v1113_v61  ;;  %v1352_v13 = vadd.f32 %v2602_v42, %v1227_v52 }
 0x11b   : > { %v1995_v45 = vpop.f32.mrf.mxu0  ;;  %v1338_v43 = vpop.f32.mrf.mxu1 }
 0x11c   : > { %v1228_v2 = vadd.f32 %v1995_v45, %v1116_v23  ;;  %v1350_v39 = vadd.f32 %v2603_v22, %v1225_v53 }
 0x11d   : > { %v1197_v56 = vpop.f32.mrf.mxu0  ;;  %v2030_v44 = vpop.f32.mrf.mxu1 }
 0x11e   : > { %v1226_v34 = vadd.f32 %v1197_v56, %v1114_v24  ;;  %v1353_v11 = vadd.f32 %v2604_v40, %v1228_v2 }
 0x11f   : > { %v1998_v58 = vpop.f32.mrf.mxu0  ;;  %v1451_v28 = vpop.f32.mrf.mxu1 }
 0x120   : > { %v1231_v7 = vadd.f32 %v1998_v58, %v1119_v10 }
 0x121   : > { %v1210_v17 = vpop.f32.mrf.mxu0  ;;  %v2031_v32 = vpop.f32.mrf.mxu1 }
 0x122   : > { %v1229_v16 = vadd.f32 %v1210_v17, %v1117_v63  ;;  %v1356_v1 = vadd.f32 %v2014_v9, %v1231_v7 }
 0x123   : > { %v1999_v31 = vpop.f32.mrf.mxu0  ;;  %v1454_v19 = vpop.f32.mrf.mxu1 }
 0x124   : > { %v1232_v62 = vadd.f32 %v1999_v31, %v1120_v27  ;;  %v1472_v8 = vadd.f32 %v2030_v44, %v1356_v1  ;;  %v1354_v3 = vadd.f32 %v1335_v54, %v1229_v16 }
 0x125   : > { %v1213_v37 = vpop.f32.mrf.mxu0 }
 0x126   : > { %v1230_v4 = vadd.f32 %v1213_v37, %v1118_v14  ;;  %v1357_v21 = vadd.f32 %v2015_v25, %v1232_v62  ;;  %v1470_v9 = vadd.f32 %v1451_v28, %v1354_v3  ;;  %v1487_v33 = vadd.f32 %v1773_v60, %v1472_v8  ;;  %v2605_v25 = vld [vmem:[#allocation6_spill] sm:$0xff] }
 0x127   : > { %v2026_v18 = vpop.f32.mrf.mxu0  ;;  %v1351_v26 = vadd.f32 %v2605_v25, %v1226_v34 }
 0x128   : > { %v1468_v15 = vadd.f32 %v2026_v18, %v1352_v13  ;;  %v1473_v36 = vadd.f32 %v2031_v32, %v1357_v21  ;;  %v1355_v47 = vadd.f32 %v1338_v43, %v1230_v4  ;;  %v1485_v41 = vadd.f32 %v1773_v60, %v1470_v9 }
 0x129   : > { %v1435_v50 = vpop.f32.mrf.mxu0  ;;  %v1495_v45 = vmax.f32 %v1487_v33, 0.0 }
 0x12a   : > { %v1466_v12 = vadd.f32 %v1435_v50, %v1350_v39  ;;  %v1488_v54 = vadd.f32 %v1773_v60, %v1473_v36  ;;  %v1471_v51 = vadd.f32 %v1454_v19, %v1355_v47  ;;  %v1483_v48 = vadd.f32 %v1773_v60, %v1468_v15 }
 0x12b   : > { %v2027_v46 = vpop.f32.mrf.mxu0  ;;  %v1493_v0 = vmax.f32 %v1485_v41, 0.0 }
 0x12c   : > { %v1496_v57 = vmax.f32 %v1488_v54, 0.0  ;;  %v1469_v59 = vadd.f32 %v2027_v46, %v1353_v11  ;;  %v1486_v35 = vadd.f32 %v1773_v60, %v1471_v51  ;;  %v1481_v55 = vadd.f32 %v1773_v60, %v1466_v12 }
 0x12d   : > { %v1438_v43 = vpop.f32.mrf.mxu0  ;;  %v1491_v6 = vmax.f32 %v1483_v48, 0.0 }
 0x12e   : > { %v1811_v56 = vpack.c.bf16 %v1496_v57, %v1495_v45  ;;  %v1484_v44 = vadd.f32 %v1773_v60, %v1469_v59  ;;  %v1467_v30 = vadd.f32 %v1438_v43, %v1351_v26  ;;  %v1494_v10 = vmax.f32 %v1486_v35, 0.0 }
 0x12f   : > { %v1489_v20 = vmax.f32 %v1481_v55, 0.0 }
 0x130   : > { %1815 = vst [vmem:[%s170_s21 + $0x18] sm:$0xff] %v1811_v56   ;;  %v1492_v49 = vmax.f32 %v1484_v44, 0.0  ;;  %v1482_v58 = vadd.f32 %v1773_v60, %v1467_v30  ;;  %v1806_v5 = vpack.c.bf16 %v1494_v10, %v1493_v0 }
 0x132   : > { %v1801_v7 = vpack.c.bf16 %v1492_v49, %v1491_v6  ;;  %v1490_v63 = vmax.f32 %v1482_v58, 0.0  ;;  %1814 = vst [vmem:[%s170_s21 + $0x10] sm:$0xff] %v1806_v5  }
 0x134   : > { %1813 = vst [vmem:[%s170_s21 + $0x8] sm:$0xff] %v1801_v7   ;;  %v1796_v28 = vpack.c.bf16 %v1490_v63, %v1489_v20 }
 0x136   : > { %1797 = vst [vmem:[%s170_s21] sm:$0xff] %v1796_v28  }
 0x137 PF: > { %s13_s12 = sadd.s32 1, %s2100_s12  }
 0x138   : > { %p10_p4 = scmp.ge.s32.totalorder %s13_s12, 6  }
 0x13a   :  { %12 = sbr.rel (!%p10_p4) target bundleno = 1 (0x1), region = 70 }

// kernel: combined_loss.21
= control target key start
LH: loop header
LB: loop body
LE: loop exit
PB: predicated region body
PF: predicated region fallthrough
CT: control target
= control target key end

     0   :  { %s445_s0 = inlined_call_operand.vmem [shape: f32[256,128], index: 0, kind: input, shape index: {}]   ;;  %s446_s1 = inlined_call_operand.vmem [shape: f32[256,128], index: 1, kind: input, shape index: {}]   ;;  %s447_s2 = inlined_call_operand.hbm [shape: f32[1,1], index: 2, kind: output, shape index: {}]  }
   0x1   :  { %v18_v0 = vld [vmem:[%s445_s0] sm:$0xff]  ;;  %v19_v1 = vld [vmem:[%s445_s0 + $0x8] sm:$0xff]  ;;  %v20_v4 = vld [vmem:[%s445_s0 + $0x10] sm:$0xff] }
   0x2   :  { %v50_v2 = vld [vmem:[%s446_s1] sm:$0xff]  ;;  %v51_v3 = vld [vmem:[%s446_s1 + $0x8] sm:$0xff]  ;;  %v52_v5 = vld [vmem:[%s446_s1 + $0x10] sm:$0xff] }
   0x3   :  { %v82_v6 = vsub.f32 %v18_v0, %v50_v2  ;;  %v83_v7 = vsub.f32 %v19_v1, %v51_v3  ;;  %v21_v8 = vld [vmem:[%s445_s0 + $0x18] sm:$0xff] }
   0x4   :  { %v53_v9 = vld [vmem:[%s446_s1 + $0x18] sm:$0xff] }
   0x5   :  { %7 = vsyncpa [#allocation3], 0  ;;  %v84_v10 = vsub.f32 %v20_v4, %v52_v5  ;;  %v22_v11 = vld [vmem:[%s445_s0 + $0x20] sm:$0xff]  ;;  %v85_v13 = vsub.f32 %v21_v8, %v53_v9  ;;  %v115_v14 = vmul.f32 %v82_v6, %v82_v6  ;;  %v116_v15 = vmul.f32 %v83_v7, %v83_v7  ;;  %v23_v16 = vld [vmem:[%s445_s0 + $0x28] sm:$0xff] }
   0x6   :  { %v54_v12 = vld [vmem:[%s446_s1 + $0x20] sm:$0xff]  ;;  %v55_v17 = vld [vmem:[%s446_s1 + $0x28] sm:$0xff]  ;;  %v24_v20 = vld [vmem:[%s445_s0 + $0x30] sm:$0xff]  ;;  %vm16_vm0 = vcmask 0  }
   0x7   :  { %v86_v18 = vsub.f32 %v22_v11, %v54_v12  ;;  %v117_v19 = vmul.f32 %v84_v10, %v84_v10  ;;  %v56_v21 = vld [vmem:[%s446_s1 + $0x30] sm:$0xff]  ;;  %v87_v22 = vsub.f32 %v23_v16, %v55_v17  ;;  %v118_v23 = vmul.f32 %v85_v13, %v85_v13  ;;  %v25_v25 = vld [vmem:[%s445_s0 + $0x38] sm:$0xff]  ;;  %v26_v30 = vld [vmem:[%s445_s0 + $0x40] sm:$0xff] }
   0x8   :  { %v147_v24 = vadd.f32 %v116_v15, %v115_v14  ;;  %v57_v26 = vld [vmem:[%s446_s1 + $0x38] sm:$0xff]  ;;  %v88_v27 = vsub.f32 %v24_v20, %v56_v21  ;;  %v58_v31 = vld [vmem:[%s446_s1 + $0x40] sm:$0xff]  ;;  %v27_v35 = vld [vmem:[%s445_s0 + $0x48] sm:$0xff] }
   0x9   :  { %v119_v28 = vmul.f32 %v86_v18, %v86_v18  ;;  %v89_v32 = vsub.f32 %v25_v25, %v57_v26  ;;  %v120_v33 = vmul.f32 %v87_v22, %v87_v22  ;;  %v59_v36 = vld [vmem:[%s446_s1 + $0x48] sm:$0xff]  ;;  %v90_v37 = vsub.f32 %v26_v30, %v58_v31  ;;  %v28_v40 = vld [vmem:[%s445_s0 + $0x50] sm:$0xff]  ;;  %v29_v45 = vld [vmem:[%s445_s0 + $0x58] sm:$0xff] }
   0xa   :  { %v148_v29 = vadd.f32 %v147_v24, %v117_v19  ;;  %v121_v38 = vmul.f32 %v88_v27, %v88_v27  ;;  %v60_v41 = vld [vmem:[%s446_s1 + $0x50] sm:$0xff]  ;;  %v91_v42 = vsub.f32 %v27_v35, %v59_v36  ;;  %v61_v46 = vld [vmem:[%s446_s1 + $0x58] sm:$0xff]  ;;  %v30_v50 = vld [vmem:[%s445_s0 + $0x60] sm:$0xff] }
   0xb   :  { %v122_v43 = vmul.f32 %v89_v32, %v89_v32  ;;  %v92_v47 = vsub.f32 %v28_v40, %v60_v41  ;;  %v123_v48 = vmul.f32 %v90_v37, %v90_v37  ;;  %v62_v51 = vld [vmem:[%s446_s1 + $0x60] sm:$0xff]  ;;  %v93_v52 = vsub.f32 %v29_v45, %v61_v46  ;;  %v31_v55 = vld [vmem:[%s445_s0 + $0x68] sm:$0xff]  ;;  %v32_v60 = vld [vmem:[%s445_s0 + $0x70] sm:$0xff] }
   0xc   :  { %v149_v34 = vadd.f32 %v148_v29, %v118_v23  ;;  %v124_v53 = vmul.f32 %v91_v42, %v91_v42  ;;  %v63_v56 = vld [vmem:[%s446_s1 + $0x68] sm:$0xff]  ;;  %v94_v57 = vsub.f32 %v30_v50, %v62_v51  ;;  %v64_v61 = vld [vmem:[%s446_s1 + $0x70] sm:$0xff]  ;;  %v33_v1 = vld [vmem:[%s445_s0 + $0x78] sm:$0xff] }
   0xd   :  { %v125_v58 = vmul.f32 %v92_v47, %v92_v47  ;;  %v95_v62 = vsub.f32 %v31_v55, %v63_v56  ;;  %v126_v63 = vmul.f32 %v93_v52, %v93_v52  ;;  %v65_v2 = vld [vmem:[%s446_s1 + $0x78] sm:$0xff]  ;;  %v96_v3 = vsub.f32 %v32_v60, %v64_v61  ;;  %v34_v6 = vld [vmem:[%s445_s0 + $0x80] sm:$0xff]  ;;  %v35_v11 = vld [vmem:[%s445_s0 + $0x88] sm:$0xff] }
   0xe   :  { %v150_v39 = vadd.f32 %v149_v34, %v119_v28  ;;  %v127_v4 = vmul.f32 %v94_v57, %v94_v57  ;;  %v66_v7 = vld [vmem:[%s446_s1 + $0x80] sm:$0xff]  ;;  %v97_v8 = vsub.f32 %v33_v1, %v65_v2  ;;  %v67_v12 = vld [vmem:[%s446_s1 + $0x88] sm:$0xff]  ;;  %v36_v16 = vld [vmem:[%s445_s0 + $0x90] sm:$0xff] }
   0xf   :  { %v128_v9 = vmul.f32 %v95_v62, %v95_v62  ;;  %v98_v13 = vsub.f32 %v34_v6, %v66_v7  ;;  %v129_v14 = vmul.f32 %v96_v3, %v96_v3  ;;  %v68_v17 = vld [vmem:[%s446_s1 + $0x90] sm:$0xff]  ;;  %v99_v18 = vsub.f32 %v35_v11, %v67_v12  ;;  %v37_v21 = vld [vmem:[%s445_s0 + $0x98] sm:$0xff]  ;;  %v38_v26 = vld [vmem:[%s445_s0 + $0xa0] sm:$0xff] }
  0x10   :  { %v151_v44 = vadd.f32 %v150_v39, %v120_v33  ;;  %v130_v19 = vmul.f32 %v97_v8, %v97_v8  ;;  %v69_v22 = vld [vmem:[%s446_s1 + $0x98] sm:$0xff]  ;;  %v100_v23 = vsub.f32 %v36_v16, %v68_v17  ;;  %v70_v27 = vld [vmem:[%s446_s1 + $0xa0] sm:$0xff]  ;;  %v39_v31 = vld [vmem:[%s445_s0 + $0xa8] sm:$0xff] }
  0x11   :  { %v131_v24 = vmul.f32 %v98_v13, %v98_v13  ;;  %v101_v28 = vsub.f32 %v37_v21, %v69_v22  ;;  %v132_v29 = vmul.f32 %v99_v18, %v99_v18  ;;  %v71_v32 = vld [vmem:[%s446_s1 + $0xa8] sm:$0xff]  ;;  %v102_v33 = vsub.f32 %v38_v26, %v70_v27  ;;  %v40_v36 = vld [vmem:[%s445_s0 + $0xb0] sm:$0xff]  ;;  %v41_v41 = vld [vmem:[%s445_s0 + $0xb8] sm:$0xff] }
  0x12   :  { %v152_v49 = vadd.f32 %v151_v44, %v121_v38  ;;  %v133_v34 = vmul.f32 %v100_v23, %v100_v23  ;;  %v72_v37 = vld [vmem:[%s446_s1 + $0xb0] sm:$0xff]  ;;  %v103_v38 = vsub.f32 %v39_v31, %v71_v32  ;;  %v73_v42 = vld [vmem:[%s446_s1 + $0xb8] sm:$0xff]  ;;  %v42_v46 = vld [vmem:[%s445_s0 + $0xc0] sm:$0xff]  ;;  %v231_v31 = vmov 0.0  }
  0x13   :  { %v134_v39 = vmul.f32 %v101_v28, %v101_v28  ;;  %v135_v44 = vmul.f32 %v102_v33, %v102_v33  ;;  %v74_v47 = vld [vmem:[%s446_s1 + $0xc0] sm:$0xff]  ;;  %v43_v51 = vld [vmem:[%s445_s0 + $0xc8] sm:$0xff]  ;;  %v44_v56 = vld [vmem:[%s445_s0 + $0xd0] sm:$0xff]  ;;  %17 = vst.msk [vmem:[#allocation2] sm:$0x1] %vm16_vm0, %v231_v31 }
  0x14   :  { %v153_v54 = vadd.f32 %v152_v49, %v122_v43  ;;  %v104_v43 = vsub.f32 %v40_v36, %v72_v37  ;;  %v136_v49 = vmul.f32 %v103_v38, %v103_v38  ;;  %v75_v52 = vld [vmem:[%s446_s1 + $0xc8] sm:$0xff]  ;;  %v76_v57 = vld [vmem:[%s446_s1 + $0xd0] sm:$0xff]  ;;  %v45_v61 = vld [vmem:[%s445_s0 + $0xd8] sm:$0xff] }
  0x15   :  { %v77_v62 = vld [vmem:[%s446_s1 + $0xd8] sm:$0xff]  ;;  %v46_v2 = vld [vmem:[%s445_s0 + $0xe0] sm:$0xff]  ;;  %v47_v7 = vld [vmem:[%s445_s0 + $0xe8] sm:$0xff] }
  0x16   :  { %v154_v59 = vadd.f32 %v153_v54, %v123_v48  ;;  %v105_v48 = vsub.f32 %v41_v41, %v73_v42  ;;  %v137_v54 = vmul.f32 %v104_v43, %v104_v43  ;;  %v78_v3 = vld [vmem:[%s446_s1 + $0xe0] sm:$0xff]  ;;  %v79_v8 = vld [vmem:[%s446_s1 + $0xe8] sm:$0xff]  ;;  %v48_v12 = vld [vmem:[%s445_s0 + $0xf0] sm:$0xff] }
  0x17   :  { %v80_v13 = vld [vmem:[%s446_s1 + $0xf0] sm:$0xff]  ;;  %v49_v17 = vld [vmem:[%s445_s0 + $0xf8] sm:$0xff]  ;;  %s232_s0 = smov [#allocation2]  }
  0x18   :  { %v155_v0 = vadd.f32 %v154_v59, %v124_v53  ;;  %v106_v53 = vsub.f32 %v42_v46, %v74_v47  ;;  %v138_v59 = vmul.f32 %v105_v48, %v105_v48  ;;  %v81_v18 = vld [vmem:[%s446_s1 + $0xf8] sm:$0xff]  ;;  %s197_s1 = sshll.u32 %s232_s0, 4  ;;  %s198_s1 = int_to_ptr.vmem [resolvable:$true] %s197_s1 }
  0x19   :  { %v113_v22 = vsub.f32 %v49_v17, %v81_v18  ;;  %s209_s26 = scalar_lea.vmem %s198_s1, 16  ;;  %s213_s27 = scalar_lea.vmem %s198_s1, 32 }
  0x1a   :  { %v156_v5 = vadd.f32 %v155_v0, %v125_v58  ;;  %v107_v58 = vsub.f32 %v43_v51, %v75_v52  ;;  %v139_v0 = vmul.f32 %v106_v53, %v106_v53  ;;  %p210_p0 = scmp.ne.s32.totalorder %s198_s1, %s209_s26  ;;  %p214_p1 = scmp.lt.s32.totalorder %s198_s1, %s198_s1 }
  0x1b   :  { %v146_v27 = vmul.f32 %v113_v22, %v113_v22  ;;  %p215_p2 = scmp.lt.s32.totalorder %s213_s27, %s209_s26 }
  0x1c   :  { %v157_v10 = vadd.f32 %v156_v5, %v126_v63  ;;  %v108_v63 = vsub.f32 %v44_v56, %v76_v57  ;;  %v140_v5 = vmul.f32 %v107_v58, %v107_v58 }
  0x1d   :  { %p216_p3 = por %p215_p2, %p214_p1 }
  0x1e   :  { %v158_v15 = vadd.f32 %v157_v10, %v127_v4  ;;  %v109_v4 = vsub.f32 %v45_v61, %v77_v62  ;;  %v141_v10 = vmul.f32 %v108_v63, %v108_v63 }
  0x1f   :  { %p217_p4 = pnand %p216_p3, %p210_p0 }
  0x20   :  { %v159_v20 = vadd.f32 %v158_v15, %v128_v9  ;;  %v110_v9 = vsub.f32 %v46_v2, %v78_v3  ;;  %v142_v15 = vmul.f32 %v109_v4, %v109_v4 }
  0x22   :  { %v160_v25 = vadd.f32 %v159_v20, %v129_v14  ;;  %v111_v14 = vsub.f32 %v47_v7, %v79_v8  ;;  %v143_v20 = vmul.f32 %v110_v9, %v110_v9 }
  0x24   :  { %v161_v30 = vadd.f32 %v160_v25, %v130_v19  ;;  %v112_v19 = vsub.f32 %v48_v12, %v80_v13  ;;  %v144_v23 = vmul.f32 %v111_v14, %v111_v14 }
  0x26   :  { %v162_v35 = vadd.f32 %v161_v30, %v131_v24  ;;  %v145_v25 = vmul.f32 %v112_v19, %v112_v19 }
  0x28   :  { %v163_v40 = vadd.f32 %v162_v35, %v132_v29 }
  0x2a   :  { %v164_v45 = vadd.f32 %v163_v40, %v133_v34 }
  0x2c   :  { %v165_v50 = vadd.f32 %v164_v45, %v134_v39  ;;  %v114_v39 = vld [vmem:[#allocation2] sm:$0x1] }
  0x2e   :  { %v166_v55 = vadd.f32 %v165_v50, %v135_v44 }
  0x30   :  { %v167_v60 = vadd.f32 %v166_v55, %v136_v49 }
  0x32   :  { %v168_v1 = vadd.f32 %v167_v60, %v137_v54 }
  0x34   :  { %v169_v6 = vadd.f32 %v168_v1, %v138_v59 }
  0x36   :  { %v170_v11 = vadd.f32 %v169_v6, %v139_v0 }
  0x38   :  { %v171_v16 = vadd.f32 %v170_v11, %v140_v5 }
  0x3a   :  { %v172_v21 = vadd.f32 %v171_v16, %v141_v10 }
  0x3c   :  { %v173_v24 = vadd.f32 %v172_v21, %v142_v15 }
  0x3e   :  { %v174_v26 = vadd.f32 %v173_v24, %v143_v20 }
  0x40   :  { %v175_v28 = vadd.f32 %v174_v26, %v144_v23 }
  0x42   :  { %v176_v29 = vadd.f32 %v175_v28, %v145_v25 }
  0x44   :  { %v177_v30 = vadd.f32 %v176_v29, %v146_v27 }
  0x46   :  { %178 = vadd.xlane.f32.xlu0 %v177_v30 }
  0xcf   :  { %v179_v32 = vpop.xlane.xlu0 %178 }
  0xd0   :  { %v180_v33 = vrot.slane %v179_v32, 4 }
  0xd2   :  { %v181_v34 = vadd.f32 %v180_v33, %v179_v32 }
  0xd4   :  { %v182_v35 = vrot.slane %v181_v34, 2 }
  0xd6   :  { %v183_v36 = vadd.f32 %v182_v35, %v181_v34 }
  0xd8   :  { %v184_v37 = vrot.slane %v183_v36, 1 }
  0xda   :  { %v185_v38 = vadd.f32 %v184_v37, %v183_v36 }
  0xdc   :  { %205 = vpush %v185_v38 }
 0x10d   :  { %s206_s25 = spop %205 }
 0x10e   :  { %v187_v40 = vstv %s206_s25 }
 0x10f   :  { %v188_v41 = vadd.f32 %v187_v40, %v114_v39 }
 0x111   :  { %190 = vst.msk [vmem:[#allocation2] sm:$0x1] %vm16_vm0, %v188_v41 }
 0x112   :  { %220 = shalt.err (!%p217_p4)
}
 0x113   :  { %200 = dma.vmem_to_hbm [thread:$0]  %s198_s1, 16, %s447_s2, [#allocation3]  }
 0x114   :  { %229 = dma.done.wait [#allocation3], 16  }
 0x115   :  { %230 = vsyncadd [#allocation3], 4294967280 }
 0x116   :  { %204 = vsyncpa [#allocation3], 1 }

// kernel: combined_loss.18
= control target key start
LH: loop header
LB: loop body
LE: loop exit
PB: predicated region body
PF: predicated region fallthrough
CT: control target
= control target key end

     0   :  { %s637_s6 = smov 0   ;;  %s639_s7 = smov 0   ;;  %s700_s0 = inlined_call_operand.vmem [shape: bf16[4,64,128], index: 0, kind: input, shape index: {}]   ;;  %s701_s1 = inlined_call_operand.vmem [shape: f32[4,128,128], index: 1, kind: output, shape index: {}]  }
   0x1   :  { %s641_s8 = smov 0  }
   0x2 LB: > { %s23_s9 = sadd.s32 1, %s621_s7  ;;  %p508_p0 = scmp.ge.s32.totalorder %s625_s8, 1  ;;  %s625_s8 = sphi %s641_s8, %s11_s8   ;;  %s621_s7 = sphi %s639_s7, %s703_s7   ;;  %s617_s6 = sphi %s637_s6, %s702_s6  }
   0x3   : > { %p25_p1 = scmp.ge.s32.totalorder %s23_s9, 4  ;;  %p106_p2 = scmp.lt.s32.totalorder %s625_s8, 5 }
   0x5   : > { %s705_s9 = smov (%p25_p1, %s23_s9), 0  ;;  %p107_p3 = pnand %p508_p0, %p106_p2 }
   0x6   : > { %p131_p4 = scmp.lt.s32.totalorder (!%p107_p3), %s617_s6, 3 }
   0x7   : > { %110 = sbr.rel (%p107_p3) target bundleno = 345 (0x159), region = 24 }
   0xc   : > { %s707_s6 = smov (!%p131_p4, %s617_s6), 3  ;;  %vm230_vm0 = vcmask 523264  }
   0xd   : > { %s527_s10 = sshll.u32 %s707_s6, 5  ;;  %s528_s14 = sshll.u32 %s707_s6, 7 }
   0xe   : > { %s138_s13 = scalar_lea.vmem %s700_s0, %s527_s10  ;;  %s673_s17 = scalar_lea.vmem %s701_s1, %s528_s14 }
   0xf   : > { %v599_v0 = vld [vmem:[%s138_s13] sm:$0xff]   ;;  %v600_v1 = vld [vmem:[%s138_s13 + $0x8] sm:$0xff]   ;;  %v602_v2 = vld [vmem:[%s138_s13 + $0x18] sm:$0xff]  }
  0x10   : > { %214 = vxpose.xlu0.c.b16.start [1/4] (short) %v599_v0, 128  ;;  %v601_v3 = vld [vmem:[%s138_s13 + $0x10] sm:$0xff]   ;;  %541 = vmatprep.subr.bf16.mxu0 %v602_v2 }
  0x11   : > { %565 = vmatprep.subr.bf16.mxu1 %v602_v2  ;;  %542 = vmatpush3.bf16.msra.mxu0 %v602_v2 }
  0x12   : > { %543 = vmatprep.subr.bf16.mxu0 %v601_v3  ;;  %569 = vmatpush3.bf16.msra.mxu1 %v602_v2 }
  0x13   : > { %566 = vmatprep.subr.bf16.mxu1 %v601_v3 }
  0x14   : > { %215 = vxpose.xlu0.c.b16.cont [2/4] (short) %v600_v1, 128 }
  0x15   : > { %544 = vmatpush3.bf16.msra.mxu0 %v601_v3 }
  0x16   : > { %545 = vmatprep.subr.bf16.mxu0 %v600_v1  ;;  %570 = vmatpush3.bf16.msra.mxu1 %v601_v3 }
  0x17   : > { %567 = vmatprep.subr.bf16.mxu1 %v600_v1 }
  0x18   : > { %216 = vxpose.xlu0.c.b16.cont [3/4] (short) %v601_v3, 128 }
  0x19   : > { %546 = vmatpush3.bf16.msra.mxu0 %v600_v1 }
  0x1a   : > { %547 = vmatprep.subr.bf16.mxu0 %v599_v0  ;;  %571 = vmatpush3.bf16.msra.mxu1 %v600_v1 }
  0x1b   : > { %568 = vmatprep.subr.bf16.mxu1 %v599_v0 }
  0x1c   : > { %217 = vxpose.xlu0.c.b16.end [4/4] (short) %v602_v2, 128 }
  0x1d   : > { %548 = vmatpush3.bf16.msra.mxu0 %v599_v0 }
  0x1e   : > { %572 = vmatpush3.bf16.msra.mxu1 %v599_v0 }
  0x72   : > { %v222_v4 = vpop.trf.xlu0 }
  0x73   : > { %549 = vmatprep.mubr.msk.bf16.mxu0 %vm230_vm0, %v222_v4 }
  0x76   : > { %v223_v5 = vpop.trf.xlu0 }
  0x77   : > { %550 = vmatmul.mubr.msk.bf16.vlgmr.msra.gmra.mxu0 %vm230_vm0, %v223_v5 }
  0x7a   : > { %v224_v6 = vpop.trf.xlu0 }
  0x7b   : > { %553 = vmatprep.mubr.msk.bf16.mxu0 %vm230_vm0, %v224_v6 }
  0x7e   : > { %v225_v7 = vpop.trf.xlu0 }
  0x7f   : > { %554 = vmatmul.mubr.msk.bf16.gmra.mxu0 %vm230_vm0, %v225_v7 }
  0x82   : > { %v226_v8 = vpop.trf.xlu0 }
  0x83   : > { %557 = vmatprep.mubr.msk.bf16.mxu1 %vm230_vm0, %v226_v8 }
  0x86   : > { %v227_v9 = vpop.trf.xlu0 }
  0x87   : > { %558 = vmatmul.mubr.msk.bf16.vlgmr.msra.gmra.mxu1 %vm230_vm0, %v227_v9 }
  0x8a   : > { %v228_v10 = vpop.trf.xlu0 }
  0x8b   : > { %561 = vmatprep.mubr.msk.bf16.mxu1 %vm230_vm0, %v228_v10 }
  0x8e   : > { %v229_v11 = vpop.trf.xlu0 }
  0x8f   : > { %562 = vmatmul.mubr.msk.bf16.gmra.mxu1 %vm230_vm0, %v229_v11 }
 0x137   : > { %v551_v12 = vpop.f32.mrf.mxu0 }
 0x138   : > { %v405_v14 = vmul.f32 0.00012207031, %v551_v12 }
 0x139   : > { %v289_v13 = vpop.f32.mrf.mxu0 }
 0x13a   : > { %421 = vst [vmem:[%s673_s17 + $0x10] sm:$0xff] %v405_v14  ;;  %v403_v16 = vmul.f32 0.00012207031, %v289_v13 }
 0x13b   : > { %v552_v15 = vpop.f32.mrf.mxu0 }
 0x13c   : > { %419 = vst [vmem:[%s673_s17] sm:$0xff] %v403_v16  ;;  %v406_v18 = vmul.f32 0.00012207031, %v552_v15 }
 0x13d   : > { %v292_v17 = vpop.f32.mrf.mxu0 }
 0x13e   : > { %422 = vst [vmem:[%s673_s17 + $0x18] sm:$0xff] %v406_v18  ;;  %v404_v20 = vmul.f32 0.00012207031, %v292_v17 }
 0x13f   : > { %v555_v19 = vpop.f32.mrf.mxu0 }
 0x140   : > { %420 = vst [vmem:[%s673_s17 + $0x8] sm:$0xff] %v404_v20  ;;  %v409_v22 = vmul.f32 0.00012207031, %v555_v19 }
 0x141   : > { %v305_v21 = vpop.f32.mrf.mxu0 }
 0x142   : > { %425 = vst [vmem:[%s673_s17 + $0x30] sm:$0xff] %v409_v22  ;;  %v407_v24 = vmul.f32 0.00012207031, %v305_v21 }
 0x143   : > { %v556_v23 = vpop.f32.mrf.mxu0 }
 0x144   : > { %423 = vst [vmem:[%s673_s17 + $0x20] sm:$0xff] %v407_v24  ;;  %v410_v26 = vmul.f32 0.00012207031, %v556_v23 }
 0x145   : > { %v308_v25 = vpop.f32.mrf.mxu0 }
 0x146   : > { %426 = vst [vmem:[%s673_s17 + $0x38] sm:$0xff] %v410_v26  ;;  %v408_v28 = vmul.f32 0.00012207031, %v308_v25 }
 0x147   : > { %v559_v27 = vpop.f32.mrf.mxu1 }
 0x148   : > { %424 = vst [vmem:[%s673_s17 + $0x28] sm:$0xff] %v408_v28  ;;  %v413_v30 = vmul.f32 0.00012207031, %v559_v27 }
 0x149   : > { %v321_v29 = vpop.f32.mrf.mxu1 }
 0x14a   : > { %429 = vst [vmem:[%s673_s17 + $0x50] sm:$0xff] %v413_v30  ;;  %v411_v32 = vmul.f32 0.00012207031, %v321_v29 }
 0x14b   : > { %v560_v31 = vpop.f32.mrf.mxu1 }
 0x14c   : > { %427 = vst [vmem:[%s673_s17 + $0x40] sm:$0xff] %v411_v32  ;;  %v414_v34 = vmul.f32 0.00012207031, %v560_v31 }
 0x14d   : > { %v324_v33 = vpop.f32.mrf.mxu1 }
 0x14e   : > { %430 = vst [vmem:[%s673_s17 + $0x58] sm:$0xff] %v414_v34  ;;  %v412_v36 = vmul.f32 0.00012207031, %v324_v33 }
 0x14f   : > { %v563_v35 = vpop.f32.mrf.mxu1 }
 0x150   : > { %428 = vst [vmem:[%s673_s17 + $0x48] sm:$0xff] %v412_v36  ;;  %v417_v38 = vmul.f32 0.00012207031, %v563_v35 }
 0x151   : > { %v337_v37 = vpop.f32.mrf.mxu1 }
 0x152   : > { %433 = vst [vmem:[%s673_s17 + $0x70] sm:$0xff] %v417_v38  ;;  %v415_v40 = vmul.f32 0.00012207031, %v337_v37 }
 0x153   : > { %v564_v39 = vpop.f32.mrf.mxu1 }
 0x154   : > { %431 = vst [vmem:[%s673_s17 + $0x60] sm:$0xff] %v415_v40  ;;  %v418_v42 = vmul.f32 0.00012207031, %v564_v39 }
 0x155   : > { %v340_v41 = vpop.f32.mrf.mxu1 }
 0x156   : > { %434 = vst [vmem:[%s673_s17 + $0x78] sm:$0xff] %v418_v42  ;;  %v416_v43 = vmul.f32 0.00012207031, %v340_v41 }
 0x158   : > { %432 = vst [vmem:[%s673_s17 + $0x68] sm:$0xff] %v416_v43 }
 0x159 PF: > { %s11_s8 = sadd.s32 1, %s625_s8   ;;  %s702_s6 = smov %s621_s7 }
 0x15a   : > { %p8_p5 = scmp.ge.s32.totalorder %s11_s8, 6   ;;  %s703_s7 = smov %s705_s9 }
 0x15c   :  { %10 = sbr.rel (!%p8_p5) target bundleno = 2 (0x2), region = 62 }

// kernel: combined_loss.16
= control target key start
LH: loop header
LB: loop body
LE: loop exit
PB: predicated region body
PF: predicated region fallthrough
CT: control target
= control target key end

     0   :  { %s2571_s12 = smov 0   ;;  %s3129_s0 = inlined_call_operand.vmem [shape: bf16[4,10,10,128], index: 0, kind: input, shape index: {}]   ;;  %s3130_s1 = inlined_call_operand.vmem [shape: bf16[9,128,128], index: 1, kind: input, shape index: {}]   ;;  %s3131_s2 = inlined_call_operand.vmem [shape: f32[1,128], index: 2, kind: input, shape index: {}]   ;;  %s3132_s3 = inlined_call_operand.vmem [shape: bf16[4,64,128], index: 3, kind: output, shape index: {}]  }
   0x1 LB: > { %s1825_s13 = sadd.s32 4294967295, %s2549_s12   ;;  %p1829_p0 = scmp.ge.s32.totalorder %s2549_s12, 1  ;;  %s2549_s12 = sphi %s2571_s12, %s13_s12  }
   0x2   : > { %p137_p1 = scmp.lt.s32.totalorder %s2549_s12, 5 }
   0x4   : > { %p138_p2 = pnand %p1829_p0, %p137_p1 }
   0x6   : > { %141 = sbr.rel (%p138_p2) target bundleno = 381 (0x17d), region = 32 }
   0xb   : > { %v2462_v0 = vld [vmem:[%s3130_s1 + $0x78] sm:$0xff]   ;;  %p161_p3 = scmp.lt.s32.totalorder %s1825_s13, 3  ;;  %v2464_v2 = vld [vmem:[%s3130_s1 + $0x70] sm:$0xff]   ;;  %v2466_v4 = vld [vmem:[%s3130_s1 + $0x68] sm:$0xff]   ;;  %vm208_vm0 = vsmask.f32 3328 }
   0xc   : > { %v2463_v1 = vld [vmem:[%s3130_s1 + $0x38] sm:$0xff]   ;;  %2221 = vmatprep.subr.bf16.mxu0 %v2462_v0  ;;  %v2465_v3 = vld [vmem:[%s3130_s1 + $0x30] sm:$0xff]   ;;  %v2467_v5 = vld [vmem:[%s3130_s1 + $0x28] sm:$0xff]   ;;  %vm209_vm1 = vsmask.f32 7440  ;;  %vm614_vm3 = vcmask 1042432  }
   0xd   : > { %2245 = vmatprep.subr.bf16.mxu1 %v2463_v1  ;;  %2222 = vmatpush3.bf16.msra.mxu0 %v2462_v0  ;;  %s3152_s13 = smov (!%p161_p3, %s1825_s13), 3  ;;  %v2468_v6 = vld [vmem:[%s3130_s1 + $0x60] sm:$0xff]   ;;  %v2470_v8 = vld [vmem:[%s3130_s1 + $0x58] sm:$0xff]   ;;  %v2472_v10 = vld [vmem:[%s3130_s1 + $0x50] sm:$0xff]   ;;  %vm615_vm4 = vcmask 1046532  }
   0xe   : > { %2246 = vmatpush3.bf16.msra.mxu1 %v2463_v1  ;;  %2223 = vmatprep.subr.bf16.mxu0 %v2464_v2  ;;  %v2469_v7 = vld [vmem:[%s3130_s1 + $0x20] sm:$0xff]   ;;  %s2453_s30 = smul.u32 80, %s3152_s13  ;;  %v2471_v9 = vld [vmem:[%s3130_s1 + $0x18] sm:$0xff]   ;;  %v2473_v14 = vld [vmem:[%s3130_s1 + $0x10] sm:$0xff]   ;;  %s2081_s16 = sshll.u32 %s3152_s13, 5 }
   0xf   : > { %2247 = vmatprep.subr.bf16.mxu1 %v2465_v3  ;;  %v2474_v18 = vld [vmem:[%s3130_s1 + $0x48] sm:$0xff]   ;;  %vm2665_vm2 = vmor %vm208_vm0, %vm209_vm1  ;;  %v2476_v43 = vld [vmem:[%s3130_s1 + $0x40] sm:$0xff]   ;;  %s170_s19 = scalar_lea.vmem %s3132_s3, %s2081_s16 }
  0x10   : > { %s2615_s10 = scalar_lea.vmem %s3129_s0, %s2453_s30  ;;  %v2475_v21 = vld [vmem:[%s3130_s1 + $0x8] sm:$0xff]   ;;  %v2477_v47 = vld [vmem:[%s3130_s1] sm:$0xff]   ;;  %v2480_v57 = vld [vmem:[%s3130_s1 + $0xb8] sm:$0xff]  }
  0x11   : > { %2224 = vmatpush3.bf16.msra.mxu0 %v2464_v2  ;;  %v2621_v11 = vld [vmem:[%s2615_s10] sm:$0xf]  ;;  %v2624_v12 = vld [vmem:[%s2615_s10 + $0x4] sm:$0x1]  ;;  %v2627_v13 = vld [vmem:[%s2615_s10 + $0x8] sm:$0xf] }
  0x12   : > { %2248 = vmatpush3.bf16.msra.mxu1 %v2465_v3  ;;  %2225 = vmatprep.subr.bf16.mxu0 %v2466_v4  ;;  %v2633_v15 = vld [vmem:[%s2615_s10 + $0xc] sm:$0x1]  ;;  %v2636_v16 = vld [vmem:[%s2615_s10 + $0x10] sm:$0xf]  ;;  %v1861_v17 = vcombine.low %v2621_v11, %v2627_v13  ;;  %v212_v19 = vshrl.u32 %v2621_v11, 16  ;;  %v215_v20 = vshll.u32 %v2621_v11, 16  ;;  %vm2775_vm5 = vmor %vm614_vm3, %vm615_vm4 }
  0x13   : > { %2249 = vmatprep.subr.bf16.mxu1 %v2467_v5  ;;  %v2649_v22 = vld [vmem:[%s2615_s10 + $0x14] sm:$0x1]  ;;  %v221_v23 = vshll.u32 %v2624_v12, 16  ;;  %v226_v24 = vshrl.u32 %v2627_v13, 16  ;;  %v229_v25 = vshll.u32 %v2627_v13, 16  ;;  %v235_v26 = vshll.u32 %v2633_v15, 16 }
  0x14   : > { %2261 = vmatprep.mubr.bf16.mxu1 %v1861_v17  ;;  %v214_v27 = vrot.slane %v212_v19, 4  ;;  %v217_v28 = vrot.slane %v215_v20, 5  ;;  %v240_v29 = vshrl.u32 %v2636_v16, 16  ;;  %v243_v30 = vshll.u32 %v2636_v16, 16  ;;  %v2658_v31 = vld [vmem:[%s2615_s10 + $0x18] sm:$0xf] }
  0x15   : > { %2226 = vmatpush3.bf16.msra.mxu0 %v2466_v4  ;;  %v228_v32 = vrot.slane %v226_v24, 4  ;;  %v231_v33 = vrot.slane %v229_v25, 5  ;;  %v2661_v34 = vld [vmem:[%s2615_s10 + $0x1c] sm:$0x1]  ;;  %v223_v36 = vrot.slane %v221_v23, 5  ;;  %v237_v41 = vrot.slane %v235_v26, 5 }
  0x16   : > { %2250 = vmatpush3.bf16.msra.mxu1 %v2467_v5  ;;  %2227 = vmatprep.subr.bf16.mxu0 %v2468_v6  ;;  %v218_v35 = vor.u32 %v217_v28, %v214_v27  ;;  %v242_v37 = vrot.slane %v240_v29, 4  ;;  %v245_v38 = vrot.slane %v243_v30, 5  ;;  %v249_v42 = vshll.u32 %v2649_v22, 16  ;;  %v2481_v61 = vld [vmem:[%s3130_s1 + $0xf8] sm:$0xff]   ;;  %v2482_v3 = vld [vmem:[%s3130_s1 + $0xb0] sm:$0xff]   ;;  %v2484_v25 = vld [vmem:[%s3130_s1 + $0xa8] sm:$0xff]  }
  0x17   : > { %2251 = vmatprep.subr.bf16.mxu1 %v2469_v7  ;;  %v232_v40 = vor.u32 %v231_v33, %v228_v32  ;;  %v254_v46 = vshrl.u32 %v2658_v31, 16  ;;  %v257_v49 = vshll.u32 %v2658_v31, 16  ;;  %v263_v50 = vshll.u32 %v2661_v34, 16  ;;  %v2483_v4 = vld [vmem:[%s3130_s1 + $0xf0] sm:$0xff]   ;;  %v2728_v17 = vld [vmem:[%s2615_s10 + $0x2c] sm:$0x1] }
  0x18   : > { %v219_v44 = vrot.slane %v218_v35, 4  ;;  %v246_v45 = vor.u32 %v245_v38, %v242_v37  ;;  %v251_v55 = vrot.slane %v249_v42, 5  ;;  %v619_v63 = vrot.slane %v2624_v12, 5  ;;  %v2739_v24 = vld [vmem:[%s2615_s10 + $0x30] sm:$0xf]  ;;  %v2514_v39 = vld [vmem:[%s3130_s1 + $0x108] sm:$0xff]  }
  0x19   : > { %2228 = vmatpush3.bf16.msra.mxu0 %v2468_v6  ;;  %v233_v48 = vrot.slane %v232_v40, 4  ;;  %v256_v52 = vrot.slane %v254_v46, 4  ;;  %v259_v56 = vrot.slane %v257_v49, 5  ;;  %v265_v60 = vrot.slane %v263_v50, 5  ;;  %v2713_v6 = vld [vmem:[%s2615_s10 + $0x20] sm:$0xf] }
  0x1a   : > { %2252 = vmatpush3.bf16.msra.mxu1 %v2469_v7  ;;  %2229 = vmatprep.subr.bf16.mxu0 %v2470_v8  ;;  %v224_v51 = vsel %vm2665_vm2, %v219_v44, %v223_v36  ;;  %v247_v54 = vrot.slane %v246_v45, 4  ;;  %v2699_v1 = vcombine.low %v2636_v16, %v2658_v31  ;;  %v623_v2 = vrot.slane %v2633_v15, 5  ;;  %v2752_v29 = vld [vmem:[%s2615_s10 + $0x34] sm:$0x1]  ;;  %v2755_v30 = vld [vmem:[%s2615_s10 + $0x38] sm:$0xf] }
  0x1b   : > { %2253 = vmatprep.subr.bf16.mxu1 %v2471_v9  ;;  %v2683_v53 = vsel %vm2665_vm2, %v233_v48, %v237_v41  ;;  %v260_v59 = vor.u32 %v259_v56, %v256_v52  ;;  %v1873_v7 = vrot.slane %v2621_v11, 9  ;;  %v268_v19 = vshrl.u32 %v2713_v6, 16  ;;  %v2758_v37 = vld [vmem:[%s2615_s10 + $0x3c] sm:$0x1]  ;;  %v2487_v52 = vld [vmem:[%s3130_s1 + $0xe0] sm:$0xff]  }
  0x1c   : > { %v1849_v58 = vcombine.low %v224_v51, %v2683_v53  ;;  %v2694_v62 = vsel %vm2665_vm2, %v247_v54, %v251_v55  ;;  %v271_v20 = vshll.u32 %v2713_v6, 16  ;;  %v291_v27 = vshll.u32 %v2728_v17, 16 }
  0x1d   : > { %2230 = vmatpush3.bf16.msra.mxu0 %v2470_v8  ;;  %v261_v0 = vrot.slane %v260_v59, 4  ;;  %v1874_v8 = vrot.slane %v2627_v13, 9  ;;  %v270_v32 = vrot.slane %v268_v19, 4  ;;  %v296_v41 = vshrl.u32 %v2739_v24, 16 }
  0x1e   : > { %2254 = vmatpush3.bf16.msra.mxu1 %v2471_v9  ;;  %2231 = vmatprep.subr.bf16.mxu0 %v2472_v10  ;;  %v273_v33 = vrot.slane %v271_v20, 5  ;;  %v293_v40 = vrot.slane %v291_v27, 5  ;;  %v299_v42 = vshll.u32 %v2739_v24, 16  ;;  %v305_v44 = vshll.u32 %v2752_v29, 16 }
  0x1f   : > { %2255 = vmatprep.subr.bf16.mxu1 %v2473_v14  ;;  %2237 = vmatprep.mubr.bf16.mxu0 %v1849_v58  ;;  %v2710_v5 = vsel %vm2665_vm2, %v261_v0, %v265_v60  ;;  %v310_v45 = vshrl.u32 %v2755_v30, 16  ;;  %v313_v46 = vshll.u32 %v2755_v30, 16  ;;  %v298_v49 = vrot.slane %v296_v41, 4 }
  0x20   : > { %v2719_v9 = vcombine.low %v2694_v62, %v2710_v5  ;;  %v301_v50 = vrot.slane %v299_v42, 5  ;;  %v319_v51 = vshll.u32 %v2758_v37, 16  ;;  %v307_v60 = vrot.slane %v305_v44, 5  ;;  %v2496_v42 = vld [vmem:[%s3130_s1 + $0x80] sm:$0xff]  }
  0x21   : > { %2232 = vmatpush3.bf16.msra.mxu0 %v2472_v10  ;;  %v2722_v10 = vld [vmem:[%s2615_s10 + $0x24] sm:$0x1]  ;;  %v312_v55 = vrot.slane %v310_v45, 4  ;;  %v315_v56 = vrot.slane %v313_v46, 5  ;;  %v1925_v19 = vcombine.low %v2627_v13, %v2636_v16  ;;  %v2488_v13 = vld [vmem:[%s3130_s1 + $0x98] sm:$0xff]   ;;  %v627_v27 = vrot.slane %v2649_v22, 5 }
  0x22   : > { %2256 = vmatpush3.bf16.msra.mxu1 %v2473_v14  ;;  %2233 = vmatprep.subr.bf16.mxu0 %v2474_v18  ;;  %v2725_v14 = vld [vmem:[%s2615_s10 + $0x28] sm:$0xf]  ;;  %v302_v59 = vor.u32 %v301_v50, %v298_v49  ;;  %v1877_v41 = vrot.slane %v2713_v6, 9  ;;  %v639_v45 = vrot.slane %v2728_v17, 5  ;;  %v1926_v17 = vcombine.low %v2658_v31, %v2713_v6  ;;  %v2500_v50 = vld [vmem:[%s3130_s1 + $0x138] sm:$0xff]  }
  0x23   : > { %2257 = vmatprep.subr.bf16.mxu1 %v2475_v21  ;;  %v282_v23 = vshrl.u32 %v2725_v14, 16  ;;  %v285_v26 = vshll.u32 %v2725_v14, 16  ;;  %v2749_v28 = vcombine.low %v2713_v6, %v2725_v14  ;;  %v1878_v44 = vrot.slane %v2725_v14, 9 }
  0x24   : > { %v1880_v6 = vrot.slane %v2755_v30, 9 }
  0x25   : > { %2234 = vmatpush3.bf16.msra.mxu0 %v2474_v18  ;;  %v2485_v18 = vld [vmem:[%s3130_s1 + $0xe8] sm:$0xff]   ;;  %v284_v36 = vrot.slane %v282_v23, 4  ;;  %v287_v38 = vrot.slane %v285_v26, 5  ;;  %v620_v23 = vsel %vm2775_vm5, %v1873_v7, %v619_v63  ;;  %v2805_v26 = vsel %vm2775_vm5, %v1874_v8, %v623_v2  ;;  %v2493_v8 = vld [vmem:[%s3130_s1 + $0xd0] sm:$0xff]  }
  0x26   : > { %2258 = vmatpush3.bf16.msra.mxu1 %v2475_v21  ;;  %2235 = vmatprep.subr.bf16.mxu0 %v2476_v43  ;;  %v277_v21 = vshll.u32 %v2722_v10, 16  ;;  %v1897_v2 = vcombine.low %v620_v23, %v2805_v26 }
  0x27   : > { %2259 = vmatprep.subr.bf16.mxu1 %v2477_v47  ;;  %v288_v48 = vor.u32 %v287_v38, %v284_v36  ;;  %v2494_v36 = vld [vmem:[%s3130_s1 + $0x88] sm:$0xff]   ;;  %v1876_v38 = vrot.slane %v2658_v31, 9 }
  0x28   : > { %v279_v35 = vrot.slane %v277_v21, 5  ;;  %v303_v21 = vrot.slane %v302_v59, 4  ;;  %v2503_v59 = vld [vmem:[%s3130_s1 + $0x170] sm:$0xff]  }
  0x29   : > { %2236 = vmatpush3.bf16.msra.mxu0 %v2476_v43  ;;  %v274_v43 = vor.u32 %v273_v33, %v270_v32  ;;  %v289_v58 = vrot.slane %v288_v48, 4  ;;  %v631_v32 = vrot.slane %v2661_v34, 5  ;;  %v2495_v33 = vld [vmem:[%s3130_s1 + $0xc8] sm:$0xff]  }
  0x2a   : > { %2260 = vmatpush3.bf16.msra.mxu1 %v2477_v47  ;;  %2269 = vmatprep.subr.bf16.mxu0 %v2480_v57  ;;  %v2486_v47 = vld [vmem:[%s3130_s1 + $0xa0] sm:$0xff]   ;;  %v2819_v15 = vsel %vm2665_vm2, %v303_v21, %v307_v60 }
  0x2b   : > { %2293 = vmatprep.subr.bf16.mxu1 %v2481_v61  ;;  %v275_v54 = vrot.slane %v274_v43, 4  ;;  %v2791_v20 = vsel %vm2665_vm2, %v289_v58, %v293_v40  ;;  %v2850_v40 = vld [vmem:[%s2615_s10 + $0x40] sm:$0xf]  ;;  %v635_v43 = vrot.slane %v2722_v10, 5  ;;  %v2870_v49 = vsel %vm2775_vm5, %v1876_v38, %v631_v32  ;;  %v2501_v10 = vld [vmem:[%s3130_s1 + $0x178] sm:$0xff]  }
  0x2c   : > { %2238 = vmatmul.mubr.bf16.vlgmr.msra.gmra.mxu0 %v2719_v9  ;;  %v952_v22 = vshrl.u32 %v2850_v40, 16  ;;  %v955_v34 = vshll.u32 %v2850_v40, 16 }
  0x2d   : > { %2262 = vmatmul.mubr.bf16.vlgmr.msra.gmra.mxu1 %v2699_v1  ;;  %2270 = vmatpush3.bf16.msra.mxu0 %v2480_v57  ;;  %v2785_v0 = vsel %vm2665_vm2, %v275_v54, %v279_v35  ;;  %v1875_v35 = vrot.slane %v2636_v16, 9  ;;  %v2497_v16 = vld [vmem:[%s3130_s1 + $0xc0] sm:$0xff]   ;;  %v1879_v54 = vrot.slane %v2739_v24, 9 }
  0x2e   : > { %2294 = vmatpush3.bf16.msra.mxu1 %v2481_v61  ;;  %2271 = vmatprep.subr.bf16.mxu0 %v2482_v3  ;;  %v2781_v61 = vcombine.low %v2739_v24, %v2755_v30  ;;  %v2812_v11 = vcombine.low %v2785_v0, %v2791_v20  ;;  %v954_v46 = vrot.slane %v952_v22, 4  ;;  %v2508_v57 = vld [vmem:[%s3130_s1 + $0x120] sm:$0xff]  }
  0x2f   : > { %2295 = vmatprep.subr.bf16.mxu1 %v2483_v4  ;;  %2265 = vmatprep.mubr.bf16.mxu1 %v2749_v28  ;;  %v2866_v48 = vsel %vm2775_vm5, %v1875_v35, %v627_v27  ;;  %v1928_v35 = vcombine.low %v2755_v30, %v2850_v40  ;;  %v2509_v30 = vld [vmem:[%s3130_s1 + $0x160] sm:$0xff]  }
  0x30   : > { %2241 = vmatprep.mubr.bf16.mxu0 %v2812_v11  ;;  %v2892_v31 = vcombine.low %v2866_v48, %v2870_v49 }
  0x31   : > { %2272 = vmatpush3.bf16.msra.mxu0 %v2482_v3  ;;  %v316_v3 = vor.u32 %v315_v56, %v312_v55  ;;  %v643_v55 = vrot.slane %v2752_v29, 5  ;;  %v647_v56 = vrot.slane %v2758_v37, 5  ;;  %v2502_v29 = vld [vmem:[%s3130_s1 + $0x130] sm:$0xff]   ;;  %v1965_v37 = vrot.slane %v2850_v40, 9 }
  0x32   : > { %2296 = vmatpush3.bf16.msra.mxu1 %v2483_v4  ;;  %2273 = vmatprep.subr.bf16.mxu0 %v2484_v25  ;;  %v321_v4 = vrot.slane %v319_v51, 5  ;;  %v2882_v51 = vsel %vm2775_vm5, %v1877_v41, %v635_v43 }
  0x33   : > { %2297 = vmatprep.subr.bf16.mxu1 %v2485_v18  ;;  %v317_v12 = vrot.slane %v316_v3, 4  ;;  %v1927_v3 = vcombine.low %v2725_v14, %v2739_v24  ;;  %v2917_v21 = vsel %vm2775_vm5, %v1880_v6, %v647_v56  ;;  %v2505_v14 = vld [vmem:[%s3130_s1 + $0x168] sm:$0xff]   ;;  %v2517_v6 = vld [vmem:[%s3130_s1 + $0x140] sm:$0xff]  }
  0x34   : > { %v2923_v24 = vld [vmem:[%s2615_s10 + $0x48] sm:$0xf]  ;;  %v2516_v56 = vld [vmem:[%s3130_s1 + $0x100] sm:$0xff]  }
  0x35   : > { %2274 = vmatpush3.bf16.msra.mxu0 %v2484_v25  ;;  %2266 = vmatmul.mubr.bf16.gmra.mxu1 %v2781_v61  ;;  %v2825_v63 = vsel %vm2665_vm2, %v317_v12, %v321_v4  ;;  %v2492_v25 = vld [vmem:[%s3130_s1 + $0x90] sm:$0xff]   ;;  %v189_v4 = vld [vmem:[%s2615_s10 + $0x44] sm:$0x1]  ;;  %v191_v12 = vld [vmem:[%s2615_s10 + $0x4c] sm:$0x1]  ;;  %v2010_v32 = vcombine.low %v2850_v40, %v2923_v24  ;;  %v1410_v41 = vshll.u32 %v2923_v24, 16 }
  0x36   : > { %2298 = vmatpush3.bf16.msra.mxu1 %v2485_v18  ;;  %v2489_v18 = vld [vmem:[%s3130_s1 + $0xd8] sm:$0xff]   ;;  %2275 = vmatprep.subr.bf16.mxu0 %v2486_v47  ;;  %v2830_v7 = vcombine.low %v2819_v15, %v2825_v63  ;;  %v1564_v27 = vrot.slane %v191_v12, 5  ;;  %v2542_v40 = vld [vmem:[%s3130_s1 + $0x200] sm:$0xff]  }
  0x37   : > { %2299 = vmatprep.subr.bf16.mxu1 %v2487_v52  ;;  %2309 = vmatprep.mubr.bf16.mxu1 %v1925_v19  ;;  %v2913_v19 = vsel %vm2775_vm5, %v1879_v54, %v643_v55  ;;  %v2515_v55 = vld [vmem:[%s3130_s1 + $0x148] sm:$0xff]  }
  0x38   : > { %2242 = vmatmul.mubr.bf16.gmra.mxu0 %v2830_v7 }
  0x39   : > { %2276 = vmatpush3.bf16.msra.mxu0 %v2486_v47  ;;  %2285 = vmatprep.mubr.bf16.mxu0 %v1897_v2  ;;  %v957_v47 = vrot.slane %v955_v34, 5  ;;  %v2504_v2 = vld [vmem:[%s3130_s1 + $0x128] sm:$0xff]   ;;  %v1407_v34 = vshrl.u32 %v2923_v24, 16 }
  0x3a   : > { %2300 = vmatpush3.bf16.msra.mxu1 %v2487_v52  ;;  %2277 = vmatprep.subr.bf16.mxu0 %v2488_v13  ;;  %v2886_v52 = vsel %vm2775_vm5, %v1878_v44, %v639_v45  ;;  %v1982_v44 = vcombine.low %v2805_v26, %v2866_v48  ;;  %v1412_v45 = vrot.slane %v1410_v41, 5  ;;  %v2513_v48 = vld [vmem:[%s3130_s1 + $0x150] sm:$0xff]  }
  0x3b   : > { %2301 = vmatprep.subr.bf16.mxu1 %v2489_v18  ;;  %v958_v58 = vor.u32 %v957_v47, %v954_v46  ;;  %v2904_v60 = vcombine.low %v2882_v51, %v2886_v52  ;;  %v1409_v43 = vrot.slane %v1407_v34, 4  ;;  %v1416_v46 = vshll.u32 %v191_v12, 16  ;;  %v2510_v47 = vld [vmem:[%s3130_s1 + $0x118] sm:$0xff]   ;;  %v2532_v12 = vld [vmem:[%s3130_s1 + $0x180] sm:$0xff]  }
  0x3d   : > { %2278 = vmatpush3.bf16.msra.mxu0 %v2488_v13  ;;  %v959_v23 = vrot.slane %v958_v58, 4  ;;  %v1115_v13 = vrot.slane %v189_v4, 5  ;;  %v2519_v58 = vld [vmem:[%s3130_s1 + $0x1f8] sm:$0xff]  }
  0x3e   : > { %2302 = vmatpush3.bf16.msra.mxu1 %v2489_v18  ;;  %2279 = vmatprep.subr.bf16.mxu0 %v2492_v25  ;;  %v961_v18 = vshll.u32 %v189_v4, 16  ;;  %v2520_v4 = vld [vmem:[%s3130_s1 + $0x1b0] sm:$0xff]  }
  0x3f   : > { %2303 = vmatprep.subr.bf16.mxu1 %v2493_v8  ;;  %v2945_v38 = vsel %vm2775_vm5, %v1965_v37, %v1115_v13  ;;  %v1954_v37 = vcombine.low %v2710_v5, %v2785_v0  ;;  %v2523_v5 = vld [vmem:[%s3130_s1 + $0x1e8] sm:$0xff]   ;;  %v2534_v13 = vld [vmem:[%s3130_s1 + $0x238] sm:$0xff]  }
  0x40   : > { %v2522_v0 = vld [vmem:[%s3130_s1 + $0x1a8] sm:$0xff]  }
  0x41   : > { %2280 = vmatpush3.bf16.msra.mxu0 %v2492_v25  ;;  %v2044_v25 = vrot.slane %v2923_v24, 9 }
  0x42   : > { %2304 = vmatpush3.bf16.msra.mxu1 %v2493_v8  ;;  %2281 = vmatprep.subr.bf16.mxu0 %v2494_v36  ;;  %v963_v8 = vrot.slane %v961_v18, 5  ;;  %v2528_v18 = vld [vmem:[%s3130_s1 + $0x190] sm:$0xff]  }
  0x43   : > { %2305 = vmatprep.subr.bf16.mxu1 %v2495_v33  ;;  %v2949_v22 = vsel %vm2775_vm5, %v2044_v25, %v1564_v27 }
  0x45   : > { %2282 = vmatpush3.bf16.msra.mxu0 %v2494_v36  ;;  %v2941_v36 = vsel %vm2665_vm2, %v959_v23, %v963_v8  ;;  %v1955_v23 = vcombine.low %v2791_v20, %v2819_v15  ;;  %v1985_v20 = vcombine.low %v2917_v21, %v2945_v38  ;;  %v2537_v8 = vld [vmem:[%s3130_s1 + $0x228] sm:$0xff]  }
  0x46   : > { %2306 = vmatpush3.bf16.msra.mxu1 %v2495_v33  ;;  %2283 = vmatprep.subr.bf16.mxu0 %v2496_v42  ;;  %v2935_v33 = vcombine.low %v2913_v19, %v2917_v21  ;;  %v1956_v15 = vcombine.low %v2825_v63, %v2941_v36  ;;  %v2527_v63 = vld [vmem:[%s3130_s1 + $0x1d8] sm:$0xff]   ;;  %v2529_v21 = vld [vmem:[%s3130_s1 + $0x1d0] sm:$0xff]  }
  0x47   : > { %2307 = vmatprep.subr.bf16.mxu1 %v2497_v16 }
  0x49   : > { %2284 = vmatpush3.bf16.msra.mxu0 %v2496_v42  ;;  %v1953_v42 = vcombine.low %v2683_v53, %v2694_v62  ;;  %v2511_v53 = vld [vmem:[%s3130_s1 + $0x158] sm:$0xff]   ;;  %v1413_v62 = vor.u32 %v1412_v45, %v1409_v43 }
  0x4a   : > { %2308 = vmatpush3.bf16.msra.mxu1 %v2497_v16  ;;  %2317 = vmatprep.subr.bf16.mxu0 %v2500_v50  ;;  %v2061_v16 = vcombine.low %v2945_v38, %v2949_v22 }
  0x4b   : > { %2341 = vmatprep.subr.bf16.mxu1 %v2501_v10  ;;  %v1414_v26 = vrot.slane %v1413_v62, 4 }
  0x4c   : > { %2286 = vmatmul.mubr.bf16.vlgmr.msra.gmra.mxu0 %v2892_v31 }
  0x4d   : > { %2310 = vmatmul.mubr.bf16.vlgmr.msra.gmra.mxu1 %v1926_v17  ;;  %2318 = vmatpush3.bf16.msra.mxu0 %v2500_v50  ;;  %v2512_v50 = vld [vmem:[%s3130_s1 + $0x110] sm:$0xff]  }
  0x4e   : > { %2342 = vmatpush3.bf16.msra.mxu1 %v2501_v10  ;;  %2319 = vmatprep.subr.bf16.mxu0 %v2502_v29  ;;  %v1418_v10 = vrot.slane %v1416_v46, 5 }
  0x4f   : > { %2343 = vmatprep.subr.bf16.mxu1 %v2503_v59  ;;  %2289 = vmatprep.mubr.bf16.mxu0 %v2904_v60 }
  0x50   : > { %2313 = vmatprep.mubr.bf16.mxu1 %v1927_v3  ;;  %v1419_v17 = vsel %vm2665_vm2, %v1414_v26, %v1418_v10  ;;  %v2521_v3 = vld [vmem:[%s3130_s1 + $0x1f0] sm:$0xff]  }
  0x51   : > { %2320 = vmatpush3.bf16.msra.mxu0 %v2502_v29  ;;  %v2981_v54 = vcombine.low %v2941_v36, %v1419_v17  ;;  %v1983_v29 = vcombine.low %v2870_v49, %v2882_v51  ;;  %v1984_v49 = vcombine.low %v2886_v52, %v2913_v19  ;;  %v2525_v51 = vld [vmem:[%s3130_s1 + $0x1e0] sm:$0xff]   ;;  %v2526_v19 = vld [vmem:[%s3130_s1 + $0x198] sm:$0xff]  }
  0x52   : > { %2344 = vmatpush3.bf16.msra.mxu1 %v2503_v59  ;;  %2321 = vmatprep.subr.bf16.mxu0 %v2504_v2  ;;  %v2518_v59 = vld [vmem:[%s3130_s1 + $0x1b8] sm:$0xff]   ;;  %v2524_v52 = vld [vmem:[%s3130_s1 + $0x1a0] sm:$0xff]  }
  0x53   : > { %2345 = vmatprep.subr.bf16.mxu1 %v2505_v14 }
  0x54   : > { %2290 = vmatmul.mubr.bf16.gmra.mxu0 %v2935_v33 }
  0x55   : > { %2314 = vmatmul.mubr.bf16.gmra.mxu1 %v1928_v35  ;;  %2322 = vmatpush3.bf16.msra.mxu0 %v2504_v2  ;;  %v2535_v2 = vld [vmem:[%s3130_s1 + $0x230] sm:$0xff]  }
  0x56   : > { %2346 = vmatpush3.bf16.msra.mxu1 %v2505_v14  ;;  %2323 = vmatprep.subr.bf16.mxu0 %v2508_v57  ;;  %v2533_v14 = vld [vmem:[%s3130_s1 + $0x1c0] sm:$0xff]  }
  0x57   : > { %2347 = vmatprep.subr.bf16.mxu1 %v2509_v30  ;;  %2333 = vmatprep.mubr.bf16.mxu0 %v1953_v42 }
  0x58   : > { %2357 = vmatprep.mubr.bf16.mxu1 %v1982_v44 }
  0x59   : > { %2324 = vmatpush3.bf16.msra.mxu0 %v2508_v57 }
  0x5a   : > { %2348 = vmatpush3.bf16.msra.mxu1 %v2509_v30  ;;  %2325 = vmatprep.subr.bf16.mxu0 %v2510_v47 }
  0x5b   : > { %2349 = vmatprep.subr.bf16.mxu1 %v2511_v53 }
  0x5d   : > { %2326 = vmatpush3.bf16.msra.mxu0 %v2510_v47 }
  0x5e   : > { %2350 = vmatpush3.bf16.msra.mxu1 %v2511_v53  ;;  %2327 = vmatprep.subr.bf16.mxu0 %v2512_v50 }
  0x5f   : > { %2351 = vmatprep.subr.bf16.mxu1 %v2513_v48 }
  0x61   : > { %2328 = vmatpush3.bf16.msra.mxu0 %v2512_v50 }
  0x62   : > { %2352 = vmatpush3.bf16.msra.mxu1 %v2513_v48  ;;  %2329 = vmatprep.subr.bf16.mxu0 %v2514_v39 }
  0x63   : > { %2353 = vmatprep.subr.bf16.mxu1 %v2515_v55 }
  0x65   : > { %2330 = vmatpush3.bf16.msra.mxu0 %v2514_v39 }
  0x66   : > { %2354 = vmatpush3.bf16.msra.mxu1 %v2515_v55  ;;  %2331 = vmatprep.subr.bf16.mxu0 %v2516_v56 }
  0x67   : > { %2355 = vmatprep.subr.bf16.mxu1 %v2517_v6 }
  0x69   : > { %2332 = vmatpush3.bf16.msra.mxu0 %v2516_v56 }
  0x6a   : > { %2356 = vmatpush3.bf16.msra.mxu1 %v2517_v6  ;;  %2365 = vmatprep.subr.bf16.mxu0 %v2518_v59 }
  0x6b   : > { %2389 = vmatprep.subr.bf16.mxu1 %v2519_v58 }
  0x6c   : > { %2334 = vmatmul.mubr.bf16.vlgmr.msra.gmra.mxu0 %v1954_v37 }
  0x6d   : > { %2358 = vmatmul.mubr.bf16.vlgmr.msra.gmra.mxu1 %v1983_v29  ;;  %2366 = vmatpush3.bf16.msra.mxu0 %v2518_v59 }
  0x6e   : > { %2390 = vmatpush3.bf16.msra.mxu1 %v2519_v58  ;;  %2367 = vmatprep.subr.bf16.mxu0 %v2520_v4 }
  0x6f   : > { %2391 = vmatprep.subr.bf16.mxu1 %v2521_v3  ;;  %2337 = vmatprep.mubr.bf16.mxu0 %v1955_v23 }
  0x70   : > { %2361 = vmatprep.mubr.bf16.mxu1 %v1984_v49 }
  0x71   : > { %2368 = vmatpush3.bf16.msra.mxu0 %v2520_v4 }
  0x72   : > { %2392 = vmatpush3.bf16.msra.mxu1 %v2521_v3  ;;  %2369 = vmatprep.subr.bf16.mxu0 %v2522_v0 }
  0x73   : > { %2393 = vmatprep.subr.bf16.mxu1 %v2523_v5 }
  0x74   : > { %2338 = vmatmul.mubr.bf16.gmra.mxu0 %v1956_v15 }
  0x75   : > { %2362 = vmatmul.mubr.bf16.gmra.mxu1 %v1985_v20  ;;  %2370 = vmatpush3.bf16.msra.mxu0 %v2522_v0 }
  0x76   : > { %2394 = vmatpush3.bf16.msra.mxu1 %v2523_v5  ;;  %2371 = vmatprep.subr.bf16.mxu0 %v2524_v52 }
  0x77   : > { %2395 = vmatprep.subr.bf16.mxu1 %v2525_v51  ;;  %2381 = vmatprep.mubr.bf16.mxu0 %v2699_v1  ;;  %v2531_v1 = vld [vmem:[%s3130_s1 + $0x1c8] sm:$0xff]  }
  0x78   : > { %2405 = vmatprep.mubr.bf16.mxu1 %v2719_v9  ;;  %v2530_v9 = vld [vmem:[%s3130_s1 + $0x188] sm:$0xff]  }
  0x79   : > { %2372 = vmatpush3.bf16.msra.mxu0 %v2524_v52 }
  0x7a   : > { %2396 = vmatpush3.bf16.msra.mxu1 %v2525_v51  ;;  %2373 = vmatprep.subr.bf16.mxu0 %v2526_v19 }
  0x7b   : > { %2397 = vmatprep.subr.bf16.mxu1 %v2527_v63 }
  0x7d   : > { %2374 = vmatpush3.bf16.msra.mxu0 %v2526_v19 }
  0x7e   : > { %2398 = vmatpush3.bf16.msra.mxu1 %v2527_v63  ;;  %2375 = vmatprep.subr.bf16.mxu0 %v2528_v18 }
  0x7f   : > { %2399 = vmatprep.subr.bf16.mxu1 %v2529_v21 }
  0x81   : > { %2376 = vmatpush3.bf16.msra.mxu0 %v2528_v18 }
  0x82   : > { %2400 = vmatpush3.bf16.msra.mxu1 %v2529_v21  ;;  %2377 = vmatprep.subr.bf16.mxu0 %v2530_v9 }
  0x83   : > { %2401 = vmatprep.subr.bf16.mxu1 %v2531_v1 }
  0x85   : > { %2378 = vmatpush3.bf16.msra.mxu0 %v2530_v9 }
  0x86   : > { %2402 = vmatpush3.bf16.msra.mxu1 %v2531_v1  ;;  %2379 = vmatprep.subr.bf16.mxu0 %v2532_v12 }
  0x87   : > { %2403 = vmatprep.subr.bf16.mxu1 %v2533_v14 }
  0x89   : > { %2380 = vmatpush3.bf16.msra.mxu0 %v2532_v12 }
  0x8a   : > { %2404 = vmatpush3.bf16.msra.mxu1 %v2533_v14  ;;  %2413 = vmatprep.subr.bf16.mxu0 %v2534_v13 }
  0x8b   : > { %2437 = vmatprep.subr.bf16.mxu1 %v2534_v13 }
  0x8c   : > { %2382 = vmatmul.mubr.bf16.vlgmr.msra.gmra.mxu0 %v2749_v28  ;;  %v2539_v28 = vld [vmem:[%s3130_s1 + $0x218] sm:$0xff]  }
  0x8d   : > { %2406 = vmatmul.mubr.bf16.vlgmr.msra.gmra.mxu1 %v2812_v11  ;;  %2414 = vmatpush3.bf16.msra.mxu0 %v2534_v13  ;;  %v2538_v11 = vld [vmem:[%s3130_s1 + $0x220] sm:$0xff]  }
  0x8e   : > { %2445 = vmatpush3.bf16.msra.mxu1 %v2534_v13  ;;  %2415 = vmatprep.subr.bf16.mxu0 %v2535_v2 }
  0x8f   : > { %2438 = vmatprep.subr.bf16.mxu1 %v2535_v2  ;;  %2385 = vmatprep.mubr.bf16.mxu0 %v2781_v61  ;;  %v2540_v61 = vld [vmem:[%s3130_s1 + $0x210] sm:$0xff]  }
  0x90   : > { %2409 = vmatprep.mubr.bf16.mxu1 %v2830_v7  ;;  %v2541_v7 = vld [vmem:[%s3130_s1 + $0x208] sm:$0xff]  }
  0x91   : > { %2416 = vmatpush3.bf16.msra.mxu0 %v2535_v2 }
  0x92   : > { %2446 = vmatpush3.bf16.msra.mxu1 %v2535_v2  ;;  %2417 = vmatprep.subr.bf16.mxu0 %v2537_v8 }
  0x93   : > { %2439 = vmatprep.subr.bf16.mxu1 %v2537_v8 }
  0x94   : > { %2386 = vmatmul.mubr.bf16.gmra.mxu0 %v2010_v32 }
  0x95   : > { %2410 = vmatmul.mubr.bf16.gmra.mxu1 %v2981_v54  ;;  %2418 = vmatpush3.bf16.msra.mxu0 %v2537_v8 }
  0x96   : > { %2447 = vmatpush3.bf16.msra.mxu1 %v2537_v8  ;;  %2419 = vmatprep.subr.bf16.mxu0 %v2538_v11 }
  0x97   : > { %2440 = vmatprep.subr.bf16.mxu1 %v2538_v11  ;;  %2429 = vmatprep.mubr.bf16.mxu0 %v2892_v31 }
  0x98   : > { %2433 = vmatprep.mubr.bf16.mxu1 %v2935_v33 }
  0x99   : > { %2420 = vmatpush3.bf16.msra.mxu0 %v2538_v11 }
  0x9a   : > { %2448 = vmatpush3.bf16.msra.mxu1 %v2538_v11  ;;  %2421 = vmatprep.subr.bf16.mxu0 %v2539_v28 }
  0x9b   : > { %2441 = vmatprep.subr.bf16.mxu1 %v2539_v28 }
  0x9d   : > { %2422 = vmatpush3.bf16.msra.mxu0 %v2539_v28 }
  0x9e   : > { %2449 = vmatpush3.bf16.msra.mxu1 %v2539_v28  ;;  %2423 = vmatprep.subr.bf16.mxu0 %v2540_v61 }
  0x9f   : > { %2442 = vmatprep.subr.bf16.mxu1 %v2540_v61 }
  0xa1   : > { %2424 = vmatpush3.bf16.msra.mxu0 %v2540_v61 }
  0xa2   : > { %2450 = vmatpush3.bf16.msra.mxu1 %v2540_v61  ;;  %2425 = vmatprep.subr.bf16.mxu0 %v2541_v7 }
  0xa3   : > { %2443 = vmatprep.subr.bf16.mxu1 %v2541_v7 }
  0xa5   : > { %2426 = vmatpush3.bf16.msra.mxu0 %v2541_v7 }
  0xa6   : > { %2451 = vmatpush3.bf16.msra.mxu1 %v2541_v7  ;;  %2427 = vmatprep.subr.bf16.mxu0 %v2542_v40 }
  0xa7   : > { %2444 = vmatprep.subr.bf16.mxu1 %v2542_v40 }
  0xa9   : > { %2428 = vmatpush3.bf16.msra.mxu0 %v2542_v40 }
  0xaa   : > { %2452 = vmatpush3.bf16.msra.mxu1 %v2542_v40 }
  0xac   : > { %2430 = vmatmul.mubr.bf16.vlgmr.msra.gmra.mxu0 %v2904_v60 }
  0xad   : > { %2434 = vmatmul.mubr.bf16.vlgmr.msra.gmra.mxu1 %v2061_v16 }
  0xec   : > { %v2239_v31 = vpop.f32.mrf.mxu0 }
  0xed   : > { %v2263_v25 = vpop.f32.mrf.mxu1 }
  0xee   : > { %v438_v24 = vpop.f32.mrf.mxu0  ;;  %v584_v12 = vadd.f32 %v2263_v25, %v2239_v31 }
  0xef   : > { %v575_v32 = vpop.f32.mrf.mxu1 }
  0xf0   : > { %v2240_v27 = vpop.f32.mrf.mxu0  ;;  %v576_v11 = vadd.f32 %v575_v32, %v438_v24 }
  0xf1   : > { %v2264_v35 = vpop.f32.mrf.mxu1 }
  0xf2   : > { %v3095_v33 = vpop.f32.mrf.mxu0 }
  0xf3   : > { %3137 = vst [vmem:[#allocation2_spill] sm:$0xff] %v3095_v33  ;;  %v3097_v34 = vpop.f32.mrf.mxu1 }
  0xf4   : > { %3138 = vst [vmem:[#allocation3_spill] sm:$0xff] %v3097_v34 }
  0xf5   : > { %v2267_v41 = vpop.f32.mrf.mxu1 }
  0xf7   : > { %v591_v57 = vpop.f32.mrf.mxu1 }
  0xf8   : > { %v2243_v36 = vpop.f32.mrf.mxu0 }
  0xf9   : > { %v2268_v38 = vpop.f32.mrf.mxu1  ;;  %v600_v14 = vadd.f32 %v2267_v41, %v2243_v36 }
  0xfa   : > { %v454_v30 = vpop.f32.mrf.mxu0  ;;  %v3144_v36 = vld [vmem:[#allocation2_spill] sm:$0xff] }
  0xfb   : > { %v594_v16 = vpop.f32.mrf.mxu1  ;;  %v592_v2 = vadd.f32 %v591_v57, %v454_v30  ;;  %v3145_v41 = vld [vmem:[#allocation3_spill] sm:$0xff] }
  0xfc   : > { %v2244_v42 = vpop.f32.mrf.mxu0  ;;  %v579_v25 = vadd.f32 %v3145_v41, %v3144_v36 }
  0xfd   : > { %v603_v7 = vadd.f32 %v2268_v38, %v2244_v42 }
  0xfe   : > { %v457_v43 = vpop.f32.mrf.mxu0 }
  0xff   : > { %v595_v33 = vadd.f32 %v594_v16, %v457_v43 }
 0x10c   : > { %v2287_v22 = vpop.f32.mrf.mxu0 }
 0x10d   : > { %v2311_v44 = vpop.f32.mrf.mxu1  ;;  %v797_v28 = vadd.f32 %v2287_v22, %v584_v12 }
 0x10e   : > { %v764_v60 = vpop.f32.mrf.mxu0 }
 0x10f   : > { %v912_v46 = vpop.f32.mrf.mxu1  ;;  %v945_v31 = vadd.f32 %v2311_v44, %v797_v28 }
 0x110   : > { %v2288_v45 = vpop.f32.mrf.mxu0 }
 0x111   : > { %v2312_v62 = vpop.f32.mrf.mxu1 }
 0x112   : > { %v767_v53 = vpop.f32.mrf.mxu0 }
 0x113   : > { %v3099_v10 = vpop.f32.mrf.mxu1  ;;  %v796_v22 = vadd.f32 %v767_v53, %v579_v25 }
 0x114   : > { %v2291_v47 = vpop.f32.mrf.mxu0  ;;  %3139 = vst [vmem:[#allocation4_spill] sm:$0xff] %v3099_v10 }
 0x115   : > { %v2315_v48 = vpop.f32.mrf.mxu1  ;;  %v801_v8 = vadd.f32 %v2291_v47, %v600_v14 }
 0x116   : > { %v780_v26 = vpop.f32.mrf.mxu0 }
 0x117   : > { %v928_v50 = vpop.f32.mrf.mxu1  ;;  %v799_v40 = vadd.f32 %v780_v26, %v592_v2 }
 0x118   : > { %v2292_v17 = vpop.f32.mrf.mxu0 }
 0x119   : > { %v2316_v55 = vpop.f32.mrf.mxu1  ;;  %v947_v57 = vadd.f32 %v928_v50, %v799_v40 }
 0x11a   : > { %v783_v54 = vpop.f32.mrf.mxu0 }
 0x11b   : > { %v931_v6 = vpop.f32.mrf.mxu1  ;;  %v800_v47 = vadd.f32 %v783_v54, %v595_v33 }
 0x11d   : > { %v948_v43 = vadd.f32 %v931_v6, %v800_v47 }
 0x12c   : > { %v2335_v39 = vpop.f32.mrf.mxu0 }
 0x12d   : > { %v2359_v56 = vpop.f32.mrf.mxu1  ;;  %v1106_v14 = vadd.f32 %v2335_v39, %v945_v31 }
 0x12e   : > { %v1073_v58 = vpop.f32.mrf.mxu0 }
 0x12f   : > { %v1225_v59 = vpop.f32.mrf.mxu1  ;;  %v1258_v2 = vadd.f32 %v2359_v56, %v1106_v14 }
 0x130   : > { %v2336_v29 = vpop.f32.mrf.mxu0 }
 0x131   : > { %v3101_v37 = vpop.f32.mrf.mxu1 }
 0x132   : > { %3140 = vst [vmem:[#allocation5_spill] sm:$0xff] %v3101_v37  ;;  %v1076_v3 = vpop.f32.mrf.mxu0  ;;  %v795_v37 = vadd.f32 %v764_v60, %v576_v11 }
 0x133   : > { %v3103_v4 = vpop.f32.mrf.mxu1 }
 0x134   : > { %3141 = vst [vmem:[#allocation6_spill] sm:$0xff] %v3103_v4  ;;  %v2339_v23 = vpop.f32.mrf.mxu0  ;;  %v587_v4 = vadd.f32 %v2264_v35, %v2240_v27  ;;  %v943_v32 = vadd.f32 %v912_v46, %v795_v37 }
 0x135   : > { %v2363_v49 = vpop.f32.mrf.mxu1 }
 0x136   : > { %v1089_v5 = vpop.f32.mrf.mxu0  ;;  %v798_v30 = vadd.f32 %v2288_v45, %v587_v4  ;;  %v1104_v26 = vadd.f32 %v1073_v58, %v943_v32 }
 0x137   : > { %v1241_v0 = vpop.f32.mrf.mxu1  ;;  %v1108_v35 = vadd.f32 %v1089_v5, %v947_v57 }
 0x138   : > { %v2340_v20 = vpop.f32.mrf.mxu0  ;;  %v946_v60 = vadd.f32 %v2312_v62, %v798_v30  ;;  %v1256_v53 = vadd.f32 %v1225_v59, %v1104_v26 }
 0x139   : > { %v2364_v15 = vpop.f32.mrf.mxu1  ;;  %v1260_v33 = vadd.f32 %v1241_v0, %v1108_v35 }
 0x13a   : > { %v1092_v51 = vpop.f32.mrf.mxu0  ;;  %v1107_v44 = vadd.f32 %v2336_v29, %v946_v60 }
 0x13b   : > { %v1244_v52 = vpop.f32.mrf.mxu1  ;;  %v1109_v54 = vadd.f32 %v1092_v51, %v948_v43  ;;  %v3148_v56 = vld [vmem:[#allocation6_spill] sm:$0xff] }
 0x13d   : > { %v1261_v5 = vadd.f32 %v1244_v52, %v1109_v54 }
 0x14c   : > { %v2383_v63 = vpop.f32.mrf.mxu0 }
 0x14d   : > { %v2407_v19 = vpop.f32.mrf.mxu1  ;;  %v1400_v37 = vadd.f32 %v2383_v63, %v1258_v2 }
 0x14e   : > { %v1367_v21 = vpop.f32.mrf.mxu0 }
 0x14f   : > { %v3105_v18 = vpop.f32.mrf.mxu1  ;;  %v1398_v58 = vadd.f32 %v1367_v21, %v1256_v53  ;;  %v2070_v21 = vld [vmem:[%s3131_s2] ss:$0 sm:$0xff] }
 0x150   : > { %3142 = vst [vmem:[#allocation7_spill] sm:$0xff] %v3105_v18  ;;  %v2384_v1 = vpop.f32.mrf.mxu0  ;;  %v949_v18 = vadd.f32 %v2315_v48, %v801_v8 }
 0x151   : > { %v3107_v9 = vpop.f32.mrf.mxu1 }
 0x152   : > { %3143 = vst [vmem:[#allocation8_spill] sm:$0xff] %v3107_v9  ;;  %v1370_v13 = vpop.f32.mrf.mxu0  ;;  %v802_v9 = vadd.f32 %v2292_v17, %v603_v7  ;;  %v1110_v24 = vadd.f32 %v2339_v23, %v949_v18  ;;  %v3146_v17 = vld [vmem:[#allocation4_spill] sm:$0xff]  ;;  %v3147_v23 = vld [vmem:[#allocation5_spill] sm:$0xff] }
 0x153   : > { %v3109_v61 = vpop.f32.mrf.mxu1  ;;  %v944_v12 = vadd.f32 %v3146_v17, %v796_v22  ;;  %v1259_v62 = vadd.f32 %v3147_v23, %v1107_v44 }
 0x154   : > { %v2387_v10 = vpop.f32.mrf.mxu0  ;;  %v950_v27 = vadd.f32 %v2316_v55, %v802_v9  ;;  %v1262_v16 = vadd.f32 %v2363_v49, %v1110_v24  ;;  %v1555_v9 = vadd.f32 %v2407_v19, %v1400_v37 }
 0x155   : > { %v2411_v34 = vpop.f32.mrf.mxu1  ;;  %v1105_v39 = vadd.f32 %v1076_v3, %v944_v12  ;;  %v1401_v8 = vadd.f32 %v2384_v1, %v1259_v62 }
 0x156   : > { %v1383_v42 = vpop.f32.mrf.mxu0  ;;  %v1111_v48 = vadd.f32 %v2340_v20, %v950_v27  ;;  %v1404_v46 = vadd.f32 %v2387_v10, %v1262_v16 }
 0x157   : > { %v1538_v38 = vpop.f32.mrf.mxu1  ;;  %v1402_v55 = vadd.f32 %v1383_v42, %v1260_v33  ;;  %v1257_v29 = vadd.f32 %v3148_v56, %v1105_v39  ;;  %v3149_v63 = vld [vmem:[#allocation7_spill] sm:$0xff] }
 0x158   : > { %v2388_v45 = vpop.f32.mrf.mxu0  ;;  %v1263_v4 = vadd.f32 %v2364_v15, %v1111_v48  ;;  %v1559_v20 = vadd.f32 %v2411_v34, %v1404_v46  ;;  %v1553_v15 = vadd.f32 %v3149_v63, %v1398_v58 }
 0x159   : > { %v2412_v50 = vpop.f32.mrf.mxu1  ;;  %v1557_v51 = vadd.f32 %v1538_v38, %v1402_v55  ;;  %v1399_v11 = vadd.f32 %v1370_v13, %v1257_v29  ;;  %v3150_v19 = vld [vmem:[#allocation8_spill] sm:$0xff] }
 0x15a   : > { %v1386_v6 = vpop.f32.mrf.mxu0  ;;  %v1405_v18 = vadd.f32 %v2388_v45, %v1263_v4  ;;  %v1556_v1 = vadd.f32 %v3150_v19, %v1401_v8 }
 0x15b   : > { %v1541_v49 = vpop.f32.mrf.mxu1  ;;  %v1403_v10 = vadd.f32 %v1386_v6, %v1261_v5  ;;  %v1554_v13 = vadd.f32 %v3109_v61, %v1399_v11 }
 0x15c   : > { %v1560_v34 = vadd.f32 %v2412_v50, %v1405_v18 }
 0x15d   : > { %v1558_v25 = vadd.f32 %v1541_v49, %v1403_v10 }
 0x16c   : > { %v2431_v59 = vpop.f32.mrf.mxu0 }
 0x16d   : > { %v2435_v0 = vpop.f32.mrf.mxu1  ;;  %v1701_v28 = vadd.f32 %v2431_v59, %v1555_v9 }
 0x16e   : > { %v1705_v3 = vadd.f32 %v2435_v0, %v1559_v20  ;;  %v1668_v7 = vpop.f32.mrf.mxu0 }
 0x16f   : > { %v1684_v52 = vpop.f32.mrf.mxu1  ;;  %v1699_v36 = vadd.f32 %v1668_v7, %v1553_v15  ;;  %v1716_v47 = vadd.f32 %v2070_v21, %v1701_v28 }
 0x170   : > { %v1703_v40 = vadd.f32 %v1684_v52, %v1557_v51  ;;  %v1720_v31 = vadd.f32 %v2070_v21, %v1705_v3  ;;  %v2432_v30 = vpop.f32.mrf.mxu0 }
 0x171   : > { %v2436_v41 = vpop.f32.mrf.mxu1  ;;  %v1702_v24 = vadd.f32 %v2432_v30, %v1556_v1  ;;  %v1714_v27 = vadd.f32 %v2070_v21, %v1699_v36  ;;  %v1724_v48 = vmax.f32 %v1716_v47, 0.0 }
 0x172   : > { %v1706_v57 = vadd.f32 %v2436_v41, %v1560_v34  ;;  %v1718_v22 = vadd.f32 %v2070_v21, %v1703_v40  ;;  %v1671_v42 = vpop.f32.mrf.mxu0  ;;  %v1728_v26 = vmax.f32 %v1720_v31, 0.0 }
 0x173   : > { %v1687_v32 = vpop.f32.mrf.mxu1  ;;  %v1717_v35 = vadd.f32 %v2070_v21, %v1702_v24  ;;  %v1700_v60 = vadd.f32 %v1671_v42, %v1554_v13  ;;  %v1722_v45 = vmax.f32 %v1714_v27, 0.0 }
 0x174   : > { %v1721_v14 = vadd.f32 %v2070_v21, %v1706_v57  ;;  %v1704_v38 = vadd.f32 %v1687_v32, %v1558_v25  ;;  %v1726_v12 = vmax.f32 %v1718_v22, 0.0 }
 0x175   : > { %v1725_v61 = vmax.f32 %v1717_v35, 0.0  ;;  %v1715_v17 = vadd.f32 %v2070_v21, %v1700_v60 }
 0x176   : > { %v1729_v43 = vmax.f32 %v1721_v14, 0.0  ;;  %v1719_v16 = vadd.f32 %v2070_v21, %v1704_v38 }
 0x177   : > { %v2098_v50 = vpack.c.bf16 %v1725_v61, %v1724_v48  ;;  %v1723_v33 = vmax.f32 %v1715_v17, 0.0 }
 0x178   : > { %v2108_v2 = vpack.c.bf16 %v1729_v43, %v1728_v26  ;;  %v1727_v44 = vmax.f32 %v1719_v16, 0.0 }
 0x179   : > { %2110 = vst [vmem:[%s170_s19 + $0x8] sm:$0xff] %v2098_v50   ;;  %v2093_v46 = vpack.c.bf16 %v1723_v33, %v1722_v45 }
 0x17a   : > { %2112 = vst [vmem:[%s170_s19 + $0x18] sm:$0xff] %v2108_v2   ;;  %v2103_v54 = vpack.c.bf16 %v1727_v44, %v1726_v12 }
 0x17b   : > { %2094 = vst [vmem:[%s170_s19] sm:$0xff] %v2093_v46  }
 0x17c   : > { %2111 = vst [vmem:[%s170_s19 + $0x10] sm:$0xff] %v2103_v54  }
 0x17d PF: > { %s13_s12 = sadd.s32 1, %s2549_s12  }
 0x17e   : > { %p10_p4 = scmp.ge.s32.totalorder %s13_s12, 6  }
 0x180   :  { %12 = sbr.rel (!%p10_p4) target bundleno = 1 (0x1), region = 70 }

// kernel: combined_loss.17
= control target key start
LH: loop header
LB: loop body
LE: loop exit
PB: predicated region body
PF: predicated region fallthrough
CT: control target
= control target key end

     0   :  { %s666_s6 = smov 0   ;;  %s668_s7 = smov 0   ;;  %s787_s0 = inlined_call_operand.vmem [shape: bf16[4,256,64], index: 0, kind: input, shape index: {}]   ;;  %s788_s1 = inlined_call_operand.vmem [shape: f32[4,64,64], index: 1, kind: output, shape index: {}]  }
   0x1   :  { %s670_s8 = smov 0  }
   0x2 LB: > { %s23_s9 = sadd.s32 1, %s649_s7  ;;  %p509_p0 = scmp.ge.s32.totalorder %s653_s8, 1  ;;  %s653_s8 = sphi %s670_s8, %s11_s8   ;;  %s649_s7 = sphi %s668_s7, %s790_s7   ;;  %s645_s6 = sphi %s666_s6, %s789_s6  }
   0x3   : > { %p25_p1 = scmp.ge.s32.totalorder %s23_s9, 4  ;;  %p106_p2 = scmp.lt.s32.totalorder %s653_s8, 5 }
   0x5   : > { %s792_s9 = smov (%p25_p1, %s23_s9), 0  ;;  %p107_p3 = pnand %p509_p0, %p106_p2 }
   0x6   : > { %p131_p4 = scmp.lt.s32.totalorder (!%p107_p3), %s645_s6, 3 }
   0x7   : > { %110 = sbr.rel (%p107_p3) target bundleno = 346 (0x15a), region = 24 }
   0xc   : > { %s794_s6 = smov (!%p131_p4, %s645_s6), 3  ;;  %vm150_vm0 = vcmask 523264   ;;  %v655_v24 = vmov 0.0  }
   0xd   : > { %s532_s10 = sshll.u32 %s794_s6, 7  ;;  %s533_s14 = sshll.u32 %s794_s6, 6 }
   0xe   : > { %s690_s13 = scalar_lea.vmem %s787_s0, %s532_s10  ;;  %s712_s17 = scalar_lea.vmem %s788_s1, %s533_s14 }
   0xf   : > { %v615_v0 = vld [vmem:[%s690_s13 + $0x40] sm:$0xff]   ;;  %v617_v2 = vld [vmem:[%s690_s13 + $0x48] sm:$0xff]   ;;  %v619_v4 = vld [vmem:[%s690_s13 + $0x50] sm:$0xff]   ;;  %151 = vst.msk [vmem:[%s712_s17] sm:$0xff] %vm150_vm0, %v655_v24 }
  0x10   : > { %v616_v1 = vld [vmem:[%s690_s13] sm:$0xff]   ;;  %311 = vxpose.xlu0.c.b16.start [1/8] (narrow) %v615_v0, 64  ;;  %v618_v3 = vld [vmem:[%s690_s13 + $0x8] sm:$0xff]   ;;  %v620_v5 = vld [vmem:[%s690_s13 + $0x10] sm:$0xff]   ;;  %152 = vst.msk [vmem:[%s712_s17 + $0x8] sm:$0xff] %vm150_vm0, %v655_v24 }
  0x11   : > { %295 = vxpose.xlu1.c.b16.start [1/8] (narrow) %v616_v1, 64  ;;  %v621_v6 = vld [vmem:[%s690_s13 + $0x58] sm:$0xff]   ;;  %v623_v8 = vld [vmem:[%s690_s13 + $0x60] sm:$0xff]   ;;  %v627_v12 = vld [vmem:[%s690_s13 + $0x70] sm:$0xff]   ;;  %153 = vst.msk [vmem:[%s712_s17 + $0x10] sm:$0xff] %vm150_vm0, %v655_v24 }
  0x12   : > { %v622_v7 = vld [vmem:[%s690_s13 + $0x18] sm:$0xff]   ;;  %v624_v9 = vld [vmem:[%s690_s13 + $0x20] sm:$0xff]   ;;  %v625_v13 = vld [vmem:[%s690_s13 + $0x68] sm:$0xff]   ;;  %154 = vst.msk [vmem:[%s712_s17 + $0x18] sm:$0xff] %vm150_vm0, %v655_v24 }
  0x13   : > { %v629_v10 = vld [vmem:[%s690_s13 + $0x78] sm:$0xff]   ;;  %v626_v14 = vld [vmem:[%s690_s13 + $0x28] sm:$0xff]   ;;  %v628_v15 = vld [vmem:[%s690_s13 + $0x30] sm:$0xff]   ;;  %155 = vst.msk [vmem:[%s712_s17 + $0x20] sm:$0xff] %vm150_vm0, %v655_v24 }
  0x14   : > { %312 = vxpose.xlu0.c.b16.cont [2/8] (narrow) %v617_v2, 64  ;;  %v630_v11 = vld [vmem:[%s690_s13 + $0x38] sm:$0xff]   ;;  %534 = vmatprep.subr.bf16.mxu0 %v629_v10  ;;  %156 = vst.msk [vmem:[%s712_s17 + $0x28] sm:$0xff] %vm150_vm0, %v655_v24  ;;  %157 = vst.msk [vmem:[%s712_s17 + $0x30] sm:$0xff] %vm150_vm0, %v655_v24 }
  0x15   : > { %296 = vxpose.xlu1.c.b16.cont [2/8] (narrow) %v618_v3, 64  ;;  %574 = vmatprep.subr.bf16.mxu1 %v629_v10  ;;  %158 = vst.msk [vmem:[%s712_s17 + $0x38] sm:$0xff] %vm150_vm0, %v655_v24 }
  0x16   : > { %535 = vmatpush3.bf16.msra.mxu0 %v630_v11  ;;  %582 = vmatpush3.bf16.msra.mxu1 %v630_v11  ;;  %v191_v26 = vld [vmem:[%s712_s17] sm:$0xff] }
  0x17   : > { %536 = vmatprep.subr.bf16.mxu0 %v627_v12  ;;  %575 = vmatprep.subr.bf16.mxu1 %v627_v12  ;;  %v192_v31 = vld [vmem:[%s712_s17 + $0x8] sm:$0xff] }
  0x18   : > { %313 = vxpose.xlu0.c.b16.cont [3/8] (narrow) %v619_v4, 64  ;;  %v193_v37 = vld [vmem:[%s712_s17 + $0x10] sm:$0xff] }
  0x19   : > { %297 = vxpose.xlu1.c.b16.cont [3/8] (narrow) %v620_v5, 64  ;;  %v194_v48 = vld [vmem:[%s712_s17 + $0x18] sm:$0xff] }
  0x1a   : > { %537 = vmatpush3.bf16.msra.mxu0 %v628_v15  ;;  %583 = vmatpush3.bf16.msra.mxu1 %v628_v15  ;;  %v195_v39 = vld [vmem:[%s712_s17 + $0x20] sm:$0xff] }
  0x1b   : > { %538 = vmatprep.subr.bf16.mxu0 %v625_v13  ;;  %576 = vmatprep.subr.bf16.mxu1 %v625_v13  ;;  %v196_v50 = vld [vmem:[%s712_s17 + $0x28] sm:$0xff]  ;;  %v197_v59 = vld [vmem:[%s712_s17 + $0x30] sm:$0xff] }
  0x1c   : > { %314 = vxpose.xlu0.c.b16.cont [4/8] (narrow) %v621_v6, 64 }
  0x1d   : > { %298 = vxpose.xlu1.c.b16.cont [4/8] (narrow) %v622_v7, 64 }
  0x1e   : > { %539 = vmatpush3.bf16.msra.mxu0 %v626_v14  ;;  %584 = vmatpush3.bf16.msra.mxu1 %v626_v14 }
  0x1f   : > { %540 = vmatprep.subr.bf16.mxu0 %v623_v8  ;;  %577 = vmatprep.subr.bf16.mxu1 %v623_v8 }
  0x20   : > { %315 = vxpose.xlu0.c.b16.cont [5/8] (narrow) %v623_v8, 64 }
  0x21   : > { %299 = vxpose.xlu1.c.b16.cont [5/8] (narrow) %v624_v9, 64 }
  0x22   : > { %541 = vmatpush3.bf16.msra.mxu0 %v624_v9  ;;  %585 = vmatpush3.bf16.msra.mxu1 %v624_v9 }
  0x23   : > { %542 = vmatprep.subr.bf16.mxu0 %v621_v6  ;;  %578 = vmatprep.subr.bf16.mxu1 %v621_v6 }
  0x24   : > { %316 = vxpose.xlu0.c.b16.cont [6/8] (narrow) %v625_v13, 64 }
  0x25   : > { %300 = vxpose.xlu1.c.b16.cont [6/8] (narrow) %v626_v14, 64 }
  0x26   : > { %543 = vmatpush3.bf16.msra.mxu0 %v622_v7  ;;  %586 = vmatpush3.bf16.msra.mxu1 %v622_v7 }
  0x27   : > { %544 = vmatprep.subr.bf16.mxu0 %v619_v4  ;;  %579 = vmatprep.subr.bf16.mxu1 %v619_v4 }
  0x28   : > { %317 = vxpose.xlu0.c.b16.cont [7/8] (narrow) %v627_v12, 64 }
  0x29   : > { %301 = vxpose.xlu1.c.b16.cont [7/8] (narrow) %v628_v15, 64 }
  0x2a   : > { %545 = vmatpush3.bf16.msra.mxu0 %v620_v5  ;;  %587 = vmatpush3.bf16.msra.mxu1 %v620_v5 }
  0x2b   : > { %546 = vmatprep.subr.bf16.mxu0 %v617_v2  ;;  %580 = vmatprep.subr.bf16.mxu1 %v617_v2 }
  0x2c   : > { %318 = vxpose.xlu0.c.b16.end [8/8] (narrow) %v629_v10, 64 }
  0x2d   : > { %302 = vxpose.xlu1.c.b16.end [8/8] (narrow) %v630_v11, 64 }
  0x2e   : > { %547 = vmatpush3.bf16.msra.mxu0 %v618_v3  ;;  %588 = vmatpush3.bf16.msra.mxu1 %v618_v3  ;;  %v198_v3 = vld [vmem:[%s712_s17 + $0x38] sm:$0xff] }
  0x2f   : > { %548 = vmatprep.subr.bf16.mxu0 %v615_v0  ;;  %581 = vmatprep.subr.bf16.mxu1 %v615_v0 }
  0x32   : > { %549 = vmatpush3.bf16.msra.mxu0 %v616_v1  ;;  %589 = vmatpush3.bf16.msra.mxu1 %v616_v1 }
  0x72   : > { %v319_v16 = vpop.trf.xlu0 }
  0x73   : > { %359 = vmatprep.mubr.bf16.mxu0 %v319_v16  ;;  %v303_v17 = vpop.trf.xlu1 }
  0x74   : > { %360 = vmatmul.mubr.bf16.vlgmr.msra.gmra.mxu0 %v303_v17 }
  0x76   : > { %v320_v18 = vpop.trf.xlu0 }
  0x77   : > { %v304_v19 = vpop.trf.xlu1  ;;  %367 = vmatprep.mubr.bf16.mxu0 %v320_v18 }
  0x7a   : > { %v321_v20 = vpop.trf.xlu0 }
  0x7b   : > { %375 = vmatprep.mubr.bf16.mxu1 %v321_v20  ;;  %v305_v21 = vpop.trf.xlu1 }
  0x7c   : > { %368 = vmatmul.mubr.bf16.gmra.mxu0 %v304_v19  ;;  %376 = vmatmul.mubr.bf16.vlgmr.msra.gmra.mxu1 %v305_v21 }
  0x7e   : > { %v322_v22 = vpop.trf.xlu0 }
  0x7f   : > { %383 = vmatprep.mubr.bf16.mxu1 %v322_v22  ;;  %v306_v23 = vpop.trf.xlu1 }
  0x84   : > { %384 = vmatmul.mubr.bf16.gmra.mxu1 %v306_v23 }
 0x134   : > { %v550_v25 = vpop.f32.mrf.mxu0 }
 0x136   : > { %v551_v27 = vpop.f32.mrf.mxu0 }
 0x137   : > { %v552_v28 = vadd.f32 %v551_v27, %v550_v25 }
 0x138   : > { %v553_v29 = vpop.f32.mrf.mxu0 }
 0x139   : > { %v392_v30 = vadd.f32 %v552_v28, %v191_v26 }
 0x13a   : > { %v554_v32 = vpop.f32.mrf.mxu0 }
 0x13b   : > { %401 = vst.msk [vmem:[%s712_s17] sm:$0xff] %vm150_vm0, %v392_v30  ;;  %v555_v33 = vadd.f32 %v554_v32, %v553_v29 }
 0x13c   : > { %v556_v34 = vpop.f32.mrf.mxu0  ;;  %v562_v35 = vpop.f32.mrf.mxu1 }
 0x13d   : > { %v393_v36 = vadd.f32 %v555_v33, %v192_v31 }
 0x13e   : > { %v557_v38 = vpop.f32.mrf.mxu0  ;;  %v563_v40 = vpop.f32.mrf.mxu1 }
 0x13f   : > { %402 = vst.msk [vmem:[%s712_s17 + $0x8] sm:$0xff] %vm150_vm0, %v393_v36  ;;  %v558_v41 = vadd.f32 %v557_v38, %v556_v34  ;;  %v564_v42 = vadd.f32 %v563_v40, %v562_v35 }
 0x140   : > { %v559_v43 = vpop.f32.mrf.mxu0  ;;  %v565_v44 = vpop.f32.mrf.mxu1 }
 0x141   : > { %v394_v45 = vadd.f32 %v558_v41, %v193_v37  ;;  %v396_v46 = vadd.f32 %v564_v42, %v195_v39 }
 0x142   : > { %v412_v47 = vld [vmem:[%s712_s17] sm:$0xff]  ;;  %v560_v49 = vpop.f32.mrf.mxu0  ;;  %v566_v51 = vpop.f32.mrf.mxu1 }
 0x143   : > { %v420_v52 = vmul.f32 6.1035156e-05, %v412_v47  ;;  %403 = vst.msk [vmem:[%s712_s17 + $0x10] sm:$0xff] %vm150_vm0, %v394_v45  ;;  %405 = vst.msk [vmem:[%s712_s17 + $0x20] sm:$0xff] %vm150_vm0, %v396_v46  ;;  %v561_v53 = vadd.f32 %v560_v49, %v559_v43  ;;  %v567_v54 = vadd.f32 %v566_v51, %v565_v44 }
 0x144   : > { %v568_v55 = vpop.f32.mrf.mxu1 }
 0x145   : > { %428 = vst.msk [vmem:[%s712_s17] sm:$0xff] %vm150_vm0, %v420_v52  ;;  %v395_v56 = vadd.f32 %v561_v53, %v194_v48  ;;  %v397_v57 = vadd.f32 %v567_v54, %v196_v50 }
 0x146   : > { %v413_v58 = vld [vmem:[%s712_s17 + $0x8] sm:$0xff]  ;;  %v569_v60 = vpop.f32.mrf.mxu1 }
 0x147   : > { %v421_v61 = vmul.f32 6.1035156e-05, %v413_v58  ;;  %404 = vst.msk [vmem:[%s712_s17 + $0x18] sm:$0xff] %vm150_vm0, %v395_v56  ;;  %406 = vst.msk [vmem:[%s712_s17 + $0x28] sm:$0xff] %vm150_vm0, %v397_v57  ;;  %v570_v62 = vadd.f32 %v569_v60, %v568_v55 }
 0x148   : > { %v571_v63 = vpop.f32.mrf.mxu1 }
 0x149   : > { %429 = vst.msk [vmem:[%s712_s17 + $0x8] sm:$0xff] %vm150_vm0, %v421_v61  ;;  %v398_v0 = vadd.f32 %v570_v62, %v197_v59 }
 0x14a   : > { %v414_v1 = vld [vmem:[%s712_s17 + $0x10] sm:$0xff]  ;;  %v416_v2 = vld [vmem:[%s712_s17 + $0x20] sm:$0xff]  ;;  %v572_v4 = vpop.f32.mrf.mxu1 }
 0x14b   : > { %v422_v5 = vmul.f32 6.1035156e-05, %v414_v1  ;;  %v424_v6 = vmul.f32 6.1035156e-05, %v416_v2  ;;  %407 = vst.msk [vmem:[%s712_s17 + $0x30] sm:$0xff] %vm150_vm0, %v398_v0  ;;  %v573_v7 = vadd.f32 %v572_v4, %v571_v63 }
 0x14d   : > { %430 = vst.msk [vmem:[%s712_s17 + $0x10] sm:$0xff] %vm150_vm0, %v422_v5  ;;  %432 = vst.msk [vmem:[%s712_s17 + $0x20] sm:$0xff] %vm150_vm0, %v424_v6  ;;  %v399_v8 = vadd.f32 %v573_v7, %v198_v3 }
 0x14e   : > { %v415_v9 = vld [vmem:[%s712_s17 + $0x18] sm:$0xff]  ;;  %v417_v10 = vld [vmem:[%s712_s17 + $0x28] sm:$0xff] }
 0x14f   : > { %v423_v11 = vmul.f32 6.1035156e-05, %v415_v9  ;;  %v425_v12 = vmul.f32 6.1035156e-05, %v417_v10  ;;  %408 = vst.msk [vmem:[%s712_s17 + $0x38] sm:$0xff] %vm150_vm0, %v399_v8 }
 0x151   : > { %431 = vst.msk [vmem:[%s712_s17 + $0x18] sm:$0xff] %vm150_vm0, %v423_v11  ;;  %433 = vst.msk [vmem:[%s712_s17 + $0x28] sm:$0xff] %vm150_vm0, %v425_v12 }
 0x152   : > { %v418_v13 = vld [vmem:[%s712_s17 + $0x30] sm:$0xff] }
 0x153   : > { %v426_v14 = vmul.f32 6.1035156e-05, %v418_v13 }
 0x155   : > { %434 = vst.msk [vmem:[%s712_s17 + $0x30] sm:$0xff] %vm150_vm0, %v426_v14 }
 0x156   : > { %v419_v15 = vld [vmem:[%s712_s17 + $0x38] sm:$0xff] }
 0x157   : > { %v427_v16 = vmul.f32 6.1035156e-05, %v419_v15 }
 0x159   : > { %435 = vst.msk [vmem:[%s712_s17 + $0x38] sm:$0xff] %vm150_vm0, %v427_v16 }
 0x15a PF: > { %s11_s8 = sadd.s32 1, %s653_s8   ;;  %s789_s6 = smov %s649_s7 }
 0x15b   : > { %p8_p5 = scmp.ge.s32.totalorder %s11_s8, 6   ;;  %s790_s7 = smov %s792_s9 }
 0x15d   :  { %10 = sbr.rel (!%p8_p5) target bundleno = 2 (0x2), region = 62 }

// kernel: combined_loss.20
= control target key start
LH: loop header
LB: loop body
LE: loop exit
PB: predicated region body
PF: predicated region fallthrough
CT: control target
= control target key end

     0   :  { %s181_s0 = inlined_call_operand.vmem [shape: f32[64,128], index: 0, kind: input, shape index: {}]   ;;  %s182_s1 = inlined_call_operand.vmem [shape: f32[64,128], index: 1, kind: input, shape index: {}]   ;;  %s183_s2 = inlined_call_operand.hbm [shape: f32[1,1], index: 2, kind: output, shape index: {}]  }
   0x1   :  { %v18_v0 = vld [vmem:[%s181_s0] sm:$0xff]  ;;  %v19_v1 = vld [vmem:[%s181_s0 + $0x8] sm:$0xff]  ;;  %v20_v2 = vld [vmem:[%s181_s0 + $0x10] sm:$0xff] }
   0x2   :  { %v21_v3 = vld [vmem:[%s181_s0 + $0x18] sm:$0xff]  ;;  %v22_v4 = vld [vmem:[%s181_s0 + $0x20] sm:$0xff]  ;;  %v27_v6 = vld [vmem:[%s182_s1 + $0x8] sm:$0xff] }
   0x3   :  { %v26_v5 = vld [vmem:[%s182_s1] sm:$0xff]  ;;  %v28_v7 = vld [vmem:[%s182_s1 + $0x10] sm:$0xff]  ;;  %v29_v8 = vld [vmem:[%s182_s1 + $0x18] sm:$0xff]  ;;  %v35_v11 = vsub.f32 %v19_v1, %v27_v6 }
   0x4   :  { %v34_v9 = vsub.f32 %v18_v0, %v26_v5  ;;  %v30_v10 = vld [vmem:[%s182_s1 + $0x20] sm:$0xff]  ;;  %v36_v12 = vsub.f32 %v20_v2, %v28_v7  ;;  %v37_v13 = vsub.f32 %v21_v3, %v29_v8  ;;  %v23_v14 = vld [vmem:[%s181_s0 + $0x28] sm:$0xff] }
   0x5   :  { %v31_v15 = vld [vmem:[%s182_s1 + $0x28] sm:$0xff] }
   0x6   :  { %v43_v16 = vmul.f32 %v34_v9, %v34_v9 }
   0x7   :  { %7 = vsyncpa [#allocation3], 0  ;;  %v38_v17 = vsub.f32 %v22_v4, %v30_v10  ;;  %v44_v18 = vmul.f32 %v35_v11, %v35_v11  ;;  %v45_v19 = vmul.f32 %v36_v12, %v36_v12  ;;  %v24_v20 = vld [vmem:[%s181_s0 + $0x30] sm:$0xff]  ;;  %v39_v22 = vsub.f32 %v23_v14, %v31_v15  ;;  %v25_v25 = vld [vmem:[%s181_s0 + $0x38] sm:$0xff]  ;;  %s112_s0 = smov [#allocation2]  }
   0x8   :  { %v32_v21 = vld [vmem:[%s182_s1 + $0x30] sm:$0xff]  ;;  %v46_v23 = vmul.f32 %v37_v13, %v37_v13  ;;  %v33_v26 = vld [vmem:[%s182_s1 + $0x38] sm:$0xff]  ;;  %vm16_vm0 = vcmask 0   ;;  %v111_v39 = vmov 0.0   ;;  %s77_s1 = sshll.u32 %s112_s0, 4  ;;  %s78_s1 = int_to_ptr.vmem [resolvable:$true] %s77_s1 }
   0x9   :  { %v51_v24 = vadd.f32 %v44_v18, %v43_v16  ;;  %v40_v27 = vsub.f32 %v24_v20, %v32_v21  ;;  %v47_v28 = vmul.f32 %v38_v17, %v38_v17  ;;  %v41_v30 = vsub.f32 %v25_v25, %v33_v26  ;;  %17 = vst.msk [vmem:[#allocation2] sm:$0x1] %vm16_vm0, %v111_v39  ;;  %s89_s14 = scalar_lea.vmem %s78_s1, 16  ;;  %s93_s15 = scalar_lea.vmem %s78_s1, 32 }
   0xa   :  { %v48_v31 = vmul.f32 %v39_v22, %v39_v22  ;;  %p90_p0 = scmp.ne.s32.totalorder %s78_s1, %s89_s14  ;;  %p94_p1 = scmp.lt.s32.totalorder %s78_s1, %s78_s1 }
   0xb   :  { %v52_v29 = vadd.f32 %v51_v24, %v45_v19  ;;  %v49_v33 = vmul.f32 %v40_v27, %v40_v27  ;;  %v50_v35 = vmul.f32 %v41_v30, %v41_v30  ;;  %p95_p2 = scmp.lt.s32.totalorder %s93_s15, %s89_s14 }
   0xd   :  { %v53_v32 = vadd.f32 %v52_v29, %v46_v23  ;;  %p96_p3 = por %p95_p2, %p94_p1 }
   0xf   :  { %v54_v34 = vadd.f32 %v53_v32, %v47_v28  ;;  %p97_p4 = pnand %p96_p3, %p90_p0 }
  0x10   :  { %v42_v47 = vld [vmem:[#allocation2] sm:$0x1] }
  0x11   :  { %v55_v36 = vadd.f32 %v54_v34, %v48_v31 }
  0x13   :  { %v56_v37 = vadd.f32 %v55_v36, %v49_v33 }
  0x15   :  { %v57_v38 = vadd.f32 %v56_v37, %v50_v35 }
  0x17   :  { %58 = vadd.xlane.f32.xlu0 %v57_v38 }
  0xa0   :  { %v59_v40 = vpop.xlane.xlu0 %58 }
  0xa1   :  { %v60_v41 = vrot.slane %v59_v40, 4 }
  0xa3   :  { %v61_v42 = vadd.f32 %v60_v41, %v59_v40 }
  0xa5   :  { %v62_v43 = vrot.slane %v61_v42, 2 }
  0xa7   :  { %v63_v44 = vadd.f32 %v62_v43, %v61_v42 }
  0xa9   :  { %v64_v45 = vrot.slane %v63_v44, 1 }
  0xab   :  { %v65_v46 = vadd.f32 %v64_v45, %v63_v44 }
  0xad   :  { %85 = vpush %v65_v46 }
  0xde   :  { %s86_s13 = spop %85 }
  0xdf   :  { %v67_v48 = vstv %s86_s13 }
  0xe0   :  { %v68_v49 = vadd.f32 %v67_v48, %v42_v47 }
  0xe2   :  { %70 = vst.msk [vmem:[#allocation2] sm:$0x1] %vm16_vm0, %v68_v49 }
  0xe3   :  { %100 = shalt.err (!%p97_p4)
}
  0xe4   :  { %80 = dma.vmem_to_hbm [thread:$0]  %s78_s1, 16, %s183_s2, [#allocation3]  }
  0xe5   :  { %109 = dma.done.wait [#allocation3], 16  }
  0xe6   :  { %110 = vsyncadd [#allocation3], 4294967280 }
  0xe7   :  { %84 = vsyncpa [#allocation3], 1 }

// kernel: combined_loss.19
= control target key start
LH: loop header
LB: loop body
LE: loop exit
PB: predicated region body
PF: predicated region fallthrough
CT: control target
= control target key end

     0   :  { %7 = vsyncpa [#allocation3], 0  ;;  %vm16_vm0 = vcmask 0   ;;  %s571_s0 = inlined_call_operand.vmem [shape: bf16[256,128], index: 0, kind: input, shape index: {}]   ;;  %s572_s1 = inlined_call_operand.vmem [shape: bf16[256,128], index: 1, kind: input, shape index: {}]   ;;  %s573_s2 = inlined_call_operand.hbm [shape: f32[1,1], index: 2, kind: output, shape index: {}]  }
   0x1   :  { %v270_v0 = vld [vmem:[%s571_s0] sm:$0xff]   ;;  %v397_v2 = vld [vmem:[%s571_s0 + $0x8] sm:$0xff]   ;;  %v398_v10 = vld [vmem:[%s571_s0 + $0x10] sm:$0xff]  }
   0x2   :  { %v334_v1 = vld [vmem:[%s572_s1] sm:$0xff]   ;;  %v412_v3 = vld [vmem:[%s572_s1 + $0x8] sm:$0xff]   ;;  %v271_v4 = vunpack.c.l.bf16 %v270_v0  ;;  %v272_v5 = vunpack.c.h.bf16 %v270_v0  ;;  %v275_v8 = vunpack.c.l.bf16 %v397_v2  ;;  %v413_v11 = vld [vmem:[%s572_s1 + $0x10] sm:$0xff]   ;;  %v276_v12 = vunpack.c.h.bf16 %v397_v2 }
   0x3   :  { %v335_v6 = vunpack.c.l.bf16 %v334_v1  ;;  %v336_v7 = vunpack.c.h.bf16 %v334_v1  ;;  %v339_v9 = vunpack.c.l.bf16 %v412_v3  ;;  %v340_v13 = vunpack.c.h.bf16 %v412_v3  ;;  %v399_v20 = vld [vmem:[%s571_s0 + $0x18] sm:$0xff]   ;;  %v400_v27 = vld [vmem:[%s571_s0 + $0x20] sm:$0xff]   ;;  %v401_v38 = vld [vmem:[%s571_s0 + $0x28] sm:$0xff]  }
   0x4   :  { %v279_v16 = vunpack.c.l.bf16 %v398_v10  ;;  %v343_v17 = vunpack.c.l.bf16 %v413_v11  ;;  %v280_v19 = vunpack.c.h.bf16 %v398_v10  ;;  %v414_v21 = vld [vmem:[%s572_s1 + $0x18] sm:$0xff]   ;;  %v344_v22 = vunpack.c.h.bf16 %v413_v11  ;;  %v415_v32 = vld [vmem:[%s572_s1 + $0x20] sm:$0xff]   ;;  %v416_v44 = vld [vmem:[%s572_s1 + $0x28] sm:$0xff]  }
   0x5   :  { %v146_v14 = vsub.f32 %v271_v4, %v335_v6  ;;  %v147_v15 = vsub.f32 %v272_v5, %v336_v7  ;;  %v148_v18 = vsub.f32 %v275_v8, %v339_v9  ;;  %v149_v23 = vsub.f32 %v276_v12, %v340_v13  ;;  %v402_v50 = vld [vmem:[%s571_s0 + $0x30] sm:$0xff]   ;;  %v403_v62 = vld [vmem:[%s571_s0 + $0x38] sm:$0xff]   ;;  %v404_v10 = vld [vmem:[%s571_s0 + $0x40] sm:$0xff]  }
   0x6   :  { %v283_v26 = vunpack.c.l.bf16 %v399_v20  ;;  %v347_v28 = vunpack.c.l.bf16 %v414_v21  ;;  %v150_v29 = vsub.f32 %v279_v16, %v343_v17  ;;  %v284_v31 = vunpack.c.h.bf16 %v399_v20  ;;  %v417_v56 = vld [vmem:[%s572_s1 + $0x30] sm:$0xff]   ;;  %v418_v4 = vld [vmem:[%s572_s1 + $0x38] sm:$0xff]   ;;  %v419_v16 = vld [vmem:[%s572_s1 + $0x40] sm:$0xff]  }
   0x7   :  { %v179_v24 = vmul.f32 %v146_v14, %v146_v14  ;;  %v180_v25 = vmul.f32 %v147_v15, %v147_v15  ;;  %v181_v30 = vmul.f32 %v148_v18, %v148_v18  ;;  %v348_v33 = vunpack.c.h.bf16 %v414_v21 }
   0x8   :  { %v151_v34 = vsub.f32 %v280_v19, %v344_v22  ;;  %v182_v35 = vmul.f32 %v149_v23, %v149_v23  ;;  %v287_v37 = vunpack.c.l.bf16 %v400_v27  ;;  %v351_v39 = vunpack.c.l.bf16 %v415_v32  ;;  %v405_v22 = vld [vmem:[%s571_s0 + $0x48] sm:$0xff]  }
   0x9   :  { %v211_v36 = vadd.f32 %v180_v25, %v179_v24  ;;  %v152_v40 = vsub.f32 %v283_v26, %v347_v28  ;;  %v183_v41 = vmul.f32 %v150_v29, %v150_v29  ;;  %v288_v43 = vunpack.c.h.bf16 %v400_v27  ;;  %v420_v28 = vld [vmem:[%s572_s1 + $0x48] sm:$0xff]  }
   0xa   :  { %v352_v45 = vunpack.c.h.bf16 %v415_v32  ;;  %v153_v46 = vsub.f32 %v284_v31, %v348_v33  ;;  %v184_v47 = vmul.f32 %v151_v34, %v151_v34  ;;  %v291_v49 = vunpack.c.l.bf16 %v401_v38  ;;  %v406_v34 = vld [vmem:[%s571_s0 + $0x50] sm:$0xff]  }
   0xb   :  { %v212_v42 = vadd.f32 %v211_v36, %v181_v30  ;;  %v355_v51 = vunpack.c.l.bf16 %v416_v44  ;;  %v154_v52 = vsub.f32 %v287_v37, %v351_v39  ;;  %v185_v53 = vmul.f32 %v152_v40, %v152_v40  ;;  %v421_v40 = vld [vmem:[%s572_s1 + $0x50] sm:$0xff]  }
   0xc   :  { %v292_v55 = vunpack.c.h.bf16 %v401_v38  ;;  %v356_v57 = vunpack.c.h.bf16 %v416_v44  ;;  %v155_v58 = vsub.f32 %v288_v43, %v352_v45  ;;  %v186_v59 = vmul.f32 %v153_v46, %v153_v46  ;;  %v407_v46 = vld [vmem:[%s571_s0 + $0x58] sm:$0xff]  }
   0xd   :  { %v213_v48 = vadd.f32 %v212_v42, %v182_v35  ;;  %v295_v61 = vunpack.c.l.bf16 %v402_v50  ;;  %v359_v63 = vunpack.c.l.bf16 %v417_v56  ;;  %v156_v0 = vsub.f32 %v291_v49, %v355_v51 }
   0xe   :  { %v187_v1 = vmul.f32 %v154_v52, %v154_v52  ;;  %v296_v3 = vunpack.c.h.bf16 %v402_v50  ;;  %v360_v5 = vunpack.c.h.bf16 %v417_v56  ;;  %v157_v6 = vsub.f32 %v292_v55, %v356_v57  ;;  %v422_v52 = vld [vmem:[%s572_s1 + $0x58] sm:$0xff]  }
   0xf   :  { %v214_v54 = vadd.f32 %v213_v48, %v183_v41  ;;  %v188_v7 = vmul.f32 %v155_v58, %v155_v58  ;;  %v299_v9 = vunpack.c.l.bf16 %v403_v62  ;;  %v363_v11 = vunpack.c.l.bf16 %v418_v4  ;;  %v408_v58 = vld [vmem:[%s571_s0 + $0x60] sm:$0xff]  }
  0x10   :  { %v158_v12 = vsub.f32 %v295_v61, %v359_v63  ;;  %v189_v13 = vmul.f32 %v156_v0, %v156_v0  ;;  %v300_v15 = vunpack.c.h.bf16 %v403_v62  ;;  %v364_v17 = vunpack.c.h.bf16 %v418_v4  ;;  %v423_v0 = vld [vmem:[%s572_s1 + $0x60] sm:$0xff]  }
  0x11   :  { %v215_v60 = vadd.f32 %v214_v54, %v184_v47  ;;  %v159_v18 = vsub.f32 %v296_v3, %v360_v5  ;;  %v190_v19 = vmul.f32 %v157_v6, %v157_v6  ;;  %v303_v21 = vunpack.c.l.bf16 %v404_v10  ;;  %v409_v6 = vld [vmem:[%s571_s0 + $0x68] sm:$0xff]  }
  0x12   :  { %v367_v23 = vunpack.c.l.bf16 %v419_v16  ;;  %v160_v24 = vsub.f32 %v299_v9, %v363_v11  ;;  %v191_v25 = vmul.f32 %v158_v12, %v158_v12  ;;  %v304_v27 = vunpack.c.h.bf16 %v404_v10  ;;  %v424_v12 = vld [vmem:[%s572_s1 + $0x68] sm:$0xff]  }
  0x13   :  { %v216_v2 = vadd.f32 %v215_v60, %v185_v53  ;;  %v368_v29 = vunpack.c.h.bf16 %v419_v16  ;;  %v161_v30 = vsub.f32 %v300_v15, %v364_v17  ;;  %v192_v31 = vmul.f32 %v159_v18, %v159_v18  ;;  %v410_v18 = vld [vmem:[%s571_s0 + $0x70] sm:$0xff]  }
  0x14   :  { %v307_v33 = vunpack.c.l.bf16 %v405_v22  ;;  %v371_v35 = vunpack.c.l.bf16 %v420_v28  ;;  %v162_v36 = vsub.f32 %v303_v21, %v367_v23  ;;  %v193_v37 = vmul.f32 %v160_v24, %v160_v24  ;;  %v425_v24 = vld [vmem:[%s572_s1 + $0x70] sm:$0xff]  }
  0x15   :  { %v217_v8 = vadd.f32 %v216_v2, %v186_v59  ;;  %v308_v39 = vunpack.c.h.bf16 %v405_v22  ;;  %v372_v41 = vunpack.c.h.bf16 %v420_v28  ;;  %v163_v42 = vsub.f32 %v304_v27, %v368_v29 }
  0x16   :  { %v194_v43 = vmul.f32 %v161_v30, %v161_v30  ;;  %v311_v45 = vunpack.c.l.bf16 %v406_v34  ;;  %v375_v47 = vunpack.c.l.bf16 %v421_v40  ;;  %v164_v48 = vsub.f32 %v307_v33, %v371_v35  ;;  %v411_v30 = vld [vmem:[%s571_s0 + $0x78] sm:$0xff]   ;;  %s454_s0 = smov [#allocation2]  }
  0x17   :  { %v218_v14 = vadd.f32 %v217_v8, %v187_v1  ;;  %v195_v49 = vmul.f32 %v162_v36, %v162_v36  ;;  %v312_v51 = vunpack.c.h.bf16 %v406_v34  ;;  %v376_v53 = vunpack.c.h.bf16 %v421_v40  ;;  %v426_v36 = vld [vmem:[%s572_s1 + $0x78] sm:$0xff]   ;;  %s261_s1 = sshll.u32 %s454_s0, 4  ;;  %s262_s1 = int_to_ptr.vmem [resolvable:$true] %s261_s1 }
  0x18   :  { %v165_v54 = vsub.f32 %v308_v39, %v372_v41  ;;  %v196_v55 = vmul.f32 %v163_v42, %v163_v42  ;;  %v315_v57 = vunpack.c.l.bf16 %v407_v46  ;;  %v379_v59 = vunpack.c.l.bf16 %v422_v52  ;;  %s431_s18 = scalar_lea.vmem %s262_s1, 16  ;;  %s435_s19 = scalar_lea.vmem %s262_s1, 32 }
  0x19   :  { %v219_v20 = vadd.f32 %v218_v14, %v188_v7  ;;  %v166_v60 = vsub.f32 %v311_v45, %v375_v47  ;;  %v197_v61 = vmul.f32 %v164_v48, %v164_v48  ;;  %v316_v63 = vunpack.c.h.bf16 %v407_v46  ;;  %p432_p0 = scmp.ne.s32.totalorder %s262_s1, %s431_s18  ;;  %p436_p1 = scmp.lt.s32.totalorder %s262_s1, %s262_s1 }
  0x1a   :  { %v380_v1 = vunpack.c.h.bf16 %v422_v52  ;;  %v167_v2 = vsub.f32 %v312_v51, %v376_v53  ;;  %v198_v3 = vmul.f32 %v165_v54, %v165_v54  ;;  %v319_v5 = vunpack.c.l.bf16 %v408_v58  ;;  %p437_p2 = scmp.lt.s32.totalorder %s435_s19, %s431_s18 }
  0x1b   :  { %v220_v26 = vadd.f32 %v219_v20, %v189_v13  ;;  %v383_v7 = vunpack.c.l.bf16 %v423_v0  ;;  %v168_v8 = vsub.f32 %v315_v57, %v379_v59  ;;  %v199_v9 = vmul.f32 %v166_v60, %v166_v60 }
  0x1c   :  { %v320_v11 = vunpack.c.h.bf16 %v408_v58  ;;  %v384_v13 = vunpack.c.h.bf16 %v423_v0  ;;  %v169_v14 = vsub.f32 %v316_v63, %v380_v1  ;;  %v200_v15 = vmul.f32 %v167_v2, %v167_v2  ;;  %p438_p3 = por %p437_p2, %p436_p1 }
  0x1d   :  { %v221_v32 = vadd.f32 %v220_v26, %v190_v19  ;;  %v323_v17 = vunpack.c.l.bf16 %v409_v6  ;;  %v387_v19 = vunpack.c.l.bf16 %v424_v12  ;;  %v170_v20 = vsub.f32 %v319_v5, %v383_v7 }
  0x1e   :  { %v201_v21 = vmul.f32 %v168_v8, %v168_v8  ;;  %v324_v23 = vunpack.c.h.bf16 %v409_v6  ;;  %v171_v26 = vsub.f32 %v320_v11, %v384_v13  ;;  %v202_v27 = vmul.f32 %v169_v14, %v169_v14  ;;  %p439_p4 = pnand %p438_p3, %p432_p0 }
  0x1f   :  { %v222_v38 = vadd.f32 %v221_v32, %v191_v25  ;;  %v388_v25 = vunpack.c.h.bf16 %v424_v12  ;;  %v327_v29 = vunpack.c.l.bf16 %v410_v18  ;;  %v172_v32 = vsub.f32 %v323_v17, %v387_v19 }
  0x20   :  { %v203_v33 = vmul.f32 %v170_v20, %v170_v20  ;;  %v328_v35 = vunpack.c.h.bf16 %v410_v18  ;;  %v204_v39 = vmul.f32 %v171_v26, %v171_v26  ;;  %v331_v41 = vunpack.c.l.bf16 %v411_v30 }
  0x21   :  { %v223_v44 = vadd.f32 %v222_v38, %v192_v31  ;;  %v391_v31 = vunpack.c.l.bf16 %v425_v24  ;;  %v173_v38 = vsub.f32 %v324_v23, %v388_v25  ;;  %v395_v42 = vunpack.c.l.bf16 %v426_v36 }
  0x22   :  { %v332_v46 = vunpack.c.h.bf16 %v411_v30  ;;  %v396_v47 = vunpack.c.h.bf16 %v426_v36  ;;  %v453_v63 = vmov 0.0  }
  0x23   :  { %v224_v50 = vadd.f32 %v223_v44, %v193_v37  ;;  %v392_v37 = vunpack.c.h.bf16 %v425_v24  ;;  %v205_v44 = vmul.f32 %v172_v32, %v172_v32  ;;  %v176_v51 = vsub.f32 %v331_v41, %v395_v42  ;;  %17 = vst.msk [vmem:[#allocation2] sm:$0x1] %vm16_vm0, %v453_v63 }
  0x24   :  { %v177_v54 = vsub.f32 %v332_v46, %v396_v47 }
  0x25   :  { %v225_v56 = vadd.f32 %v224_v50, %v194_v43  ;;  %v174_v43 = vsub.f32 %v327_v29, %v391_v31  ;;  %v175_v48 = vsub.f32 %v328_v35, %v392_v37  ;;  %v209_v57 = vmul.f32 %v176_v51, %v176_v51 }
  0x26   :  { %v210_v59 = vmul.f32 %v177_v54, %v177_v54 }
  0x27   :  { %v226_v62 = vadd.f32 %v225_v56, %v195_v49  ;;  %v206_v49 = vmul.f32 %v173_v38, %v173_v38  ;;  %v207_v52 = vmul.f32 %v174_v43, %v174_v43 }
  0x29   :  { %v227_v4 = vadd.f32 %v226_v62, %v196_v55  ;;  %v208_v55 = vmul.f32 %v175_v48, %v175_v48 }
  0x2a   :  { %v178_v7 = vld [vmem:[#allocation2] sm:$0x1] }
  0x2b   :  { %v228_v10 = vadd.f32 %v227_v4, %v197_v61 }
  0x2d   :  { %v229_v16 = vadd.f32 %v228_v10, %v198_v3 }
  0x2f   :  { %v230_v22 = vadd.f32 %v229_v16, %v199_v9 }
  0x31   :  { %v231_v28 = vadd.f32 %v230_v22, %v200_v15 }
  0x33   :  { %v232_v34 = vadd.f32 %v231_v28, %v201_v21 }
  0x35   :  { %v233_v40 = vadd.f32 %v232_v34, %v202_v27 }
  0x37   :  { %v234_v45 = vadd.f32 %v233_v40, %v203_v33 }
  0x39   :  { %v235_v50 = vadd.f32 %v234_v45, %v204_v39 }
  0x3b   :  { %v236_v53 = vadd.f32 %v235_v50, %v205_v44 }
  0x3d   :  { %v237_v56 = vadd.f32 %v236_v53, %v206_v49 }
  0x3f   :  { %v238_v58 = vadd.f32 %v237_v56, %v207_v52 }
  0x41   :  { %v239_v60 = vadd.f32 %v238_v58, %v208_v55 }
  0x43   :  { %v240_v61 = vadd.f32 %v239_v60, %v209_v57 }
  0x45   :  { %v241_v62 = vadd.f32 %v240_v61, %v210_v59 }
  0x47   :  { %242 = vadd.xlane.f32.xlu0 %v241_v62 }
  0xd0   :  { %v243_v0 = vpop.xlane.xlu0 %242 }
  0xd1   :  { %v244_v1 = vrot.slane %v243_v0, 4 }
  0xd3   :  { %v245_v2 = vadd.f32 %v244_v1, %v243_v0 }
  0xd5   :  { %v246_v3 = vrot.slane %v245_v2, 2 }
  0xd7   :  { %v247_v4 = vadd.f32 %v246_v3, %v245_v2 }
  0xd9   :  { %v248_v5 = vrot.slane %v247_v4, 1 }
  0xdb   :  { %v249_v6 = vadd.f32 %v248_v5, %v247_v4 }
  0xdd   :  { %427 = vpush %v249_v6 }
 0x10e   :  { %s428_s17 = spop %427 }
 0x10f   :  { %v251_v8 = vstv %s428_s17 }
 0x110   :  { %v252_v9 = vadd.f32 %v251_v8, %v178_v7 }
 0x112   :  { %254 = vst.msk [vmem:[#allocation2] sm:$0x1] %vm16_vm0, %v252_v9 }
 0x113   :  { %442 = shalt.err (!%p439_p4)
}
 0x114   :  { %264 = dma.vmem_to_hbm [thread:$0]  %s262_s1, 16, %s573_s2, [#allocation3]  }
 0x115   :  { %451 = dma.done.wait [#allocation3], 16  }
 0x116   :  { %452 = vsyncadd [#allocation3], 4294967280 }
 0x117   :  { %268 = vsyncpa [#allocation3], 1 }

// kernel: combined_loss.11
= control target key start
LH: loop header
LB: loop body
LE: loop exit
PB: predicated region body
PF: predicated region fallthrough
CT: control target
= control target key end

     0   :  { %s108_s0 = inlined_call_operand.vmem [shape: f32[8,128], index: 0, kind: input, shape index: {}]   ;;  %s109_s1 = inlined_call_operand.vmem [shape: f32[8,128], index: 1, kind: input, shape index: {}]   ;;  %s110_s2 = inlined_call_operand.hbm [shape: f32[1,1], index: 2, kind: output, shape index: {}]  }
   0x1   :  { %v18_v0 = vld [vmem:[%s108_s0] sm:$0xff] }
   0x2   :  { %v19_v1 = vld [vmem:[%s109_s1] sm:$0xff] }
   0x3   :  { %7 = vsyncpa [#allocation3], 0  ;;  %v20_v2 = vmax.f32 %v18_v0, 1e-06  ;;  %v22_v3 = vmax.f32 %v19_v1, 1e-06 }
   0x4   :  { %vm16_vm0 = vcmask 0   ;;  %v80_v8 = vmov 0.0   ;;  %s81_s0 = smov [#allocation2]  }
   0x5   :  { %v21_v4 = vmin.f32 %v20_v2, 0.999999  ;;  %v23_v5 = vmin.f32 %v22_v3, 0.999999  ;;  %17 = vst.msk [vmem:[#allocation2] sm:$0x1] %vm16_vm0, %v80_v8 }
   0x6   :  { %s46_s1 = sshll.u32 %s81_s0, 4  ;;  %s47_s1 = int_to_ptr.vmem [resolvable:$true] %s46_s1 }
   0x7   :  { %v24_v6 = vsub.f32 %v21_v4, %v23_v5  ;;  %s58_s14 = scalar_lea.vmem %s47_s1, 16  ;;  %s62_s15 = scalar_lea.vmem %s47_s1, 32 }
   0x8   :  { %p59_p0 = scmp.ne.s32.totalorder %s47_s1, %s58_s14  ;;  %p63_p1 = scmp.lt.s32.totalorder %s47_s1, %s47_s1 }
   0x9   :  { %v26_v7 = vmul.f32 %v24_v6, %v24_v6  ;;  %p64_p2 = scmp.lt.s32.totalorder %s62_s15, %s58_s14 }
   0xb   :  { %27 = vadd.xlane.f32.xlu0 %v26_v7  ;;  %p65_p3 = por %p64_p2, %p63_p1 }
   0xc   :  { %v25_v16 = vld [vmem:[#allocation2] sm:$0x1] }
   0xd   :  { %p66_p4 = pnand %p65_p3, %p59_p0 }
  0x94   :  { %v28_v9 = vpop.xlane.xlu0 %27 }
  0x95   :  { %v29_v10 = vrot.slane %v28_v9, 4 }
  0x97   :  { %v30_v11 = vadd.f32 %v29_v10, %v28_v9 }
  0x99   :  { %v31_v12 = vrot.slane %v30_v11, 2 }
  0x9b   :  { %v32_v13 = vadd.f32 %v31_v12, %v30_v11 }
  0x9d   :  { %v33_v14 = vrot.slane %v32_v13, 1 }
  0x9f   :  { %v34_v15 = vadd.f32 %v33_v14, %v32_v13 }
  0xa1   :  { %54 = vpush %v34_v15 }
  0xd2   :  { %s55_s13 = spop %54 }
  0xd3   :  { %v36_v17 = vstv %s55_s13 }
  0xd4   :  { %v37_v18 = vadd.f32 %v36_v17, %v25_v16 }
  0xd6   :  { %39 = vst.msk [vmem:[#allocation2] sm:$0x1] %vm16_vm0, %v37_v18 }
  0xd7   :  { %69 = shalt.err (!%p66_p4)
}
  0xd8   :  { %49 = dma.vmem_to_hbm [thread:$0]  %s47_s1, 16, %s110_s2, [#allocation3]  }
  0xd9   :  { %78 = dma.done.wait [#allocation3], 16  }
  0xda   :  { %79 = vsyncadd [#allocation3], 4294967280 }
  0xdb   :  { %53 = vsyncpa [#allocation3], 1 }

// kernel: combined_loss.12
= control target key start
LH: loop header
LB: loop body
LE: loop exit
PB: predicated region body
PF: predicated region fallthrough
CT: control target
= control target key end

     0   :  { %vm52_vm0 = vcmask 130048   ;;  %s1357_s0 = inlined_call_operand.vmem [shape: f32[32,16], index: 0, kind: input, shape index: {}]   ;;  %s1358_s1 = inlined_call_operand.vmem [shape: f32[32,16], index: 1, kind: input, shape index: {}]   ;;  %s1359_s2 = inlined_call_operand.vmem [shape: f32[12,32], index: 2, kind: input, shape index: {}]   ;;  %s1360_s3 = inlined_call_operand.vmem [shape: f32[16,6], index: 3, kind: input, shape index: {}]   ;;  %s1361_s4 = inlined_call_operand.hbm [shape: f32[1,1], index: 4, kind: output, shape index: {}]  }
   0x1   :  { %v1258_v0 = vld [vmem:[%s1360_s3 + $0x8] sm:$0xff]  ;;  %v1263_v1 = vld [vmem:[%s1360_s3] sm:$0xff]  ;;  %v26_v5 = vld [vmem:[%s1357_s0 + $0x10] sm:$0xff] }
   0x2   :  { %v24_v2 = vld [vmem:[%s1357_s0] sm:$0xff]  ;;  %1093 = vmatprep.subr.mxu0 %v1258_v0  ;;  %v25_v4 = vld [vmem:[%s1357_s0 + $0x8] sm:$0xff]  ;;  %v30_v8 = vmax.f32 %v26_v5, 1e-06  ;;  %v27_v10 = vld [vmem:[%s1357_s0 + $0x18] sm:$0xff] }
   0x3   :  { %v28_v3 = vmax.f32 %v24_v2, 1e-06  ;;  %1094 = vmatpush3.msra.mxu0 %v1258_v0  ;;  %v29_v6 = vmax.f32 %v25_v4, 1e-06  ;;  %v37_v7 = vld [vmem:[%s1358_s1 + $0x8] sm:$0xff]  ;;  %v36_v11 = vld [vmem:[%s1358_s1] sm:$0xff] }
   0x4   :  { %1095 = vmatprep.subr.mxu0 %v1263_v1  ;;  %v38_v12 = vld [vmem:[%s1358_s1 + $0x10] sm:$0xff]  ;;  %v34_v14 = vmin.f32 %v30_v8, 0.999999  ;;  %v31_v15 = vmax.f32 %v27_v10, 1e-06 }
   0x5   :  { %v32_v9 = vmin.f32 %v28_v3, 0.999999  ;;  %1096 = vmatpush3.msra.mxu0 %v1263_v1  ;;  %v33_v13 = vmin.f32 %v29_v6, 0.999999  ;;  %v40_v16 = vmax.f32 %v36_v11, 1e-06 }
   0x6   :  { %1114 = vmatprep.subr.mxu0 %v1258_v0  ;;  %v41_v17 = vmax.f32 %v37_v7, 1e-06  ;;  %v42_v18 = vmax.f32 %v38_v12, 1e-06 }
   0x7   :  { %1097 = vmatprep.mubr.msk.f32.mxu0 %vm52_vm0, %v32_v9 }
   0x8   :  { %1098 = vmatmul.mubr.msk.f32.vlgmr.msra.gmra.mxu0 %vm52_vm0, %v33_v13 }
   0x9   :  { %9 = vsyncpa [#allocation3], 0  ;;  %1115 = vmatpush3.msra.mxu0 %v1258_v0  ;;  %1100 = vmatprep.mubr.msk.f32.mxu0 %vm52_vm0, %v34_v14  ;;  %v35_v19 = vmin.f32 %v31_v15, 0.999999  ;;  %v44_v20 = vmin.f32 %v40_v16, 0.999999  ;;  %v404_v26 = vmul.f32 %v32_v9, %v32_v9  ;;  %v405_v27 = vmul.f32 %v33_v13, %v33_v13 }
   0xa   :  { %v39_v21 = vld [vmem:[%s1358_s1 + $0x18] sm:$0xff]  ;;  %1116 = vmatprep.subr.mxu0 %v1263_v1  ;;  %v45_v22 = vmin.f32 %v41_v17, 0.999999  ;;  %v46_v24 = vmin.f32 %v42_v18, 0.999999  ;;  %v406_v28 = vmul.f32 %v34_v14, %v34_v14  ;;  %v1332_v38 = vld [vmem:[%s1359_s2] sm:$0xff] }
   0xb   :  { %1117 = vmatpush3.msra.mxu0 %v1263_v1  ;;  %v43_v23 = vmax.f32 %v39_v21, 1e-06  ;;  %v407_v29 = vmul.f32 %v35_v19, %v35_v19  ;;  %v584_v30 = vmul.f32 %v44_v20, %v44_v20  ;;  %v764_v34 = vmul.f32 %v44_v20, %v32_v9  ;;  %v49_v45 = vld [vmem:[%s1359_s2 + $0x8] sm:$0xf]  ;;  %s1229_s2 = smov [#allocation2]  }
   0xc   :  { %1101 = vmatmul.mubr.msk.f32.gmra.mxu0 %vm52_vm0, %v35_v19  ;;  %1135 = vmatprep.subr.mxu0 %v1258_v0  ;;  %v585_v31 = vmul.f32 %v45_v22, %v45_v22  ;;  %v586_v32 = vmul.f32 %v46_v24, %v46_v24  ;;  %v765_v35 = vmul.f32 %v45_v22, %v33_v13  ;;  %vm150_vm1 = vcmask 261120   ;;  %s995_s10 = sshll.u32 %s1229_s2, 4  ;;  %s996_s10 = int_to_ptr.vmem [resolvable:$true] %s995_s10 }
   0xd   :  { %1118 = vmatprep.mubr.msk.f32.mxu0 %vm52_vm0, %v44_v20  ;;  %v47_v25 = vmin.f32 %v43_v23, 0.999999  ;;  %v766_v36 = vmul.f32 %v46_v24, %v34_v14  ;;  %1111 = vmatprep.mubr.msk.f32.mxu1 %vm150_vm1, %v1332_v38  ;;  %vm971_vm2 = vcmask 48128   ;;  %vm973_vm3 = vcmask 44032   ;;  %s1206_s12 = scalar_lea.vmem %s996_s10, 16  ;;  %s1210_s13 = scalar_lea.vmem %s996_s10, 32 }
   0xe   :  { %vm22_vm4 = vcmask 0   ;;  %p1207_p0 = scmp.ne.s32.totalorder %s996_s10, %s1206_s12  ;;  %p1211_p1 = scmp.lt.s32.totalorder %s996_s10, %s996_s10 }
   0xf   :  { %v587_v33 = vmul.f32 %v47_v25, %v47_v25  ;;  %v767_v37 = vmul.f32 %v47_v25, %v35_v19  ;;  %p1212_p2 = scmp.lt.s32.totalorder %s1210_s13, %s1206_s12 }
  0x10   :  { %1119 = vmatmul.mubr.msk.f32.vlgmr.msra.gmra.mxu0 %vm52_vm0, %v45_v22 }
  0x11   :  { %1136 = vmatpush3.msra.mxu0 %v1258_v0  ;;  %1121 = vmatprep.mubr.msk.f32.mxu0 %vm52_vm0, %v46_v24  ;;  %p1213_p3 = por %p1212_p2, %p1211_p1 }
  0x12   :  { %1137 = vmatprep.subr.mxu0 %v1263_v1 }
  0x13   :  { %1138 = vmatpush3.msra.mxu0 %v1263_v1  ;;  %p1214_p4 = pnand %p1213_p3, %p1207_p0 }
  0x14   :  { %1122 = vmatmul.mubr.msk.f32.gmra.mxu0 %vm52_vm0, %v47_v25  ;;  %1156 = vmatprep.subr.mxu0 %v1258_v0 }
  0x15   :  { %1139 = vmatprep.mubr.msk.f32.mxu0 %vm52_vm0, %v404_v26 }
  0x18   :  { %1140 = vmatmul.mubr.msk.f32.vlgmr.msra.gmra.mxu0 %vm52_vm0, %v405_v27 }
  0x19   :  { %1157 = vmatpush3.msra.mxu0 %v1258_v0  ;;  %1142 = vmatprep.mubr.msk.f32.mxu0 %vm52_vm0, %v406_v28 }
  0x1a   :  { %1158 = vmatprep.subr.mxu0 %v1263_v1 }
  0x1b   :  { %1159 = vmatpush3.msra.mxu0 %v1263_v1 }
  0x1c   :  { %1143 = vmatmul.mubr.msk.f32.gmra.mxu0 %vm52_vm0, %v407_v29  ;;  %1177 = vmatprep.subr.mxu0 %v1258_v0 }
  0x1d   :  { %1160 = vmatprep.mubr.msk.f32.mxu0 %vm52_vm0, %v584_v30 }
  0x20   :  { %1161 = vmatmul.mubr.msk.f32.vlgmr.msra.gmra.mxu0 %vm52_vm0, %v585_v31 }
  0x21   :  { %1163 = vmatprep.mubr.msk.f32.mxu0 %vm52_vm0, %v586_v32  ;;  %1178 = vmatpush3.msra.mxu0 %v1258_v0 }
  0x22   :  { %1179 = vmatprep.subr.mxu0 %v1263_v1 }
  0x23   :  { %1180 = vmatpush3.msra.mxu0 %v1263_v1 }
  0x24   :  { %1164 = vmatmul.mubr.msk.f32.gmra.mxu0 %vm52_vm0, %v587_v33 }
  0x25   :  { %1181 = vmatprep.mubr.msk.f32.mxu0 %vm52_vm0, %v764_v34 }
  0x28   :  { %1182 = vmatmul.mubr.msk.f32.vlgmr.msra.gmra.mxu0 %vm52_vm0, %v765_v35 }
  0x29   :  { %1184 = vmatprep.mubr.msk.f32.mxu0 %vm52_vm0, %v766_v36 }
  0x2c   :  { %1185 = vmatmul.mubr.msk.f32.gmra.mxu0 %vm52_vm0, %v767_v37 }
  0xc8   :  { %v1099_v39 = vpop.f32.mrf.mxu0 }
  0xca   :  { %v131_v40 = vpop.f32.mrf.mxu0 }
  0xcc   :  { %v1102_v41 = vpop.f32.mrf.mxu0 }
  0xcd   :  { %1103 = vmatprep.subr.mxu1 %v1102_v41 }
  0xce   :  { %v141_v42 = vpop.f32.mrf.mxu0  ;;  %1104 = vmatpush3.msra.mxu1 %v1102_v41 }
  0xcf   :  { %1105 = vmatprep.subr.mxu1 %v141_v42 }
  0xd0   :  { %1106 = vmatpush3.msra.mxu1 %v141_v42  ;;  %v1120_v43 = vpop.f32.mrf.mxu0 }
  0xd1   :  { %1107 = vmatprep.subr.mxu1 %v1099_v39 }
  0xd2   :  { %1108 = vmatpush3.msra.mxu1 %v1099_v39  ;;  %v310_v44 = vpop.f32.mrf.mxu0 }
  0xd3   :  { %1109 = vmatprep.subr.mxu1 %v131_v40 }
  0xd4   :  { %1110 = vmatpush3.msra.mxu1 %v131_v40  ;;  %v1123_v46 = vpop.f32.mrf.mxu0 }
  0xd5   :  { %1112 = vmatmul.mubr.msk.f32.vlgmr.msra.gmra.mxu1 %vm150_vm1, %v49_v45  ;;  %1124 = vmatprep.subr.mxu1 %v1123_v46 }
  0xd6   :  { %v320_v47 = vpop.f32.mrf.mxu0  ;;  %1125 = vmatpush3.msra.mxu1 %v1123_v46  ;;  %1132 = vmatprep.mubr.msk.f32.mxu1 %vm150_vm1, %v1332_v38 }
  0xd7   :  { %1126 = vmatprep.subr.mxu1 %v320_v47 }
  0xd8   :  { %1127 = vmatpush3.msra.mxu1 %v320_v47  ;;  %v1141_v48 = vpop.f32.mrf.mxu0  ;;  %v1228_v47 = vmov 0.0  }
  0xd9   :  { %1128 = vmatprep.subr.mxu1 %v1120_v43  ;;  %23 = vst.msk [vmem:[#allocation2] sm:$0x1] %vm22_vm4, %v1228_v47 }
  0xda   :  { %1129 = vmatpush3.msra.mxu1 %v1120_v43  ;;  %v486_v49 = vpop.f32.mrf.mxu0 }
  0xdb   :  { %1130 = vmatprep.subr.mxu1 %v310_v44 }
  0xdc   :  { %1131 = vmatpush3.msra.mxu1 %v310_v44  ;;  %v1144_v50 = vpop.f32.mrf.mxu0 }
  0xdd   :  { %1133 = vmatmul.mubr.msk.f32.vlgmr.msra.gmra.mxu1 %vm150_vm1, %v49_v45  ;;  %1145 = vmatprep.subr.mxu1 %v1144_v50 }
  0xde   :  { %v496_v51 = vpop.f32.mrf.mxu0  ;;  %1146 = vmatpush3.msra.mxu1 %v1144_v50  ;;  %1153 = vmatprep.mubr.msk.f32.mxu1 %vm150_vm1, %v1332_v38 }
  0xdf   :  { %1147 = vmatprep.subr.mxu1 %v496_v51 }
  0xe0   :  { %1148 = vmatpush3.msra.mxu1 %v496_v51  ;;  %v1162_v52 = vpop.f32.mrf.mxu0 }
  0xe1   :  { %1149 = vmatprep.subr.mxu1 %v1141_v48 }
  0xe2   :  { %1150 = vmatpush3.msra.mxu1 %v1141_v48  ;;  %v666_v53 = vpop.f32.mrf.mxu0 }
  0xe3   :  { %1151 = vmatprep.subr.mxu1 %v486_v49 }
  0xe4   :  { %1152 = vmatpush3.msra.mxu1 %v486_v49  ;;  %v1165_v54 = vpop.f32.mrf.mxu0 }
  0xe5   :  { %1154 = vmatmul.mubr.msk.f32.vlgmr.msra.gmra.mxu1 %vm150_vm1, %v49_v45  ;;  %1166 = vmatprep.subr.mxu1 %v1165_v54 }
  0xe6   :  { %v676_v55 = vpop.f32.mrf.mxu0  ;;  %1167 = vmatpush3.msra.mxu1 %v1165_v54  ;;  %1174 = vmatprep.mubr.msk.f32.mxu1 %vm150_vm1, %v1332_v38 }
  0xe7   :  { %1168 = vmatprep.subr.mxu1 %v676_v55 }
  0xe8   :  { %1169 = vmatpush3.msra.mxu1 %v676_v55  ;;  %v1183_v56 = vpop.f32.mrf.mxu0  ;;  %v970_v55 = vld [vmem:[#allocation2] sm:$0x1] }
  0xe9   :  { %1170 = vmatprep.subr.mxu1 %v1162_v52 }
  0xea   :  { %1171 = vmatpush3.msra.mxu1 %v1162_v52  ;;  %v846_v57 = vpop.f32.mrf.mxu0 }
  0xeb   :  { %1172 = vmatprep.subr.mxu1 %v666_v53 }
  0xec   :  { %1173 = vmatpush3.msra.mxu1 %v666_v53  ;;  %v1186_v58 = vpop.f32.mrf.mxu0 }
  0xed   :  { %1175 = vmatmul.mubr.msk.f32.vlgmr.msra.gmra.mxu1 %vm150_vm1, %v49_v45  ;;  %1187 = vmatprep.subr.mxu1 %v1186_v58 }
  0xee   :  { %v856_v59 = vpop.f32.mrf.mxu0  ;;  %1188 = vmatpush3.msra.mxu1 %v1186_v58  ;;  %1195 = vmatprep.mubr.msk.f32.mxu1 %vm150_vm1, %v1332_v38 }
  0xef   :  { %1189 = vmatprep.subr.mxu1 %v856_v59 }
  0xf0   :  { %1190 = vmatpush3.msra.mxu1 %v856_v59 }
  0xf1   :  { %1191 = vmatprep.subr.mxu1 %v1183_v56 }
  0xf2   :  { %1192 = vmatpush3.msra.mxu1 %v1183_v56 }
  0xf3   :  { %1193 = vmatprep.subr.mxu1 %v846_v57 }
  0xf4   :  { %1194 = vmatpush3.msra.mxu1 %v846_v57 }
  0xf5   :  { %1196 = vmatmul.mubr.msk.f32.vlgmr.msra.gmra.mxu1 %vm150_vm1, %v49_v45 }
 0x195   :  { %v1113_v60 = vpop.f32.mrf.mxu1 }
 0x196   :  { %v581_v3 = vmul.f32 %v1113_v60, %v1113_v60  ;;  %v945_v28 = vmul.f32 2.0, %v1113_v60 }
 0x197   :  { %v223_v61 = vpop.f32.mrf.mxu1 }
 0x198   :  { %v580_v7 = vmul.f32 %v223_v61, %v223_v61  ;;  %v944_v30 = vmul.f32 2.0, %v223_v61 }
 0x19d   :  { %v1134_v62 = vpop.f32.mrf.mxu1 }
 0x19e   :  { %v761_v1 = vmul.f32 %v1134_v62, %v1134_v62  ;;  %v941_v21 = vmul.f32 %v1134_v62, %v1113_v60  ;;  %v947_v31 = vmul.f32 %v1134_v62, %v945_v28 }
 0x19f   :  { %v395_v63 = vpop.f32.mrf.mxu1 }
 0x1a0   :  { %v760_v4 = vmul.f32 %v395_v63, %v395_v63  ;;  %v951_v9 = vadd.f32 %v761_v1, %v581_v3  ;;  %v940_v25 = vmul.f32 %v395_v63, %v223_v61  ;;  %v946_v33 = vmul.f32 %v944_v30, %v395_v63 }
 0x1a1   :  { %v949_v35 = vadd.f32 0.0001, %v947_v31 }
 0x1a2   :  { %v950_v14 = vadd.f32 %v760_v4, %v580_v7  ;;  %v953_v15 = vadd.f32 0.0001, %v951_v9  ;;  %v948_v37 = vadd.f32 0.0001, %v946_v33 }
 0x1a4   :  { %v952_v19 = vadd.f32 0.0001, %v950_v14 }
 0x1a5   :  { %v1155_v0 = vpop.f32.mrf.mxu1 }
 0x1a6   :  { %v583_v6 = vsub.f32 %v1155_v0, %v581_v3 }
 0x1a7   :  { %v571_v2 = vpop.f32.mrf.mxu1 }
 0x1a8   :  { %v582_v11 = vsub.f32 %v571_v2, %v580_v7 }
 0x1ad   :  { %v1176_v5 = vpop.f32.mrf.mxu1 }
 0x1ae   :  { %v763_v8 = vsub.f32 %v1176_v5, %v761_v1 }
 0x1af   :  { %v751_v10 = vpop.f32.mrf.mxu1 }
 0x1b0   :  { %v959_v12 = vadd.f32 %v763_v8, %v583_v6  ;;  %v762_v13 = vsub.f32 %v751_v10, %v760_v4 }
 0x1b2   :  { %v961_v16 = vadd.f32 0.0009, %v959_v12  ;;  %v958_v17 = vadd.f32 %v762_v13, %v582_v11 }
 0x1b4   :  { %v965_v18 = vmul.f32 %v961_v16, %v953_v15  ;;  %v960_v20 = vadd.f32 0.0009, %v958_v17 }
 0x1b5   :  { %v1197_v22 = vpop.f32.mrf.mxu1 }
 0x1b6   :  { %1202 = vrcp.f32 %v965_v18  ;;  %v964_v23 = vmul.f32 %v960_v20, %v952_v19  ;;  %v943_v24 = vsub.f32 %v1197_v22, %v941_v21 }
 0x1b7   :  { %v931_v26 = vpop.f32.mrf.mxu1 }
 0x1b8   :  { %1204 = vrcp.f32 %v964_v23  ;;  %v942_v27 = vsub.f32 %v931_v26, %v940_v25  ;;  %v955_v29 = vmul.f32 2.0, %v943_v24 }
 0x1ba   :  { %v954_v32 = vmul.f32 2.0, %v942_v27  ;;  %v957_v34 = vadd.f32 0.0009, %v955_v29 }
 0x1bc   :  { %v956_v36 = vadd.f32 0.0009, %v954_v32  ;;  %v963_v38 = vmul.f32 %v957_v34, %v949_v35 }
 0x1be   :  { %v962_v40 = vmul.f32 %v956_v36, %v948_v37 }
 0x1c3   :  { %v1203_v39 = vpop.eup %1202 }
 0x1c4   :  { %v969_v41 = vmul.f32 %v1203_v39, %v963_v38 }
 0x1c5   :  { %v1205_v42 = vpop.eup %1204 }
 0x1c6   :  { %v968_v43 = vmul.f32 %v1205_v42, %v962_v40  ;;  %v974_v45 = vsel %vm973_vm3, %v969_v41, 0.0 }
 0x1c8   :  { %v972_v44 = vsel %vm971_vm2, %v968_v43, 0.0 }
 0x1c9   :  { %v975_v46 = vadd.f32 %v974_v45, %v972_v44 }
 0x1cb   :  { %976 = vadd.xlane.f32.xlu0 %v975_v46 }
 0x254   :  { %v977_v48 = vpop.xlane.xlu0 %976 }
 0x255   :  { %v978_v49 = vrot.slane %v977_v48, 4 }
 0x257   :  { %v979_v50 = vadd.f32 %v978_v49, %v977_v48 }
 0x259   :  { %v980_v51 = vrot.slane %v979_v50, 2 }
 0x25b   :  { %v981_v52 = vadd.f32 %v980_v51, %v979_v50 }
 0x25d   :  { %v982_v53 = vrot.slane %v981_v52, 1 }
 0x25f   :  { %v983_v54 = vadd.f32 %v982_v53, %v981_v52 }
 0x261   :  { %1198 = vpush %v983_v54 }
 0x292   :  { %s1199_s11 = spop %1198 }
 0x293   :  { %v985_v56 = vstv %s1199_s11 }
 0x294   :  { %v986_v57 = vadd.f32 %v985_v56, %v970_v55 }
 0x296   :  { %988 = vst.msk [vmem:[#allocation2] sm:$0x1] %vm22_vm4, %v986_v57 }
 0x297   :  { %1217 = shalt.err (!%p1214_p4)
}
 0x298   :  { %998 = dma.vmem_to_hbm [thread:$0]  %s996_s10, 16, %s1361_s4, [#allocation3]  }
 0x299   :  { %1226 = dma.done.wait [#allocation3], 16  }
 0x29a   :  { %1227 = vsyncadd [#allocation3], 4294967280 }
 0x29b   :  { %1002 = vsyncpa [#allocation3], 1 }

</bundles_post_ra>
